<compile_context>
chip_gen: v7x
topology: tpu7x:2x2x1
jax: 0.10.0
libtpu: 0.0.40
codegen_flags: <defaults>
</compile_context>

<pallas_src>
import functools
import numpy as np
import jax
import jax.numpy as jnp
from jax.experimental import pallas as pl
from jax.experimental.pallas import tpu as pltpu

BOARD = 3
N = BOARD * BOARD            # 9 cells
ROUNDS = 4
REGUL_WEIGHT = 0.01
OPPONENT_WEIGHT = 5.0
# forward defaults: noise_scale=1, mul_noise_scale=0, op_noise_scale=0,
# outer_noise_scale=1, outer_noise_weight=0  -> only the inner gumbel survives.


# --------------------------------------------------------------------------
# Fused kernel: whole game (4 rounds x 2 players) for one batch tile.
# Layout: cells on sublanes, batch on lanes.
# --------------------------------------------------------------------------
def _hexgame_kernel(g_ref,
                    w1a0_ref, w1a1_ref, w1a2_ref, w1a3_ref, b1a_ref, w2a_ref, b2a_ref,
                    w1b0_ref, w1b1_ref, w1b2_ref, w1b3_ref, b1b_ref, w2b_ref, b2b_ref,
                    out_ref):
    f32 = jnp.float32
    tb = g_ref.shape[2]                       # batch tile (lanes)

    model1 = (w1a0_ref[...], w1a1_ref[...], w1a2_ref[...], w1a3_ref[...],
              b1a_ref[...], w2a_ref[...], b2a_ref[...])
    model2 = (w1b0_ref[...], w1b1_ref[...], w1b2_ref[...], w1b3_ref[...],
              b1b_ref[...], w2b_ref[...], b2b_ref[...])

    row = jax.lax.broadcasted_iota(jnp.int32, (N, tb), 0)

    def conv_net(our, opp, prev_move, params):
        # ConvSimple forward as dense matmuls in the (features, batch) layout;
        # the 4 input channels are [our, opp, empty, opponent's last move].
        w_our, w_opp, w_emp, w_mov, b1, w2, b2 = params
        empty = 1.0 - our - opp
        h = (jnp.dot(w_our, our, preferred_element_type=f32)
             + jnp.dot(w_opp, opp, preferred_element_type=f32)
             + jnp.dot(w_emp, empty, preferred_element_type=f32)
             + jnp.dot(w_mov, prev_move, preferred_element_type=f32)
             + b1)
        h = jnp.maximum(h, 0.0)
        return jnp.dot(w2, h, preferred_element_type=f32) + b2

    def win_reward(p):
        c = lambda i: p[i:i + 1, :]                       # (1, tb) sublane row
        return (c(0) * c(1) * c(2) + c(3) * c(4) * c(5) + c(6) * c(7) * c(8)
                + c(0) * c(3) * c(6) + c(1) * c(4) * c(7) + c(2) * c(5) * c(8)
                + c(0) * c(4) * c(8) + c(2) * c(4) * c(6))

    def win_loss(p):
        c = lambda i: p[i:i + 1, :]
        line = lambda a, b, d: jnp.exp((c(a) + c(b) + c(d) - float(BOARD)) * 2.0)
        return (line(0, 1, 2) + line(3, 4, 5) + line(6, 7, 8)
                + line(0, 3, 6) + line(1, 4, 7) + line(2, 5, 8)
                + line(0, 4, 8) + line(2, 4, 6))

    def half_step(params, g, our, opp, prev_opp_move, our_wins, opp_wins):
        logits = conv_net(our, opp, prev_opp_move, params)          # (9, tb)
        occupied = our + opp
        # calc_regul per sample (batch mean taken outside the kernel)
        regul = jnp.sum(logits * logits * (1.0 - occupied), axis=0, keepdims=True)

        # randomized_rounding: inner_noise_scale == 1 (mul_noise_scale == 0);
        # the outer-noise branch has weight 0 and is dropped entirely.
        z = logits + g
        zmax = jnp.max(z, axis=0, keepdims=True)
        ez = jnp.exp(z - zmax)
        y_soft = ez * pl.reciprocal(jnp.sum(ez, axis=0, keepdims=True), approx=True)
        maxv = jnp.max(y_soft, axis=0, keepdims=True)
        idx = jnp.min(jnp.where(y_soft == maxv, row, N), axis=0, keepdims=True)
        y_hard = (row == idx).astype(f32)
        # Straight-through forward value (== y_hard).
        # TODO(synk): the .detach() straight-through backward estimator is not
        # representable in this forward-only kernel.
        move = y_hard - y_soft + y_soft

        game_over = our_wins + opp_wins          # wins *before* this move
        move = move * (1.0 - game_over)
        move = move * (1.0 - occupied)           # remaining_probs
        new_our = our + move
        reward = win_reward(new_our)
        new_wins = jnp.maximum(our_wins, reward)
        return move, new_our, new_wins, regul, reward

    zeros9 = jnp.zeros((N, tb), f32)
    zeros1 = jnp.zeros((1, tb), f32)
    p1, p2 = zeros9, zeros9
    move1, move2 = zeros9, zeros9
    p1_wins, p2_wins = zeros1, zeros1
    loss1, loss2 = zeros1, zeros1
    our_win_reward, op_win_reward = zeros1, zeros1

    # TODO(synk): move_order / win_time / reward_weight and the tensorboard /
    # numpy logging paths never affect the returned losses and are omitted.
    for step in range(ROUNDS):
        move1, p1, p1_wins, regul1, our_win_reward = half_step(
            model1, g_ref[2 * step], p1, p2, move2, p1_wins, p2_wins)
        move2, p2, p2_wins, regul2, op_win_reward = half_step(
            model2, g_ref[2 * step + 1], p2, p1, move1, p2_wins, p1_wins)
        w = REGUL_WEIGHT / (step + 1)
        loss1 = loss1 + regul1 * w
        loss2 = loss2 + regul2 * w

    loss1 = loss1 - win_loss(p1) + OPPONENT_WEIGHT * op_win_reward
    loss2 = loss2 - win_loss(p2) + OPPONENT_WEIGHT * our_win_reward

    out_ref[0:1, :] = loss1
    out_ref[1:2, :] = loss2


# --------------------------------------------------------------------------
# Glue: conv-weight -> dense-matrix construction, param init, gumbel sampling
# --------------------------------------------------------------------------
def conv_to_dense(w, b):
    """w: (C_out, C_in, 3, 3), b: (C_out,) -> dense W (C_in*9, C_out*9), bias (1, C_out*9)
    equivalent to nn.Conv2d(padding=1) applied to a 3x3 board in NCHW layout."""
    c_out, c_in, kh, kw = w.shape
    W = np.zeros((c_in * N, c_out * N), dtype=np.float32)
    for co in range(c_out):
        for ci in range(c_in):
            for oi in range(BOARD):
                for oj in range(BOARD):
                    for di in range(kh):
                        for dj in range(kw):
                            ii, jj = oi + di - 1, oj + dj - 1
                            if 0 <= ii < BOARD and 0 <= jj < BOARD:
                                W[ci * N + ii * BOARD + jj,
                                  co * N + oi * BOARD + oj] += w[co, ci, di, dj]
    Bv = np.zeros((1, c_out * N), dtype=np.float32)
    for co in range(c_out):
        Bv[0, co * N:(co + 1) * N] = b[co]
    return W, Bv


def init_conv_simple(key, feature_maps, in_ch=4, out_ch=1):
    # TODO(synk): ConvSimple's definition is absent from the source; assumed to
    # be conv3x3(pad=1) -> ReLU -> conv3x3(pad=1) per its constructor args.
    k1, k2, k3, k4 = jax.random.split(key, 4)
    bound1 = 1.0 / np.sqrt(in_ch * 9)
    w1 = np.asarray(jax.random.uniform(k1, (feature_maps, in_ch, 3, 3), jnp.float32, -bound1, bound1))
    b1 = np.asarray(jax.random.uniform(k2, (feature_maps,), jnp.float32, -bound1, bound1))
    bound2 = 1.0 / np.sqrt(feature_maps * 9)
    w2 = np.asarray(jax.random.uniform(k3, (out_ch, feature_maps, 3, 3), jnp.float32, -bound2, bound2))
    b2 = np.asarray(jax.random.uniform(k4, (out_ch,), jnp.float32, -bound2, bound2))

    W1, B1 = conv_to_dense(w1, b1)          # (36, F*9), (1, F*9)
    W2, B2 = conv_to_dense(w2, b2)          # (F*9, 9), (1, 9)
    W1T = W1.T                              # (F*9, 36) -> split per input channel
    w1_per_channel = tuple(jnp.asarray(np.ascontiguousarray(W1T[:, c * N:(c + 1) * N]))
                           for c in range(in_ch))
    return (*w1_per_channel,
            jnp.asarray(B1.T),              # (F*9, 1)
            jnp.asarray(np.ascontiguousarray(W2.T)),   # (9, F*9)
            jnp.asarray(B2.T))              # (9, 1)


def sample_gumbel(key, shape, eps=1e-20):
    u = jax.random.uniform(key, shape, jnp.float32, 0.0, 1.0)
    return -jnp.log(-jnp.log(u + eps) + eps)


def _pick_batch_tile(b):
    # Big enough to amortize per-step overhead, small enough that the hidden
    # activation (feature_maps*9, tile) f32 stays well inside scoped VMEM on
    # v5e/v6e/v7x even at feature_maps=256.
    for tb in (512, 256, 128):
        if b % tb == 0:
            return tb
    return b


# --------------------------------------------------------------------------
# HexGame.forward (train_player_id, player1_random_prob=0, rounding=False,
# training=True, global_step=0) -- logging branches skipped.
# --------------------------------------------------------------------------
def hexgame_forward(train_player_id, params_player, params_fixed, key, batch_size):
    if train_player_id == 0:
        model1, model2 = params_player, params_fixed
    else:
        model1, model2 = params_fixed, params_player
    # TODO(synk): host-side random model_pool choice / random_move branch
    # (probability 0 here) have no Pallas equivalent and are skipped.

    b = batch_size
    tb = _pick_batch_tile(b)
    g = sample_gumbel(key, (ROUNDS * 2, N, b))     # inner gumbel only

    def full_spec(arr):
        # whole array, VMEM-resident across all batch tiles
        return pl.BlockSpec(arr.shape, lambda i: (0,) * arr.ndim)

    grid_spec = pltpu.PrefetchScalarGridSpec(
        num_scalar_prefetch=0,
        grid=(b // tb,),
        in_specs=[pl.BlockSpec((ROUNDS * 2, N, tb), lambda i: (0, 0, i))]
                + [full_spec(a) for a in model1]
                + [full_spec(a) for a in model2],
        out_specs=pl.BlockSpec((2, tb), lambda i: (0, i)),
    )

    out = pl.pallas_call(
        _hexgame_kernel,
        out_shape=jax.ShapeDtypeStruct((2, b), jnp.float32),
        grid_spec=grid_spec,
        compiler_params=pltpu.CompilerParams(
            dimension_semantics=("parallel",)),
    )(g, *model1, *model2)

    total_loss1 = jnp.mean(out[0])
    total_loss2 = jnp.mean(out[1])
    return total_loss1, total_loss2


if __name__ == "__main__":
    batch_size = 128        # module default batch; exactly one 128-lane tile
    feature_maps = 32       # small stand-in for the module default 256

    root = jax.random.PRNGKey(0)
    kp, kf, kfwd = jax.random.split(root, 3)
    params_player = init_conv_simple(kp, feature_maps)
    params_fixed = init_conv_simple(kf, feature_maps)

    fwd = jax.jit(functools.partial(hexgame_forward, 0, batch_size=batch_size))
    loss1, loss2 = fwd(params_player, params_fixed, kfwd)
    jax.block_until_ready((loss1, loss2))
    assert jnp.isfinite(loss1) and jnp.isfinite(loss2)
    print("KERNEL_OK")
</pallas_src>

<mosaic_0001>
module attributes {stable_mosaic.version = 11 : i64} {
  func.func @_hexgame_kernel(%arg0: i32, %arg1: memref<8x9x128xf32, #tpu.memory_space<vmem>>, %arg2: memref<288x9xf32, #tpu.memory_space<vmem>>, %arg3: memref<288x9xf32, #tpu.memory_space<vmem>>, %arg4: memref<288x9xf32, #tpu.memory_space<vmem>>, %arg5: memref<288x9xf32, #tpu.memory_space<vmem>>, %arg6: memref<288x1xf32, #tpu.memory_space<vmem>>, %arg7: memref<9x288xf32, #tpu.memory_space<vmem>>, %arg8: memref<9x1xf32, #tpu.memory_space<vmem>>, %arg9: memref<288x9xf32, #tpu.memory_space<vmem>>, %arg10: memref<288x9xf32, #tpu.memory_space<vmem>>, %arg11: memref<288x9xf32, #tpu.memory_space<vmem>>, %arg12: memref<288x9xf32, #tpu.memory_space<vmem>>, %arg13: memref<288x1xf32, #tpu.memory_space<vmem>>, %arg14: memref<9x288xf32, #tpu.memory_space<vmem>>, %arg15: memref<9x1xf32, #tpu.memory_space<vmem>>, %arg16: memref<2x128xf32, #tpu.memory_space<vmem>>) attributes {dimension_semantics = [#tpu.dimension_semantics<parallel>], iteration_bounds = array<i64: 1>, scalar_prefetch = 0 : i64, scratch_operands = 0 : i64, tpu.core_type = #tpu.core_type<tc>, window_params = [{transform_indices = @transform_0, window_bounds = array<i64: 8, 9, 128>}, {pipeline_mode = #tpu.pipeline_mode<synchronous>, transform_indices = @transform_1, window_bounds = array<i64: 288, 9>}, {pipeline_mode = #tpu.pipeline_mode<synchronous>, transform_indices = @transform_2, window_bounds = array<i64: 288, 9>}, {pipeline_mode = #tpu.pipeline_mode<synchronous>, transform_indices = @transform_3, window_bounds = array<i64: 288, 9>}, {pipeline_mode = #tpu.pipeline_mode<synchronous>, transform_indices = @transform_4, window_bounds = array<i64: 288, 9>}, {pipeline_mode = #tpu.pipeline_mode<synchronous>, transform_indices = @transform_5, window_bounds = array<i64: 288, 1>}, {pipeline_mode = #tpu.pipeline_mode<synchronous>, transform_indices = @transform_6, window_bounds = array<i64: 9, 288>}, {pipeline_mode = #tpu.pipeline_mode<synchronous>, transform_indices = @transform_7, window_bounds = array<i64: 9, 1>}, {pipeline_mode = #tpu.pipeline_mode<synchronous>, transform_indices = @transform_8, window_bounds = array<i64: 288, 9>}, {pipeline_mode = #tpu.pipeline_mode<synchronous>, transform_indices = @transform_9, window_bounds = array<i64: 288, 9>}, {pipeline_mode = #tpu.pipeline_mode<synchronous>, transform_indices = @transform_10, window_bounds = array<i64: 288, 9>}, {pipeline_mode = #tpu.pipeline_mode<synchronous>, transform_indices = @transform_11, window_bounds = array<i64: 288, 9>}, {pipeline_mode = #tpu.pipeline_mode<synchronous>, transform_indices = @transform_12, window_bounds = array<i64: 288, 1>}, {pipeline_mode = #tpu.pipeline_mode<synchronous>, transform_indices = @transform_13, window_bounds = array<i64: 9, 288>}, {pipeline_mode = #tpu.pipeline_mode<synchronous>, transform_indices = @transform_14, window_bounds = array<i64: 9, 1>}, {transform_indices = @transform_15, window_bounds = array<i64: 2, 128>}]} {
    %c0 = arith.constant 0 : index
    %c0_0 = arith.constant 0 : index
    %0 = vector.load %arg2[%c0, %c0_0] : memref<288x9xf32, #tpu.memory_space<vmem>>, vector<288x9xf32>
    %c0_1 = arith.constant 0 : index
    %c0_2 = arith.constant 0 : index
    %1 = vector.load %arg3[%c0_1, %c0_2] : memref<288x9xf32, #tpu.memory_space<vmem>>, vector<288x9xf32>
    %c0_3 = arith.constant 0 : index
    %c0_4 = arith.constant 0 : index
    %2 = vector.load %arg4[%c0_3, %c0_4] : memref<288x9xf32, #tpu.memory_space<vmem>>, vector<288x9xf32>
    %c0_5 = arith.constant 0 : index
    %c0_6 = arith.constant 0 : index
    %3 = vector.load %arg5[%c0_5, %c0_6] : memref<288x9xf32, #tpu.memory_space<vmem>>, vector<288x9xf32>
    %c0_7 = arith.constant 0 : index
    %c0_8 = arith.constant 0 : index
    %4 = vector.load %arg6[%c0_7, %c0_8] : memref<288x1xf32, #tpu.memory_space<vmem>>, vector<288x1xf32>
    %c0_9 = arith.constant 0 : index
    %c0_10 = arith.constant 0 : index
    %5 = vector.load %arg7[%c0_9, %c0_10] : memref<9x288xf32, #tpu.memory_space<vmem>>, vector<9x288xf32>
    %c0_11 = arith.constant 0 : index
    %c0_12 = arith.constant 0 : index
    %6 = vector.load %arg8[%c0_11, %c0_12] : memref<9x1xf32, #tpu.memory_space<vmem>>, vector<9x1xf32>
    %c0_13 = arith.constant 0 : index
    %c0_14 = arith.constant 0 : index
    %7 = vector.load %arg9[%c0_13, %c0_14] : memref<288x9xf32, #tpu.memory_space<vmem>>, vector<288x9xf32>
    %c0_15 = arith.constant 0 : index
    %c0_16 = arith.constant 0 : index
    %8 = vector.load %arg10[%c0_15, %c0_16] : memref<288x9xf32, #tpu.memory_space<vmem>>, vector<288x9xf32>
    %c0_17 = arith.constant 0 : index
    %c0_18 = arith.constant 0 : index
    %9 = vector.load %arg11[%c0_17, %c0_18] : memref<288x9xf32, #tpu.memory_space<vmem>>, vector<288x9xf32>
    %c0_19 = arith.constant 0 : index
    %c0_20 = arith.constant 0 : index
    %10 = vector.load %arg12[%c0_19, %c0_20] : memref<288x9xf32, #tpu.memory_space<vmem>>, vector<288x9xf32>
    %c0_21 = arith.constant 0 : index
    %c0_22 = arith.constant 0 : index
    %11 = vector.load %arg13[%c0_21, %c0_22] : memref<288x1xf32, #tpu.memory_space<vmem>>, vector<288x1xf32>
    %c0_23 = arith.constant 0 : index
    %c0_24 = arith.constant 0 : index
    %12 = vector.load %arg14[%c0_23, %c0_24] : memref<9x288xf32, #tpu.memory_space<vmem>>, vector<9x288xf32>
    %c0_25 = arith.constant 0 : index
    %c0_26 = arith.constant 0 : index
    %13 = vector.load %arg15[%c0_25, %c0_26] : memref<9x1xf32, #tpu.memory_space<vmem>>, vector<9x1xf32>
    %14 = tpu.iota {dimensions = array<i32: 0>} : vector<9x128xi32>
    %cst = arith.constant 0.000000e+00 : f32
    %15 = vector.broadcast %cst : f32 to vector<9x128xf32>
    %cst_27 = arith.constant 0.000000e+00 : f32
    %16 = vector.broadcast %cst_27 : f32 to vector<1x128xf32>
    %c0_28 = arith.constant 0 : index
    %c0_29 = arith.constant 0 : index
    %c0_30 = arith.constant 0 : index
    %17 = vector.load %arg1[%c0_28, %c0_29, %c0_30] : memref<8x9x128xf32, #tpu.memory_space<vmem>>, vector<1x9x128xf32>
    %18 = vector.shape_cast %17 : vector<1x9x128xf32> to vector<9x128xf32>
    %cst_31 = arith.constant 1.000000e+00 : f32
    %19 = vector.broadcast %cst_31 : f32 to vector<9x128xf32>
    %20 = arith.subf %19, %15 : vector<9x128xf32>
    %21 = arith.subf %20, %15 : vector<9x128xf32>
    %cst_32 = arith.constant dense<0.000000e+00> : vector<288x128xf32>
    %22 = tpu.matmul %0, %15, %cst_32 {dimension_numbers = #tpu.dot_dimension_numbers<[1], [0], [0], [1], [0, 0, 1, 1], [], []>} : vector<288x9xf32>, vector<9x128xf32>, vector<288x128xf32> -> vector<288x128xf32>
    %cst_33 = arith.constant dense<0.000000e+00> : vector<288x128xf32>
    %23 = tpu.matmul %1, %15, %cst_33 {dimension_numbers = #tpu.dot_dimension_numbers<[1], [0], [0], [1], [0, 0, 1, 1], [], []>} : vector<288x9xf32>, vector<9x128xf32>, vector<288x128xf32> -> vector<288x128xf32>
    %24 = arith.addf %22, %23 : vector<288x128xf32>
    %cst_34 = arith.constant dense<0.000000e+00> : vector<288x128xf32>
    %25 = tpu.matmul %2, %21, %cst_34 {dimension_numbers = #tpu.dot_dimension_numbers<[1], [0], [0], [1], [0, 0, 1, 1], [], []>} : vector<288x9xf32>, vector<9x128xf32>, vector<288x128xf32> -> vector<288x128xf32>
    %26 = arith.addf %24, %25 : vector<288x128xf32>
    %cst_35 = arith.constant dense<0.000000e+00> : vector<288x128xf32>
    %27 = tpu.matmul %3, %15, %cst_35 {dimension_numbers = #tpu.dot_dimension_numbers<[1], [0], [0], [1], [0, 0, 1, 1], [], []>} : vector<288x9xf32>, vector<9x128xf32>, vector<288x128xf32> -> vector<288x128xf32>
    %28 = arith.addf %26, %27 : vector<288x128xf32>
    %29 = vector.broadcast %4 : vector<288x1xf32> to vector<288x128xf32>
    %30 = arith.addf %28, %29 : vector<288x128xf32>
    %cst_36 = arith.constant 0.000000e+00 : f32
    %31 = vector.broadcast %cst_36 : f32 to vector<288x128xf32>
    %32 = arith.maximumf %30, %31 : vector<288x128xf32>
    %cst_37 = arith.constant dense<0.000000e+00> : vector<9x128xf32>
    %33 = tpu.matmul %5, %32, %cst_37 {dimension_numbers = #tpu.dot_dimension_numbers<[1], [0], [0], [1], [0, 0, 1, 1], [], []>} : vector<9x288xf32>, vector<288x128xf32>, vector<9x128xf32> -> vector<9x128xf32>
    %34 = vector.broadcast %6 : vector<9x1xf32> to vector<9x128xf32>
    %35 = arith.addf %33, %34 : vector<9x128xf32>
    %36 = arith.addf %15, %15 : vector<9x128xf32>
    %37 = arith.mulf %35, %35 : vector<9x128xf32>
    %cst_38 = arith.constant 1.000000e+00 : f32
    %38 = vector.broadcast %cst_38 : f32 to vector<9x128xf32>
    %39 = arith.subf %38, %36 : vector<9x128xf32>
    %40 = arith.mulf %37, %39 : vector<9x128xf32>
    %cst_39 = arith.constant dense<0.000000e+00> : vector<128xf32>
    %41 = vector.multi_reduction <add>, %40, %cst_39 [0] : vector<9x128xf32> to vector<128xf32>
    %42 = vector.shape_cast %41 : vector<128xf32> to vector<1x128xf32>
    %43 = arith.addf %35, %18 : vector<9x128xf32>
    %cst_40 = arith.constant dense<0xFF800000> : vector<128xf32>
    %44 = vector.multi_reduction <maximumf>, %43, %cst_40 [0] : vector<9x128xf32> to vector<128xf32>
    %45 = vector.shape_cast %44 : vector<128xf32> to vector<1x128xf32>
    %46 = vector.broadcast %45 : vector<1x128xf32> to vector<9x128xf32>
    %47 = arith.subf %43, %46 : vector<9x128xf32>
    %48 = math.exp %47 : vector<9x128xf32>
    %cst_41 = arith.constant dense<0.000000e+00> : vector<128xf32>
    %49 = vector.multi_reduction <add>, %48, %cst_41 [0] : vector<9x128xf32> to vector<128xf32>
    %50 = vector.shape_cast %49 : vector<128xf32> to vector<1x128xf32>
    %51 = tpu.reciprocal %50 {approx = true} : vector<1x128xf32> -> vector<1x128xf32>
    %52 = vector.broadcast %51 : vector<1x128xf32> to vector<9x128xf32>
    %53 = arith.mulf %48, %52 : vector<9x128xf32>
    %cst_42 = arith.constant dense<0xFF800000> : vector<128xf32>
    %54 = vector.multi_reduction <maximumf>, %53, %cst_42 [0] : vector<9x128xf32> to vector<128xf32>
    %55 = vector.shape_cast %54 : vector<128xf32> to vector<1x128xf32>
    %56 = vector.broadcast %55 : vector<1x128xf32> to vector<9x128xf32>
    %57 = arith.cmpf oeq, %53, %56 : vector<9x128xf32>
    %c9_i32 = arith.constant 9 : i32
    %58 = vector.broadcast %c9_i32 : i32 to vector<9x128xi32>
    %59 = arith.select %57, %14, %58 : vector<9x128xi1>, vector<9x128xi32>
    %cst_43 = arith.constant dense<2147483647> : vector<128xi32>
    %60 = vector.multi_reduction <minsi>, %59, %cst_43 [0] : vector<9x128xi32> to vector<128xi32>
    %61 = vector.shape_cast %60 : vector<128xi32> to vector<1x128xi32>
    %62 = vector.broadcast %61 : vector<1x128xi32> to vector<9x128xi32>
    %63 = arith.cmpi eq, %14, %62 : vector<9x128xi32>
    %64 = arith.extui %63 : vector<9x128xi1> to vector<9x128xi32>
    %65 = arith.sitofp %64 : vector<9x128xi32> to vector<9x128xf32>
    %66 = arith.subf %65, %53 : vector<9x128xf32>
    %67 = arith.addf %66, %53 : vector<9x128xf32>
    %68 = arith.addf %16, %16 : vector<1x128xf32>
    %cst_44 = arith.constant 1.000000e+00 : f32
    %69 = vector.broadcast %cst_44 : f32 to vector<1x128xf32>
    %70 = arith.subf %69, %68 : vector<1x128xf32>
    %71 = vector.broadcast %70 : vector<1x128xf32> to vector<9x128xf32>
    %72 = arith.mulf %67, %71 : vector<9x128xf32>
    %cst_45 = arith.constant 1.000000e+00 : f32
    %73 = vector.broadcast %cst_45 : f32 to vector<9x128xf32>
    %74 = arith.subf %73, %36 : vector<9x128xf32>
    %75 = arith.mulf %72, %74 : vector<9x128xf32>
    %76 = arith.addf %15, %75 : vector<9x128xf32>
    %77 = vector.extract_strided_slice %76 {offsets = [0, 0], sizes = [1, 128], strides = [1, 1]} : vector<9x128xf32> to vector<1x128xf32>
    %78 = vector.extract_strided_slice %76 {offsets = [1, 0], sizes = [1, 128], strides = [1, 1]} : vector<9x128xf32> to vector<1x128xf32>
    %79 = arith.mulf %77, %78 : vector<1x128xf32>
    %80 = vector.extract_strided_slice %76 {offsets = [2, 0], sizes = [1, 128], strides = [1, 1]} : vector<9x128xf32> to vector<1x128xf32>
    %81 = arith.mulf %79, %80 : vector<1x128xf32>
    %82 = vector.extract_strided_slice %76 {offsets = [3, 0], sizes = [1, 128], strides = [1, 1]} : vector<9x128xf32> to vector<1x128xf32>
    %83 = vector.extract_strided_slice %76 {offsets = [4, 0], sizes = [1, 128], strides = [1, 1]} : vector<9x128xf32> to vector<1x128xf32>
    %84 = arith.mulf %82, %83 : vector<1x128xf32>
    %85 = vector.extract_strided_slice %76 {offsets = [5, 0], sizes = [1, 128], strides = [1, 1]} : vector<9x128xf32> to vector<1x128xf32>
    %86 = arith.mulf %84, %85 : vector<1x128xf32>
    %87 = arith.addf %81, %86 : vector<1x128xf32>
    %88 = vector.extract_strided_slice %76 {offsets = [6, 0], sizes = [1, 128], strides = [1, 1]} : vector<9x128xf32> to vector<1x128xf32>
    %89 = vector.extract_strided_slice %76 {offsets = [7, 0], sizes = [1, 128], strides = [1, 1]} : vector<9x128xf32> to vector<1x128xf32>
    %90 = arith.mulf %88, %89 : vector<1x128xf32>
    %91 = vector.extract_strided_slice %76 {offsets = [8, 0], sizes = [1, 128], strides = [1, 1]} : vector<9x128xf32> to vector<1x128xf32>
    %92 = arith.mulf %90, %91 : vector<1x128xf32>
    %93 = arith.addf %87, %92 : vector<1x128xf32>
    %94 = vector.extract_strided_slice %76 {offsets = [0, 0], sizes = [1, 128], strides = [1, 1]} : vector<9x128xf32> to vector<1x128xf32>
    %95 = vector.extract_strided_slice %76 {offsets = [3, 0], sizes = [1, 128], strides = [1, 1]} : vector<9x128xf32> to vector<1x128xf32>
    %96 = arith.mulf %94, %95 : vector<1x128xf32>
    %97 = vector.extract_strided_slice %76 {offsets = [6, 0], sizes = [1, 128], strides = [1, 1]} : vector<9x128xf32> to vector<1x128xf32>
    %98 = arith.mulf %96, %97 : vector<1x128xf32>
    %99 = arith.addf %93, %98 : vector<1x128xf32>
    %100 = vector.extract_strided_slice %76 {offsets = [1, 0], sizes = [1, 128], strides = [1, 1]} : vector<9x128xf32> to vector<1x128xf32>
    %101 = vector.extract_strided_slice %76 {offsets = [4, 0], sizes = [1, 128], strides = [1, 1]} : vector<9x128xf32> to vector<1x128xf32>
    %102 = arith.mulf %100, %101 : vector<1x128xf32>
    %103 = vector.extract_strided_slice %76 {offsets = [7, 0], sizes = [1, 128], strides = [1, 1]} : vector<9x128xf32> to vector<1x128xf32>
    %104 = arith.mulf %102, %103 : vector<1x128xf32>
    %105 = arith.addf %99, %104 : vector<1x128xf32>
    %106 = vector.extract_strided_slice %76 {offsets = [2, 0], sizes = [1, 128], strides = [1, 1]} : vector<9x128xf32> to vector<1x128xf32>
    %107 = vector.extract_strided_slice %76 {offsets = [5, 0], sizes = [1, 128], strides = [1, 1]} : vector<9x128xf32> to vector<1x128xf32>
    %108 = arith.mulf %106, %107 : vector<1x128xf32>
    %109 = vector.extract_strided_slice %76 {offsets = [8, 0], sizes = [1, 128], strides = [1, 1]} : vector<9x128xf32> to vector<1x128xf32>
    %110 = arith.mulf %108, %109 : vector<1x128xf32>
    %111 = arith.addf %105, %110 : vector<1x128xf32>
    %112 = vector.extract_strided_slice %76 {offsets = [0, 0], sizes = [1, 128], strides = [1, 1]} : vector<9x128xf32> to vector<1x128xf32>
    %113 = vector.extract_strided_slice %76 {offsets = [4, 0], sizes = [1, 128], strides = [1, 1]} : vector<9x128xf32> to vector<1x128xf32>
    %114 = arith.mulf %112, %113 : vector<1x128xf32>
    %115 = vector.extract_strided_slice %76 {offsets = [8, 0], sizes = [1, 128], strides = [1, 1]} : vector<9x128xf32> to vector<1x128xf32>
    %116 = arith.mulf %114, %115 : vector<1x128xf32>
    %117 = arith.addf %111, %116 : vector<1x128xf32>
    %118 = vector.extract_strided_slice %76 {offsets = [2, 0], sizes = [1, 128], strides = [1, 1]} : vector<9x128xf32> to vector<1x128xf32>
    %119 = vector.extract_strided_slice %76 {offsets = [4, 0], sizes = [1, 128], strides = [1, 1]} : vector<9x128xf32> to vector<1x128xf32>
    %120 = arith.mulf %118, %119 : vector<1x128xf32>
    %121 = vector.extract_strided_slice %76 {offsets = [6, 0], sizes = [1, 128], strides = [1, 1]} : vector<9x128xf32> to vector<1x128xf32>
    %122 = arith.mulf %120, %121 : vector<1x128xf32>
    %123 = arith.addf %117, %122 : vector<1x128xf32>
    %124 = arith.maximumf %16, %123 : vector<1x128xf32>
    %c1 = arith.constant 1 : index
    %c0_46 = arith.constant 0 : index
    %c0_47 = arith.constant 0 : index
    %125 = vector.load %arg1[%c1, %c0_46, %c0_47] : memref<8x9x128xf32, #tpu.memory_space<vmem>>, vector<1x9x128xf32>
    %126 = vector.shape_cast %125 : vector<1x9x128xf32> to vector<9x128xf32>
    %cst_48 = arith.constant 1.000000e+00 : f32
    %127 = vector.broadcast %cst_48 : f32 to vector<9x128xf32>
    %128 = arith.subf %127, %15 : vector<9x128xf32>
    %129 = arith.subf %128, %76 : vector<9x128xf32>
    %cst_49 = arith.constant dense<0.000000e+00> : vector<288x128xf32>
    %130 = tpu.matmul %7, %15, %cst_49 {dimension_numbers = #tpu.dot_dimension_numbers<[1], [0], [0], [1], [0, 0, 1, 1], [], []>} : vector<288x9xf32>, vector<9x128xf32>, vector<288x128xf32> -> vector<288x128xf32>
    %cst_50 = arith.constant dense<0.000000e+00> : vector<288x128xf32>
    %131 = tpu.matmul %8, %76, %cst_50 {dimension_numbers = #tpu.dot_dimension_numbers<[1], [0], [0], [1], [0, 0, 1, 1], [], []>} : vector<288x9xf32>, vector<9x128xf32>, vector<288x128xf32> -> vector<288x128xf32>
    %132 = arith.addf %130, %131 : vector<288x128xf32>
    %cst_51 = arith.constant dense<0.000000e+00> : vector<288x128xf32>
    %133 = tpu.matmul %9, %129, %cst_51 {dimension_numbers = #tpu.dot_dimension_numbers<[1], [0], [0], [1], [0, 0, 1, 1], [], []>} : vector<288x9xf32>, vector<9x128xf32>, vector<288x128xf32> -> vector<288x128xf32>
    %134 = arith.addf %132, %133 : vector<288x128xf32>
    %cst_52 = arith.constant dense<0.000000e+00> : vector<288x128xf32>
    %135 = tpu.matmul %10, %75, %cst_52 {dimension_numbers = #tpu.dot_dimension_numbers<[1], [0], [0], [1], [0, 0, 1, 1], [], []>} : vector<288x9xf32>, vector<9x128xf32>, vector<288x128xf32> -> vector<288x128xf32>
    %136 = arith.addf %134, %135 : vector<288x128xf32>
    %137 = vector.broadcast %11 : vector<288x1xf32> to vector<288x128xf32>
    %138 = arith.addf %136, %137 : vector<288x128xf32>
    %cst_53 = arith.constant 0.000000e+00 : f32
    %139 = vector.broadcast %cst_53 : f32 to vector<288x128xf32>
    %140 = arith.maximumf %138, %139 : vector<288x128xf32>
    %cst_54 = arith.constant dense<0.000000e+00> : vector<9x128xf32>
    %141 = tpu.matmul %12, %140, %cst_54 {dimension_numbers = #tpu.dot_dimension_numbers<[1], [0], [0], [1], [0, 0, 1, 1], [], []>} : vector<9x288xf32>, vector<288x128xf32>, vector<9x128xf32> -> vector<9x128xf32>
    %142 = vector.broadcast %13 : vector<9x1xf32> to vector<9x128xf32>
    %143 = arith.addf %141, %142 : vector<9x128xf32>
    %144 = arith.addf %15, %76 : vector<9x128xf32>
    %145 = arith.mulf %143, %143 : vector<9x128xf32>
    %cst_55 = arith.constant 1.000000e+00 : f32
    %146 = vector.broadcast %cst_55 : f32 to vector<9x128xf32>
    %147 = arith.subf %146, %144 : vector<9x128xf32>
    %148 = arith.mulf %145, %147 : vector<9x128xf32>
    %cst_56 = arith.constant dense<0.000000e+00> : vector<128xf32>
    %149 = vector.multi_reduction <add>, %148, %cst_56 [0] : vector<9x128xf32> to vector<128xf32>
    %150 = vector.shape_cast %149 : vector<128xf32> to vector<1x128xf32>
    %151 = arith.addf %143, %126 : vector<9x128xf32>
    %cst_57 = arith.constant dense<0xFF800000> : vector<128xf32>
    %152 = vector.multi_reduction <maximumf>, %151, %cst_57 [0] : vector<9x128xf32> to vector<128xf32>
    %153 = vector.shape_cast %152 : vector<128xf32> to vector<1x128xf32>
    %154 = vector.broadcast %153 : vector<1x128xf32> to vector<9x128xf32>
    %155 = arith.subf %151, %154 : vector<9x128xf32>
    %156 = math.exp %155 : vector<9x128xf32>
    %cst_58 = arith.constant dense<0.000000e+00> : vector<128xf32>
    %157 = vector.multi_reduction <add>, %156, %cst_58 [0] : vector<9x128xf32> to vector<128xf32>
    %158 = vector.shape_cast %157 : vector<128xf32> to vector<1x128xf32>
    %159 = tpu.reciprocal %158 {approx = true} : vector<1x128xf32> -> vector<1x128xf32>
    %160 = vector.broadcast %159 : vector<1x128xf32> to vector<9x128xf32>
    %161 = arith.mulf %156, %160 : vector<9x128xf32>
    %cst_59 = arith.constant dense<0xFF800000> : vector<128xf32>
    %162 = vector.multi_reduction <maximumf>, %161, %cst_59 [0] : vector<9x128xf32> to vector<128xf32>
    %163 = vector.shape_cast %162 : vector<128xf32> to vector<1x128xf32>
    %164 = vector.broadcast %163 : vector<1x128xf32> to vector<9x128xf32>
    %165 = arith.cmpf oeq, %161, %164 : vector<9x128xf32>
    %c9_i32_60 = arith.constant 9 : i32
    %166 = vector.broadcast %c9_i32_60 : i32 to vector<9x128xi32>
    %167 = arith.select %165, %14, %166 : vector<9x128xi1>, vector<9x128xi32>
    %cst_61 = arith.constant dense<2147483647> : vector<128xi32>
    %168 = vector.multi_reduction <minsi>, %167, %cst_61 [0] : vector<9x128xi32> to vector<128xi32>
    %169 = vector.shape_cast %168 : vector<128xi32> to vector<1x128xi32>
    %170 = vector.broadcast %169 : vector<1x128xi32> to vector<9x128xi32>
    %171 = arith.cmpi eq, %14, %170 : vector<9x128xi32>
    %172 = arith.extui %171 : vector<9x128xi1> to vector<9x128xi32>
    %173 = arith.sitofp %172 : vector<9x128xi32> to vector<9x128xf32>
    %174 = arith.subf %173, %161 : vector<9x128xf32>
    %175 = arith.addf %174, %161 : vector<9x128xf32>
    %176 = arith.addf %16, %124 : vector<1x128xf32>
    %cst_62 = arith.constant 1.000000e+00 : f32
    %177 = vector.broadcast %cst_62 : f32 to vector<1x128xf32>
    %178 = arith.subf %177, %176 : vector<1x128xf32>
    %179 = vector.broadcast %178 : vector<1x128xf32> to vector<9x128xf32>
    %180 = arith.mulf %175, %179 : vector<9x128xf32>
    %cst_63 = arith.constant 1.000000e+00 : f32
    %181 = vector.broadcast %cst_63 : f32 to vector<9x128xf32>
    %182 = arith.subf %181, %144 : vector<9x128xf32>
    %183 = arith.mulf %180, %182 : vector<9x128xf32>
    %184 = arith.addf %15, %183 : vector<9x128xf32>
    %185 = vector.extract_strided_slice %184 {offsets = [0, 0], sizes = [1, 128], strides = [1, 1]} : vector<9x128xf32> to vector<1x128xf32>
    %186 = vector.extract_strided_slice %184 {offsets = [1, 0], sizes = [1, 128], strides = [1, 1]} : vector<9x128xf32> to vector<1x128xf32>
    %187 = arith.mulf %185, %186 : vector<1x128xf32>
    %188 = vector.extract_strided_slice %184 {offsets = [2, 0], sizes = [1, 128], strides = [1, 1]} : vector<9x128xf32> to vector<1x128xf32>
    %189 = arith.mulf %187, %188 : vector<1x128xf32>
    %190 = vector.extract_strided_slice %184 {offsets = [3, 0], sizes = [1, 128], strides = [1, 1]} : vector<9x128xf32> to vector<1x128xf32>
    %191 = vector.extract_strided_slice %184 {offsets = [4, 0], sizes = [1, 128], strides = [1, 1]} : vector<9x128xf32> to vector<1x128xf32>
    %192 = arith.mulf %190, %191 : vector<1x128xf32>
    %193 = vector.extract_strided_slice %184 {offsets = [5, 0], sizes = [1, 128], strides = [1, 1]} : vector<9x128xf32> to vector<1x128xf32>
    %194 = arith.mulf %192, %193 : vector<1x128xf32>
    %195 = arith.addf %189, %194 : vector<1x128xf32>
    %196 = vector.extract_strided_slice %184 {offsets = [6, 0], sizes = [1, 128], strides = [1, 1]} : vector<9x128xf32> to vector<1x128xf32>
    %197 = vector.extract_strided_slice %184 {offsets = [7, 0], sizes = [1, 128], strides = [1, 1]} : vector<9x128xf32> to vector<1x128xf32>
    %198 = arith.mulf %196, %197 : vector<1x128xf32>
    %199 = vector.extract_strided_slice %184 {offsets = [8, 0], sizes = [1, 128], strides = [1, 1]} : vector<9x128xf32> to vector<1x128xf32>
    %200 = arith.mulf %198, %199 : vector<1x128xf32>
    %201 = arith.addf %195, %200 : vector<1x128xf32>
    %202 = vector.extract_strided_slice %184 {offsets = [0, 0], sizes = [1, 128], strides = [1, 1]} : vector<9x128xf32> to vector<1x128xf32>
    %203 = vector.extract_strided_slice %184 {offsets = [3, 0], sizes = [1, 128], strides = [1, 1]} : vector<9x128xf32> to vector<1x128xf32>
    %204 = arith.mulf %202, %203 : vector<1x128xf32>
    %205 = vector.extract_strided_slice %184 {offsets = [6, 0], sizes = [1, 128], strides = [1, 1]} : vector<9x128xf32> to vector<1x128xf32>
    %206 = arith.mulf %204, %205 : vector<1x128xf32>
    %207 = arith.addf %201, %206 : vector<1x128xf32>
    %208 = vector.extract_strided_slice %184 {offsets = [1, 0], sizes = [1, 128], strides = [1, 1]} : vector<9x128xf32> to vector<1x128xf32>
    %209 = vector.extract_strided_slice %184 {offsets = [4, 0], sizes = [1, 128], strides = [1, 1]} : vector<9x128xf32> to vector<1x128xf32>
    %210 = arith.mulf %208, %209 : vector<1x128xf32>
    %211 = vector.extract_strided_slice %184 {offsets = [7, 0], sizes = [1, 128], strides = [1, 1]} : vector<9x128xf32> to vector<1x128xf32>
    %212 = arith.mulf %210, %211 : vector<1x128xf32>
    %213 = arith.addf %207, %212 : vector<1x128xf32>
    %214 = vector.extract_strided_slice %184 {offsets = [2, 0], sizes = [1, 128], strides = [1, 1]} : vector<9x128xf32> to vector<1x128xf32>
    %215 = vector.extract_strided_slice %184 {offsets = [5, 0], sizes = [1, 128], strides = [1, 1]} : vector<9x128xf32> to vector<1x128xf32>
    %216 = arith.mulf %214, %215 : vector<1x128xf32>
    %217 = vector.extract_strided_slice %184 {offsets = [8, 0], sizes = [1, 128], strides = [1, 1]} : vector<9x128xf32> to vector<1x128xf32>
    %218 = arith.mulf %216, %217 : vector<1x128xf32>
    %219 = arith.addf %213, %218 : vector<1x128xf32>
    %220 = vector.extract_strided_slice %184 {offsets = [0, 0], sizes = [1, 128], strides = [1, 1]} : vector<9x128xf32> to vector<1x128xf32>
    %221 = vector.extract_strided_slice %184 {offsets = [4, 0], sizes = [1, 128], strides = [1, 1]} : vector<9x128xf32> to vector<1x128xf32>
    %222 = arith.mulf %220, %221 : vector<1x128xf32>
    %223 = vector.extract_strided_slice %184 {offsets = [8, 0], sizes = [1, 128], strides = [1, 1]} : vector<9x128xf32> to vector<1x128xf32>
    %224 = arith.mulf %222, %223 : vector<1x128xf32>
    %225 = arith.addf %219, %224 : vector<1x128xf32>
    %226 = vector.extract_strided_slice %184 {offsets = [2, 0], sizes = [1, 128], strides = [1, 1]} : vector<9x128xf32> to vector<1x128xf32>
    %227 = vector.extract_strided_slice %184 {offsets = [4, 0], sizes = [1, 128], strides = [1, 1]} : vector<9x128xf32> to vector<1x128xf32>
    %228 = arith.mulf %226, %227 : vector<1x128xf32>
    %229 = vector.extract_strided_slice %184 {offsets = [6, 0], sizes = [1, 128], strides = [1, 1]} : vector<9x128xf32> to vector<1x128xf32>
    %230 = arith.mulf %228, %229 : vector<1x128xf32>
    %231 = arith.addf %225, %230 : vector<1x128xf32>
    %232 = arith.maximumf %16, %231 : vector<1x128xf32>
    %cst_64 = arith.constant 0.00999999977 : f32
    %233 = vector.broadcast %cst_64 : f32 to vector<1x128xf32>
    %234 = arith.mulf %42, %233 : vector<1x128xf32>
    %235 = arith.addf %16, %234 : vector<1x128xf32>
    %cst_65 = arith.constant 0.00999999977 : f32
    %236 = vector.broadcast %cst_65 : f32 to vector<1x128xf32>
    %237 = arith.mulf %150, %236 : vector<1x128xf32>
    %238 = arith.addf %16, %237 : vector<1x128xf32>
    %c2 = arith.constant 2 : index
    %c0_66 = arith.constant 0 : index
    %c0_67 = arith.constant 0 : index
    %239 = vector.load %arg1[%c2, %c0_66, %c0_67] : memref<8x9x128xf32, #tpu.memory_space<vmem>>, vector<1x9x128xf32>
    %240 = vector.shape_cast %239 : vector<1x9x128xf32> to vector<9x128xf32>
    %cst_68 = arith.constant 1.000000e+00 : f32
    %241 = vector.broadcast %cst_68 : f32 to vector<9x128xf32>
    %242 = arith.subf %241, %76 : vector<9x128xf32>
    %243 = arith.subf %242, %184 : vector<9x128xf32>
    %cst_69 = arith.constant dense<0.000000e+00> : vector<288x128xf32>
    %244 = tpu.matmul %0, %76, %cst_69 {dimension_numbers = #tpu.dot_dimension_numbers<[1], [0], [0], [1], [0, 0, 1, 1], [], []>} : vector<288x9xf32>, vector<9x128xf32>, vector<288x128xf32> -> vector<288x128xf32>
    %cst_70 = arith.constant dense<0.000000e+00> : vector<288x128xf32>
    %245 = tpu.matmul %1, %184, %cst_70 {dimension_numbers = #tpu.dot_dimension_numbers<[1], [0], [0], [1], [0, 0, 1, 1], [], []>} : vector<288x9xf32>, vector<9x128xf32>, vector<288x128xf32> -> vector<288x128xf32>
    %246 = arith.addf %244, %245 : vector<288x128xf32>
    %cst_71 = arith.constant dense<0.000000e+00> : vector<288x128xf32>
    %247 = tpu.matmul %2, %243, %cst_71 {dimension_numbers = #tpu.dot_dimension_numbers<[1], [0], [0], [1], [0, 0, 1, 1], [], []>} : vector<288x9xf32>, vector<9x128xf32>, vector<288x128xf32> -> vector<288x128xf32>
    %248 = arith.addf %246, %247 : vector<288x128xf32>
    %cst_72 = arith.constant dense<0.000000e+00> : vector<288x128xf32>
    %249 = tpu.matmul %3, %183, %cst_72 {dimension_numbers = #tpu.dot_dimension_numbers<[1], [0], [0], [1], [0, 0, 1, 1], [], []>} : vector<288x9xf32>, vector<9x128xf32>, vector<288x128xf32> -> vector<288x128xf32>
    %250 = arith.addf %248, %249 : vector<288x128xf32>
    %251 = vector.broadcast %4 : vector<288x1xf32> to vector<288x128xf32>
    %252 = arith.addf %250, %251 : vector<288x128xf32>
    %cst_73 = arith.constant 0.000000e+00 : f32
    %253 = vector.broadcast %cst_73 : f32 to vector<288x128xf32>
    %254 = arith.maximumf %252, %253 : vector<288x128xf32>
    %cst_74 = arith.constant dense<0.000000e+00> : vector<9x128xf32>
    %255 = tpu.matmul %5, %254, %cst_74 {dimension_numbers = #tpu.dot_dimension_numbers<[1], [0], [0], [1], [0, 0, 1, 1], [], []>} : vector<9x288xf32>, vector<288x128xf32>, vector<9x128xf32> -> vector<9x128xf32>
    %256 = vector.broadcast %6 : vector<9x1xf32> to vector<9x128xf32>
    %257 = arith.addf %255, %256 : vector<9x128xf32>
    %258 = arith.addf %76, %184 : vector<9x128xf32>
    %259 = arith.mulf %257, %257 : vector<9x128xf32>
    %cst_75 = arith.constant 1.000000e+00 : f32
    %260 = vector.broadcast %cst_75 : f32 to vector<9x128xf32>
    %261 = arith.subf %260, %258 : vector<9x128xf32>
    %262 = arith.mulf %259, %261 : vector<9x128xf32>
    %cst_76 = arith.constant dense<0.000000e+00> : vector<128xf32>
    %263 = vector.multi_reduction <add>, %262, %cst_76 [0] : vector<9x128xf32> to vector<128xf32>
    %264 = vector.shape_cast %263 : vector<128xf32> to vector<1x128xf32>
    %265 = arith.addf %257, %240 : vector<9x128xf32>
    %cst_77 = arith.constant dense<0xFF800000> : vector<128xf32>
    %266 = vector.multi_reduction <maximumf>, %265, %cst_77 [0] : vector<9x128xf32> to vector<128xf32>
    %267 = vector.shape_cast %266 : vector<128xf32> to vector<1x128xf32>
    %268 = vector.broadcast %267 : vector<1x128xf32> to vector<9x128xf32>
    %269 = arith.subf %265, %268 : vector<9x128xf32>
    %270 = math.exp %269 : vector<9x128xf32>
    %cst_78 = arith.constant dense<0.000000e+00> : vector<128xf32>
    %271 = vector.multi_reduction <add>, %270, %cst_78 [0] : vector<9x128xf32> to vector<128xf32>
    %272 = vector.shape_cast %271 : vector<128xf32> to vector<1x128xf32>
    %273 = tpu.reciprocal %272 {approx = true} : vector<1x128xf32> -> vector<1x128xf32>
    %274 = vector.broadcast %273 : vector<1x128xf32> to vector<9x128xf32>
    %275 = arith.mulf %270, %274 : vector<9x128xf32>
    %cst_79 = arith.constant dense<0xFF800000> : vector<128xf32>
    %276 = vector.multi_reduction <maximumf>, %275, %cst_79 [0] : vector<9x128xf32> to vector<128xf32>
    %277 = vector.shape_cast %276 : vector<128xf32> to vector<1x128xf32>
    %278 = vector.broadcast %277 : vector<1x128xf32> to vector<9x128xf32>
    %279 = arith.cmpf oeq, %275, %278 : vector<9x128xf32>
    %c9_i32_80 = arith.constant 9 : i32
    %280 = vector.broadcast %c9_i32_80 : i32 to vector<9x128xi32>
    %281 = arith.select %279, %14, %280 : vector<9x128xi1>, vector<9x128xi32>
    %cst_81 = arith.constant dense<2147483647> : vector<128xi32>
    %282 = vector.multi_reduction <minsi>, %281, %cst_81 [0] : vector<9x128xi32> to vector<128xi32>
    %283 = vector.shape_cast %282 : vector<128xi32> to vector<1x128xi32>
    %284 = vector.broadcast %283 : vector<1x128xi32> to vector<9x128xi32>
    %285 = arith.cmpi eq, %14, %284 : vector<9x128xi32>
    %286 = arith.extui %285 : vector<9x128xi1> to vector<9x128xi32>
    %287 = arith.sitofp %286 : vector<9x128xi32> to vector<9x128xf32>
    %288 = arith.subf %287, %275 : vector<9x128xf32>
    %289 = arith.addf %288, %275 : vector<9x128xf32>
    %290 = arith.addf %124, %232 : vector<1x128xf32>
    %cst_82 = arith.constant 1.000000e+00 : f32
    %291 = vector.broadcast %cst_82 : f32 to vector<1x128xf32>
    %292 = arith.subf %291, %290 : vector<1x128xf32>
    %293 = vector.broadcast %292 : vector<1x128xf32> to vector<9x128xf32>
    %294 = arith.mulf %289, %293 : vector<9x128xf32>
    %cst_83 = arith.constant 1.000000e+00 : f32
    %295 = vector.broadcast %cst_83 : f32 to vector<9x128xf32>
    %296 = arith.subf %295, %258 : vector<9x128xf32>
    %297 = arith.mulf %294, %296 : vector<9x128xf32>
    %298 = arith.addf %76, %297 : vector<9x128xf32>
    %299 = vector.extract_strided_slice %298 {offsets = [0, 0], sizes = [1, 128], strides = [1, 1]} : vector<9x128xf32> to vector<1x128xf32>
    %300 = vector.extract_strided_slice %298 {offsets = [1, 0], sizes = [1, 128], strides = [1, 1]} : vector<9x128xf32> to vector<1x128xf32>
    %301 = arith.mulf %299, %300 : vector<1x128xf32>
    %302 = vector.extract_strided_slice %298 {offsets = [2, 0], sizes = [1, 128], strides = [1, 1]} : vector<9x128xf32> to vector<1x128xf32>
    %303 = arith.mulf %301, %302 : vector<1x128xf32>
    %304 = vector.extract_strided_slice %298 {offsets = [3, 0], sizes = [1, 128], strides = [1, 1]} : vector<9x128xf32> to vector<1x128xf32>
    %305 = vector.extract_strided_slice %298 {offsets = [4, 0], sizes = [1, 128], strides = [1, 1]} : vector<9x128xf32> to vector<1x128xf32>
    %306 = arith.mulf %304, %305 : vector<1x128xf32>
    %307 = vector.extract_strided_slice %298 {offsets = [5, 0], sizes = [1, 128], strides = [1, 1]} : vector<9x128xf32> to vector<1x128xf32>
    %308 = arith.mulf %306, %307 : vector<1x128xf32>
    %309 = arith.addf %303, %308 : vector<1x128xf32>
    %310 = vector.extract_strided_slice %298 {offsets = [6, 0], sizes = [1, 128], strides = [1, 1]} : vector<9x128xf32> to vector<1x128xf32>
    %311 = vector.extract_strided_slice %298 {offsets = [7, 0], sizes = [1, 128], strides = [1, 1]} : vector<9x128xf32> to vector<1x128xf32>
    %312 = arith.mulf %310, %311 : vector<1x128xf32>
    %313 = vector.extract_strided_slice %298 {offsets = [8, 0], sizes = [1, 128], strides = [1, 1]} : vector<9x128xf32> to vector<1x128xf32>
    %314 = arith.mulf %312, %313 : vector<1x128xf32>
    %315 = arith.addf %309, %314 : vector<1x128xf32>
    %316 = vector.extract_strided_slice %298 {offsets = [0, 0], sizes = [1, 128], strides = [1, 1]} : vector<9x128xf32> to vector<1x128xf32>
    %317 = vector.extract_strided_slice %298 {offsets = [3, 0], sizes = [1, 128], strides = [1, 1]} : vector<9x128xf32> to vector<1x128xf32>
    %318 = arith.mulf %316, %317 : vector<1x128xf32>
    %319 = vector.extract_strided_slice %298 {offsets = [6, 0], sizes = [1, 128], strides = [1, 1]} : vector<9x128xf32> to vector<1x128xf32>
    %320 = arith.mulf %318, %319 : vector<1x128xf32>
    %321 = arith.addf %315, %320 : vector<1x128xf32>
    %322 = vector.extract_strided_slice %298 {offsets = [1, 0], sizes = [1, 128], strides = [1, 1]} : vector<9x128xf32> to vector<1x128xf32>
    %323 = vector.extract_strided_slice %298 {offsets = [4, 0], sizes = [1, 128], strides = [1, 1]} : vector<9x128xf32> to vector<1x128xf32>
    %324 = arith.mulf %322, %323 : vector<1x128xf32>
    %325 = vector.extract_strided_slice %298 {offsets = [7, 0], sizes = [1, 128], strides = [1, 1]} : vector<9x128xf32> to vector<1x128xf32>
    %326 = arith.mulf %324, %325 : vector<1x128xf32>
    %327 = arith.addf %321, %326 : vector<1x128xf32>
    %328 = vector.extract_strided_slice %298 {offsets = [2, 0], sizes = [1, 128], strides = [1, 1]} : vector<9x128xf32> to vector<1x128xf32>
    %329 = vector.extract_strided_slice %298 {offsets = [5, 0], sizes = [1, 128], strides = [1, 1]} : vector<9x128xf32> to vector<1x128xf32>
    %330 = arith.mulf %328, %329 : vector<1x128xf32>
    %331 = vector.extract_strided_slice %298 {offsets = [8, 0], sizes = [1, 128], strides = [1, 1]} : vector<9x128xf32> to vector<1x128xf32>
    %332 = arith.mulf %330, %331 : vector<1x128xf32>
    %333 = arith.addf %327, %332 : vector<1x128xf32>
    %334 = vector.extract_strided_slice %298 {offsets = [0, 0], sizes = [1, 128], strides = [1, 1]} : vector<9x128xf32> to vector<1x128xf32>
    %335 = vector.extract_strided_slice %298 {offsets = [4, 0], sizes = [1, 128], strides = [1, 1]} : vector<9x128xf32> to vector<1x128xf32>
    %336 = arith.mulf %334, %335 : vector<1x128xf32>
    %337 = vector.extract_strided_slice %298 {offsets = [8, 0], sizes = [1, 128], strides = [1, 1]} : vector<9x128xf32> to vector<1x128xf32>
    %338 = arith.mulf %336, %337 : vector<1x128xf32>
    %339 = arith.addf %333, %338 : vector<1x128xf32>
    %340 = vector.extract_strided_slice %298 {offsets = [2, 0], sizes = [1, 128], strides = [1, 1]} : vector<9x128xf32> to vector<1x128xf32>
    %341 = vector.extract_strided_slice %298 {offsets = [4, 0], sizes = [1, 128], strides = [1, 1]} : vector<9x128xf32> to vector<1x128xf32>
    %342 = arith.mulf %340, %341 : vector<1x128xf32>
    %343 = vector.extract_strided_slice %298 {offsets = [6, 0], sizes = [1, 128], strides = [1, 1]} : vector<9x128xf32> to vector<1x128xf32>
    %344 = arith.mulf %342, %343 : vector<1x128xf32>
    %345 = arith.addf %339, %344 : vector<1x128xf32>
    %346 = arith.maximumf %124, %345 : vector<1x128xf32>
    %c3 = arith.constant 3 : index
    %c0_84 = arith.constant 0 : index
    %c0_85 = arith.constant 0 : index
    %347 = vector.load %arg1[%c3, %c0_84, %c0_85] : memref<8x9x128xf32, #tpu.memory_space<vmem>>, vector<1x9x128xf32>
    %348 = vector.shape_cast %347 : vector<1x9x128xf32> to vector<9x128xf32>
    %cst_86 = arith.constant 1.000000e+00 : f32
    %349 = vector.broadcast %cst_86 : f32 to vector<9x128xf32>
    %350 = arith.subf %349, %184 : vector<9x128xf32>
    %351 = arith.subf %350, %298 : vector<9x128xf32>
    %cst_87 = arith.constant dense<0.000000e+00> : vector<288x128xf32>
    %352 = tpu.matmul %7, %184, %cst_87 {dimension_numbers = #tpu.dot_dimension_numbers<[1], [0], [0], [1], [0, 0, 1, 1], [], []>} : vector<288x9xf32>, vector<9x128xf32>, vector<288x128xf32> -> vector<288x128xf32>
    %cst_88 = arith.constant dense<0.000000e+00> : vector<288x128xf32>
    %353 = tpu.matmul %8, %298, %cst_88 {dimension_numbers = #tpu.dot_dimension_numbers<[1], [0], [0], [1], [0, 0, 1, 1], [], []>} : vector<288x9xf32>, vector<9x128xf32>, vector<288x128xf32> -> vector<288x128xf32>
    %354 = arith.addf %352, %353 : vector<288x128xf32>
    %cst_89 = arith.constant dense<0.000000e+00> : vector<288x128xf32>
    %355 = tpu.matmul %9, %351, %cst_89 {dimension_numbers = #tpu.dot_dimension_numbers<[1], [0], [0], [1], [0, 0, 1, 1], [], []>} : vector<288x9xf32>, vector<9x128xf32>, vector<288x128xf32> -> vector<288x128xf32>
    %356 = arith.addf %354, %355 : vector<288x128xf32>
    %cst_90 = arith.constant dense<0.000000e+00> : vector<288x128xf32>
    %357 = tpu.matmul %10, %297, %cst_90 {dimension_numbers = #tpu.dot_dimension_numbers<[1], [0], [0], [1], [0, 0, 1, 1], [], []>} : vector<288x9xf32>, vector<9x128xf32>, vector<288x128xf32> -> vector<288x128xf32>
    %358 = arith.addf %356, %357 : vector<288x128xf32>
    %359 = vector.broadcast %11 : vector<288x1xf32> to vector<288x128xf32>
    %360 = arith.addf %358, %359 : vector<288x128xf32>
    %cst_91 = arith.constant 0.000000e+00 : f32
    %361 = vector.broadcast %cst_91 : f32 to vector<288x128xf32>
    %362 = arith.maximumf %360, %361 : vector<288x128xf32>
    %cst_92 = arith.constant dense<0.000000e+00> : vector<9x128xf32>
    %363 = tpu.matmul %12, %362, %cst_92 {dimension_numbers = #tpu.dot_dimension_numbers<[1], [0], [0], [1], [0, 0, 1, 1], [], []>} : vector<9x288xf32>, vector<288x128xf32>, vector<9x128xf32> -> vector<9x128xf32>
    %364 = vector.broadcast %13 : vector<9x1xf32> to vector<9x128xf32>
    %365 = arith.addf %363, %364 : vector<9x128xf32>
    %366 = arith.addf %184, %298 : vector<9x128xf32>
    %367 = arith.mulf %365, %365 : vector<9x128xf32>
    %cst_93 = arith.constant 1.000000e+00 : f32
    %368 = vector.broadcast %cst_93 : f32 to vector<9x128xf32>
    %369 = arith.subf %368, %366 : vector<9x128xf32>
    %370 = arith.mulf %367, %369 : vector<9x128xf32>
    %cst_94 = arith.constant dense<0.000000e+00> : vector<128xf32>
    %371 = vector.multi_reduction <add>, %370, %cst_94 [0] : vector<9x128xf32> to vector<128xf32>
    %372 = vector.shape_cast %371 : vector<128xf32> to vector<1x128xf32>
    %373 = arith.addf %365, %348 : vector<9x128xf32>
    %cst_95 = arith.constant dense<0xFF800000> : vector<128xf32>
    %374 = vector.multi_reduction <maximumf>, %373, %cst_95 [0] : vector<9x128xf32> to vector<128xf32>
    %375 = vector.shape_cast %374 : vector<128xf32> to vector<1x128xf32>
    %376 = vector.broadcast %375 : vector<1x128xf32> to vector<9x128xf32>
    %377 = arith.subf %373, %376 : vector<9x128xf32>
    %378 = math.exp %377 : vector<9x128xf32>
    %cst_96 = arith.constant dense<0.000000e+00> : vector<128xf32>
    %379 = vector.multi_reduction <add>, %378, %cst_96 [0] : vector<9x128xf32> to vector<128xf32>
    %380 = vector.shape_cast %379 : vector<128xf32> to vector<1x128xf32>
    %381 = tpu.reciprocal %380 {approx = true} : vector<1x128xf32> -> vector<1x128xf32>
    %382 = vector.broadcast %381 : vector<1x128xf32> to vector<9x128xf32>
    %383 = arith.mulf %378, %382 : vector<9x128xf32>
    %cst_97 = arith.constant dense<0xFF800000> : vector<128xf32>
    %384 = vector.multi_reduction <maximumf>, %383, %cst_97 [0] : vector<9x128xf32> to vector<128xf32>
    %385 = vector.shape_cast %384 : vector<128xf32> to vector<1x128xf32>
    %386 = vector.broadcast %385 : vector<1x128xf32> to vector<9x128xf32>
    %387 = arith.cmpf oeq, %383, %386 : vector<9x128xf32>
    %c9_i32_98 = arith.constant 9 : i32
    %388 = vector.broadcast %c9_i32_98 : i32 to vector<9x128xi32>
    %389 = arith.select %387, %14, %388 : vector<9x128xi1>, vector<9x128xi32>
    %cst_99 = arith.constant dense<2147483647> : vector<128xi32>
    %390 = vector.multi_reduction <minsi>, %389, %cst_99 [0] : vector<9x128xi32> to vector<128xi32>
    %391 = vector.shape_cast %390 : vector<128xi32> to vector<1x128xi32>
    %392 = vector.broadcast %391 : vector<1x128xi32> to vector<9x128xi32>
    %393 = arith.cmpi eq, %14, %392 : vector<9x128xi32>
    %394 = arith.extui %393 : vector<9x128xi1> to vector<9x128xi32>
    %395 = arith.sitofp %394 : vector<9x128xi32> to vector<9x128xf32>
    %396 = arith.subf %395, %383 : vector<9x128xf32>
    %397 = arith.addf %396, %383 : vector<9x128xf32>
    %398 = arith.addf %232, %346 : vector<1x128xf32>
    %cst_100 = arith.constant 1.000000e+00 : f32
    %399 = vector.broadcast %cst_100 : f32 to vector<1x128xf32>
    %400 = arith.subf %399, %398 : vector<1x128xf32>
    %401 = vector.broadcast %400 : vector<1x128xf32> to vector<9x128xf32>
    %402 = arith.mulf %397, %401 : vector<9x128xf32>
    %cst_101 = arith.constant 1.000000e+00 : f32
    %403 = vector.broadcast %cst_101 : f32 to vector<9x128xf32>
    %404 = arith.subf %403, %366 : vector<9x128xf32>
    %405 = arith.mulf %402, %404 : vector<9x128xf32>
    %406 = arith.addf %184, %405 : vector<9x128xf32>
    %407 = vector.extract_strided_slice %406 {offsets = [0, 0], sizes = [1, 128], strides = [1, 1]} : vector<9x128xf32> to vector<1x128xf32>
    %408 = vector.extract_strided_slice %406 {offsets = [1, 0], sizes = [1, 128], strides = [1, 1]} : vector<9x128xf32> to vector<1x128xf32>
    %409 = arith.mulf %407, %408 : vector<1x128xf32>
    %410 = vector.extract_strided_slice %406 {offsets = [2, 0], sizes = [1, 128], strides = [1, 1]} : vector<9x128xf32> to vector<1x128xf32>
    %411 = arith.mulf %409, %410 : vector<1x128xf32>
    %412 = vector.extract_strided_slice %406 {offsets = [3, 0], sizes = [1, 128], strides = [1, 1]} : vector<9x128xf32> to vector<1x128xf32>
    %413 = vector.extract_strided_slice %406 {offsets = [4, 0], sizes = [1, 128], strides = [1, 1]} : vector<9x128xf32> to vector<1x128xf32>
    %414 = arith.mulf %412, %413 : vector<1x128xf32>
    %415 = vector.extract_strided_slice %406 {offsets = [5, 0], sizes = [1, 128], strides = [1, 1]} : vector<9x128xf32> to vector<1x128xf32>
    %416 = arith.mulf %414, %415 : vector<1x128xf32>
    %417 = arith.addf %411, %416 : vector<1x128xf32>
    %418 = vector.extract_strided_slice %406 {offsets = [6, 0], sizes = [1, 128], strides = [1, 1]} : vector<9x128xf32> to vector<1x128xf32>
    %419 = vector.extract_strided_slice %406 {offsets = [7, 0], sizes = [1, 128], strides = [1, 1]} : vector<9x128xf32> to vector<1x128xf32>
    %420 = arith.mulf %418, %419 : vector<1x128xf32>
    %421 = vector.extract_strided_slice %406 {offsets = [8, 0], sizes = [1, 128], strides = [1, 1]} : vector<9x128xf32> to vector<1x128xf32>
    %422 = arith.mulf %420, %421 : vector<1x128xf32>
    %423 = arith.addf %417, %422 : vector<1x128xf32>
    %424 = vector.extract_strided_slice %406 {offsets = [0, 0], sizes = [1, 128], strides = [1, 1]} : vector<9x128xf32> to vector<1x128xf32>
    %425 = vector.extract_strided_slice %406 {offsets = [3, 0], sizes = [1, 128], strides = [1, 1]} : vector<9x128xf32> to vector<1x128xf32>
    %426 = arith.mulf %424, %425 : vector<1x128xf32>
    %427 = vector.extract_strided_slice %406 {offsets = [6, 0], sizes = [1, 128], strides = [1, 1]} : vector<9x128xf32> to vector<1x128xf32>
    %428 = arith.mulf %426, %427 : vector<1x128xf32>
    %429 = arith.addf %423, %428 : vector<1x128xf32>
    %430 = vector.extract_strided_slice %406 {offsets = [1, 0], sizes = [1, 128], strides = [1, 1]} : vector<9x128xf32> to vector<1x128xf32>
    %431 = vector.extract_strided_slice %406 {offsets = [4, 0], sizes = [1, 128], strides = [1, 1]} : vector<9x128xf32> to vector<1x128xf32>
    %432 = arith.mulf %430, %431 : vector<1x128xf32>
    %433 = vector.extract_strided_slice %406 {offsets = [7, 0], sizes = [1, 128], strides = [1, 1]} : vector<9x128xf32> to vector<1x128xf32>
    %434 = arith.mulf %432, %433 : vector<1x128xf32>
    %435 = arith.addf %429, %434 : vector<1x128xf32>
    %436 = vector.extract_strided_slice %406 {offsets = [2, 0], sizes = [1, 128], strides = [1, 1]} : vector<9x128xf32> to vector<1x128xf32>
    %437 = vector.extract_strided_slice %406 {offsets = [5, 0], sizes = [1, 128], strides = [1, 1]} : vector<9x128xf32> to vector<1x128xf32>
    %438 = arith.mulf %436, %437 : vector<1x128xf32>
    %439 = vector.extract_strided_slice %406 {offsets = [8, 0], sizes = [1, 128], strides = [1, 1]} : vector<9x128xf32> to vector<1x128xf32>
    %440 = arith.mulf %438, %439 : vector<1x128xf32>
    %441 = arith.addf %435, %440 : vector<1x128xf32>
    %442 = vector.extract_strided_slice %406 {offsets = [0, 0], sizes = [1, 128], strides = [1, 1]} : vector<9x128xf32> to vector<1x128xf32>
    %443 = vector.extract_strided_slice %406 {offsets = [4, 0], sizes = [1, 128], strides = [1, 1]} : vector<9x128xf32> to vector<1x128xf32>
    %444 = arith.mulf %442, %443 : vector<1x128xf32>
    %445 = vector.extract_strided_slice %406 {offsets = [8, 0], sizes = [1, 128], strides = [1, 1]} : vector<9x128xf32> to vector<1x128xf32>
    %446 = arith.mulf %444, %445 : vector<1x128xf32>
    %447 = arith.addf %441, %446 : vector<1x128xf32>
    %448 = vector.extract_strided_slice %406 {offsets = [2, 0], sizes = [1, 128], strides = [1, 1]} : vector<9x128xf32> to vector<1x128xf32>
    %449 = vector.extract_strided_slice %406 {offsets = [4, 0], sizes = [1, 128], strides = [1, 1]} : vector<9x128xf32> to vector<1x128xf32>
    %450 = arith.mulf %448, %449 : vector<1x128xf32>
    %451 = vector.extract_strided_slice %406 {offsets = [6, 0], sizes = [1, 128], strides = [1, 1]} : vector<9x128xf32> to vector<1x128xf32>
    %452 = arith.mulf %450, %451 : vector<1x128xf32>
    %453 = arith.addf %447, %452 : vector<1x128xf32>
    %454 = arith.maximumf %232, %453 : vector<1x128xf32>
    %cst_102 = arith.constant 5.000000e-03 : f32
    %455 = vector.broadcast %cst_102 : f32 to vector<1x128xf32>
    %456 = arith.mulf %264, %455 : vector<1x128xf32>
    %457 = arith.addf %235, %456 : vector<1x128xf32>
    %cst_103 = arith.constant 5.000000e-03 : f32
    %458 = vector.broadcast %cst_103 : f32 to vector<1x128xf32>
    %459 = arith.mulf %372, %458 : vector<1x128xf32>
    %460 = arith.addf %238, %459 : vector<1x128xf32>
    %c4 = arith.constant 4 : index
    %c0_104 = arith.constant 0 : index
    %c0_105 = arith.constant 0 : index
    %461 = vector.load %arg1[%c4, %c0_104, %c0_105] : memref<8x9x128xf32, #tpu.memory_space<vmem>>, vector<1x9x128xf32>
    %462 = vector.shape_cast %461 : vector<1x9x128xf32> to vector<9x128xf32>
    %cst_106 = arith.constant 1.000000e+00 : f32
    %463 = vector.broadcast %cst_106 : f32 to vector<9x128xf32>
    %464 = arith.subf %463, %298 : vector<9x128xf32>
    %465 = arith.subf %464, %406 : vector<9x128xf32>
    %cst_107 = arith.constant dense<0.000000e+00> : vector<288x128xf32>
    %466 = tpu.matmul %0, %298, %cst_107 {dimension_numbers = #tpu.dot_dimension_numbers<[1], [0], [0], [1], [0, 0, 1, 1], [], []>} : vector<288x9xf32>, vector<9x128xf32>, vector<288x128xf32> -> vector<288x128xf32>
    %cst_108 = arith.constant dense<0.000000e+00> : vector<288x128xf32>
    %467 = tpu.matmul %1, %406, %cst_108 {dimension_numbers = #tpu.dot_dimension_numbers<[1], [0], [0], [1], [0, 0, 1, 1], [], []>} : vector<288x9xf32>, vector<9x128xf32>, vector<288x128xf32> -> vector<288x128xf32>
    %468 = arith.addf %466, %467 : vector<288x128xf32>
    %cst_109 = arith.constant dense<0.000000e+00> : vector<288x128xf32>
    %469 = tpu.matmul %2, %465, %cst_109 {dimension_numbers = #tpu.dot_dimension_numbers<[1], [0], [0], [1], [0, 0, 1, 1], [], []>} : vector<288x9xf32>, vector<9x128xf32>, vector<288x128xf32> -> vector<288x128xf32>
    %470 = arith.addf %468, %469 : vector<288x128xf32>
    %cst_110 = arith.constant dense<0.000000e+00> : vector<288x128xf32>
    %471 = tpu.matmul %3, %405, %cst_110 {dimension_numbers = #tpu.dot_dimension_numbers<[1], [0], [0], [1], [0, 0, 1, 1], [], []>} : vector<288x9xf32>, vector<9x128xf32>, vector<288x128xf32> -> vector<288x128xf32>
    %472 = arith.addf %470, %471 : vector<288x128xf32>
    %473 = vector.broadcast %4 : vector<288x1xf32> to vector<288x128xf32>
    %474 = arith.addf %472, %473 : vector<288x128xf32>
    %cst_111 = arith.constant 0.000000e+00 : f32
    %475 = vector.broadcast %cst_111 : f32 to vector<288x128xf32>
    %476 = arith.maximumf %474, %475 : vector<288x128xf32>
    %cst_112 = arith.constant dense<0.000000e+00> : vector<9x128xf32>
    %477 = tpu.matmul %5, %476, %cst_112 {dimension_numbers = #tpu.dot_dimension_numbers<[1], [0], [0], [1], [0, 0, 1, 1], [], []>} : vector<9x288xf32>, vector<288x128xf32>, vector<9x128xf32> -> vector<9x128xf32>
    %478 = vector.broadcast %6 : vector<9x1xf32> to vector<9x128xf32>
    %479 = arith.addf %477, %478 : vector<9x128xf32>
    %480 = arith.addf %298, %406 : vector<9x128xf32>
    %481 = arith.mulf %479, %479 : vector<9x128xf32>
    %cst_113 = arith.constant 1.000000e+00 : f32
    %482 = vector.broadcast %cst_113 : f32 to vector<9x128xf32>
    %483 = arith.subf %482, %480 : vector<9x128xf32>
    %484 = arith.mulf %481, %483 : vector<9x128xf32>
    %cst_114 = arith.constant dense<0.000000e+00> : vector<128xf32>
    %485 = vector.multi_reduction <add>, %484, %cst_114 [0] : vector<9x128xf32> to vector<128xf32>
    %486 = vector.shape_cast %485 : vector<128xf32> to vector<1x128xf32>
    %487 = arith.addf %479, %462 : vector<9x128xf32>
    %cst_115 = arith.constant dense<0xFF800000> : vector<128xf32>
    %488 = vector.multi_reduction <maximumf>, %487, %cst_115 [0] : vector<9x128xf32> to vector<128xf32>
    %489 = vector.shape_cast %488 : vector<128xf32> to vector<1x128xf32>
    %490 = vector.broadcast %489 : vector<1x128xf32> to vector<9x128xf32>
    %491 = arith.subf %487, %490 : vector<9x128xf32>
    %492 = math.exp %491 : vector<9x128xf32>
    %cst_116 = arith.constant dense<0.000000e+00> : vector<128xf32>
    %493 = vector.multi_reduction <add>, %492, %cst_116 [0] : vector<9x128xf32> to vector<128xf32>
    %494 = vector.shape_cast %493 : vector<128xf32> to vector<1x128xf32>
    %495 = tpu.reciprocal %494 {approx = true} : vector<1x128xf32> -> vector<1x128xf32>
    %496 = vector.broadcast %495 : vector<1x128xf32> to vector<9x128xf32>
    %497 = arith.mulf %492, %496 : vector<9x128xf32>
    %cst_117 = arith.constant dense<0xFF800000> : vector<128xf32>
    %498 = vector.multi_reduction <maximumf>, %497, %cst_117 [0] : vector<9x128xf32> to vector<128xf32>
    %499 = vector.shape_cast %498 : vector<128xf32> to vector<1x128xf32>
    %500 = vector.broadcast %499 : vector<1x128xf32> to vector<9x128xf32>
    %501 = arith.cmpf oeq, %497, %500 : vector<9x128xf32>
    %c9_i32_118 = arith.constant 9 : i32
    %502 = vector.broadcast %c9_i32_118 : i32 to vector<9x128xi32>
    %503 = arith.select %501, %14, %502 : vector<9x128xi1>, vector<9x128xi32>
    %cst_119 = arith.constant dense<2147483647> : vector<128xi32>
    %504 = vector.multi_reduction <minsi>, %503, %cst_119 [0] : vector<9x128xi32> to vector<128xi32>
    %505 = vector.shape_cast %504 : vector<128xi32> to vector<1x128xi32>
    %506 = vector.broadcast %505 : vector<1x128xi32> to vector<9x128xi32>
    %507 = arith.cmpi eq, %14, %506 : vector<9x128xi32>
    %508 = arith.extui %507 : vector<9x128xi1> to vector<9x128xi32>
    %509 = arith.sitofp %508 : vector<9x128xi32> to vector<9x128xf32>
    %510 = arith.subf %509, %497 : vector<9x128xf32>
    %511 = arith.addf %510, %497 : vector<9x128xf32>
    %512 = arith.addf %346, %454 : vector<1x128xf32>
    %cst_120 = arith.constant 1.000000e+00 : f32
    %513 = vector.broadcast %cst_120 : f32 to vector<1x128xf32>
    %514 = arith.subf %513, %512 : vector<1x128xf32>
    %515 = vector.broadcast %514 : vector<1x128xf32> to vector<9x128xf32>
    %516 = arith.mulf %511, %515 : vector<9x128xf32>
    %cst_121 = arith.constant 1.000000e+00 : f32
    %517 = vector.broadcast %cst_121 : f32 to vector<9x128xf32>
    %518 = arith.subf %517, %480 : vector<9x128xf32>
    %519 = arith.mulf %516, %518 : vector<9x128xf32>
    %520 = arith.addf %298, %519 : vector<9x128xf32>
    %521 = vector.extract_strided_slice %520 {offsets = [0, 0], sizes = [1, 128], strides = [1, 1]} : vector<9x128xf32> to vector<1x128xf32>
    %522 = vector.extract_strided_slice %520 {offsets = [1, 0], sizes = [1, 128], strides = [1, 1]} : vector<9x128xf32> to vector<1x128xf32>
    %523 = arith.mulf %521, %522 : vector<1x128xf32>
    %524 = vector.extract_strided_slice %520 {offsets = [2, 0], sizes = [1, 128], strides = [1, 1]} : vector<9x128xf32> to vector<1x128xf32>
    %525 = arith.mulf %523, %524 : vector<1x128xf32>
    %526 = vector.extract_strided_slice %520 {offsets = [3, 0], sizes = [1, 128], strides = [1, 1]} : vector<9x128xf32> to vector<1x128xf32>
    %527 = vector.extract_strided_slice %520 {offsets = [4, 0], sizes = [1, 128], strides = [1, 1]} : vector<9x128xf32> to vector<1x128xf32>
    %528 = arith.mulf %526, %527 : vector<1x128xf32>
    %529 = vector.extract_strided_slice %520 {offsets = [5, 0], sizes = [1, 128], strides = [1, 1]} : vector<9x128xf32> to vector<1x128xf32>
    %530 = arith.mulf %528, %529 : vector<1x128xf32>
    %531 = arith.addf %525, %530 : vector<1x128xf32>
    %532 = vector.extract_strided_slice %520 {offsets = [6, 0], sizes = [1, 128], strides = [1, 1]} : vector<9x128xf32> to vector<1x128xf32>
    %533 = vector.extract_strided_slice %520 {offsets = [7, 0], sizes = [1, 128], strides = [1, 1]} : vector<9x128xf32> to vector<1x128xf32>
    %534 = arith.mulf %532, %533 : vector<1x128xf32>
    %535 = vector.extract_strided_slice %520 {offsets = [8, 0], sizes = [1, 128], strides = [1, 1]} : vector<9x128xf32> to vector<1x128xf32>
    %536 = arith.mulf %534, %535 : vector<1x128xf32>
    %537 = arith.addf %531, %536 : vector<1x128xf32>
    %538 = vector.extract_strided_slice %520 {offsets = [0, 0], sizes = [1, 128], strides = [1, 1]} : vector<9x128xf32> to vector<1x128xf32>
    %539 = vector.extract_strided_slice %520 {offsets = [3, 0], sizes = [1, 128], strides = [1, 1]} : vector<9x128xf32> to vector<1x128xf32>
    %540 = arith.mulf %538, %539 : vector<1x128xf32>
    %541 = vector.extract_strided_slice %520 {offsets = [6, 0], sizes = [1, 128], strides = [1, 1]} : vector<9x128xf32> to vector<1x128xf32>
    %542 = arith.mulf %540, %541 : vector<1x128xf32>
    %543 = arith.addf %537, %542 : vector<1x128xf32>
    %544 = vector.extract_strided_slice %520 {offsets = [1, 0], sizes = [1, 128], strides = [1, 1]} : vector<9x128xf32> to vector<1x128xf32>
    %545 = vector.extract_strided_slice %520 {offsets = [4, 0], sizes = [1, 128], strides = [1, 1]} : vector<9x128xf32> to vector<1x128xf32>
    %546 = arith.mulf %544, %545 : vector<1x128xf32>
    %547 = vector.extract_strided_slice %520 {offsets = [7, 0], sizes = [1, 128], strides = [1, 1]} : vector<9x128xf32> to vector<1x128xf32>
    %548 = arith.mulf %546, %547 : vector<1x128xf32>
    %549 = arith.addf %543, %548 : vector<1x128xf32>
    %550 = vector.extract_strided_slice %520 {offsets = [2, 0], sizes = [1, 128], strides = [1, 1]} : vector<9x128xf32> to vector<1x128xf32>
    %551 = vector.extract_strided_slice %520 {offsets = [5, 0], sizes = [1, 128], strides = [1, 1]} : vector<9x128xf32> to vector<1x128xf32>
    %552 = arith.mulf %550, %551 : vector<1x128xf32>
    %553 = vector.extract_strided_slice %520 {offsets = [8, 0], sizes = [1, 128], strides = [1, 1]} : vector<9x128xf32> to vector<1x128xf32>
    %554 = arith.mulf %552, %553 : vector<1x128xf32>
    %555 = arith.addf %549, %554 : vector<1x128xf32>
    %556 = vector.extract_strided_slice %520 {offsets = [0, 0], sizes = [1, 128], strides = [1, 1]} : vector<9x128xf32> to vector<1x128xf32>
    %557 = vector.extract_strided_slice %520 {offsets = [4, 0], sizes = [1, 128], strides = [1, 1]} : vector<9x128xf32> to vector<1x128xf32>
    %558 = arith.mulf %556, %557 : vector<1x128xf32>
    %559 = vector.extract_strided_slice %520 {offsets = [8, 0], sizes = [1, 128], strides = [1, 1]} : vector<9x128xf32> to vector<1x128xf32>
    %560 = arith.mulf %558, %559 : vector<1x128xf32>
    %561 = arith.addf %555, %560 : vector<1x128xf32>
    %562 = vector.extract_strided_slice %520 {offsets = [2, 0], sizes = [1, 128], strides = [1, 1]} : vector<9x128xf32> to vector<1x128xf32>
    %563 = vector.extract_strided_slice %520 {offsets = [4, 0], sizes = [1, 128], strides = [1, 1]} : vector<9x128xf32> to vector<1x128xf32>
    %564 = arith.mulf %562, %563 : vector<1x128xf32>
    %565 = vector.extract_strided_slice %520 {offsets = [6, 0], sizes = [1, 128], strides = [1, 1]} : vector<9x128xf32> to vector<1x128xf32>
    %566 = arith.mulf %564, %565 : vector<1x128xf32>
    %567 = arith.addf %561, %566 : vector<1x128xf32>
    %568 = arith.maximumf %346, %567 : vector<1x128xf32>
    %c5 = arith.constant 5 : index
    %c0_122 = arith.constant 0 : index
    %c0_123 = arith.constant 0 : index
    %569 = vector.load %arg1[%c5, %c0_122, %c0_123] : memref<8x9x128xf32, #tpu.memory_space<vmem>>, vector<1x9x128xf32>
    %570 = vector.shape_cast %569 : vector<1x9x128xf32> to vector<9x128xf32>
    %cst_124 = arith.constant 1.000000e+00 : f32
    %571 = vector.broadcast %cst_124 : f32 to vector<9x128xf32>
    %572 = arith.subf %571, %406 : vector<9x128xf32>
    %573 = arith.subf %572, %520 : vector<9x128xf32>
    %cst_125 = arith.constant dense<0.000000e+00> : vector<288x128xf32>
    %574 = tpu.matmul %7, %406, %cst_125 {dimension_numbers = #tpu.dot_dimension_numbers<[1], [0], [0], [1], [0, 0, 1, 1], [], []>} : vector<288x9xf32>, vector<9x128xf32>, vector<288x128xf32> -> vector<288x128xf32>
    %cst_126 = arith.constant dense<0.000000e+00> : vector<288x128xf32>
    %575 = tpu.matmul %8, %520, %cst_126 {dimension_numbers = #tpu.dot_dimension_numbers<[1], [0], [0], [1], [0, 0, 1, 1], [], []>} : vector<288x9xf32>, vector<9x128xf32>, vector<288x128xf32> -> vector<288x128xf32>
    %576 = arith.addf %574, %575 : vector<288x128xf32>
    %cst_127 = arith.constant dense<0.000000e+00> : vector<288x128xf32>
    %577 = tpu.matmul %9, %573, %cst_127 {dimension_numbers = #tpu.dot_dimension_numbers<[1], [0], [0], [1], [0, 0, 1, 1], [], []>} : vector<288x9xf32>, vector<9x128xf32>, vector<288x128xf32> -> vector<288x128xf32>
    %578 = arith.addf %576, %577 : vector<288x128xf32>
    %cst_128 = arith.constant dense<0.000000e+00> : vector<288x128xf32>
    %579 = tpu.matmul %10, %519, %cst_128 {dimension_numbers = #tpu.dot_dimension_numbers<[1], [0], [0], [1], [0, 0, 1, 1], [], []>} : vector<288x9xf32>, vector<9x128xf32>, vector<288x128xf32> -> vector<288x128xf32>
    %580 = arith.addf %578, %579 : vector<288x128xf32>
    %581 = vector.broadcast %11 : vector<288x1xf32> to vector<288x128xf32>
    %582 = arith.addf %580, %581 : vector<288x128xf32>
    %cst_129 = arith.constant 0.000000e+00 : f32
    %583 = vector.broadcast %cst_129 : f32 to vector<288x128xf32>
    %584 = arith.maximumf %582, %583 : vector<288x128xf32>
    %cst_130 = arith.constant dense<0.000000e+00> : vector<9x128xf32>
    %585 = tpu.matmul %12, %584, %cst_130 {dimension_numbers = #tpu.dot_dimension_numbers<[1], [0], [0], [1], [0, 0, 1, 1], [], []>} : vector<9x288xf32>, vector<288x128xf32>, vector<9x128xf32> -> vector<9x128xf32>
    %586 = vector.broadcast %13 : vector<9x1xf32> to vector<9x128xf32>
    %587 = arith.addf %585, %586 : vector<9x128xf32>
    %588 = arith.addf %406, %520 : vector<9x128xf32>
    %589 = arith.mulf %587, %587 : vector<9x128xf32>
    %cst_131 = arith.constant 1.000000e+00 : f32
    %590 = vector.broadcast %cst_131 : f32 to vector<9x128xf32>
    %591 = arith.subf %590, %588 : vector<9x128xf32>
    %592 = arith.mulf %589, %591 : vector<9x128xf32>
    %cst_132 = arith.constant dense<0.000000e+00> : vector<128xf32>
    %593 = vector.multi_reduction <add>, %592, %cst_132 [0] : vector<9x128xf32> to vector<128xf32>
    %594 = vector.shape_cast %593 : vector<128xf32> to vector<1x128xf32>
    %595 = arith.addf %587, %570 : vector<9x128xf32>
    %cst_133 = arith.constant dense<0xFF800000> : vector<128xf32>
    %596 = vector.multi_reduction <maximumf>, %595, %cst_133 [0] : vector<9x128xf32> to vector<128xf32>
    %597 = vector.shape_cast %596 : vector<128xf32> to vector<1x128xf32>
    %598 = vector.broadcast %597 : vector<1x128xf32> to vector<9x128xf32>
    %599 = arith.subf %595, %598 : vector<9x128xf32>
    %600 = math.exp %599 : vector<9x128xf32>
    %cst_134 = arith.constant dense<0.000000e+00> : vector<128xf32>
    %601 = vector.multi_reduction <add>, %600, %cst_134 [0] : vector<9x128xf32> to vector<128xf32>
    %602 = vector.shape_cast %601 : vector<128xf32> to vector<1x128xf32>
    %603 = tpu.reciprocal %602 {approx = true} : vector<1x128xf32> -> vector<1x128xf32>
    %604 = vector.broadcast %603 : vector<1x128xf32> to vector<9x128xf32>
    %605 = arith.mulf %600, %604 : vector<9x128xf32>
    %cst_135 = arith.constant dense<0xFF800000> : vector<128xf32>
    %606 = vector.multi_reduction <maximumf>, %605, %cst_135 [0] : vector<9x128xf32> to vector<128xf32>
    %607 = vector.shape_cast %606 : vector<128xf32> to vector<1x128xf32>
    %608 = vector.broadcast %607 : vector<1x128xf32> to vector<9x128xf32>
    %609 = arith.cmpf oeq, %605, %608 : vector<9x128xf32>
    %c9_i32_136 = arith.constant 9 : i32
    %610 = vector.broadcast %c9_i32_136 : i32 to vector<9x128xi32>
    %611 = arith.select %609, %14, %610 : vector<9x128xi1>, vector<9x128xi32>
    %cst_137 = arith.constant dense<2147483647> : vector<128xi32>
    %612 = vector.multi_reduction <minsi>, %611, %cst_137 [0] : vector<9x128xi32> to vector<128xi32>
    %613 = vector.shape_cast %612 : vector<128xi32> to vector<1x128xi32>
    %614 = vector.broadcast %613 : vector<1x128xi32> to vector<9x128xi32>
    %615 = arith.cmpi eq, %14, %614 : vector<9x128xi32>
    %616 = arith.extui %615 : vector<9x128xi1> to vector<9x128xi32>
    %617 = arith.sitofp %616 : vector<9x128xi32> to vector<9x128xf32>
    %618 = arith.subf %617, %605 : vector<9x128xf32>
    %619 = arith.addf %618, %605 : vector<9x128xf32>
    %620 = arith.addf %454, %568 : vector<1x128xf32>
    %cst_138 = arith.constant 1.000000e+00 : f32
    %621 = vector.broadcast %cst_138 : f32 to vector<1x128xf32>
    %622 = arith.subf %621, %620 : vector<1x128xf32>
    %623 = vector.broadcast %622 : vector<1x128xf32> to vector<9x128xf32>
    %624 = arith.mulf %619, %623 : vector<9x128xf32>
    %cst_139 = arith.constant 1.000000e+00 : f32
    %625 = vector.broadcast %cst_139 : f32 to vector<9x128xf32>
    %626 = arith.subf %625, %588 : vector<9x128xf32>
    %627 = arith.mulf %624, %626 : vector<9x128xf32>
    %628 = arith.addf %406, %627 : vector<9x128xf32>
    %629 = vector.extract_strided_slice %628 {offsets = [0, 0], sizes = [1, 128], strides = [1, 1]} : vector<9x128xf32> to vector<1x128xf32>
    %630 = vector.extract_strided_slice %628 {offsets = [1, 0], sizes = [1, 128], strides = [1, 1]} : vector<9x128xf32> to vector<1x128xf32>
    %631 = arith.mulf %629, %630 : vector<1x128xf32>
    %632 = vector.extract_strided_slice %628 {offsets = [2, 0], sizes = [1, 128], strides = [1, 1]} : vector<9x128xf32> to vector<1x128xf32>
    %633 = arith.mulf %631, %632 : vector<1x128xf32>
    %634 = vector.extract_strided_slice %628 {offsets = [3, 0], sizes = [1, 128], strides = [1, 1]} : vector<9x128xf32> to vector<1x128xf32>
    %635 = vector.extract_strided_slice %628 {offsets = [4, 0], sizes = [1, 128], strides = [1, 1]} : vector<9x128xf32> to vector<1x128xf32>
    %636 = arith.mulf %634, %635 : vector<1x128xf32>
    %637 = vector.extract_strided_slice %628 {offsets = [5, 0], sizes = [1, 128], strides = [1, 1]} : vector<9x128xf32> to vector<1x128xf32>
    %638 = arith.mulf %636, %637 : vector<1x128xf32>
    %639 = arith.addf %633, %638 : vector<1x128xf32>
    %640 = vector.extract_strided_slice %628 {offsets = [6, 0], sizes = [1, 128], strides = [1, 1]} : vector<9x128xf32> to vector<1x128xf32>
    %641 = vector.extract_strided_slice %628 {offsets = [7, 0], sizes = [1, 128], strides = [1, 1]} : vector<9x128xf32> to vector<1x128xf32>
    %642 = arith.mulf %640, %641 : vector<1x128xf32>
    %643 = vector.extract_strided_slice %628 {offsets = [8, 0], sizes = [1, 128], strides = [1, 1]} : vector<9x128xf32> to vector<1x128xf32>
    %644 = arith.mulf %642, %643 : vector<1x128xf32>
    %645 = arith.addf %639, %644 : vector<1x128xf32>
    %646 = vector.extract_strided_slice %628 {offsets = [0, 0], sizes = [1, 128], strides = [1, 1]} : vector<9x128xf32> to vector<1x128xf32>
    %647 = vector.extract_strided_slice %628 {offsets = [3, 0], sizes = [1, 128], strides = [1, 1]} : vector<9x128xf32> to vector<1x128xf32>
    %648 = arith.mulf %646, %647 : vector<1x128xf32>
    %649 = vector.extract_strided_slice %628 {offsets = [6, 0], sizes = [1, 128], strides = [1, 1]} : vector<9x128xf32> to vector<1x128xf32>
    %650 = arith.mulf %648, %649 : vector<1x128xf32>
    %651 = arith.addf %645, %650 : vector<1x128xf32>
    %652 = vector.extract_strided_slice %628 {offsets = [1, 0], sizes = [1, 128], strides = [1, 1]} : vector<9x128xf32> to vector<1x128xf32>
    %653 = vector.extract_strided_slice %628 {offsets = [4, 0], sizes = [1, 128], strides = [1, 1]} : vector<9x128xf32> to vector<1x128xf32>
    %654 = arith.mulf %652, %653 : vector<1x128xf32>
    %655 = vector.extract_strided_slice %628 {offsets = [7, 0], sizes = [1, 128], strides = [1, 1]} : vector<9x128xf32> to vector<1x128xf32>
    %656 = arith.mulf %654, %655 : vector<1x128xf32>
    %657 = arith.addf %651, %656 : vector<1x128xf32>
    %658 = vector.extract_strided_slice %628 {offsets = [2, 0], sizes = [1, 128], strides = [1, 1]} : vector<9x128xf32> to vector<1x128xf32>
    %659 = vector.extract_strided_slice %628 {offsets = [5, 0], sizes = [1, 128], strides = [1, 1]} : vector<9x128xf32> to vector<1x128xf32>
    %660 = arith.mulf %658, %659 : vector<1x128xf32>
    %661 = vector.extract_strided_slice %628 {offsets = [8, 0], sizes = [1, 128], strides = [1, 1]} : vector<9x128xf32> to vector<1x128xf32>
    %662 = arith.mulf %660, %661 : vector<1x128xf32>
    %663 = arith.addf %657, %662 : vector<1x128xf32>
    %664 = vector.extract_strided_slice %628 {offsets = [0, 0], sizes = [1, 128], strides = [1, 1]} : vector<9x128xf32> to vector<1x128xf32>
    %665 = vector.extract_strided_slice %628 {offsets = [4, 0], sizes = [1, 128], strides = [1, 1]} : vector<9x128xf32> to vector<1x128xf32>
    %666 = arith.mulf %664, %665 : vector<1x128xf32>
    %667 = vector.extract_strided_slice %628 {offsets = [8, 0], sizes = [1, 128], strides = [1, 1]} : vector<9x128xf32> to vector<1x128xf32>
    %668 = arith.mulf %666, %667 : vector<1x128xf32>
    %669 = arith.addf %663, %668 : vector<1x128xf32>
    %670 = vector.extract_strided_slice %628 {offsets = [2, 0], sizes = [1, 128], strides = [1, 1]} : vector<9x128xf32> to vector<1x128xf32>
    %671 = vector.extract_strided_slice %628 {offsets = [4, 0], sizes = [1, 128], strides = [1, 1]} : vector<9x128xf32> to vector<1x128xf32>
    %672 = arith.mulf %670, %671 : vector<1x128xf32>
    %673 = vector.extract_strided_slice %628 {offsets = [6, 0], sizes = [1, 128], strides = [1, 1]} : vector<9x128xf32> to vector<1x128xf32>
    %674 = arith.mulf %672, %673 : vector<1x128xf32>
    %675 = arith.addf %669, %674 : vector<1x128xf32>
    %676 = arith.maximumf %454, %675 : vector<1x128xf32>
    %cst_140 = arith.constant 0.00333333341 : f32
    %677 = vector.broadcast %cst_140 : f32 to vector<1x128xf32>
    %678 = arith.mulf %486, %677 : vector<1x128xf32>
    %679 = arith.addf %457, %678 : vector<1x128xf32>
    %cst_141 = arith.constant 0.00333333341 : f32
    %680 = vector.broadcast %cst_141 : f32 to vector<1x128xf32>
    %681 = arith.mulf %594, %680 : vector<1x128xf32>
    %682 = arith.addf %460, %681 : vector<1x128xf32>
    %c6 = arith.constant 6 : index
    %c0_142 = arith.constant 0 : index
    %c0_143 = arith.constant 0 : index
    %683 = vector.load %arg1[%c6, %c0_142, %c0_143] : memref<8x9x128xf32, #tpu.memory_space<vmem>>, vector<1x9x128xf32>
    %684 = vector.shape_cast %683 : vector<1x9x128xf32> to vector<9x128xf32>
    %cst_144 = arith.constant 1.000000e+00 : f32
    %685 = vector.broadcast %cst_144 : f32 to vector<9x128xf32>
    %686 = arith.subf %685, %520 : vector<9x128xf32>
    %687 = arith.subf %686, %628 : vector<9x128xf32>
    %cst_145 = arith.constant dense<0.000000e+00> : vector<288x128xf32>
    %688 = tpu.matmul %0, %520, %cst_145 {dimension_numbers = #tpu.dot_dimension_numbers<[1], [0], [0], [1], [0, 0, 1, 1], [], []>} : vector<288x9xf32>, vector<9x128xf32>, vector<288x128xf32> -> vector<288x128xf32>
    %cst_146 = arith.constant dense<0.000000e+00> : vector<288x128xf32>
    %689 = tpu.matmul %1, %628, %cst_146 {dimension_numbers = #tpu.dot_dimension_numbers<[1], [0], [0], [1], [0, 0, 1, 1], [], []>} : vector<288x9xf32>, vector<9x128xf32>, vector<288x128xf32> -> vector<288x128xf32>
    %690 = arith.addf %688, %689 : vector<288x128xf32>
    %cst_147 = arith.constant dense<0.000000e+00> : vector<288x128xf32>
    %691 = tpu.matmul %2, %687, %cst_147 {dimension_numbers = #tpu.dot_dimension_numbers<[1], [0], [0], [1], [0, 0, 1, 1], [], []>} : vector<288x9xf32>, vector<9x128xf32>, vector<288x128xf32> -> vector<288x128xf32>
    %692 = arith.addf %690, %691 : vector<288x128xf32>
    %cst_148 = arith.constant dense<0.000000e+00> : vector<288x128xf32>
    %693 = tpu.matmul %3, %627, %cst_148 {dimension_numbers = #tpu.dot_dimension_numbers<[1], [0], [0], [1], [0, 0, 1, 1], [], []>} : vector<288x9xf32>, vector<9x128xf32>, vector<288x128xf32> -> vector<288x128xf32>
    %694 = arith.addf %692, %693 : vector<288x128xf32>
    %695 = vector.broadcast %4 : vector<288x1xf32> to vector<288x128xf32>
    %696 = arith.addf %694, %695 : vector<288x128xf32>
    %cst_149 = arith.constant 0.000000e+00 : f32
    %697 = vector.broadcast %cst_149 : f32 to vector<288x128xf32>
    %698 = arith.maximumf %696, %697 : vector<288x128xf32>
    %cst_150 = arith.constant dense<0.000000e+00> : vector<9x128xf32>
    %699 = tpu.matmul %5, %698, %cst_150 {dimension_numbers = #tpu.dot_dimension_numbers<[1], [0], [0], [1], [0, 0, 1, 1], [], []>} : vector<9x288xf32>, vector<288x128xf32>, vector<9x128xf32> -> vector<9x128xf32>
    %700 = vector.broadcast %6 : vector<9x1xf32> to vector<9x128xf32>
    %701 = arith.addf %699, %700 : vector<9x128xf32>
    %702 = arith.addf %520, %628 : vector<9x128xf32>
    %703 = arith.mulf %701, %701 : vector<9x128xf32>
    %cst_151 = arith.constant 1.000000e+00 : f32
    %704 = vector.broadcast %cst_151 : f32 to vector<9x128xf32>
    %705 = arith.subf %704, %702 : vector<9x128xf32>
    %706 = arith.mulf %703, %705 : vector<9x128xf32>
    %cst_152 = arith.constant dense<0.000000e+00> : vector<128xf32>
    %707 = vector.multi_reduction <add>, %706, %cst_152 [0] : vector<9x128xf32> to vector<128xf32>
    %708 = vector.shape_cast %707 : vector<128xf32> to vector<1x128xf32>
    %709 = arith.addf %701, %684 : vector<9x128xf32>
    %cst_153 = arith.constant dense<0xFF800000> : vector<128xf32>
    %710 = vector.multi_reduction <maximumf>, %709, %cst_153 [0] : vector<9x128xf32> to vector<128xf32>
    %711 = vector.shape_cast %710 : vector<128xf32> to vector<1x128xf32>
    %712 = vector.broadcast %711 : vector<1x128xf32> to vector<9x128xf32>
    %713 = arith.subf %709, %712 : vector<9x128xf32>
    %714 = math.exp %713 : vector<9x128xf32>
    %cst_154 = arith.constant dense<0.000000e+00> : vector<128xf32>
    %715 = vector.multi_reduction <add>, %714, %cst_154 [0] : vector<9x128xf32> to vector<128xf32>
    %716 = vector.shape_cast %715 : vector<128xf32> to vector<1x128xf32>
    %717 = tpu.reciprocal %716 {approx = true} : vector<1x128xf32> -> vector<1x128xf32>
    %718 = vector.broadcast %717 : vector<1x128xf32> to vector<9x128xf32>
    %719 = arith.mulf %714, %718 : vector<9x128xf32>
    %cst_155 = arith.constant dense<0xFF800000> : vector<128xf32>
    %720 = vector.multi_reduction <maximumf>, %719, %cst_155 [0] : vector<9x128xf32> to vector<128xf32>
    %721 = vector.shape_cast %720 : vector<128xf32> to vector<1x128xf32>
    %722 = vector.broadcast %721 : vector<1x128xf32> to vector<9x128xf32>
    %723 = arith.cmpf oeq, %719, %722 : vector<9x128xf32>
    %c9_i32_156 = arith.constant 9 : i32
    %724 = vector.broadcast %c9_i32_156 : i32 to vector<9x128xi32>
    %725 = arith.select %723, %14, %724 : vector<9x128xi1>, vector<9x128xi32>
    %cst_157 = arith.constant dense<2147483647> : vector<128xi32>
    %726 = vector.multi_reduction <minsi>, %725, %cst_157 [0] : vector<9x128xi32> to vector<128xi32>
    %727 = vector.shape_cast %726 : vector<128xi32> to vector<1x128xi32>
    %728 = vector.broadcast %727 : vector<1x128xi32> to vector<9x128xi32>
    %729 = arith.cmpi eq, %14, %728 : vector<9x128xi32>
    %730 = arith.extui %729 : vector<9x128xi1> to vector<9x128xi32>
    %731 = arith.sitofp %730 : vector<9x128xi32> to vector<9x128xf32>
    %732 = arith.subf %731, %719 : vector<9x128xf32>
    %733 = arith.addf %732, %719 : vector<9x128xf32>
    %734 = arith.addf %568, %676 : vector<1x128xf32>
    %cst_158 = arith.constant 1.000000e+00 : f32
    %735 = vector.broadcast %cst_158 : f32 to vector<1x128xf32>
    %736 = arith.subf %735, %734 : vector<1x128xf32>
    %737 = vector.broadcast %736 : vector<1x128xf32> to vector<9x128xf32>
    %738 = arith.mulf %733, %737 : vector<9x128xf32>
    %cst_159 = arith.constant 1.000000e+00 : f32
    %739 = vector.broadcast %cst_159 : f32 to vector<9x128xf32>
    %740 = arith.subf %739, %702 : vector<9x128xf32>
    %741 = arith.mulf %738, %740 : vector<9x128xf32>
    %742 = arith.addf %520, %741 : vector<9x128xf32>
    %743 = vector.extract_strided_slice %742 {offsets = [0, 0], sizes = [1, 128], strides = [1, 1]} : vector<9x128xf32> to vector<1x128xf32>
    %744 = vector.extract_strided_slice %742 {offsets = [1, 0], sizes = [1, 128], strides = [1, 1]} : vector<9x128xf32> to vector<1x128xf32>
    %745 = arith.mulf %743, %744 : vector<1x128xf32>
    %746 = vector.extract_strided_slice %742 {offsets = [2, 0], sizes = [1, 128], strides = [1, 1]} : vector<9x128xf32> to vector<1x128xf32>
    %747 = arith.mulf %745, %746 : vector<1x128xf32>
    %748 = vector.extract_strided_slice %742 {offsets = [3, 0], sizes = [1, 128], strides = [1, 1]} : vector<9x128xf32> to vector<1x128xf32>
    %749 = vector.extract_strided_slice %742 {offsets = [4, 0], sizes = [1, 128], strides = [1, 1]} : vector<9x128xf32> to vector<1x128xf32>
    %750 = arith.mulf %748, %749 : vector<1x128xf32>
    %751 = vector.extract_strided_slice %742 {offsets = [5, 0], sizes = [1, 128], strides = [1, 1]} : vector<9x128xf32> to vector<1x128xf32>
    %752 = arith.mulf %750, %751 : vector<1x128xf32>
    %753 = arith.addf %747, %752 : vector<1x128xf32>
    %754 = vector.extract_strided_slice %742 {offsets = [6, 0], sizes = [1, 128], strides = [1, 1]} : vector<9x128xf32> to vector<1x128xf32>
    %755 = vector.extract_strided_slice %742 {offsets = [7, 0], sizes = [1, 128], strides = [1, 1]} : vector<9x128xf32> to vector<1x128xf32>
    %756 = arith.mulf %754, %755 : vector<1x128xf32>
    %757 = vector.extract_strided_slice %742 {offsets = [8, 0], sizes = [1, 128], strides = [1, 1]} : vector<9x128xf32> to vector<1x128xf32>
    %758 = arith.mulf %756, %757 : vector<1x128xf32>
    %759 = arith.addf %753, %758 : vector<1x128xf32>
    %760 = vector.extract_strided_slice %742 {offsets = [0, 0], sizes = [1, 128], strides = [1, 1]} : vector<9x128xf32> to vector<1x128xf32>
    %761 = vector.extract_strided_slice %742 {offsets = [3, 0], sizes = [1, 128], strides = [1, 1]} : vector<9x128xf32> to vector<1x128xf32>
    %762 = arith.mulf %760, %761 : vector<1x128xf32>
    %763 = vector.extract_strided_slice %742 {offsets = [6, 0], sizes = [1, 128], strides = [1, 1]} : vector<9x128xf32> to vector<1x128xf32>
    %764 = arith.mulf %762, %763 : vector<1x128xf32>
    %765 = arith.addf %759, %764 : vector<1x128xf32>
    %766 = vector.extract_strided_slice %742 {offsets = [1, 0], sizes = [1, 128], strides = [1, 1]} : vector<9x128xf32> to vector<1x128xf32>
    %767 = vector.extract_strided_slice %742 {offsets = [4, 0], sizes = [1, 128], strides = [1, 1]} : vector<9x128xf32> to vector<1x128xf32>
    %768 = arith.mulf %766, %767 : vector<1x128xf32>
    %769 = vector.extract_strided_slice %742 {offsets = [7, 0], sizes = [1, 128], strides = [1, 1]} : vector<9x128xf32> to vector<1x128xf32>
    %770 = arith.mulf %768, %769 : vector<1x128xf32>
    %771 = arith.addf %765, %770 : vector<1x128xf32>
    %772 = vector.extract_strided_slice %742 {offsets = [2, 0], sizes = [1, 128], strides = [1, 1]} : vector<9x128xf32> to vector<1x128xf32>
    %773 = vector.extract_strided_slice %742 {offsets = [5, 0], sizes = [1, 128], strides = [1, 1]} : vector<9x128xf32> to vector<1x128xf32>
    %774 = arith.mulf %772, %773 : vector<1x128xf32>
    %775 = vector.extract_strided_slice %742 {offsets = [8, 0], sizes = [1, 128], strides = [1, 1]} : vector<9x128xf32> to vector<1x128xf32>
    %776 = arith.mulf %774, %775 : vector<1x128xf32>
    %777 = arith.addf %771, %776 : vector<1x128xf32>
    %778 = vector.extract_strided_slice %742 {offsets = [0, 0], sizes = [1, 128], strides = [1, 1]} : vector<9x128xf32> to vector<1x128xf32>
    %779 = vector.extract_strided_slice %742 {offsets = [4, 0], sizes = [1, 128], strides = [1, 1]} : vector<9x128xf32> to vector<1x128xf32>
    %780 = arith.mulf %778, %779 : vector<1x128xf32>
    %781 = vector.extract_strided_slice %742 {offsets = [8, 0], sizes = [1, 128], strides = [1, 1]} : vector<9x128xf32> to vector<1x128xf32>
    %782 = arith.mulf %780, %781 : vector<1x128xf32>
    %783 = arith.addf %777, %782 : vector<1x128xf32>
    %784 = vector.extract_strided_slice %742 {offsets = [2, 0], sizes = [1, 128], strides = [1, 1]} : vector<9x128xf32> to vector<1x128xf32>
    %785 = vector.extract_strided_slice %742 {offsets = [4, 0], sizes = [1, 128], strides = [1, 1]} : vector<9x128xf32> to vector<1x128xf32>
    %786 = arith.mulf %784, %785 : vector<1x128xf32>
    %787 = vector.extract_strided_slice %742 {offsets = [6, 0], sizes = [1, 128], strides = [1, 1]} : vector<9x128xf32> to vector<1x128xf32>
    %788 = arith.mulf %786, %787 : vector<1x128xf32>
    %789 = arith.addf %783, %788 : vector<1x128xf32>
    %790 = arith.maximumf %568, %789 : vector<1x128xf32>
    %c7 = arith.constant 7 : index
    %c0_160 = arith.constant 0 : index
    %c0_161 = arith.constant 0 : index
    %791 = vector.load %arg1[%c7, %c0_160, %c0_161] : memref<8x9x128xf32, #tpu.memory_space<vmem>>, vector<1x9x128xf32>
    %792 = vector.shape_cast %791 : vector<1x9x128xf32> to vector<9x128xf32>
    %cst_162 = arith.constant 1.000000e+00 : f32
    %793 = vector.broadcast %cst_162 : f32 to vector<9x128xf32>
    %794 = arith.subf %793, %628 : vector<9x128xf32>
    %795 = arith.subf %794, %742 : vector<9x128xf32>
    %cst_163 = arith.constant dense<0.000000e+00> : vector<288x128xf32>
    %796 = tpu.matmul %7, %628, %cst_163 {dimension_numbers = #tpu.dot_dimension_numbers<[1], [0], [0], [1], [0, 0, 1, 1], [], []>} : vector<288x9xf32>, vector<9x128xf32>, vector<288x128xf32> -> vector<288x128xf32>
    %cst_164 = arith.constant dense<0.000000e+00> : vector<288x128xf32>
    %797 = tpu.matmul %8, %742, %cst_164 {dimension_numbers = #tpu.dot_dimension_numbers<[1], [0], [0], [1], [0, 0, 1, 1], [], []>} : vector<288x9xf32>, vector<9x128xf32>, vector<288x128xf32> -> vector<288x128xf32>
    %798 = arith.addf %796, %797 : vector<288x128xf32>
    %cst_165 = arith.constant dense<0.000000e+00> : vector<288x128xf32>
    %799 = tpu.matmul %9, %795, %cst_165 {dimension_numbers = #tpu.dot_dimension_numbers<[1], [0], [0], [1], [0, 0, 1, 1], [], []>} : vector<288x9xf32>, vector<9x128xf32>, vector<288x128xf32> -> vector<288x128xf32>
    %800 = arith.addf %798, %799 : vector<288x128xf32>
    %cst_166 = arith.constant dense<0.000000e+00> : vector<288x128xf32>
    %801 = tpu.matmul %10, %741, %cst_166 {dimension_numbers = #tpu.dot_dimension_numbers<[1], [0], [0], [1], [0, 0, 1, 1], [], []>} : vector<288x9xf32>, vector<9x128xf32>, vector<288x128xf32> -> vector<288x128xf32>
    %802 = arith.addf %800, %801 : vector<288x128xf32>
    %803 = vector.broadcast %11 : vector<288x1xf32> to vector<288x128xf32>
    %804 = arith.addf %802, %803 : vector<288x128xf32>
    %cst_167 = arith.constant 0.000000e+00 : f32
    %805 = vector.broadcast %cst_167 : f32 to vector<288x128xf32>
    %806 = arith.maximumf %804, %805 : vector<288x128xf32>
    %cst_168 = arith.constant dense<0.000000e+00> : vector<9x128xf32>
    %807 = tpu.matmul %12, %806, %cst_168 {dimension_numbers = #tpu.dot_dimension_numbers<[1], [0], [0], [1], [0, 0, 1, 1], [], []>} : vector<9x288xf32>, vector<288x128xf32>, vector<9x128xf32> -> vector<9x128xf32>
    %808 = vector.broadcast %13 : vector<9x1xf32> to vector<9x128xf32>
    %809 = arith.addf %807, %808 : vector<9x128xf32>
    %810 = arith.addf %628, %742 : vector<9x128xf32>
    %811 = arith.mulf %809, %809 : vector<9x128xf32>
    %cst_169 = arith.constant 1.000000e+00 : f32
    %812 = vector.broadcast %cst_169 : f32 to vector<9x128xf32>
    %813 = arith.subf %812, %810 : vector<9x128xf32>
    %814 = arith.mulf %811, %813 : vector<9x128xf32>
    %cst_170 = arith.constant dense<0.000000e+00> : vector<128xf32>
    %815 = vector.multi_reduction <add>, %814, %cst_170 [0] : vector<9x128xf32> to vector<128xf32>
    %816 = vector.shape_cast %815 : vector<128xf32> to vector<1x128xf32>
    %817 = arith.addf %809, %792 : vector<9x128xf32>
    %cst_171 = arith.constant dense<0xFF800000> : vector<128xf32>
    %818 = vector.multi_reduction <maximumf>, %817, %cst_171 [0] : vector<9x128xf32> to vector<128xf32>
    %819 = vector.shape_cast %818 : vector<128xf32> to vector<1x128xf32>
    %820 = vector.broadcast %819 : vector<1x128xf32> to vector<9x128xf32>
    %821 = arith.subf %817, %820 : vector<9x128xf32>
    %822 = math.exp %821 : vector<9x128xf32>
    %cst_172 = arith.constant dense<0.000000e+00> : vector<128xf32>
    %823 = vector.multi_reduction <add>, %822, %cst_172 [0] : vector<9x128xf32> to vector<128xf32>
    %824 = vector.shape_cast %823 : vector<128xf32> to vector<1x128xf32>
    %825 = tpu.reciprocal %824 {approx = true} : vector<1x128xf32> -> vector<1x128xf32>
    %826 = vector.broadcast %825 : vector<1x128xf32> to vector<9x128xf32>
    %827 = arith.mulf %822, %826 : vector<9x128xf32>
    %cst_173 = arith.constant dense<0xFF800000> : vector<128xf32>
    %828 = vector.multi_reduction <maximumf>, %827, %cst_173 [0] : vector<9x128xf32> to vector<128xf32>
    %829 = vector.shape_cast %828 : vector<128xf32> to vector<1x128xf32>
    %830 = vector.broadcast %829 : vector<1x128xf32> to vector<9x128xf32>
    %831 = arith.cmpf oeq, %827, %830 : vector<9x128xf32>
    %c9_i32_174 = arith.constant 9 : i32
    %832 = vector.broadcast %c9_i32_174 : i32 to vector<9x128xi32>
    %833 = arith.select %831, %14, %832 : vector<9x128xi1>, vector<9x128xi32>
    %cst_175 = arith.constant dense<2147483647> : vector<128xi32>
    %834 = vector.multi_reduction <minsi>, %833, %cst_175 [0] : vector<9x128xi32> to vector<128xi32>
    %835 = vector.shape_cast %834 : vector<128xi32> to vector<1x128xi32>
    %836 = vector.broadcast %835 : vector<1x128xi32> to vector<9x128xi32>
    %837 = arith.cmpi eq, %14, %836 : vector<9x128xi32>
    %838 = arith.extui %837 : vector<9x128xi1> to vector<9x128xi32>
    %839 = arith.sitofp %838 : vector<9x128xi32> to vector<9x128xf32>
    %840 = arith.subf %839, %827 : vector<9x128xf32>
    %841 = arith.addf %840, %827 : vector<9x128xf32>
    %842 = arith.addf %676, %790 : vector<1x128xf32>
    %cst_176 = arith.constant 1.000000e+00 : f32
    %843 = vector.broadcast %cst_176 : f32 to vector<1x128xf32>
    %844 = arith.subf %843, %842 : vector<1x128xf32>
    %845 = vector.broadcast %844 : vector<1x128xf32> to vector<9x128xf32>
    %846 = arith.mulf %841, %845 : vector<9x128xf32>
    %cst_177 = arith.constant 1.000000e+00 : f32
    %847 = vector.broadcast %cst_177 : f32 to vector<9x128xf32>
    %848 = arith.subf %847, %810 : vector<9x128xf32>
    %849 = arith.mulf %846, %848 : vector<9x128xf32>
    %850 = arith.addf %628, %849 : vector<9x128xf32>
    %851 = vector.extract_strided_slice %850 {offsets = [0, 0], sizes = [1, 128], strides = [1, 1]} : vector<9x128xf32> to vector<1x128xf32>
    %852 = vector.extract_strided_slice %850 {offsets = [1, 0], sizes = [1, 128], strides = [1, 1]} : vector<9x128xf32> to vector<1x128xf32>
    %853 = arith.mulf %851, %852 : vector<1x128xf32>
    %854 = vector.extract_strided_slice %850 {offsets = [2, 0], sizes = [1, 128], strides = [1, 1]} : vector<9x128xf32> to vector<1x128xf32>
    %855 = arith.mulf %853, %854 : vector<1x128xf32>
    %856 = vector.extract_strided_slice %850 {offsets = [3, 0], sizes = [1, 128], strides = [1, 1]} : vector<9x128xf32> to vector<1x128xf32>
    %857 = vector.extract_strided_slice %850 {offsets = [4, 0], sizes = [1, 128], strides = [1, 1]} : vector<9x128xf32> to vector<1x128xf32>
    %858 = arith.mulf %856, %857 : vector<1x128xf32>
    %859 = vector.extract_strided_slice %850 {offsets = [5, 0], sizes = [1, 128], strides = [1, 1]} : vector<9x128xf32> to vector<1x128xf32>
    %860 = arith.mulf %858, %859 : vector<1x128xf32>
    %861 = arith.addf %855, %860 : vector<1x128xf32>
    %862 = vector.extract_strided_slice %850 {offsets = [6, 0], sizes = [1, 128], strides = [1, 1]} : vector<9x128xf32> to vector<1x128xf32>
    %863 = vector.extract_strided_slice %850 {offsets = [7, 0], sizes = [1, 128], strides = [1, 1]} : vector<9x128xf32> to vector<1x128xf32>
    %864 = arith.mulf %862, %863 : vector<1x128xf32>
    %865 = vector.extract_strided_slice %850 {offsets = [8, 0], sizes = [1, 128], strides = [1, 1]} : vector<9x128xf32> to vector<1x128xf32>
    %866 = arith.mulf %864, %865 : vector<1x128xf32>
    %867 = arith.addf %861, %866 : vector<1x128xf32>
    %868 = vector.extract_strided_slice %850 {offsets = [0, 0], sizes = [1, 128], strides = [1, 1]} : vector<9x128xf32> to vector<1x128xf32>
    %869 = vector.extract_strided_slice %850 {offsets = [3, 0], sizes = [1, 128], strides = [1, 1]} : vector<9x128xf32> to vector<1x128xf32>
    %870 = arith.mulf %868, %869 : vector<1x128xf32>
    %871 = vector.extract_strided_slice %850 {offsets = [6, 0], sizes = [1, 128], strides = [1, 1]} : vector<9x128xf32> to vector<1x128xf32>
    %872 = arith.mulf %870, %871 : vector<1x128xf32>
    %873 = arith.addf %867, %872 : vector<1x128xf32>
    %874 = vector.extract_strided_slice %850 {offsets = [1, 0], sizes = [1, 128], strides = [1, 1]} : vector<9x128xf32> to vector<1x128xf32>
    %875 = vector.extract_strided_slice %850 {offsets = [4, 0], sizes = [1, 128], strides = [1, 1]} : vector<9x128xf32> to vector<1x128xf32>
    %876 = arith.mulf %874, %875 : vector<1x128xf32>
    %877 = vector.extract_strided_slice %850 {offsets = [7, 0], sizes = [1, 128], strides = [1, 1]} : vector<9x128xf32> to vector<1x128xf32>
    %878 = arith.mulf %876, %877 : vector<1x128xf32>
    %879 = arith.addf %873, %878 : vector<1x128xf32>
    %880 = vector.extract_strided_slice %850 {offsets = [2, 0], sizes = [1, 128], strides = [1, 1]} : vector<9x128xf32> to vector<1x128xf32>
    %881 = vector.extract_strided_slice %850 {offsets = [5, 0], sizes = [1, 128], strides = [1, 1]} : vector<9x128xf32> to vector<1x128xf32>
    %882 = arith.mulf %880, %881 : vector<1x128xf32>
    %883 = vector.extract_strided_slice %850 {offsets = [8, 0], sizes = [1, 128], strides = [1, 1]} : vector<9x128xf32> to vector<1x128xf32>
    %884 = arith.mulf %882, %883 : vector<1x128xf32>
    %885 = arith.addf %879, %884 : vector<1x128xf32>
    %886 = vector.extract_strided_slice %850 {offsets = [0, 0], sizes = [1, 128], strides = [1, 1]} : vector<9x128xf32> to vector<1x128xf32>
    %887 = vector.extract_strided_slice %850 {offsets = [4, 0], sizes = [1, 128], strides = [1, 1]} : vector<9x128xf32> to vector<1x128xf32>
    %888 = arith.mulf %886, %887 : vector<1x128xf32>
    %889 = vector.extract_strided_slice %850 {offsets = [8, 0], sizes = [1, 128], strides = [1, 1]} : vector<9x128xf32> to vector<1x128xf32>
    %890 = arith.mulf %888, %889 : vector<1x128xf32>
    %891 = arith.addf %885, %890 : vector<1x128xf32>
    %892 = vector.extract_strided_slice %850 {offsets = [2, 0], sizes = [1, 128], strides = [1, 1]} : vector<9x128xf32> to vector<1x128xf32>
    %893 = vector.extract_strided_slice %850 {offsets = [4, 0], sizes = [1, 128], strides = [1, 1]} : vector<9x128xf32> to vector<1x128xf32>
    %894 = arith.mulf %892, %893 : vector<1x128xf32>
    %895 = vector.extract_strided_slice %850 {offsets = [6, 0], sizes = [1, 128], strides = [1, 1]} : vector<9x128xf32> to vector<1x128xf32>
    %896 = arith.mulf %894, %895 : vector<1x128xf32>
    %897 = arith.addf %891, %896 : vector<1x128xf32>
    %cst_178 = arith.constant 2.500000e-03 : f32
    %898 = vector.broadcast %cst_178 : f32 to vector<1x128xf32>
    %899 = arith.mulf %708, %898 : vector<1x128xf32>
    %900 = arith.addf %679, %899 : vector<1x128xf32>
    %cst_179 = arith.constant 2.500000e-03 : f32
    %901 = vector.broadcast %cst_179 : f32 to vector<1x128xf32>
    %902 = arith.mulf %816, %901 : vector<1x128xf32>
    %903 = arith.addf %682, %902 : vector<1x128xf32>
    %904 = vector.extract_strided_slice %742 {offsets = [0, 0], sizes = [1, 128], strides = [1, 1]} : vector<9x128xf32> to vector<1x128xf32>
    %905 = vector.extract_strided_slice %742 {offsets = [1, 0], sizes = [1, 128], strides = [1, 1]} : vector<9x128xf32> to vector<1x128xf32>
    %906 = arith.addf %904, %905 : vector<1x128xf32>
    %907 = vector.extract_strided_slice %742 {offsets = [2, 0], sizes = [1, 128], strides = [1, 1]} : vector<9x128xf32> to vector<1x128xf32>
    %908 = arith.addf %906, %907 : vector<1x128xf32>
    %cst_180 = arith.constant 3.000000e+00 : f32
    %909 = vector.broadcast %cst_180 : f32 to vector<1x128xf32>
    %910 = arith.subf %908, %909 : vector<1x128xf32>
    %cst_181 = arith.constant 2.000000e+00 : f32
    %911 = vector.broadcast %cst_181 : f32 to vector<1x128xf32>
    %912 = arith.mulf %910, %911 : vector<1x128xf32>
    %913 = math.exp %912 : vector<1x128xf32>
    %914 = vector.extract_strided_slice %742 {offsets = [3, 0], sizes = [1, 128], strides = [1, 1]} : vector<9x128xf32> to vector<1x128xf32>
    %915 = vector.extract_strided_slice %742 {offsets = [4, 0], sizes = [1, 128], strides = [1, 1]} : vector<9x128xf32> to vector<1x128xf32>
    %916 = arith.addf %914, %915 : vector<1x128xf32>
    %917 = vector.extract_strided_slice %742 {offsets = [5, 0], sizes = [1, 128], strides = [1, 1]} : vector<9x128xf32> to vector<1x128xf32>
    %918 = arith.addf %916, %917 : vector<1x128xf32>
    %cst_182 = arith.constant 3.000000e+00 : f32
    %919 = vector.broadcast %cst_182 : f32 to vector<1x128xf32>
    %920 = arith.subf %918, %919 : vector<1x128xf32>
    %cst_183 = arith.constant 2.000000e+00 : f32
    %921 = vector.broadcast %cst_183 : f32 to vector<1x128xf32>
    %922 = arith.mulf %920, %921 : vector<1x128xf32>
    %923 = math.exp %922 : vector<1x128xf32>
    %924 = arith.addf %913, %923 : vector<1x128xf32>
    %925 = vector.extract_strided_slice %742 {offsets = [6, 0], sizes = [1, 128], strides = [1, 1]} : vector<9x128xf32> to vector<1x128xf32>
    %926 = vector.extract_strided_slice %742 {offsets = [7, 0], sizes = [1, 128], strides = [1, 1]} : vector<9x128xf32> to vector<1x128xf32>
    %927 = arith.addf %925, %926 : vector<1x128xf32>
    %928 = vector.extract_strided_slice %742 {offsets = [8, 0], sizes = [1, 128], strides = [1, 1]} : vector<9x128xf32> to vector<1x128xf32>
    %929 = arith.addf %927, %928 : vector<1x128xf32>
    %cst_184 = arith.constant 3.000000e+00 : f32
    %930 = vector.broadcast %cst_184 : f32 to vector<1x128xf32>
    %931 = arith.subf %929, %930 : vector<1x128xf32>
    %cst_185 = arith.constant 2.000000e+00 : f32
    %932 = vector.broadcast %cst_185 : f32 to vector<1x128xf32>
    %933 = arith.mulf %931, %932 : vector<1x128xf32>
    %934 = math.exp %933 : vector<1x128xf32>
    %935 = arith.addf %924, %934 : vector<1x128xf32>
    %936 = vector.extract_strided_slice %742 {offsets = [0, 0], sizes = [1, 128], strides = [1, 1]} : vector<9x128xf32> to vector<1x128xf32>
    %937 = vector.extract_strided_slice %742 {offsets = [3, 0], sizes = [1, 128], strides = [1, 1]} : vector<9x128xf32> to vector<1x128xf32>
    %938 = arith.addf %936, %937 : vector<1x128xf32>
    %939 = vector.extract_strided_slice %742 {offsets = [6, 0], sizes = [1, 128], strides = [1, 1]} : vector<9x128xf32> to vector<1x128xf32>
    %940 = arith.addf %938, %939 : vector<1x128xf32>
    %cst_186 = arith.constant 3.000000e+00 : f32
    %941 = vector.broadcast %cst_186 : f32 to vector<1x128xf32>
    %942 = arith.subf %940, %941 : vector<1x128xf32>
    %cst_187 = arith.constant 2.000000e+00 : f32
    %943 = vector.broadcast %cst_187 : f32 to vector<1x128xf32>
    %944 = arith.mulf %942, %943 : vector<1x128xf32>
    %945 = math.exp %944 : vector<1x128xf32>
    %946 = arith.addf %935, %945 : vector<1x128xf32>
    %947 = vector.extract_strided_slice %742 {offsets = [1, 0], sizes = [1, 128], strides = [1, 1]} : vector<9x128xf32> to vector<1x128xf32>
    %948 = vector.extract_strided_slice %742 {offsets = [4, 0], sizes = [1, 128], strides = [1, 1]} : vector<9x128xf32> to vector<1x128xf32>
    %949 = arith.addf %947, %948 : vector<1x128xf32>
    %950 = vector.extract_strided_slice %742 {offsets = [7, 0], sizes = [1, 128], strides = [1, 1]} : vector<9x128xf32> to vector<1x128xf32>
    %951 = arith.addf %949, %950 : vector<1x128xf32>
    %cst_188 = arith.constant 3.000000e+00 : f32
    %952 = vector.broadcast %cst_188 : f32 to vector<1x128xf32>
    %953 = arith.subf %951, %952 : vector<1x128xf32>
    %cst_189 = arith.constant 2.000000e+00 : f32
    %954 = vector.broadcast %cst_189 : f32 to vector<1x128xf32>
    %955 = arith.mulf %953, %954 : vector<1x128xf32>
    %956 = math.exp %955 : vector<1x128xf32>
    %957 = arith.addf %946, %956 : vector<1x128xf32>
    %958 = vector.extract_strided_slice %742 {offsets = [2, 0], sizes = [1, 128], strides = [1, 1]} : vector<9x128xf32> to vector<1x128xf32>
    %959 = vector.extract_strided_slice %742 {offsets = [5, 0], sizes = [1, 128], strides = [1, 1]} : vector<9x128xf32> to vector<1x128xf32>
    %960 = arith.addf %958, %959 : vector<1x128xf32>
    %961 = vector.extract_strided_slice %742 {offsets = [8, 0], sizes = [1, 128], strides = [1, 1]} : vector<9x128xf32> to vector<1x128xf32>
    %962 = arith.addf %960, %961 : vector<1x128xf32>
    %cst_190 = arith.constant 3.000000e+00 : f32
    %963 = vector.broadcast %cst_190 : f32 to vector<1x128xf32>
    %964 = arith.subf %962, %963 : vector<1x128xf32>
    %cst_191 = arith.constant 2.000000e+00 : f32
    %965 = vector.broadcast %cst_191 : f32 to vector<1x128xf32>
    %966 = arith.mulf %964, %965 : vector<1x128xf32>
    %967 = math.exp %966 : vector<1x128xf32>
    %968 = arith.addf %957, %967 : vector<1x128xf32>
    %969 = vector.extract_strided_slice %742 {offsets = [0, 0], sizes = [1, 128], strides = [1, 1]} : vector<9x128xf32> to vector<1x128xf32>
    %970 = vector.extract_strided_slice %742 {offsets = [4, 0], sizes = [1, 128], strides = [1, 1]} : vector<9x128xf32> to vector<1x128xf32>
    %971 = arith.addf %969, %970 : vector<1x128xf32>
    %972 = vector.extract_strided_slice %742 {offsets = [8, 0], sizes = [1, 128], strides = [1, 1]} : vector<9x128xf32> to vector<1x128xf32>
    %973 = arith.addf %971, %972 : vector<1x128xf32>
    %cst_192 = arith.constant 3.000000e+00 : f32
    %974 = vector.broadcast %cst_192 : f32 to vector<1x128xf32>
    %975 = arith.subf %973, %974 : vector<1x128xf32>
    %cst_193 = arith.constant 2.000000e+00 : f32
    %976 = vector.broadcast %cst_193 : f32 to vector<1x128xf32>
    %977 = arith.mulf %975, %976 : vector<1x128xf32>
    %978 = math.exp %977 : vector<1x128xf32>
    %979 = arith.addf %968, %978 : vector<1x128xf32>
    %980 = vector.extract_strided_slice %742 {offsets = [2, 0], sizes = [1, 128], strides = [1, 1]} : vector<9x128xf32> to vector<1x128xf32>
    %981 = vector.extract_strided_slice %742 {offsets = [4, 0], sizes = [1, 128], strides = [1, 1]} : vector<9x128xf32> to vector<1x128xf32>
    %982 = arith.addf %980, %981 : vector<1x128xf32>
    %983 = vector.extract_strided_slice %742 {offsets = [6, 0], sizes = [1, 128], strides = [1, 1]} : vector<9x128xf32> to vector<1x128xf32>
    %984 = arith.addf %982, %983 : vector<1x128xf32>
    %cst_194 = arith.constant 3.000000e+00 : f32
    %985 = vector.broadcast %cst_194 : f32 to vector<1x128xf32>
    %986 = arith.subf %984, %985 : vector<1x128xf32>
    %cst_195 = arith.constant 2.000000e+00 : f32
    %987 = vector.broadcast %cst_195 : f32 to vector<1x128xf32>
    %988 = arith.mulf %986, %987 : vector<1x128xf32>
    %989 = math.exp %988 : vector<1x128xf32>
    %990 = arith.addf %979, %989 : vector<1x128xf32>
    %991 = arith.subf %900, %990 : vector<1x128xf32>
    %cst_196 = arith.constant 5.000000e+00 : f32
    %992 = vector.broadcast %cst_196 : f32 to vector<1x128xf32>
    %993 = arith.mulf %992, %897 : vector<1x128xf32>
    %994 = arith.addf %991, %993 : vector<1x128xf32>
    %995 = vector.extract_strided_slice %850 {offsets = [0, 0], sizes = [1, 128], strides = [1, 1]} : vector<9x128xf32> to vector<1x128xf32>
    %996 = vector.extract_strided_slice %850 {offsets = [1, 0], sizes = [1, 128], strides = [1, 1]} : vector<9x128xf32> to vector<1x128xf32>
    %997 = arith.addf %995, %996 : vector<1x128xf32>
    %998 = vector.extract_strided_slice %850 {offsets = [2, 0], sizes = [1, 128], strides = [1, 1]} : vector<9x128xf32> to vector<1x128xf32>
    %999 = arith.addf %997, %998 : vector<1x128xf32>
    %cst_197 = arith.constant 3.000000e+00 : f32
    %1000 = vector.broadcast %cst_197 : f32 to vector<1x128xf32>
    %1001 = arith.subf %999, %1000 : vector<1x128xf32>
    %cst_198 = arith.constant 2.000000e+00 : f32
    %1002 = vector.broadcast %cst_198 : f32 to vector<1x128xf32>
    %1003 = arith.mulf %1001, %1002 : vector<1x128xf32>
    %1004 = math.exp %1003 : vector<1x128xf32>
    %1005 = vector.extract_strided_slice %850 {offsets = [3, 0], sizes = [1, 128], strides = [1, 1]} : vector<9x128xf32> to vector<1x128xf32>
    %1006 = vector.extract_strided_slice %850 {offsets = [4, 0], sizes = [1, 128], strides = [1, 1]} : vector<9x128xf32> to vector<1x128xf32>
    %1007 = arith.addf %1005, %1006 : vector<1x128xf32>
    %1008 = vector.extract_strided_slice %850 {offsets = [5, 0], sizes = [1, 128], strides = [1, 1]} : vector<9x128xf32> to vector<1x128xf32>
    %1009 = arith.addf %1007, %1008 : vector<1x128xf32>
    %cst_199 = arith.constant 3.000000e+00 : f32
    %1010 = vector.broadcast %cst_199 : f32 to vector<1x128xf32>
    %1011 = arith.subf %1009, %1010 : vector<1x128xf32>
    %cst_200 = arith.constant 2.000000e+00 : f32
    %1012 = vector.broadcast %cst_200 : f32 to vector<1x128xf32>
    %1013 = arith.mulf %1011, %1012 : vector<1x128xf32>
    %1014 = math.exp %1013 : vector<1x128xf32>
    %1015 = arith.addf %1004, %1014 : vector<1x128xf32>
    %1016 = vector.extract_strided_slice %850 {offsets = [6, 0], sizes = [1, 128], strides = [1, 1]} : vector<9x128xf32> to vector<1x128xf32>
    %1017 = vector.extract_strided_slice %850 {offsets = [7, 0], sizes = [1, 128], strides = [1, 1]} : vector<9x128xf32> to vector<1x128xf32>
    %1018 = arith.addf %1016, %1017 : vector<1x128xf32>
    %1019 = vector.extract_strided_slice %850 {offsets = [8, 0], sizes = [1, 128], strides = [1, 1]} : vector<9x128xf32> to vector<1x128xf32>
    %1020 = arith.addf %1018, %1019 : vector<1x128xf32>
    %cst_201 = arith.constant 3.000000e+00 : f32
    %1021 = vector.broadcast %cst_201 : f32 to vector<1x128xf32>
    %1022 = arith.subf %1020, %1021 : vector<1x128xf32>
    %cst_202 = arith.constant 2.000000e+00 : f32
    %1023 = vector.broadcast %cst_202 : f32 to vector<1x128xf32>
    %1024 = arith.mulf %1022, %1023 : vector<1x128xf32>
    %1025 = math.exp %1024 : vector<1x128xf32>
    %1026 = arith.addf %1015, %1025 : vector<1x128xf32>
    %1027 = vector.extract_strided_slice %850 {offsets = [0, 0], sizes = [1, 128], strides = [1, 1]} : vector<9x128xf32> to vector<1x128xf32>
    %1028 = vector.extract_strided_slice %850 {offsets = [3, 0], sizes = [1, 128], strides = [1, 1]} : vector<9x128xf32> to vector<1x128xf32>
    %1029 = arith.addf %1027, %1028 : vector<1x128xf32>
    %1030 = vector.extract_strided_slice %850 {offsets = [6, 0], sizes = [1, 128], strides = [1, 1]} : vector<9x128xf32> to vector<1x128xf32>
    %1031 = arith.addf %1029, %1030 : vector<1x128xf32>
    %cst_203 = arith.constant 3.000000e+00 : f32
    %1032 = vector.broadcast %cst_203 : f32 to vector<1x128xf32>
    %1033 = arith.subf %1031, %1032 : vector<1x128xf32>
    %cst_204 = arith.constant 2.000000e+00 : f32
    %1034 = vector.broadcast %cst_204 : f32 to vector<1x128xf32>
    %1035 = arith.mulf %1033, %1034 : vector<1x128xf32>
    %1036 = math.exp %1035 : vector<1x128xf32>
    %1037 = arith.addf %1026, %1036 : vector<1x128xf32>
    %1038 = vector.extract_strided_slice %850 {offsets = [1, 0], sizes = [1, 128], strides = [1, 1]} : vector<9x128xf32> to vector<1x128xf32>
    %1039 = vector.extract_strided_slice %850 {offsets = [4, 0], sizes = [1, 128], strides = [1, 1]} : vector<9x128xf32> to vector<1x128xf32>
    %1040 = arith.addf %1038, %1039 : vector<1x128xf32>
    %1041 = vector.extract_strided_slice %850 {offsets = [7, 0], sizes = [1, 128], strides = [1, 1]} : vector<9x128xf32> to vector<1x128xf32>
    %1042 = arith.addf %1040, %1041 : vector<1x128xf32>
    %cst_205 = arith.constant 3.000000e+00 : f32
    %1043 = vector.broadcast %cst_205 : f32 to vector<1x128xf32>
    %1044 = arith.subf %1042, %1043 : vector<1x128xf32>
    %cst_206 = arith.constant 2.000000e+00 : f32
    %1045 = vector.broadcast %cst_206 : f32 to vector<1x128xf32>
    %1046 = arith.mulf %1044, %1045 : vector<1x128xf32>
    %1047 = math.exp %1046 : vector<1x128xf32>
    %1048 = arith.addf %1037, %1047 : vector<1x128xf32>
    %1049 = vector.extract_strided_slice %850 {offsets = [2, 0], sizes = [1, 128], strides = [1, 1]} : vector<9x128xf32> to vector<1x128xf32>
    %1050 = vector.extract_strided_slice %850 {offsets = [5, 0], sizes = [1, 128], strides = [1, 1]} : vector<9x128xf32> to vector<1x128xf32>
    %1051 = arith.addf %1049, %1050 : vector<1x128xf32>
    %1052 = vector.extract_strided_slice %850 {offsets = [8, 0], sizes = [1, 128], strides = [1, 1]} : vector<9x128xf32> to vector<1x128xf32>
    %1053 = arith.addf %1051, %1052 : vector<1x128xf32>
    %cst_207 = arith.constant 3.000000e+00 : f32
    %1054 = vector.broadcast %cst_207 : f32 to vector<1x128xf32>
    %1055 = arith.subf %1053, %1054 : vector<1x128xf32>
    %cst_208 = arith.constant 2.000000e+00 : f32
    %1056 = vector.broadcast %cst_208 : f32 to vector<1x128xf32>
    %1057 = arith.mulf %1055, %1056 : vector<1x128xf32>
    %1058 = math.exp %1057 : vector<1x128xf32>
    %1059 = arith.addf %1048, %1058 : vector<1x128xf32>
    %1060 = vector.extract_strided_slice %850 {offsets = [0, 0], sizes = [1, 128], strides = [1, 1]} : vector<9x128xf32> to vector<1x128xf32>
    %1061 = vector.extract_strided_slice %850 {offsets = [4, 0], sizes = [1, 128], strides = [1, 1]} : vector<9x128xf32> to vector<1x128xf32>
    %1062 = arith.addf %1060, %1061 : vector<1x128xf32>
    %1063 = vector.extract_strided_slice %850 {offsets = [8, 0], sizes = [1, 128], strides = [1, 1]} : vector<9x128xf32> to vector<1x128xf32>
    %1064 = arith.addf %1062, %1063 : vector<1x128xf32>
    %cst_209 = arith.constant 3.000000e+00 : f32
    %1065 = vector.broadcast %cst_209 : f32 to vector<1x128xf32>
    %1066 = arith.subf %1064, %1065 : vector<1x128xf32>
    %cst_210 = arith.constant 2.000000e+00 : f32
    %1067 = vector.broadcast %cst_210 : f32 to vector<1x128xf32>
    %1068 = arith.mulf %1066, %1067 : vector<1x128xf32>
    %1069 = math.exp %1068 : vector<1x128xf32>
    %1070 = arith.addf %1059, %1069 : vector<1x128xf32>
    %1071 = vector.extract_strided_slice %850 {offsets = [2, 0], sizes = [1, 128], strides = [1, 1]} : vector<9x128xf32> to vector<1x128xf32>
    %1072 = vector.extract_strided_slice %850 {offsets = [4, 0], sizes = [1, 128], strides = [1, 1]} : vector<9x128xf32> to vector<1x128xf32>
    %1073 = arith.addf %1071, %1072 : vector<1x128xf32>
    %1074 = vector.extract_strided_slice %850 {offsets = [6, 0], sizes = [1, 128], strides = [1, 1]} : vector<9x128xf32> to vector<1x128xf32>
    %1075 = arith.addf %1073, %1074 : vector<1x128xf32>
    %cst_211 = arith.constant 3.000000e+00 : f32
    %1076 = vector.broadcast %cst_211 : f32 to vector<1x128xf32>
    %1077 = arith.subf %1075, %1076 : vector<1x128xf32>
    %cst_212 = arith.constant 2.000000e+00 : f32
    %1078 = vector.broadcast %cst_212 : f32 to vector<1x128xf32>
    %1079 = arith.mulf %1077, %1078 : vector<1x128xf32>
    %1080 = math.exp %1079 : vector<1x128xf32>
    %1081 = arith.addf %1070, %1080 : vector<1x128xf32>
    %1082 = arith.subf %903, %1081 : vector<1x128xf32>
    %cst_213 = arith.constant 5.000000e+00 : f32
    %1083 = vector.broadcast %cst_213 : f32 to vector<1x128xf32>
    %1084 = arith.mulf %1083, %789 : vector<1x128xf32>
    %1085 = arith.addf %1082, %1084 : vector<1x128xf32>
    %c0_214 = arith.constant 0 : index
    %c0_215 = arith.constant 0 : index
    %1086 = vector.load %arg16[%c0_214, %c0_215] : memref<2x128xf32, #tpu.memory_space<vmem>>, vector<1x128xf32>
    tpu.vector_store %arg16[%c0_214, %c0_215], %994 {strides = array<i32>} : memref<2x128xf32, #tpu.memory_space<vmem>>, vector<1x128xf32>,
    %c1_216 = arith.constant 1 : index
    %c0_217 = arith.constant 0 : index
    %1087 = vector.load %arg16[%c1_216, %c0_217] : memref<2x128xf32, #tpu.memory_space<vmem>>, vector<1x128xf32>
    tpu.vector_store %arg16[%c1_216, %c0_217], %1085 {strides = array<i32>} : memref<2x128xf32, #tpu.memory_space<vmem>>, vector<1x128xf32>,
    return
  }
  func.func @transform_0(%arg0: i32) -> (i32, i32, i32) {
    %c0_i32 = arith.constant 0 : i32
    %c0_i32_0 = arith.constant 0 : i32
    %c0_i32_1 = arith.constant 0 : i32
    return %c0_i32, %c0_i32_0, %arg0 : i32, i32, i32
  }
  func.func @transform_1(%arg0: i32) -> (i32, i32) {
    %c0_i32 = arith.constant 0 : i32
    %c0_i32_0 = arith.constant 0 : i32
    %c0_i32_1 = arith.constant 0 : i32
    return %c0_i32, %c0_i32_0 : i32, i32
  }
  func.func @transform_2(%arg0: i32) -> (i32, i32) {
    %c0_i32 = arith.constant 0 : i32
    %c0_i32_0 = arith.constant 0 : i32
    %c0_i32_1 = arith.constant 0 : i32
    return %c0_i32, %c0_i32_0 : i32, i32
  }
  func.func @transform_3(%arg0: i32) -> (i32, i32) {
    %c0_i32 = arith.constant 0 : i32
    %c0_i32_0 = arith.constant 0 : i32
    %c0_i32_1 = arith.constant 0 : i32
    return %c0_i32, %c0_i32_0 : i32, i32
  }
  func.func @transform_4(%arg0: i32) -> (i32, i32) {
    %c0_i32 = arith.constant 0 : i32
    %c0_i32_0 = arith.constant 0 : i32
    %c0_i32_1 = arith.constant 0 : i32
    return %c0_i32, %c0_i32_0 : i32, i32
  }
  func.func @transform_5(%arg0: i32) -> (i32, i32) {
    %c0_i32 = arith.constant 0 : i32
    %c0_i32_0 = arith.constant 0 : i32
    %c0_i32_1 = arith.constant 0 : i32
    return %c0_i32, %c0_i32_0 : i32, i32
  }
  func.func @transform_6(%arg0: i32) -> (i32, i32) {
    %c0_i32 = arith.constant 0 : i32
    %c0_i32_0 = arith.constant 0 : i32
    %c0_i32_1 = arith.constant 0 : i32
    return %c0_i32, %c0_i32_0 : i32, i32
  }
  func.func @transform_7(%arg0: i32) -> (i32, i32) {
    %c0_i32 = arith.constant 0 : i32
    %c0_i32_0 = arith.constant 0 : i32
    %c0_i32_1 = arith.constant 0 : i32
    return %c0_i32, %c0_i32_0 : i32, i32
  }
  func.func @transform_8(%arg0: i32) -> (i32, i32) {
    %c0_i32 = arith.constant 0 : i32
    %c0_i32_0 = arith.constant 0 : i32
    %c0_i32_1 = arith.constant 0 : i32
    return %c0_i32, %c0_i32_0 : i32, i32
  }
  func.func @transform_9(%arg0: i32) -> (i32, i32) {
    %c0_i32 = arith.constant 0 : i32
    %c0_i32_0 = arith.constant 0 : i32
    %c0_i32_1 = arith.constant 0 : i32
    return %c0_i32, %c0_i32_0 : i32, i32
  }
  func.func @transform_10(%arg0: i32) -> (i32, i32) {
    %c0_i32 = arith.constant 0 : i32
    %c0_i32_0 = arith.constant 0 : i32
    %c0_i32_1 = arith.constant 0 : i32
    return %c0_i32, %c0_i32_0 : i32, i32
  }
  func.func @transform_11(%arg0: i32) -> (i32, i32) {
    %c0_i32 = arith.constant 0 : i32
    %c0_i32_0 = arith.constant 0 : i32
    %c0_i32_1 = arith.constant 0 : i32
    return %c0_i32, %c0_i32_0 : i32, i32
  }
  func.func @transform_12(%arg0: i32) -> (i32, i32) {
    %c0_i32 = arith.constant 0 : i32
    %c0_i32_0 = arith.constant 0 : i32
    %c0_i32_1 = arith.constant 0 : i32
    return %c0_i32, %c0_i32_0 : i32, i32
  }
  func.func @transform_13(%arg0: i32) -> (i32, i32) {
    %c0_i32 = arith.constant 0 : i32
    %c0_i32_0 = arith.constant 0 : i32
    %c0_i32_1 = arith.constant 0 : i32
    return %c0_i32, %c0_i32_0 : i32, i32
  }
  func.func @transform_14(%arg0: i32) -> (i32, i32) {
    %c0_i32 = arith.constant 0 : i32
    %c0_i32_0 = arith.constant 0 : i32
    %c0_i32_1 = arith.constant 0 : i32
    return %c0_i32, %c0_i32_0 : i32, i32
  }
  func.func @transform_15(%arg0: i32) -> (i32, i32) {
    %c0_i32 = arith.constant 0 : i32
    %c0_i32_0 = arith.constant 0 : i32
    return %c0_i32, %arg0 : i32, i32
  }
}

</mosaic_0001>

<bundles_post_ra>
// kernel: hexgame_forward.1
= control target key start
LH: loop header
LB: loop body
LE: loop exit
PB: predicated region body
PF: predicated region fallthrough
CT: control target
= control target key end

     0   :  { %vm431_vm0 = vcmask 72704   ;;  %v26756_v0 = vmov 0.0   ;;  %vm540_vm1 = vcmask 1040384   ;;  %vm20282_vm2 = vmmov 1   ;;  %s26740_s2 = inlined_call_operand.vmem [shape: f32[288,9], index: 2, kind: input, shape index: {}]   ;;  %s26741_s5 = inlined_call_operand.vmem [shape: f32[288,1], index: 5, kind: input, shape index: {}]   ;;  %s26742_s1 = inlined_call_operand.vmem [shape: f32[288,9], index: 1, kind: input, shape index: {}]   ;;  %s26743_s7 = inlined_call_operand.vmem [shape: f32[9,1], index: 7, kind: input, shape index: {}]   ;;  %s26744_s12 = inlined_call_operand.vmem [shape: f32[288,1], index: 12, kind: input, shape index: {}]   ;;  %s26745_s3 = inlined_call_operand.vmem [shape: f32[288,9], index: 3, kind: input, shape index: {}]   ;;  %s26746_s14 = inlined_call_operand.vmem [shape: f32[9,1], index: 14, kind: input, shape index: {}]   ;;  %s26747_s4 = inlined_call_operand.vmem [shape: f32[288,9], index: 4, kind: input, shape index: {}]   ;;  %s26748_s6 = inlined_call_operand.vmem [shape: f32[9,288], index: 6, kind: input, shape index: {}]   ;;  %s26749_s9 = inlined_call_operand.vmem [shape: f32[288,9], index: 9, kind: input, shape index: {}]   ;;  %s26750_s0 = inlined_call_operand.vmem [shape: f32[8,9,128], index: 0, kind: input, shape index: {}]   ;;  %s26751_s8 = inlined_call_operand.vmem [shape: f32[288,9], index: 8, kind: input, shape index: {}]   ;;  %s26752_s10 = inlined_call_operand.vmem [shape: f32[288,9], index: 10, kind: input, shape index: {}]   ;;  %s26753_s11 = inlined_call_operand.vmem [shape: f32[288,9], index: 11, kind: input, shape index: {}]   ;;  %s26754_s13 = inlined_call_operand.vmem [shape: f32[9,288], index: 13, kind: input, shape index: {}]   ;;  %s26755_s15 = inlined_call_operand.vmem [shape: f32[2,128], index: 15, kind: output, shape index: {}]  }
   0x1   :  { %16018 = vmatprep.subr.mxu0 %v26756_v0  ;;  %v86_v1 = vld [vmem:[%s26740_s2] sm:$0xff]  ;;  %v87_v2 = vld [vmem:[%s26740_s2 + $0x8] sm:$0xff]  ;;  %v88_v3 = vld [vmem:[%s26740_s2 + $0x10] sm:$0xff]  ;;  %v20283_v15 = vmov 1.0|1.0   ;;  %v20284_v19 = vmov 0  }
   0x2   :  { %16019 = vmatpush3.msra.mxu0 %v26756_v0  ;;  %16020 = vmatprep.mubr.msk.f32.mxu0 %vm431_vm0, %v86_v1  ;;  %v89_v4 = vld [vmem:[%s26740_s2 + $0x18] sm:$0xff]  ;;  %v90_v5 = vld [vmem:[%s26740_s2 + $0x20] sm:$0xff]  ;;  %v91_v6 = vld [vmem:[%s26740_s2 + $0x28] sm:$0xff]  ;;  %vm2185_vm4 = vcmask 261120  }
   0x3   :  { %16021 = vmatmul.mubr.msk.f32.vlgmr.msra.gmra.mrb[0].mxu0 %vm431_vm0, %v87_v2  ;;  %16074 = vmatprep.subr.mxu0 %v26756_v0  ;;  %v92_v7 = vld [vmem:[%s26740_s2 + $0x30] sm:$0xff]  ;;  %v93_v8 = vld [vmem:[%s26740_s2 + $0x38] sm:$0xff]  ;;  %v94_v9 = vld [vmem:[%s26740_s2 + $0x40] sm:$0xff] }
   0x4   :  { %16023 = vmatprep.mubr.msk.f32.mxu0 %vm431_vm0, %v88_v3  ;;  %16075 = vmatpush3.msra.mxu0 %v26756_v0  ;;  %v95_v10 = vld [vmem:[%s26740_s2 + $0x48] sm:$0xff]  ;;  %v96_v11 = vld [vmem:[%s26740_s2 + $0x50] sm:$0xff]  ;;  %v97_v12 = vld [vmem:[%s26740_s2 + $0x58] sm:$0xff] }
   0x5   :  { %vm20417_vm3 = vmpackc.low %vm540_vm1, %vm20282_vm2  ;;  %v98_v14 = vld [vmem:[%s26740_s2 + $0x60] sm:$0xff]  ;;  %v99_v16 = vld [vmem:[%s26740_s2 + $0x68] sm:$0xff]  ;;  %19309 = vset.pattern.permute.xlu1 %v20284_v19  ;;  %19308 = vset.pattern.permute.xlu0 %v20284_v19 }
   0x6   :  { %17955 = vmatprep.subr.msk.bf16.mxu0 %vm20417_vm3, %v20283_v15  ;;  %v100_v17 = vld [vmem:[%s26740_s2 + $0x70] sm:$0xff]  ;;  %v101_v18 = vld [vmem:[%s26740_s2 + $0x78] sm:$0xff]  ;;  %v210_v20 = vld [vmem:[%s26741_s5 + $0x80] sm:$0xff] }
   0x7   :  { %16024 = vmatmul.mubr.msk.f32.gmra.mrb[2].mxu0 %vm431_vm0, %v89_v4  ;;  %v194_v21 = vld [vmem:[%s26741_s5] sm:$0xff]  ;;  %2005 = vperm.xlu0 %19308, %v210_v20   ;;  %v211_v23 = vld [vmem:[%s26741_s5 + $0x88] sm:$0xff]  ;;  %v104_v26 = vld [vmem:[%s26740_s2 + $0x90] sm:$0xff] }
   0x8   :  { %16026 = vmatprep.mubr.msk.f32.mxu0 %vm431_vm0, %v90_v5  ;;  %v102_v22 = vld [vmem:[%s26740_s2 + $0x80] sm:$0xff]  ;;  %1925 = vperm.xlu1 %19309, %v194_v21   ;;  %v195_v24 = vld [vmem:[%s26741_s5 + $0x8] sm:$0xff]  ;;  %v212_v27 = vld [vmem:[%s26741_s5 + $0x90] sm:$0xff] }
   0x9   :  { %v103_v25 = vld [vmem:[%s26740_s2 + $0x88] sm:$0xff]  ;;  %v213_v28 = vld [vmem:[%s26741_s5 + $0x98] sm:$0xff]  ;;  %v106_v30 = vld [vmem:[%s26740_s2 + $0xa0] sm:$0xff] }
   0xa   :  { %v105_v29 = vld [vmem:[%s26740_s2 + $0x98] sm:$0xff]  ;;  %v196_v31 = vld [vmem:[%s26741_s5 + $0x10] sm:$0xff]  ;;  %v107_v33 = vld [vmem:[%s26740_s2 + $0xa8] sm:$0xff] }
   0xb   :  { %16027 = vmatmul.mubr.msk.f32.gmra.mrb[4].mxu0 %vm431_vm0, %v91_v6  ;;  %2010 = vperm.xlu0 %19308, %v211_v23   ;;  %v197_v32 = vld [vmem:[%s26741_s5 + $0x18] sm:$0xff]  ;;  %v108_v34 = vld [vmem:[%s26740_s2 + $0xb0] sm:$0xff]  ;;  %v214_v35 = vld [vmem:[%s26741_s5 + $0xa0] sm:$0xff] }
   0xc   :  { %16029 = vmatprep.mubr.msk.f32.mxu0 %vm431_vm0, %v92_v7  ;;  %1930 = vperm.xlu1 %19309, %v195_v24   ;;  %v215_v36 = vld [vmem:[%s26741_s5 + $0xa8] sm:$0xff]  ;;  %v109_v37 = vld [vmem:[%s26740_s2 + $0xb8] sm:$0xff]  ;;  %v110_v38 = vld [vmem:[%s26740_s2 + $0xc0] sm:$0xff] }
   0xd   :  { %v198_v39 = vld [vmem:[%s26741_s5 + $0x20] sm:$0xff]  ;;  %v199_v40 = vld [vmem:[%s26741_s5 + $0x28] sm:$0xff]  ;;  %v112_v42 = vld [vmem:[%s26740_s2 + $0xd0] sm:$0xff] }
   0xe   :  { %v111_v41 = vld [vmem:[%s26740_s2 + $0xc8] sm:$0xff]  ;;  %v216_v43 = vld [vmem:[%s26741_s5 + $0xb0] sm:$0xff]  ;;  %v217_v44 = vld [vmem:[%s26741_s5 + $0xb8] sm:$0xff] }
   0xf   :  { %16030 = vmatmul.mubr.msk.f32.gmra.mrb[6].mxu0 %vm431_vm0, %v93_v8  ;;  %2015 = vperm.xlu0 %19308, %v212_v27   ;;  %v113_v45 = vld [vmem:[%s26740_s2 + $0xd8] sm:$0xff]  ;;  %v114_v46 = vld [vmem:[%s26740_s2 + $0xe0] sm:$0xff]  ;;  %v200_v47 = vld [vmem:[%s26741_s5 + $0x30] sm:$0xff] }
  0x10   :  { %16032 = vmatprep.mubr.msk.f32.mxu0 %vm431_vm0, %v94_v9  ;;  %2020 = vperm.xlu1 %19309, %v213_v28   ;;  %v201_v48 = vld [vmem:[%s26741_s5 + $0x38] sm:$0xff]  ;;  %v115_v49 = vld [vmem:[%s26740_s2 + $0xe8] sm:$0xff]  ;;  %v116_v50 = vld [vmem:[%s26740_s2 + $0xf0] sm:$0xff] }
  0x11   :  { %v218_v51 = vld [vmem:[%s26741_s5 + $0xc0] sm:$0xff]  ;;  %v219_v52 = vld [vmem:[%s26741_s5 + $0xc8] sm:$0xff]  ;;  %v117_v53 = vld [vmem:[%s26740_s2 + $0xf8] sm:$0xff] }
  0x12   :  { %v118_v54 = vld [vmem:[%s26740_s2 + $0x100] sm:$0xff]  ;;  %v203_v56 = vld [vmem:[%s26741_s5 + $0x48] sm:$0xff]  ;;  %v120_v58 = vld [vmem:[%s26740_s2 + $0x110] sm:$0xff] }
  0x13   :  { %16033 = vmatmul.mubr.msk.f32.gmra.mrb[8].mxu0 %vm431_vm0, %v95_v10  ;;  %1935 = vperm.xlu0 %19308, %v196_v31   ;;  %v202_v55 = vld [vmem:[%s26741_s5 + $0x40] sm:$0xff]  ;;  %v119_v57 = vld [vmem:[%s26740_s2 + $0x108] sm:$0xff]  ;;  %v220_v59 = vld [vmem:[%s26741_s5 + $0xd0] sm:$0xff] }
  0x14   :  { %16035 = vmatprep.mubr.msk.f32.mxu0 %vm431_vm0, %v96_v11  ;;  %1940 = vperm.xlu1 %19309, %v197_v32   ;;  %v221_v60 = vld [vmem:[%s26741_s5 + $0xd8] sm:$0xff]  ;;  %v50_v62 = vld [vmem:[%s26742_s1] sm:$0xff]  ;;  %v204_v63 = vld [vmem:[%s26741_s5 + $0x50] sm:$0xff] }
  0x15   :  { %v121_v61 = vld [vmem:[%s26740_s2 + $0x118] sm:$0xff]  ;;  %v51_v2 = vld [vmem:[%s26742_s1 + $0x8] sm:$0xff]  ;;  %v52_v3 = vld [vmem:[%s26742_s1 + $0x10] sm:$0xff] }
  0x16   :  { %v205_v1 = vld [vmem:[%s26741_s5 + $0x58] sm:$0xff]  ;;  %v222_v4 = vld [vmem:[%s26741_s5 + $0xe0] sm:$0xff]  ;;  %v223_v5 = vld [vmem:[%s26741_s5 + $0xe8] sm:$0xff] }
  0x17   :  { %16036 = vmatmul.mubr.msk.f32.gmra.mrb[10].mxu0 %vm431_vm0, %v97_v12  ;;  %2025 = vperm.xlu0 %19308, %v214_v35   ;;  %v53_v6 = vld [vmem:[%s26742_s1 + $0x18] sm:$0xff]  ;;  %v54_v7 = vld [vmem:[%s26742_s1 + $0x20] sm:$0xff]  ;;  %v207_v9 = vld [vmem:[%s26741_s5 + $0x68] sm:$0xff] }
  0x18   :  { %16038 = vmatprep.mubr.msk.f32.mxu0 %vm431_vm0, %v98_v14  ;;  %2030 = vperm.xlu1 %19309, %v215_v36   ;;  %v206_v8 = vld [vmem:[%s26741_s5 + $0x60] sm:$0xff]  ;;  %v55_v10 = vld [vmem:[%s26742_s1 + $0x28] sm:$0xff]  ;;  %v56_v11 = vld [vmem:[%s26742_s1 + $0x30] sm:$0xff] }
  0x19   :  { %v224_v12 = vld [vmem:[%s26741_s5 + $0xf0] sm:$0xff]  ;;  %v225_v14 = vld [vmem:[%s26741_s5 + $0xf8] sm:$0xff]  ;;  %v59_v19 = vld [vmem:[%s26742_s1 + $0x48] sm:$0xff] }
  0x1a   :  { %v60_v20 = vld [vmem:[%s26742_s1 + $0x50] sm:$0xff]  ;;  %v226_v21 = vld [vmem:[%s26741_s5 + $0x100] sm:$0xff]  ;;  %v61_v23 = vld [vmem:[%s26742_s1 + $0x58] sm:$0xff] }
  0x1b   :  { %16039 = vmatmul.mubr.msk.f32.gmra.mrb[12].mxu0 %vm431_vm0, %v99_v16  ;;  %1945 = vperm.xlu0 %19308, %v198_v39   ;;  %v58_v16 = vld [vmem:[%s26742_s1 + $0x40] sm:$0xff]  ;;  %v63_v27 = vld [vmem:[%s26742_s1 + $0x68] sm:$0xff]  ;;  %v64_v28 = vld [vmem:[%s26742_s1 + $0x70] sm:$0xff] }
  0x1c   :  { %16041 = vmatprep.mubr.msk.f32.mxu0 %vm431_vm0, %v100_v17  ;;  %1950 = vperm.xlu1 %19309, %v199_v40   ;;  %v208_v17 = vld [vmem:[%s26741_s5 + $0x70] sm:$0xff]  ;;  %v62_v24 = vld [vmem:[%s26742_s1 + $0x60] sm:$0xff]  ;;  %v399_v35 = vld [vmem:[%s26744_s12 + $0x88] sm:$0xff] }
  0x1d   :  { %v236_v31 = vld [vmem:[%s26743_s7] sm:$0xff]  ;;  %v68_v36 = vld [vmem:[%s26742_s1 + $0x90] sm:$0xff]  ;;  %v69_v39 = vld [vmem:[%s26742_s1 + $0x98] sm:$0xff] }
  0x1e   :  { %v66_v32 = vld [vmem:[%s26742_s1 + $0x80] sm:$0xff]  ;;  %v20209_v13 = vld [vmem:[%s26752_s10 + $0x28] sm:$0xff] }
  0x1f   :  { %16042 = vmatmul.mubr.msk.f32.gmra.mrb[14].mxu0 %vm431_vm0, %v101_v18  ;;  %2035 = vperm.xlu0 %19308, %v216_v43   ;;  %v209_v18 = vld [vmem:[%s26741_s5 + $0x78] sm:$0xff]  ;;  %v70_v40 = vld [vmem:[%s26742_s1 + $0xa0] sm:$0xff]  ;;  %v71_v43 = vld [vmem:[%s26742_s1 + $0xa8] sm:$0xff] }
  0x20   :  { %16044 = vmatprep.mubr.msk.f32.mxu0 %vm431_vm0, %v102_v22  ;;  %2040 = vperm.xlu1 %19309, %v217_v44   ;;  %v227_v22 = vld [vmem:[%s26741_s5 + $0x108] sm:$0xff]  ;;  %v72_v44 = vld [vmem:[%s26742_s1 + $0xb0] sm:$0xff] }
  0x23   :  { %16045 = vmatmul.mubr.msk.f32.gmra.mrb[16].mxu0 %vm431_vm0, %v103_v25  ;;  %1955 = vperm.xlu0 %19308, %v200_v47   ;;  %v228_v25 = vld [vmem:[%s26741_s5 + $0x110] sm:$0xff]  ;;  %v73_v47 = vld [vmem:[%s26742_s1 + $0xb8] sm:$0xff] }
  0x24   :  { %16047 = vmatprep.mubr.msk.f32.mxu0 %vm431_vm0, %v104_v26  ;;  %1960 = vperm.xlu1 %19309, %v201_v48   ;;  %v229_v26 = vld [vmem:[%s26741_s5 + $0x118] sm:$0xff]  ;;  %v74_v48 = vld [vmem:[%s26742_s1 + $0xc0] sm:$0xff] }
  0x27   :  { %16048 = vmatmul.mubr.msk.f32.gmra.mrb[18].mxu0 %vm431_vm0, %v105_v29  ;;  %2045 = vperm.xlu0 %19308, %v218_v51   ;;  %v65_v29 = vld [vmem:[%s26742_s1 + $0x78] sm:$0xff]  ;;  %v75_v51 = vld [vmem:[%s26742_s1 + $0xc8] sm:$0xff] }
  0x28   :  { %16050 = vmatprep.mubr.msk.f32.mxu0 %vm431_vm0, %v106_v30  ;;  %2050 = vperm.xlu1 %19309, %v219_v52   ;;  %v237_v30 = vld [vmem:[%s26743_s7 + $0x8] sm:$0x1]  ;;  %v76_v52 = vld [vmem:[%s26742_s1 + $0xd0] sm:$0xff] }
  0x2b   :  { %16051 = vmatmul.mubr.msk.f32.gmra.mrb[20].mxu0 %vm431_vm0, %v107_v33  ;;  %1965 = vperm.xlu0 %19308, %v202_v55   ;;  %v67_v33 = vld [vmem:[%s26742_s1 + $0x88] sm:$0xff]  ;;  %v77_v55 = vld [vmem:[%s26742_s1 + $0xd8] sm:$0xff] }
  0x2c   :  { %16053 = vmatprep.mubr.msk.f32.mxu0 %vm431_vm0, %v108_v34  ;;  %1970 = vperm.xlu1 %19309, %v203_v56   ;;  %v398_v34 = vld [vmem:[%s26744_s12 + $0x80] sm:$0xff] }
  0x2d   :  { %v78_v56 = vld [vmem:[%s26742_s1 + $0xe0] sm:$0xff] }
  0x2f   :  { %16054 = vmatmul.mubr.msk.f32.gmra.mrb[22].mxu0 %vm431_vm0, %v109_v37  ;;  %2055 = vperm.xlu0 %19308, %v220_v59   ;;  %v382_v37 = vld [vmem:[%s26744_s12] sm:$0xff]  ;;  %v79_v59 = vld [vmem:[%s26742_s1 + $0xe8] sm:$0xff] }
  0x30   :  { %16056 = vmatprep.mubr.msk.f32.mxu0 %vm431_vm0, %v110_v38  ;;  %2060 = vperm.xlu1 %19309, %v221_v60   ;;  %v383_v38 = vld [vmem:[%s26744_s12 + $0x8] sm:$0xff]  ;;  %v80_v60 = vld [vmem:[%s26742_s1 + $0xf0] sm:$0xff] }
  0x33   :  { %16057 = vmatmul.mubr.msk.f32.gmra.mrb[24].mxu0 %vm431_vm0, %v111_v41  ;;  %1975 = vperm.xlu0 %19308, %v204_v63   ;;  %v400_v41 = vld [vmem:[%s26744_s12 + $0x90] sm:$0xff]  ;;  %v81_v63 = vld [vmem:[%s26742_s1 + $0xf8] sm:$0xff] }
  0x34   :  { %16059 = vmatprep.mubr.msk.f32.mxu0 %vm431_vm0, %v112_v42  ;;  %1980 = vperm.xlu1 %19309, %v205_v1   ;;  %v401_v42 = vld [vmem:[%s26744_s12 + $0x98] sm:$0xff]  ;;  %v82_v1 = vld [vmem:[%s26742_s1 + $0x100] sm:$0xff] }
  0x37   :  { %16060 = vmatmul.mubr.msk.f32.gmra.mrb[26].mxu0 %vm431_vm0, %v113_v45  ;;  %2065 = vperm.xlu0 %19308, %v222_v4   ;;  %v384_v45 = vld [vmem:[%s26744_s12 + $0x10] sm:$0xff]  ;;  %v83_v4 = vld [vmem:[%s26742_s1 + $0x108] sm:$0xff] }
  0x38   :  { %16062 = vmatprep.mubr.msk.f32.mxu0 %vm431_vm0, %v114_v46  ;;  %2070 = vperm.xlu1 %19309, %v223_v5   ;;  %v385_v46 = vld [vmem:[%s26744_s12 + $0x18] sm:$0xff]  ;;  %v84_v5 = vld [vmem:[%s26742_s1 + $0x110] sm:$0xff] }
  0x3b   :  { %16063 = vmatmul.mubr.msk.f32.gmra.mrb[28].mxu0 %vm431_vm0, %v115_v49  ;;  %1985 = vperm.xlu0 %19308, %v206_v8   ;;  %v402_v49 = vld [vmem:[%s26744_s12 + $0xa0] sm:$0xff]  ;;  %v85_v8 = vld [vmem:[%s26742_s1 + $0x118] sm:$0xff] }
  0x3c   :  { %16065 = vmatprep.mubr.msk.f32.mxu0 %vm431_vm0, %v116_v50  ;;  %1990 = vperm.xlu1 %19309, %v207_v9   ;;  %v403_v50 = vld [vmem:[%s26744_s12 + $0xa8] sm:$0xff]  ;;  %v122_v9 = vld [vmem:[%s26745_s3] sm:$0xff] }
  0x3f   :  { %16066 = vmatmul.mubr.msk.f32.gmra.mrb[30].mxu0 %vm431_vm0, %v117_v53  ;;  %2075 = vperm.xlu0 %19308, %v224_v12   ;;  %v386_v53 = vld [vmem:[%s26744_s12 + $0x20] sm:$0xff]  ;;  %v123_v12 = vld [vmem:[%s26745_s3 + $0x8] sm:$0xff] }
  0x40   :  { %16068 = vmatprep.mubr.msk.f32.mxu0 %vm431_vm0, %v118_v54  ;;  %2080 = vperm.xlu1 %19309, %v225_v14   ;;  %v387_v54 = vld [vmem:[%s26744_s12 + $0x28] sm:$0xff]  ;;  %v124_v14 = vld [vmem:[%s26745_s3 + $0x10] sm:$0xff] }
  0x43   :  { %16069 = vmatmul.mubr.msk.f32.gmra.mrb[32].mxu0 %vm431_vm0, %v119_v57  ;;  %1995 = vperm.xlu0 %19308, %v208_v17   ;;  %v404_v57 = vld [vmem:[%s26744_s12 + $0xb0] sm:$0xff]  ;;  %v125_v17 = vld [vmem:[%s26745_s3 + $0x18] sm:$0xff] }
  0x44   :  { %16071 = vmatprep.mubr.msk.f32.mxu0 %vm431_vm0, %v120_v58  ;;  %2000 = vperm.xlu1 %19309, %v209_v18   ;;  %v405_v58 = vld [vmem:[%s26744_s12 + $0xb8] sm:$0xff]  ;;  %v126_v18 = vld [vmem:[%s26745_s3 + $0x20] sm:$0xff] }
  0x47   :  { %16072 = vmatmul.mubr.msk.f32.gmra.mrb[34].mxu0 %vm431_vm0, %v121_v61  ;;  %2085 = vperm.xlu0 %19308, %v226_v21   ;;  %v388_v61 = vld [vmem:[%s26744_s12 + $0x30] sm:$0xff]  ;;  %v127_v21 = vld [vmem:[%s26745_s3 + $0x28] sm:$0xff] }
  0x48   :  { %16076 = vmatprep.mubr.msk.f32.mxu0 %vm431_vm0, %v50_v62  ;;  %2090 = vperm.xlu1 %19309, %v227_v22   ;;  %v389_v62 = vld [vmem:[%s26744_s12 + $0x38] sm:$0xff]  ;;  %v128_v22 = vld [vmem:[%s26745_s3 + $0x30] sm:$0xff] }
  0x4b   :  { %16077 = vmatmul.mubr.msk.f32.vlgmr.msra.gmra.mrb[0].mxu0 %vm431_vm0, %v51_v2  ;;  %2095 = vperm.xlu0 %19308, %v228_v25   ;;  %v406_v2 = vld [vmem:[%s26744_s12 + $0xc0] sm:$0xff]  ;;  %v129_v25 = vld [vmem:[%s26745_s3 + $0x38] sm:$0xff] }
  0x4c   :  { %16079 = vmatprep.mubr.msk.f32.mxu0 %vm431_vm0, %v52_v3  ;;  %17957 = vmatpush3.bf16.msk.msra.mxu0 %vm20417_vm3, %v20283_v15  ;;  %v57_v15 = vld [vmem:[%s26742_s1 + $0x38] sm:$0xff]  ;;  %v407_v3 = vld [vmem:[%s26744_s12 + $0xc8] sm:$0xff] }
  0x4d   :  { %16188 = vmatprep.subr.mxu0 %v26756_v0  ;;  %2100 = vperm.xlu1 %19309, %v229_v26   ;;  %v130_v26 = vld [vmem:[%s26745_s3 + $0x40] sm:$0xff] }
  0x4f   :  { %16080 = vmatmul.mubr.msk.f32.gmra.mrb[2].mxu0 %vm431_vm0, %v53_v6  ;;  %2182 = vperm.xlu0 %19308, %v237_v30   ;;  %v390_v6 = vld [vmem:[%s26744_s12 + $0x40] sm:$0xff]  ;;  %v132_v30 = vld [vmem:[%s26745_s3 + $0x50] sm:$0xff] }
  0x50   :  { %16082 = vmatprep.mubr.msk.f32.mxu0 %vm431_vm0, %v54_v7  ;;  %v391_v7 = vld [vmem:[%s26744_s12 + $0x48] sm:$0xff] }
  0x51   :  { %2177 = vperm.xlu1 %19309, %v236_v31   ;;  %v397_v31 = vld [vmem:[%s26744_s12 + $0x78] sm:$0xff] }
  0x53   :  { %16083 = vmatmul.mubr.msk.f32.gmra.mrb[4].mxu0 %vm431_vm0, %v55_v10  ;;  %4043 = vperm.xlu0 %19308, %v398_v34   ;;  %v408_v10 = vld [vmem:[%s26744_s12 + $0xd0] sm:$0xff]  ;;  %v134_v34 = vld [vmem:[%s26745_s3 + $0x60] sm:$0xff] }
  0x54   :  { %16085 = vmatprep.mubr.msk.f32.mxu0 %vm431_vm0, %v56_v11  ;;  %v409_v11 = vld [vmem:[%s26744_s12 + $0xd8] sm:$0xff] }
  0x55   :  { %4048 = vperm.xlu1 %19309, %v399_v35   ;;  %v415_v35 = vld [vmem:[%s26744_s12 + $0x108] sm:$0xff] }
  0x57   :  { %16086 = vmatmul.mubr.msk.f32.gmra.mrb[6].mxu0 %vm431_vm0, %v57_v15  ;;  %3963 = vperm.xlu0 %19308, %v382_v37   ;;  %v392_v15 = vld [vmem:[%s26744_s12 + $0x50] sm:$0xff]  ;;  %v135_v37 = vld [vmem:[%s26745_s3 + $0x68] sm:$0xff] }
  0x58   :  { %16088 = vmatprep.mubr.msk.f32.mxu0 %vm431_vm0, %v58_v16  ;;  %v393_v16 = vld [vmem:[%s26744_s12 + $0x58] sm:$0xff] }
  0x59   :  { %3968 = vperm.xlu1 %19309, %v383_v38   ;;  %v136_v38 = vld [vmem:[%s26745_s3 + $0x70] sm:$0xff] }
  0x5b   :  { %16089 = vmatmul.mubr.msk.f32.gmra.mrb[8].mxu0 %vm431_vm0, %v59_v19  ;;  %4053 = vperm.xlu0 %19308, %v400_v41   ;;  %v410_v19 = vld [vmem:[%s26744_s12 + $0xe0] sm:$0xff]  ;;  %v137_v41 = vld [vmem:[%s26745_s3 + $0x78] sm:$0xff] }
  0x5c   :  { %16091 = vmatprep.mubr.msk.f32.mxu0 %vm431_vm0, %v60_v20  ;;  %v411_v20 = vld [vmem:[%s26744_s12 + $0xe8] sm:$0xff] }
  0x5d   :  { %4058 = vperm.xlu1 %19309, %v401_v42   ;;  %v138_v42 = vld [vmem:[%s26745_s3 + $0x80] sm:$0xff] }
  0x5f   :  { %16092 = vmatmul.mubr.msk.f32.gmra.mrb[10].mxu0 %vm431_vm0, %v61_v23  ;;  %3973 = vperm.xlu0 %19308, %v384_v45   ;;  %v394_v23 = vld [vmem:[%s26744_s12 + $0x60] sm:$0xff]  ;;  %v139_v45 = vld [vmem:[%s26745_s3 + $0x88] sm:$0xff] }
  0x60   :  { %16094 = vmatprep.mubr.msk.f32.mxu0 %vm431_vm0, %v62_v24  ;;  %v395_v24 = vld [vmem:[%s26744_s12 + $0x68] sm:$0xff] }
  0x61   :  { %3978 = vperm.xlu1 %19309, %v385_v46   ;;  %v140_v46 = vld [vmem:[%s26745_s3 + $0x90] sm:$0xff] }
  0x63   :  { %16095 = vmatmul.mubr.msk.f32.gmra.mrb[12].mxu0 %vm431_vm0, %v63_v27  ;;  %4063 = vperm.xlu0 %19308, %v402_v49   ;;  %v412_v27 = vld [vmem:[%s26744_s12 + $0xf0] sm:$0xff]  ;;  %v143_v49 = vld [vmem:[%s26745_s3 + $0xa8] sm:$0xff] }
  0x64   :  { %16097 = vmatprep.mubr.msk.f32.mxu0 %vm431_vm0, %v64_v28  ;;  %v413_v28 = vld [vmem:[%s26744_s12 + $0xf8] sm:$0xff] }
  0x65   :  { %4068 = vperm.xlu1 %19309, %v403_v50   ;;  %v144_v50 = vld [vmem:[%s26745_s3 + $0xb0] sm:$0xff] }
  0x67   :  { %16098 = vmatmul.mubr.msk.f32.gmra.mrb[14].mxu0 %vm431_vm0, %v65_v29  ;;  %3983 = vperm.xlu0 %19308, %v386_v53   ;;  %v131_v29 = vld [vmem:[%s26745_s3 + $0x48] sm:$0xff] }
  0x68   :  { %16100 = vmatprep.mubr.msk.f32.mxu0 %vm431_vm0, %v66_v32  ;;  %v396_v32 = vld [vmem:[%s26744_s12 + $0x70] sm:$0xff]  ;;  %v147_v53 = vld [vmem:[%s26745_s3 + $0xc8] sm:$0xff] }
  0x69   :  { %3988 = vperm.xlu1 %19309, %v387_v54   ;;  %v148_v54 = vld [vmem:[%s26745_s3 + $0xd0] sm:$0xff] }
  0x6b   :  { %16101 = vmatmul.mubr.msk.f32.gmra.mrb[16].mxu0 %vm431_vm0, %v67_v33  ;;  %4073 = vperm.xlu0 %19308, %v404_v57   ;;  %v133_v33 = vld [vmem:[%s26745_s3 + $0x58] sm:$0xff]  ;;  %v151_v57 = vld [vmem:[%s26745_s3 + $0xe8] sm:$0xff] }
  0x6c   :  { %16103 = vmatprep.mubr.msk.f32.mxu0 %vm431_vm0, %v68_v36  ;;  %v414_v36 = vld [vmem:[%s26744_s12 + $0x100] sm:$0xff] }
  0x6d   :  { %4078 = vperm.xlu1 %19309, %v405_v58   ;;  %v152_v58 = vld [vmem:[%s26745_s3 + $0xf0] sm:$0xff] }
  0x6f   :  { %16104 = vmatmul.mubr.msk.f32.gmra.mrb[18].mxu0 %vm431_vm0, %v69_v39  ;;  %3993 = vperm.xlu0 %19308, %v388_v61   ;;  %v417_v39 = vld [vmem:[%s26744_s12 + $0x118] sm:$0xff]  ;;  %v155_v61 = vld [vmem:[%s26745_s3 + $0x108] sm:$0xff] }
  0x70   :  { %16106 = vmatprep.mubr.msk.f32.mxu0 %vm431_vm0, %v70_v40  ;;  %v416_v40 = vld [vmem:[%s26744_s12 + $0x110] sm:$0xff] }
  0x71   :  { %3998 = vperm.xlu1 %19309, %v389_v62   ;;  %v156_v62 = vld [vmem:[%s26745_s3 + $0x110] sm:$0xff] }
  0x73   :  { %16107 = vmatmul.mubr.msk.f32.gmra.mrb[20].mxu0 %vm431_vm0, %v71_v43  ;;  %4083 = vperm.xlu0 %19308, %v406_v2   ;;  %v424_v43 = vld [vmem:[%s26746_s14] sm:$0xff]  ;;  %v159_v2 = vld [vmem:[%s26747_s4 + $0x8] sm:$0xff] }
  0x74   :  { %16109 = vmatprep.mubr.msk.f32.mxu0 %vm431_vm0, %v72_v44  ;;  %v425_v44 = vld [vmem:[%s26746_s14 + $0x8] sm:$0x1] }
  0x75   :  { %4088 = vperm.xlu1 %19309, %v407_v3   ;;  %v160_v3 = vld [vmem:[%s26747_s4 + $0x10] sm:$0xff] }
  0x77   :  { %16110 = vmatmul.mubr.msk.f32.gmra.mrb[22].mxu0 %vm431_vm0, %v73_v47  ;;  %4003 = vperm.xlu0 %19308, %v390_v6   ;;  %v141_v47 = vld [vmem:[%s26745_s3 + $0x98] sm:$0xff]  ;;  %v163_v6 = vld [vmem:[%s26747_s4 + $0x28] sm:$0xff] }
  0x78   :  { %16112 = vmatprep.mubr.msk.f32.mxu0 %vm431_vm0, %v74_v48  ;;  %v142_v48 = vld [vmem:[%s26745_s3 + $0xa0] sm:$0xff] }
  0x79   :  { %4008 = vperm.xlu1 %19309, %v391_v7   ;;  %v164_v7 = vld [vmem:[%s26747_s4 + $0x30] sm:$0xff] }
  0x7b   :  { %16113 = vmatmul.mubr.msk.f32.gmra.mrb[24].mxu0 %vm431_vm0, %v75_v51  ;;  %4093 = vperm.xlu0 %19308, %v408_v10   ;;  %v145_v51 = vld [vmem:[%s26745_s3 + $0xb8] sm:$0xff]  ;;  %v167_v10 = vld [vmem:[%s26747_s4 + $0x48] sm:$0xff] }
  0x7c   :  { %16115 = vmatprep.mubr.msk.f32.mxu0 %vm431_vm0, %v76_v52  ;;  %v146_v52 = vld [vmem:[%s26745_s3 + $0xc0] sm:$0xff] }
  0x7d   :  { %4098 = vperm.xlu1 %19309, %v409_v11   ;;  %v168_v11 = vld [vmem:[%s26747_s4 + $0x50] sm:$0xff] }
  0x7f   :  { %16116 = vmatmul.mubr.msk.f32.gmra.mrb[26].mxu0 %vm431_vm0, %v77_v55  ;;  %4013 = vperm.xlu0 %19308, %v392_v15   ;;  %v149_v55 = vld [vmem:[%s26745_s3 + $0xd8] sm:$0xff]  ;;  %v171_v15 = vld [vmem:[%s26747_s4 + $0x68] sm:$0xff] }
  0x80   :  { %16118 = vmatprep.mubr.msk.f32.mxu0 %vm431_vm0, %v78_v56  ;;  %v150_v56 = vld [vmem:[%s26745_s3 + $0xe0] sm:$0xff] }
  0x81   :  { %4018 = vperm.xlu1 %19309, %v393_v16   ;;  %v172_v16 = vld [vmem:[%s26747_s4 + $0x70] sm:$0xff] }
  0x83   :  { %16119 = vmatmul.mubr.msk.f32.gmra.mrb[28].mxu0 %vm431_vm0, %v79_v59  ;;  %4103 = vperm.xlu0 %19308, %v410_v19   ;;  %v153_v59 = vld [vmem:[%s26745_s3 + $0xf8] sm:$0xff]  ;;  %v175_v19 = vld [vmem:[%s26747_s4 + $0x88] sm:$0xff] }
  0x84   :  { %16121 = vmatprep.mubr.msk.f32.mxu0 %vm431_vm0, %v80_v60  ;;  %v154_v60 = vld [vmem:[%s26745_s3 + $0x100] sm:$0xff] }
  0x85   :  { %4108 = vperm.xlu1 %19309, %v411_v20   ;;  %v176_v20 = vld [vmem:[%s26747_s4 + $0x90] sm:$0xff] }
  0x87   :  { %16122 = vmatmul.mubr.msk.f32.gmra.mrb[30].mxu0 %vm431_vm0, %v81_v63  ;;  %4023 = vperm.xlu0 %19308, %v394_v23   ;;  %v157_v63 = vld [vmem:[%s26745_s3 + $0x118] sm:$0xff]  ;;  %v179_v23 = vld [vmem:[%s26747_s4 + $0xa8] sm:$0xff] }
  0x88   :  { %16124 = vmatprep.mubr.msk.f32.mxu0 %vm431_vm0, %v82_v1  ;;  %v158_v1 = vld [vmem:[%s26747_s4] sm:$0xff] }
  0x89   :  { %4028 = vperm.xlu1 %19309, %v395_v24   ;;  %v180_v24 = vld [vmem:[%s26747_s4 + $0xb0] sm:$0xff] }
  0x8b   :  { %16125 = vmatmul.mubr.msk.f32.gmra.mrb[32].mxu0 %vm431_vm0, %v83_v4  ;;  %4113 = vperm.xlu0 %19308, %v412_v27   ;;  %v161_v4 = vld [vmem:[%s26747_s4 + $0x18] sm:$0xff]  ;;  %v183_v27 = vld [vmem:[%s26747_s4 + $0xc8] sm:$0xff] }
  0x8c   :  { %16127 = vmatprep.mubr.msk.f32.mxu0 %vm431_vm0, %v84_v5  ;;  %v162_v5 = vld [vmem:[%s26747_s4 + $0x20] sm:$0xff] }
  0x8d   :  { %4118 = vperm.xlu1 %19309, %v413_v28   ;;  %v184_v28 = vld [vmem:[%s26747_s4 + $0xd0] sm:$0xff] }
  0x8f   :  { %16128 = vmatmul.mubr.msk.f32.gmra.mrb[34].mxu0 %vm431_vm0, %v85_v8  ;;  %4033 = vperm.xlu0 %19308, %v396_v32   ;;  %v165_v8 = vld [vmem:[%s26747_s4 + $0x38] sm:$0xff]  ;;  %v188_v32 = vld [vmem:[%s26747_s4 + $0xf0] sm:$0xff] }
  0x90   :  { %16134 = vmatprep.mubr.msk.f32.mxu0 %vm431_vm0, %v122_v9  ;;  %v166_v9 = vld [vmem:[%s26747_s4 + $0x40] sm:$0xff] }
  0x91   :  { %4038 = vperm.xlu1 %19309, %v397_v31   ;;  %v187_v31 = vld [vmem:[%s26747_s4 + $0xe8] sm:$0xff] }
  0x93   :  { %16135 = vmatmul.mubr.msk.f32.vlgmr.msra.gmra.mrb[0].mxu0 %vm431_vm0, %v123_v12  ;;  %4123 = vperm.xlu0 %19308, %v414_v36   ;;  %v169_v12 = vld [vmem:[%s26747_s4 + $0x58] sm:$0xff]  ;;  %v192_v36 = vld [vmem:[%s26747_s4 + $0x110] sm:$0xff] }
  0x94   :  { %16137 = vmatprep.mubr.msk.f32.mxu0 %vm431_vm0, %v124_v14  ;;  %16189 = vmatpush3.msra.mxu0 %v26756_v0  ;;  %v170_v14 = vld [vmem:[%s26747_s4 + $0x60] sm:$0xff] }
  0x95   :  { %4128 = vperm.xlu1 %19309, %v415_v35   ;;  %v191_v35 = vld [vmem:[%s26747_s4 + $0x108] sm:$0xff] }
  0x97   :  { %16138 = vmatmul.mubr.msk.f32.gmra.mrb[2].mxu0 %vm431_vm0, %v125_v17  ;;  %4133 = vperm.xlu0 %19308, %v416_v40   ;;  %v173_v17 = vld [vmem:[%s26747_s4 + $0x78] sm:$0xff]  ;;  %v231_v40 = vld [vmem:[%s26748_s6 + $0x8] sm:$0xff] }
  0x98   :  { %16140 = vmatprep.mubr.msk.f32.mxu0 %vm431_vm0, %v126_v18  ;;  %v174_v18 = vld [vmem:[%s26747_s4 + $0x80] sm:$0xff]  ;;  %2256 = vmatprep.mubr.f32.mxu1 %v231_v40 }
  0x99   :  { %4138 = vperm.xlu1 %19309, %v417_v39   ;;  %v21188_v39 = vpop.permute.xlu0 %2005 }
  0x9a   :  { %26883 = vst [vmem:[#allocation2_spill] sm:$0xff] %v21188_v39 }
  0x9b   :  { %16141 = vmatmul.mubr.msk.f32.gmra.mrb[4].mxu0 %vm431_vm0, %v127_v21  ;;  %4220 = vperm.xlu0 %19308, %v425_v44   ;;  %v177_v21 = vld [vmem:[%s26747_s4 + $0x98] sm:$0xff] }
  0x9c   :  { %16143 = vmatprep.mubr.msk.f32.mxu0 %vm431_vm0, %v128_v22  ;;  %v178_v22 = vld [vmem:[%s26747_s4 + $0xa0] sm:$0xff] }
  0x9d   :  { %4215 = vperm.xlu1 %19309, %v424_v43  }
  0x9f   :  { %16144 = vmatmul.mubr.msk.f32.gmra.mrb[6].mxu0 %vm431_vm0, %v129_v25  ;;  %v181_v25 = vld [vmem:[%s26747_s4 + $0xb8] sm:$0xff] }
  0xa0   :  { %16146 = vmatprep.mubr.msk.f32.mxu0 %vm431_vm0, %v130_v26  ;;  %v182_v26 = vld [vmem:[%s26747_s4 + $0xc0] sm:$0xff] }
  0xa3   :  { %16147 = vmatmul.mubr.msk.f32.gmra.mrb[8].mxu0 %vm431_vm0, %v131_v29  ;;  %v185_v29 = vld [vmem:[%s26747_s4 + $0xd8] sm:$0xff] }
  0xa4   :  { %16149 = vmatprep.mubr.msk.f32.mxu0 %vm431_vm0, %v132_v30  ;;  %v186_v30 = vld [vmem:[%s26747_s4 + $0xe0] sm:$0xff] }
  0xa7   :  { %16150 = vmatmul.mubr.msk.f32.gmra.mrb[10].mxu0 %vm431_vm0, %v133_v33  ;;  %v189_v33 = vld [vmem:[%s26747_s4 + $0xf8] sm:$0xff] }
  0xa8   :  { %16152 = vmatprep.mubr.msk.f32.mxu0 %vm431_vm0, %v134_v34  ;;  %v190_v34 = vld [vmem:[%s26747_s4 + $0x100] sm:$0xff] }
  0xab   :  { %16153 = vmatmul.mubr.msk.f32.gmra.mrb[12].mxu0 %vm431_vm0, %v135_v37  ;;  %v193_v37 = vld [vmem:[%s26747_s4 + $0x118] sm:$0xff] }
  0xac   :  { %16155 = vmatprep.mubr.msk.f32.mxu0 %vm431_vm0, %v136_v38  ;;  %v21186_v38 = vpop.permute.xlu1 %1925 }
  0xaf   :  { %16156 = vmatmul.mubr.msk.f32.gmra.mrb[14].mxu0 %vm431_vm0, %v137_v41 }
  0xb0   :  { %16158 = vmatprep.mubr.msk.f32.mxu0 %vm431_vm0, %v138_v42  ;;  %v21193_v41 = vpop.permute.xlu1 %1930  ;;  %v21195_v42 = vpop.permute.xlu0 %2010 }
  0xb1   :  { %26884 = vst [vmem:[#allocation3_spill] sm:$0xff] %v21195_v42 }
  0xb3   :  { %16159 = vmatmul.mubr.msk.f32.gmra.mrb[16].mxu0 %vm431_vm0, %v139_v45 }
  0xb4   :  { %16161 = vmatprep.mubr.msk.f32.mxu0 %vm431_vm0, %v140_v46  ;;  %v21197_v43 = vpop.permute.xlu1 %2020  ;;  %v21199_v44 = vpop.permute.xlu0 %2015 }
  0xb5   :  { %26885 = vst [vmem:[#allocation4_spill] sm:$0xff] %v21197_v43  ;;  %26886 = vst [vmem:[#allocation5_spill] sm:$0xff] %v21199_v44 }
  0xb7   :  { %16162 = vmatmul.mubr.msk.f32.gmra.mrb[18].mxu0 %vm431_vm0, %v141_v47 }
  0xb8   :  { %16164 = vmatprep.mubr.msk.f32.mxu0 %vm431_vm0, %v142_v48  ;;  %v21201_v45 = vpop.permute.xlu1 %1940  ;;  %v21203_v46 = vpop.permute.xlu0 %1935 }
  0xbb   :  { %16165 = vmatmul.mubr.msk.f32.gmra.mrb[20].mxu0 %vm431_vm0, %v143_v49 }
  0xbc   :  { %16167 = vmatprep.mubr.msk.f32.mxu0 %vm431_vm0, %v144_v50  ;;  %v21205_v47 = vpop.permute.xlu1 %2030  ;;  %v21207_v48 = vpop.permute.xlu0 %2025 }
  0xbd   :  { %26887 = vst [vmem:[#allocation6_spill] sm:$0xff] %v21205_v47  ;;  %26888 = vst [vmem:[#allocation7_spill] sm:$0xff] %v21207_v48 }
  0xbf   :  { %16168 = vmatmul.mubr.msk.f32.gmra.mrb[22].mxu0 %vm431_vm0, %v145_v51 }
  0xc0   :  { %16170 = vmatprep.mubr.msk.f32.mxu0 %vm431_vm0, %v146_v52  ;;  %v21209_v49 = vpop.permute.xlu1 %1950  ;;  %v21211_v50 = vpop.permute.xlu0 %1945 }
  0xc3   :  { %16171 = vmatmul.mubr.msk.f32.gmra.mrb[24].mxu0 %vm431_vm0, %v147_v53 }
  0xc4   :  { %16173 = vmatprep.mubr.msk.f32.mxu0 %vm431_vm0, %v148_v54  ;;  %v21213_v51 = vpop.permute.xlu1 %2040  ;;  %v21215_v52 = vpop.permute.xlu0 %2035 }
  0xc5   :  { %26889 = vst [vmem:[#allocation8_spill] sm:$0xff] %v21213_v51  ;;  %26890 = vst [vmem:[#allocation9_spill] sm:$0xff] %v21215_v52 }
  0xc7   :  { %16174 = vmatmul.mubr.msk.f32.gmra.mrb[26].mxu0 %vm431_vm0, %v149_v55 }
  0xc8   :  { %16176 = vmatprep.mubr.msk.f32.mxu0 %vm431_vm0, %v150_v56  ;;  %v21217_v53 = vpop.permute.xlu1 %1960  ;;  %v21219_v54 = vpop.permute.xlu0 %1955 }
  0xc9   :  { %26891 = vst [vmem:[#allocation10_spill] sm:$0xff] %v21217_v53  ;;  %26892 = vst [vmem:[#allocation11_spill] sm:$0xff] %v21219_v54 }
  0xcb   :  { %16177 = vmatmul.mubr.msk.f32.gmra.mrb[28].mxu0 %vm431_vm0, %v151_v57 }
  0xcc   :  { %16179 = vmatprep.mubr.msk.f32.mxu0 %vm431_vm0, %v152_v58  ;;  %v21221_v55 = vpop.permute.xlu1 %2050  ;;  %v21223_v56 = vpop.permute.xlu0 %2045 }
  0xcd   :  { %26893 = vst [vmem:[#allocation12_spill] sm:$0xff] %v21221_v55  ;;  %26894 = vst [vmem:[#allocation13_spill] sm:$0xff] %v21223_v56 }
  0xcf   :  { %16180 = vmatmul.mubr.msk.f32.gmra.mrb[30].mxu0 %vm431_vm0, %v153_v59 }
  0xd0   :  { %16182 = vmatprep.mubr.msk.f32.mxu0 %vm431_vm0, %v154_v60  ;;  %v21225_v57 = vpop.permute.xlu1 %1970  ;;  %v21227_v58 = vpop.permute.xlu0 %1965 }
  0xd1   :  { %26895 = vst [vmem:[#allocation14_spill] sm:$0xff] %v21225_v57  ;;  %26896 = vst [vmem:[#allocation15_spill] sm:$0xff] %v21227_v58 }
  0xd3   :  { %16183 = vmatmul.mubr.msk.f32.gmra.mrb[32].mxu0 %vm431_vm0, %v155_v61 }
  0xd4   :  { %16185 = vmatprep.mubr.msk.f32.mxu0 %vm431_vm0, %v156_v62  ;;  %v21229_v59 = vpop.permute.xlu1 %2060  ;;  %v21231_v60 = vpop.permute.xlu0 %2055 }
  0xd5   :  { %26897 = vst [vmem:[#allocation16_spill] sm:$0xff] %v21229_v59  ;;  %26898 = vst [vmem:[#allocation17_spill] sm:$0xff] %v21231_v60 }
  0xd7   :  { %16186 = vmatmul.mubr.msk.f32.gmra.mrb[34].mxu0 %vm431_vm0, %v157_v63 }
  0xd8   :  { %16190 = vmatprep.mubr.msk.f32.mxu0 %vm431_vm0, %v158_v1 }
  0xdb   :  { %16191 = vmatmul.mubr.msk.f32.vlgmr.msra.gmra.mrb[0].mxu0 %vm431_vm0, %v159_v2 }
  0xdc   :  { %16193 = vmatprep.mubr.msk.f32.mxu0 %vm431_vm0, %v160_v3  ;;  %v21235_v3 = vpop.permute.xlu1 %1980 }
  0xdd   :  { %26899 = vst [vmem:[#allocation18_spill] sm:$0xff] %v21235_v3 }
  0xdf   :  { %16194 = vmatmul.mubr.msk.f32.gmra.mrb[2].mxu0 %vm431_vm0, %v161_v4 }
  0xe0   :  { %16196 = vmatprep.mubr.msk.f32.mxu0 %vm431_vm0, %v162_v5 }
  0xe3   :  { %16197 = vmatmul.mubr.msk.f32.gmra.mrb[4].mxu0 %vm431_vm0, %v163_v6  ;;  %v21237_v6 = vpop.permute.xlu0 %1975 }
  0xe4   :  { %16199 = vmatprep.mubr.msk.f32.mxu0 %vm431_vm0, %v164_v7  ;;  %26900 = vst [vmem:[#allocation19_spill] sm:$0xff] %v21237_v6 }
  0xe7   :  { %16200 = vmatmul.mubr.msk.f32.gmra.mrb[6].mxu0 %vm431_vm0, %v165_v8 }
  0xe8   :  { %16202 = vmatprep.mubr.msk.f32.mxu0 %vm431_vm0, %v166_v9 }
  0xeb   :  { %16203 = vmatmul.mubr.msk.f32.gmra.mrb[8].mxu0 %vm431_vm0, %v167_v10 }
  0xec   :  { %16205 = vmatprep.mubr.msk.f32.mxu0 %vm431_vm0, %v168_v11 }
  0xef   :  { %16206 = vmatmul.mubr.msk.f32.gmra.mrb[10].mxu0 %vm431_vm0, %v169_v12 }
  0xf0   :  { %16208 = vmatprep.mubr.msk.f32.mxu0 %vm431_vm0, %v170_v14 }
  0xf3   :  { %16209 = vmatmul.mubr.msk.f32.gmra.mrb[12].mxu0 %vm431_vm0, %v171_v15 }
  0xf4   :  { %16211 = vmatprep.mubr.msk.f32.mxu0 %vm431_vm0, %v172_v16 }
  0xf7   :  { %16212 = vmatmul.mubr.msk.f32.gmra.mrb[14].mxu0 %vm431_vm0, %v173_v17  ;;  %v21244_v17 = vpop.permute.xlu1 %2070 }
  0xf8   :  { %16214 = vmatprep.mubr.msk.f32.mxu0 %vm431_vm0, %v174_v18  ;;  %26901 = vst [vmem:[#allocation20_spill] sm:$0xff] %v21244_v17 }
  0xfb   :  { %16215 = vmatmul.mubr.msk.f32.gmra.mrb[16].mxu0 %vm431_vm0, %v175_v19 }
  0xfc   :  { %16217 = vmatprep.mubr.msk.f32.mxu0 %vm431_vm0, %v176_v20  ;;  %v21249_v20 = vpop.permute.xlu0 %2065 }
  0xfd   :  { %26902 = vst [vmem:[#allocation21_spill] sm:$0xff] %v21249_v20 }
  0xff   :  { %16218 = vmatmul.mubr.msk.f32.gmra.mrb[18].mxu0 %vm431_vm0, %v177_v21 }
 0x100   :  { %16220 = vmatprep.mubr.msk.f32.mxu0 %vm431_vm0, %v178_v22 }
 0x103   :  { %16221 = vmatmul.mubr.msk.f32.gmra.mrb[20].mxu0 %vm431_vm0, %v179_v23 }
 0x104   :  { %16223 = vmatprep.mubr.msk.f32.mxu0 %vm431_vm0, %v180_v24 }
 0x107   :  { %16224 = vmatmul.mubr.msk.f32.gmra.mrb[22].mxu0 %vm431_vm0, %v181_v25 }
 0x108   :  { %16226 = vmatprep.mubr.msk.f32.mxu0 %vm431_vm0, %v182_v26 }
 0x10b   :  { %16227 = vmatmul.mubr.msk.f32.gmra.mrb[24].mxu0 %vm431_vm0, %v183_v27 }
 0x10c   :  { %16229 = vmatprep.mubr.msk.f32.mxu0 %vm431_vm0, %v184_v28 }
 0x10f   :  { %16230 = vmatmul.mubr.msk.f32.gmra.mrb[26].mxu0 %vm431_vm0, %v185_v29  ;;  %v21255_v29 = vpop.permute.xlu1 %1990 }
 0x110   :  { %16232 = vmatprep.mubr.msk.f32.mxu0 %vm431_vm0, %v186_v30  ;;  %26903 = vst [vmem:[#allocation22_spill] sm:$0xff] %v21255_v29 }
 0x113   :  { %16233 = vmatmul.mubr.msk.f32.gmra.mrb[28].mxu0 %vm431_vm0, %v187_v31 }
 0x114   :  { %16235 = vmatprep.mubr.msk.f32.mxu0 %vm431_vm0, %v188_v32  ;;  %v21257_v32 = vpop.permute.xlu0 %1985 }
 0x115   :  { %26904 = vst [vmem:[#allocation23_spill] sm:$0xff] %v21257_v32 }
 0x117   :  { %16236 = vmatmul.mubr.msk.f32.gmra.mrb[30].mxu0 %vm431_vm0, %v189_v33 }
 0x118   :  { %16238 = vmatprep.mubr.msk.f32.mxu0 %vm431_vm0, %v190_v34 }
 0x11b   :  { %16239 = vmatmul.mubr.msk.f32.gmra.mrb[32].mxu0 %vm431_vm0, %v191_v35 }
 0x11c   :  { %16241 = vmatprep.mubr.msk.f32.mxu0 %vm431_vm0, %v192_v36 }
 0x11f   :  { %16242 = vmatmul.mubr.msk.f32.gmra.mrb[34].mxu0 %vm431_vm0, %v193_v37 }
 0x1ae   :  { %v16192_v61 = vpop.f32.mrb[0].mxu0 }
 0x1af   :  { %v2104_v62 = vadd.f32 %v16192_v61, %v21193_v41  ;;  %v1708_v63 = vpop.f32.mrb[1].mxu0 }
 0x1b0   :  { %v2103_v1 = vadd.f32 %v21186_v38, %v1708_v63 }
 0x1b1   :  { %v2140_v2 = vmax.f32 %v2104_v62, 0.0 }
 0x1b2   :  { %v2139_v4 = vmax.f32 %v2103_v1, 0.0  ;;  %v16195_v5 = vpop.f32.mrb[2].mxu0  ;;  %v21264_v1 = vpop.permute.xlu1 %2080 }
 0x1b3   :  { %v2106_v7 = vadd.f32 %v16195_v5, %v21201_v45  ;;  %v1718_v8 = vpop.f32.mrb[3].mxu0  ;;  %26905 = vst [vmem:[#allocation24_spill] sm:$0xff] %v21264_v1  ;;  %v21269_v5 = vpop.permute.xlu0 %2075 }
 0x1b4   :  { %v2105_v9 = vadd.f32 %v21203_v46, %v1718_v8  ;;  %v21241_v10 = vpack.c.bf16 %v2140_v2, %v2139_v4  ;;  %26906 = vst [vmem:[#allocation25_spill] sm:$0xff] %v21269_v5 }
 0x1b5   :  { %v2142_v11 = vmax.f32 %v2106_v7, 0.0 }
 0x1b6   :  { %v2141_v12 = vmax.f32 %v2105_v9, 0.0  ;;  %v16198_v14 = vpop.f32.mrb[4].mxu0 }
 0x1b7   :  { %v2108_v15 = vadd.f32 %v16198_v14, %v21209_v49  ;;  %v1728_v16 = vpop.f32.mrb[5].mxu0 }
 0x1b8   :  { %v21246_v18 = vpack.c.bf16 %v2142_v11, %v2141_v12  ;;  %v2107_v19 = vadd.f32 %v21211_v50, %v1728_v16 }
 0x1b9   :  { %v2144_v21 = vmax.f32 %v2108_v15, 0.0 }
 0x1ba   :  { %v2143_v22 = vmax.f32 %v2107_v19, 0.0  ;;  %v16201_v23 = vpop.f32.mrb[6].mxu0  ;;  %v21275_v19 = vpop.permute.xlu1 %2000 }
 0x1bb   :  { %v2110_v24 = vadd.f32 %v16201_v23, %v21217_v53  ;;  %v1738_v25 = vpop.f32.mrb[7].mxu0  ;;  %26907 = vst [vmem:[#allocation26_spill] sm:$0xff] %v21275_v19  ;;  %v21277_v23 = vpop.permute.xlu0 %1995 }
 0x1bc   :  { %v21252_v26 = vpack.c.bf16 %v2144_v21, %v2143_v22  ;;  %v2109_v27 = vadd.f32 %v21219_v54, %v1738_v25  ;;  %26908 = vst [vmem:[#allocation27_spill] sm:$0xff] %v21277_v23 }
 0x1bd   :  { %v2146_v28 = vmax.f32 %v2110_v24, 0.0 }
 0x1be   :  { %v2145_v30 = vmax.f32 %v2109_v27, 0.0  ;;  %v16204_v31 = vpop.f32.mrb[8].mxu0 }
 0x1bf   :  { %v2112_v33 = vadd.f32 %v16204_v31, %v21225_v57  ;;  %v1748_v34 = vpop.f32.mrb[9].mxu0 }
 0x1c0   :  { %v21260_v35 = vpack.c.bf16 %v2146_v28, %v2145_v30  ;;  %v2111_v36 = vadd.f32 %v21227_v58, %v1748_v34 }
 0x1c1   :  { %v2148_v37 = vmax.f32 %v2112_v33, 0.0 }
 0x1c2   :  { %v2147_v40 = vmax.f32 %v2111_v36, 0.0  ;;  %v16207_v61 = vpop.f32.mrb[10].mxu0 }
 0x1c3   :  { %v2114_v62 = vadd.f32 %v16207_v61, %v21235_v3  ;;  %v1758_v63 = vpop.f32.mrb[11].mxu0 }
 0x1c4   :  { %v21266_v2 = vpack.c.bf16 %v2148_v37, %v2147_v40  ;;  %v2113_v4 = vadd.f32 %v21237_v6, %v1758_v63 }
 0x1c5   :  { %v2150_v7 = vmax.f32 %v2114_v62, 0.0 }
 0x1c6   :  { %v2149_v8 = vmax.f32 %v2113_v4, 0.0  ;;  %v16210_v9 = vpop.f32.mrb[12].mxu0 }
 0x1c7   :  { %v2116_v11 = vadd.f32 %v16210_v9, %v21255_v29  ;;  %v1768_v12 = vpop.f32.mrb[13].mxu0 }
 0x1c8   :  { %v21272_v14 = vpack.c.bf16 %v2150_v7, %v2149_v8  ;;  %v2115_v15 = vadd.f32 %v21257_v32, %v1768_v12 }
 0x1c9   :  { %v2152_v16 = vmax.f32 %v2116_v11, 0.0 }
 0x1ca   :  { %v2151_v21 = vmax.f32 %v2115_v15, 0.0  ;;  %v16213_v22 = vpop.f32.mrb[14].mxu0 }
 0x1cb   :  { %v2118_v24 = vadd.f32 %v16213_v22, %v21275_v19  ;;  %v1778_v25 = vpop.f32.mrb[15].mxu0 }
 0x1cc   :  { %v21280_v27 = vpack.c.bf16 %v2152_v16, %v2151_v21  ;;  %v2117_v28 = vadd.f32 %v21277_v23, %v1778_v25 }
 0x1cd   :  { %v2154_v30 = vmax.f32 %v2118_v24, 0.0 }
 0x1ce   :  { %v2153_v31 = vmax.f32 %v2117_v28, 0.0  ;;  %v16216_v33 = vpop.f32.mrb[16].mxu0 }
 0x1cf   :  { %v2120_v34 = vadd.f32 %v16216_v33, %v21195_v42  ;;  %v1788_v36 = vpop.f32.mrb[17].mxu0 }
 0x1d0   :  { %v21284_v37 = vpack.c.bf16 %v2154_v30, %v2153_v31  ;;  %v2119_v40 = vadd.f32 %v21188_v39, %v1788_v36 }
 0x1d1   :  { %v2156_v61 = vmax.f32 %v2120_v34, 0.0 }
 0x1d2   :  { %v2155_v62 = vmax.f32 %v2119_v40, 0.0  ;;  %v16219_v63 = vpop.f32.mrb[18].mxu0 }
 0x1d3   :  { %v2122_v4 = vadd.f32 %v16219_v63, %v21197_v43  ;;  %v1798_v7 = vpop.f32.mrb[19].mxu0 }
 0x1d4   :  { %v2121_v8 = vadd.f32 %v21199_v44, %v1798_v7  ;;  %v17958_v9 = vpack.c.bf16 %v2156_v61, %v2155_v62 }
 0x1d5   :  { %v2158_v11 = vmax.f32 %v2122_v4, 0.0 }
 0x1d6   :  { %v2157_v12 = vmax.f32 %v2121_v8, 0.0  ;;  %v16222_v15 = vpop.f32.mrb[20].mxu0  ;;  %17959 = vmatprep.subr.bf16.mxu1 %v17958_v9 }
 0x1d7   :  { %v2124_v16 = vadd.f32 %v16222_v15, %v21205_v47  ;;  %v1808_v21 = vpop.f32.mrb[21].mxu0  ;;  %17961 = vmatpush3.bf16.msra.mxu1 %v21241_v10 }
 0x1d8   :  { %v17962_v22 = vpack.c.bf16 %v2158_v11, %v2157_v12  ;;  %v2123_v24 = vadd.f32 %v21207_v48, %v1808_v21 }
 0x1d9   :  { %v2160_v25 = vmax.f32 %v2124_v16, 0.0 }
 0x1da   :  { %v2159_v28 = vmax.f32 %v2123_v24, 0.0  ;;  %v16225_v30 = vpop.f32.mrb[22].mxu0  ;;  %17963 = vmatprep.subr.bf16.mxu1 %v17962_v22 }
 0x1db   :  { %v2126_v31 = vadd.f32 %v16225_v30, %v21213_v51  ;;  %v1818_v33 = vpop.f32.mrb[23].mxu0  ;;  %17965 = vmatpush3.bf16.msra.mxu1 %v21246_v18 }
 0x1dc   :  { %v17966_v34 = vpack.c.bf16 %v2160_v25, %v2159_v28  ;;  %v2125_v36 = vadd.f32 %v21215_v52, %v1818_v33 }
 0x1dd   :  { %v2162_v40 = vmax.f32 %v2126_v31, 0.0 }
 0x1de   :  { %v2161_v61 = vmax.f32 %v2125_v36, 0.0  ;;  %v16228_v62 = vpop.f32.mrb[24].mxu0  ;;  %17967 = vmatprep.subr.bf16.mxu1 %v17966_v34 }
 0x1df   :  { %v2128_v10 = vadd.f32 %v16228_v62, %v21221_v55  ;;  %v1828_v63 = vpop.f32.mrb[25].mxu0  ;;  %17969 = vmatpush3.bf16.msra.mxu1 %v21252_v26 }
 0x1e0   :  { %v17970_v4 = vpack.c.bf16 %v2162_v40, %v2161_v61  ;;  %v2127_v7 = vadd.f32 %v21223_v56, %v1828_v63  ;;  %v21306_v40 = vpop.permute.xlu1 %2090 }
 0x1e1   :  { %v2164_v8 = vmax.f32 %v2128_v10, 0.0  ;;  %26909 = vst [vmem:[#allocation28_spill] sm:$0xff] %v21306_v40  ;;  %v21309_v10 = vpop.permute.xlu0 %2085 }
 0x1e2   :  { %v2163_v9 = vmax.f32 %v2127_v7, 0.0  ;;  %v16231_v11 = vpop.f32.mrb[26].mxu0  ;;  %17971 = vmatprep.subr.bf16.mxu1 %v17970_v4  ;;  %26910 = vst [vmem:[#allocation29_spill] sm:$0xff] %v21309_v10 }
 0x1e3   :  { %v2130_v18 = vadd.f32 %v16231_v11, %v21229_v59  ;;  %v1838_v12 = vpop.f32.mrb[27].mxu0  ;;  %17973 = vmatpush3.bf16.msra.mxu1 %v21260_v35 }
 0x1e4   :  { %v17974_v15 = vpack.c.bf16 %v2164_v8, %v2163_v9  ;;  %v2129_v16 = vadd.f32 %v21231_v60, %v1838_v12 }
 0x1e5   :  { %v2166_v21 = vmax.f32 %v2130_v18, 0.0  ;;  %v21314_v18 = vpop.permute.xlu1 %2100 }
 0x1e6   :  { %v2165_v22 = vmax.f32 %v2129_v16, 0.0  ;;  %v16234_v24 = vpop.f32.mrb[28].mxu0  ;;  %17975 = vmatprep.subr.bf16.mxu1 %v17974_v15  ;;  %26911 = vst [vmem:[#allocation30_spill] sm:$0xff] %v21314_v18  ;;  %v21316_v16 = vpop.permute.xlu0 %2095 }
 0x1e7   :  { %v2132_v26 = vadd.f32 %v16234_v24, %v21244_v17  ;;  %v1848_v25 = vpop.f32.mrb[29].mxu0  ;;  %17977 = vmatpush3.bf16.msra.mxu1 %v21266_v2  ;;  %26912 = vst [vmem:[#allocation31_spill] sm:$0xff] %v21316_v16 }
 0x1e8   :  { %v17978_v28 = vpack.c.bf16 %v2166_v21, %v2165_v22  ;;  %v2131_v30 = vadd.f32 %v21249_v20, %v1848_v25  ;;  %v234_v25 = vld [vmem:[%s26748_s6 + $0x20] sm:$0x1] }
 0x1e9   :  { %v2168_v31 = vmax.f32 %v2132_v26, 0.0 }
 0x1ea   :  { %v2167_v33 = vmax.f32 %v2131_v30, 0.0  ;;  %v16237_v34 = vpop.f32.mrb[30].mxu0  ;;  %17979 = vmatprep.subr.bf16.mxu1 %v17978_v28 }
 0x1eb   :  { %v2134_v35 = vadd.f32 %v16237_v34, %v21264_v1  ;;  %v1858_v36 = vpop.f32.mrb[31].mxu0  ;;  %17981 = vmatpush3.bf16.msra.mxu1 %v21272_v14  ;;  %v235_v34 = vld [vmem:[%s26748_s6 + $0x28] sm:$0x1] }
 0x1ec   :  { %v17982_v61 = vpack.c.bf16 %v2168_v31, %v2167_v33  ;;  %v2133_v62 = vadd.f32 %v21269_v5, %v1858_v36  ;;  %v232_v33 = vld [vmem:[%s26748_s6 + $0x10] sm:$0xff] }
 0x1ed   :  { %v2170_v2 = vmax.f32 %v2134_v35, 0.0  ;;  %v274_v35 = vld [vmem:[%s26749_s9] sm:$0xff] }
 0x1ee   :  { %v2169_v63 = vmax.f32 %v2133_v62, 0.0  ;;  %v16240_v4 = vpop.f32.mrb[32].mxu0  ;;  %17983 = vmatprep.subr.bf16.mxu1 %v17982_v61 }
 0x1ef   :  { %v2136_v7 = vadd.f32 %v16240_v4, %v21306_v40  ;;  %v1868_v8 = vpop.f32.mrb[33].mxu0  ;;  %17985 = vmatpush3.bf16.msra.mxu1 %v21280_v27  ;;  %v230_v27 = vld [vmem:[%s26748_s6] sm:$0xff] }
 0x1f0   :  { %v17986_v9 = vpack.c.bf16 %v2170_v2, %v2169_v63  ;;  %v2135_v11 = vadd.f32 %v21309_v10, %v1868_v8  ;;  %v21344_v8 = vpop.permute.xlu1 %2177 }
 0x1f1   :  { %v2172_v14 = vmax.f32 %v2136_v7, 0.0  ;;  %v21342_v7 = vpop.permute.xlu0 %2182  ;;  %26914 = vst [vmem:[#allocation33_spill] sm:$0xff] %v21344_v8 }
 0x1f2   :  { %v2171_v12 = vmax.f32 %v2135_v11, 0.0  ;;  %v16243_v15 = vpop.f32.mrb[34].mxu0  ;;  %17987 = vmatprep.subr.bf16.mxu1 %v17986_v9  ;;  %26913 = vst [vmem:[#allocation32_spill] sm:$0xff] %v21342_v7 }
 0x1f3   :  { %v2138_v21 = vadd.f32 %v16243_v15, %v21314_v18  ;;  %v1878_v22 = vpop.f32.mrb[35].mxu0  ;;  %17989 = vmatpush3.bf16.msra.mxu1 %v21284_v37  ;;  %v233_v37 = vld [vmem:[%s26748_s6 + $0x18] sm:$0x1]  ;;  %v429_v15 = vld [vmem:[%s26750_s0] sm:$0xff] }
 0x1f4   :  { %v17990_v24 = vpack.c.bf16 %v2172_v14, %v2171_v12  ;;  %v2137_v26 = vadd.f32 %v21316_v16, %v1878_v22  ;;  %v430_v12 = vld [vmem:[%s26750_s0 + $0x8] sm:$0x1] }
 0x1f5   :  { %v2174_v28 = vmax.f32 %v2138_v21, 0.0 }
 0x1f6   :  { %v2173_v30 = vmax.f32 %v2137_v26, 0.0  ;;  %2257 = vmatmul.mubr.f32.vlgmr.msra.gmra.mrb[0].mxu1 %v230_v27  ;;  %17991 = vmatprep.subr.bf16.mxu1 %v17990_v24 }
 0x1f7   :  { %17993 = vmatpush3.bf16.msra.mxu1 %v17990_v24  ;;  %2261 = vmatprep.mubr.f32.mxu1 %v234_v25 }
 0x1f8   :  { %v17994_v31 = vpack.c.bf16 %v2174_v28, %v2173_v30 }
 0x1fa   :  { %2262 = vmatmul.mubr.f32.gmra.mrb[2].mxu1 %v233_v37  ;;  %17995 = vmatprep.subr.bf16.mxu1 %v17994_v31 }
 0x1fb   :  { %17997 = vmatpush3.bf16.msra.mxu1 %v17994_v31  ;;  %16252 = vmatprep.mubr.msk.f32.mxu1 %vm2185_vm4, %v232_v33 }
 0x1fe   :  { %16253 = vmatmul.mubr.msk.f32.vlgmr.msra.gmra.mrb[4].mxu1 %vm2185_vm4, %v235_v34 }
 0x1ff   :  { %16259 = vmatprep.mubr.msk.f32.mxu1 %vm431_vm0, %v274_v35 }
 0x2c9   :  { %v14635_v36 = vpop.f32.mrb[0].mxu1 }
 0x2ca   :  { %v14636_v61 = vpop.f32.mrb[1].mxu1 }
 0x2cb   :  { %v14637_v62 = vadd.f32 %v14636_v61, %v14635_v36 }
 0x2cd   :  { %v14638_v2 = vpop.f32.mrb[2].mxu1  ;;  %v2259_v14 = vadd.f32 %v14637_v62, %v21344_v8 }
 0x2ce   :  { %v14639_v63 = vpop.f32.mrb[3].mxu1 }
 0x2cf   :  { %v14640_v4 = vadd.f32 %v14639_v63, %v14638_v2 }
 0x2d1   :  { %v2264_v9 = vadd.f32 %v14640_v4, %v21342_v7  ;;  %v16254_v11 = vpop.f32.mrb[4].mxu1 }
 0x2d2   :  { %v2333_v21 = vpop.f32.mrb[5].mxu1 }
 0x2d3   :  { %v2339_v22 = vadd.f32 %v16254_v11, %v2264_v9  ;;  %v2334_v27 = vadd.f32 %v2333_v21, %v2259_v14 }
 0x2d5   :  { %v2343_v24 = vmul.f32 %v2339_v22, %v2339_v22  ;;  %v2353_v26 = vadd.f32 %v2339_v22, %v430_v12  ;;  %v2342_v25 = vmul.f32 %v2334_v27, %v2334_v27  ;;  %v2352_v28 = vadd.f32 %v2334_v27, %v429_v15 }
 0x2d7   :  { %v2344_v30 = vsel %vm540_vm1, %v2343_v24, 0.0  ;;  %v2354_v37 = vsel %vm540_vm1, %v2353_v26, -inf }
 0x2d8   :  { %v21356_v31 = vadd.f32 %v2344_v30, %v2342_v25  ;;  %v2355_v33 = vmax.f32 %v2352_v28, %v2354_v37 }
 0x2da   :  { %26915 = vst [vmem:[#allocation34_spill] sm:$0xff] %v21356_v31  ;;  %v2356_v34 = vrot.slane %v2355_v33, 4 }
 0x2dc   :  { %v2357_v35 = vmax.f32 %v2355_v33, %v2356_v34 }
 0x2de   :  { %v2358_v36 = vrot.slane %v2357_v35, 2 }
 0x2e0   :  { %v2359_v61 = vmax.f32 %v2357_v35, %v2358_v36 }
 0x2e2   :  { %v2360_v62 = vrot.slane %v2359_v61, 1 }
 0x2e4   :  { %v2361_v2 = vmax.f32 %v2359_v61, %v2360_v62  ;;  %v426_v61 = vlaneseq }
 0x2e6   :  { %v2362_v63 = vsub.f32 %v2352_v28, %v2361_v2  ;;  %v2363_v4 = vsub.f32 %v2353_v26, %v2361_v2 }
 0x2e8   :  { %v2364_v9 = vmul.f32 1.442695, %v2362_v63  ;;  %v2366_v11 = vmul.f32 1.442695, %v2363_v4  ;;  %v21360_v63 = vshrl.u32 %v426_v61, 7 }
 0x2ea   :  { %19310 = vpow2.f32 %v2364_v9 }
 0x2eb   :  { %19312 = vpow2.f32 %v2366_v11  ;;  %v21363_v11 = vadd.s32 8, %v21360_v63 }
 0x2f4   :  { %v19311_v14 = vpop.eup %19310 }
 0x2f5   :  { %v19313_v12 = vpop.eup %19312 }
 0x2f6   :  { %v2368_v15 = vsel %vm540_vm1, %v19313_v12, 0.0 }
 0x2f7   :  { %v2369_v21 = vadd.f32 %v19311_v14, %v2368_v15 }
 0x2f9   :  { %v2370_v22 = vrot.slane %v2369_v21, 4 }
 0x2fb   :  { %v2371_v27 = vadd.f32 %v2370_v22, %v2369_v21 }
 0x2fd   :  { %v2372_v24 = vrot.slane %v2371_v27, 2 }
 0x2ff   :  { %v2373_v25 = vadd.f32 %v2372_v24, %v2371_v27 }
 0x301   :  { %v2374_v30 = vrot.slane %v2373_v25, 1 }
 0x303   :  { %v2375_v37 = vadd.f32 %v2374_v30, %v2373_v25 }
 0x305   :  { %19314 = vrcp.f32 %v2375_v37 }
 0x30f   :  { %v19315_v33 = vpop.eup %19314 }
 0x310   :  { %v2377_v34 = vmul.f32 %v19315_v33, %v19311_v14  ;;  %v2378_v28 = vmul.f32 %v19315_v33, %v19313_v12 }
 0x312   :  { %v2379_v26 = vsel %vm540_vm1, %v2378_v28, -inf }
 0x313   :  { %v2380_v35 = vmax.f32 %v2377_v34, %v2379_v26 }
 0x315   :  { %v2381_v36 = vrot.slane %v2380_v35, 4 }
 0x317   :  { %v2382_v62 = vmax.f32 %v2380_v35, %v2381_v36 }
 0x319   :  { %v2383_v2 = vrot.slane %v2382_v62, 2 }
 0x31b   :  { %v2384_v4 = vmax.f32 %v2382_v62, %v2383_v2 }
 0x31d   :  { %v2385_v9 = vrot.slane %v2384_v4, 1 }
 0x31f   :  { %v2386_v15 = vmax.f32 %v2384_v4, %v2385_v9 }
 0x321   :  { %vm2387_vm5 = vcmp.eq.f32.partialorder %v2377_v34, %v2386_v15  ;;  %vm2388_vm6 = vcmp.eq.f32.partialorder %v2378_v28, %v2386_v15 }
 0x322   :  { %v2389_v14 = vsel %vm2387_vm5, %v21360_v63, 9  ;;  %v2390_v12 = vsel %vm2388_vm6, %v21363_v11, 9 }
 0x323   :  { %v2391_v21 = vsel %vm540_vm1, %v2390_v12, 2147483647  ;;  %v277_v12 = vld [vmem:[%s26749_s9 + $0x18] sm:$0xff] }
 0x324   :  { %vm2392_vm7 = vcmp.lt.s32.totalorder %v2389_v14, %v2391_v21 }
 0x325   :  { %v2393_v22 = vsel %vm2392_vm7, %v2389_v14, %v2391_v21  ;;  %v278_v21 = vld [vmem:[%s26749_s9 + $0x20] sm:$0xff] }
 0x326   :  { %v2394_v27 = vrot.slane %v2393_v22, 4 }
 0x328   :  { %vm2395_vm8 = vcmp.lt.s32.totalorder %v2393_v22, %v2394_v27 }
 0x329   :  { %v2396_v24 = vsel %vm2395_vm8, %v2393_v22, %v2394_v27  ;;  %v279_v22 = vld [vmem:[%s26749_s9 + $0x28] sm:$0xff]  ;;  %v280_v27 = vld [vmem:[%s26749_s9 + $0x30] sm:$0xff] }
 0x32a   :  { %v2397_v25 = vrot.slane %v2396_v24, 2 }
 0x32c   :  { %vm2398_vm9 = vcmp.lt.s32.totalorder %v2396_v24, %v2397_v25 }
 0x32d   :  { %v2399_v30 = vsel %vm2398_vm9, %v2396_v24, %v2397_v25  ;;  %v281_v24 = vld [vmem:[%s26749_s9 + $0x38] sm:$0xff]  ;;  %v282_v25 = vld [vmem:[%s26749_s9 + $0x40] sm:$0xff] }
 0x32e   :  { %v2400_v37 = vrot.slane %v2399_v30, 1 }
 0x330   :  { %vm2401_vm10 = vcmp.lt.s32.totalorder %v2399_v30, %v2400_v37 }
 0x331   :  { %v2402_v33 = vsel %vm2401_vm10, %v2399_v30, %v2400_v37  ;;  %v283_v30 = vld [vmem:[%s26749_s9 + $0x48] sm:$0xff]  ;;  %v284_v37 = vld [vmem:[%s26749_s9 + $0x50] sm:$0xff] }
 0x332   :  { %vm2403_vm11 = vcmp.eq.s32.totalorder %v21360_v63, %v2402_v33  ;;  %vm2404_vm12 = vcmp.eq.s32.totalorder %v21363_v11, %v2402_v33  ;;  %v285_v33 = vld [vmem:[%s26749_s9 + $0x58] sm:$0xff] }
 0x333   :  { %v13363_v26 = vsel %vm2403_vm11, 1.0, %v26756_v0  ;;  %v13364_v35 = vsel %vm2404_vm12, 1.0, %v26756_v0 }
 0x334   :  { %v2409_v36 = vsub.f32 %v13363_v26, %v2377_v34  ;;  %v2410_v61 = vsub.f32 %v13364_v35, %v2378_v28  ;;  %v286_v26 = vld [vmem:[%s26749_s9 + $0x60] sm:$0xff]  ;;  %v287_v35 = vld [vmem:[%s26749_s9 + $0x68] sm:$0xff] }
 0x336   :  { %v21372_v62 = vadd.f32 %v2409_v36, %v2377_v34  ;;  %v21374_v2 = vadd.f32 %v2410_v61, %v2378_v28  ;;  %v275_v34 = vld [vmem:[%s26749_s9 + $0x8] sm:$0xff]  ;;  %v276_v28 = vld [vmem:[%s26749_s9 + $0x10] sm:$0xff]  ;;  %v289_v61 = vld [vmem:[%s26749_s9 + $0x78] sm:$0xff] }
 0x337   :  { %v288_v36 = vld [vmem:[%s26749_s9 + $0x70] sm:$0xff] }
 0x338   :  { %v21378_v4 = vpack.c.bf16 %v21374_v2, %v21372_v62  ;;  %v21384_v9 = vsub.f32 1.0, %v21372_v62  ;;  %v21387_v15 = vsub.f32 1.0, %v21374_v2 }
 0x33a   :  { %18000 = vmatprep.subr.msk.bf16.mxu1 %vm20417_vm3, %v21378_v4  ;;  %v21402_v14 = vpack.c.bf16 %v21387_v15, %v21384_v9 }
 0x33b   :  { %18003 = vmatpush3.bf16.msk.msra.mxu1 %vm20417_vm3, %v21378_v4 }
 0x33c   :  { %16313 = vmatprep.subr.mxu1 %v26756_v0 }
 0x33e   :  { %16260 = vmatmul.mubr.msk.f32.vlgmr.msra.gmra.mrb[6].mxu1 %vm431_vm0, %v275_v34  ;;  %v290_v34 = vld [vmem:[%s26749_s9 + $0x80] sm:$0xff] }
 0x33f   :  { %16314 = vmatpush3.msra.mxu1 %v26756_v0  ;;  %16262 = vmatprep.mubr.msk.f32.mxu1 %vm431_vm0, %v276_v28  ;;  %v291_v28 = vld [vmem:[%s26749_s9 + $0x88] sm:$0xff] }
 0x340   :  { %18006 = vmatprep.subr.msk.bf16.mxu1 %vm20417_vm3, %v21402_v14 }
 0x342   :  { %16263 = vmatmul.mubr.msk.f32.gmra.mrb[8].mxu1 %vm431_vm0, %v277_v12  ;;  %v292_v12 = vld [vmem:[%s26749_s9 + $0x90] sm:$0xff] }
 0x343   :  { %16265 = vmatprep.mubr.msk.f32.mxu1 %vm431_vm0, %v278_v21  ;;  %v293_v21 = vld [vmem:[%s26749_s9 + $0x98] sm:$0xff] }
 0x346   :  { %16266 = vmatmul.mubr.msk.f32.gmra.mrb[10].mxu1 %vm431_vm0, %v279_v22  ;;  %v294_v22 = vld [vmem:[%s26749_s9 + $0xa0] sm:$0xff] }
 0x347   :  { %16268 = vmatprep.mubr.msk.f32.mxu1 %vm431_vm0, %v280_v27  ;;  %v295_v27 = vld [vmem:[%s26749_s9 + $0xa8] sm:$0xff] }
 0x34a   :  { %16269 = vmatmul.mubr.msk.f32.gmra.mrb[12].mxu1 %vm431_vm0, %v281_v24  ;;  %v296_v24 = vld [vmem:[%s26749_s9 + $0xb0] sm:$0xff] }
 0x34b   :  { %16271 = vmatprep.mubr.msk.f32.mxu1 %vm431_vm0, %v282_v25  ;;  %v297_v25 = vld [vmem:[%s26749_s9 + $0xb8] sm:$0xff] }
 0x34e   :  { %16272 = vmatmul.mubr.msk.f32.gmra.mrb[14].mxu1 %vm431_vm0, %v283_v30  ;;  %v298_v30 = vld [vmem:[%s26749_s9 + $0xc0] sm:$0xff] }
 0x34f   :  { %16274 = vmatprep.mubr.msk.f32.mxu1 %vm431_vm0, %v284_v37  ;;  %v299_v37 = vld [vmem:[%s26749_s9 + $0xc8] sm:$0xff] }
 0x352   :  { %16275 = vmatmul.mubr.msk.f32.gmra.mrb[16].mxu1 %vm431_vm0, %v285_v33  ;;  %v300_v33 = vld [vmem:[%s26749_s9 + $0xd0] sm:$0xff] }
 0x353   :  { %16277 = vmatprep.mubr.msk.f32.mxu1 %vm431_vm0, %v286_v26  ;;  %v301_v26 = vld [vmem:[%s26749_s9 + $0xd8] sm:$0xff] }
 0x356   :  { %16278 = vmatmul.mubr.msk.f32.gmra.mrb[18].mxu1 %vm431_vm0, %v287_v35  ;;  %v302_v35 = vld [vmem:[%s26749_s9 + $0xe0] sm:$0xff] }
 0x357   :  { %16280 = vmatprep.mubr.msk.f32.mxu1 %vm431_vm0, %v288_v36  ;;  %v303_v36 = vld [vmem:[%s26749_s9 + $0xe8] sm:$0xff] }
 0x35a   :  { %16281 = vmatmul.mubr.msk.f32.gmra.mrb[20].mxu1 %vm431_vm0, %v289_v61  ;;  %v304_v61 = vld [vmem:[%s26749_s9 + $0xf0] sm:$0xff] }
 0x35b   :  { %16283 = vmatprep.mubr.msk.f32.mxu1 %vm431_vm0, %v290_v34  ;;  %v305_v34 = vld [vmem:[%s26749_s9 + $0xf8] sm:$0xff] }
 0x35e   :  { %16284 = vmatmul.mubr.msk.f32.gmra.mrb[22].mxu1 %vm431_vm0, %v291_v28  ;;  %v306_v28 = vld [vmem:[%s26749_s9 + $0x100] sm:$0xff] }
 0x35f   :  { %16286 = vmatprep.mubr.msk.f32.mxu1 %vm431_vm0, %v292_v12  ;;  %v307_v12 = vld [vmem:[%s26749_s9 + $0x108] sm:$0xff] }
 0x362   :  { %16287 = vmatmul.mubr.msk.f32.gmra.mrb[24].mxu1 %vm431_vm0, %v293_v21  ;;  %v308_v21 = vld [vmem:[%s26749_s9 + $0x110] sm:$0xff] }
 0x363   :  { %16289 = vmatprep.mubr.msk.f32.mxu1 %vm431_vm0, %v294_v22  ;;  %v309_v22 = vld [vmem:[%s26749_s9 + $0x118] sm:$0xff] }
 0x366   :  { %16290 = vmatmul.mubr.msk.f32.gmra.mrb[26].mxu1 %vm431_vm0, %v295_v27  ;;  %v238_v27 = vld [vmem:[%s26751_s8] sm:$0xff] }
 0x367   :  { %16292 = vmatprep.mubr.msk.f32.mxu1 %vm431_vm0, %v296_v24  ;;  %v239_v24 = vld [vmem:[%s26751_s8 + $0x8] sm:$0xff] }
 0x36a   :  { %16293 = vmatmul.mubr.msk.f32.gmra.mrb[28].mxu1 %vm431_vm0, %v297_v25  ;;  %v240_v25 = vld [vmem:[%s26751_s8 + $0x10] sm:$0xff] }
 0x36b   :  { %16295 = vmatprep.mubr.msk.f32.mxu1 %vm431_vm0, %v298_v30  ;;  %v241_v30 = vld [vmem:[%s26751_s8 + $0x18] sm:$0xff] }
 0x36e   :  { %16296 = vmatmul.mubr.msk.f32.gmra.mrb[30].mxu1 %vm431_vm0, %v299_v37  ;;  %v242_v37 = vld [vmem:[%s26751_s8 + $0x20] sm:$0xff] }
 0x36f   :  { %16298 = vmatprep.mubr.msk.f32.mxu1 %vm431_vm0, %v300_v33  ;;  %v244_v33 = vld [vmem:[%s26751_s8 + $0x30] sm:$0xff] }
 0x372   :  { %16299 = vmatmul.mubr.msk.f32.gmra.mrb[32].mxu1 %vm431_vm0, %v301_v26  ;;  %v245_v26 = vld [vmem:[%s26751_s8 + $0x38] sm:$0xff] }
 0x373   :  { %16301 = vmatprep.mubr.msk.f32.mxu1 %vm431_vm0, %v302_v35  ;;  %v246_v35 = vld [vmem:[%s26751_s8 + $0x40] sm:$0xff] }
 0x376   :  { %16302 = vmatmul.mubr.msk.f32.gmra.mrb[34].mxu1 %vm431_vm0, %v303_v36  ;;  %v247_v36 = vld [vmem:[%s26751_s8 + $0x48] sm:$0xff] }
 0x377   :  { %16304 = vmatprep.mubr.msk.f32.mxu1 %vm431_vm0, %v304_v61  ;;  %v248_v61 = vld [vmem:[%s26751_s8 + $0x50] sm:$0xff] }
 0x37a   :  { %16305 = vmatmul.mubr.msk.f32.gmra.mrb[36].mxu1 %vm431_vm0, %v305_v34  ;;  %v249_v34 = vld [vmem:[%s26751_s8 + $0x58] sm:$0xff] }
 0x37b   :  { %16307 = vmatprep.mubr.msk.f32.mxu1 %vm431_vm0, %v306_v28  ;;  %v250_v28 = vld [vmem:[%s26751_s8 + $0x60] sm:$0xff] }
 0x37e   :  { %16308 = vmatmul.mubr.msk.f32.gmra.mrb[38].mxu1 %vm431_vm0, %v307_v12  ;;  %v251_v12 = vld [vmem:[%s26751_s8 + $0x68] sm:$0xff] }
 0x37f   :  { %16310 = vmatprep.mubr.msk.f32.mxu1 %vm431_vm0, %v308_v21  ;;  %v252_v21 = vld [vmem:[%s26751_s8 + $0x70] sm:$0xff] }
 0x382   :  { %16311 = vmatmul.mubr.msk.f32.gmra.mrb[40].mxu1 %vm431_vm0, %v309_v22  ;;  %v253_v22 = vld [vmem:[%s26751_s8 + $0x78] sm:$0xff] }
 0x383   :  { %16315 = vmatprep.mubr.msk.f32.mxu1 %vm431_vm0, %v238_v27  ;;  %v254_v27 = vld [vmem:[%s26751_s8 + $0x80] sm:$0xff] }
 0x386   :  { %16316 = vmatmul.mubr.msk.f32.vlgmr.msra.gmra.mrb[6].mxu1 %vm431_vm0, %v239_v24  ;;  %v255_v24 = vld [vmem:[%s26751_s8 + $0x88] sm:$0xff] }
 0x387   :  { %18009 = vmatpush3.bf16.msk.msra.mxu1 %vm20417_vm3, %v21402_v14  ;;  %16318 = vmatprep.mubr.msk.f32.mxu1 %vm431_vm0, %v240_v25  ;;  %v243_v14 = vld [vmem:[%s26751_s8 + $0x28] sm:$0xff]  ;;  %v256_v25 = vld [vmem:[%s26751_s8 + $0x90] sm:$0xff] }
 0x388   :  { %18012 = vmatprep.subr.msk.bf16.mxu1 %vm20417_vm3, %v21378_v4 }
 0x38a   :  { %16319 = vmatmul.mubr.msk.f32.gmra.mrb[8].mxu1 %vm431_vm0, %v241_v30  ;;  %v257_v30 = vld [vmem:[%s26751_s8 + $0x98] sm:$0xff] }
 0x38b   :  { %16321 = vmatprep.mubr.msk.f32.mxu1 %vm431_vm0, %v242_v37  ;;  %v258_v37 = vld [vmem:[%s26751_s8 + $0xa0] sm:$0xff] }
 0x38e   :  { %16322 = vmatmul.mubr.msk.f32.gmra.mrb[10].mxu1 %vm431_vm0, %v243_v14  ;;  %v259_v14 = vld [vmem:[%s26751_s8 + $0xa8] sm:$0xff] }
 0x38f   :  { %16324 = vmatprep.mubr.msk.f32.mxu1 %vm431_vm0, %v244_v33  ;;  %v260_v33 = vld [vmem:[%s26751_s8 + $0xb0] sm:$0xff] }
 0x392   :  { %16325 = vmatmul.mubr.msk.f32.gmra.mrb[12].mxu1 %vm431_vm0, %v245_v26  ;;  %v261_v26 = vld [vmem:[%s26751_s8 + $0xb8] sm:$0xff] }
 0x393   :  { %16327 = vmatprep.mubr.msk.f32.mxu1 %vm431_vm0, %v246_v35  ;;  %v262_v35 = vld [vmem:[%s26751_s8 + $0xc0] sm:$0xff] }
 0x396   :  { %16328 = vmatmul.mubr.msk.f32.gmra.mrb[14].mxu1 %vm431_vm0, %v247_v36  ;;  %v263_v36 = vld [vmem:[%s26751_s8 + $0xc8] sm:$0xff] }
 0x397   :  { %16330 = vmatprep.mubr.msk.f32.mxu1 %vm431_vm0, %v248_v61  ;;  %v264_v61 = vld [vmem:[%s26751_s8 + $0xd0] sm:$0xff] }
 0x39a   :  { %16331 = vmatmul.mubr.msk.f32.gmra.mrb[16].mxu1 %vm431_vm0, %v249_v34  ;;  %v265_v34 = vld [vmem:[%s26751_s8 + $0xd8] sm:$0xff] }
 0x39b   :  { %16333 = vmatprep.mubr.msk.f32.mxu1 %vm431_vm0, %v250_v28  ;;  %v266_v28 = vld [vmem:[%s26751_s8 + $0xe0] sm:$0xff] }
 0x39e   :  { %16334 = vmatmul.mubr.msk.f32.gmra.mrb[18].mxu1 %vm431_vm0, %v251_v12  ;;  %v267_v12 = vld [vmem:[%s26751_s8 + $0xe8] sm:$0xff] }
 0x39f   :  { %16336 = vmatprep.mubr.msk.f32.mxu1 %vm431_vm0, %v252_v21  ;;  %v268_v21 = vld [vmem:[%s26751_s8 + $0xf0] sm:$0xff] }
 0x3a2   :  { %16337 = vmatmul.mubr.msk.f32.gmra.mrb[20].mxu1 %vm431_vm0, %v253_v22  ;;  %v269_v22 = vld [vmem:[%s26751_s8 + $0xf8] sm:$0xff] }
 0x3a3   :  { %16339 = vmatprep.mubr.msk.f32.mxu1 %vm431_vm0, %v254_v27  ;;  %v270_v27 = vld [vmem:[%s26751_s8 + $0x100] sm:$0xff] }
 0x3a6   :  { %16340 = vmatmul.mubr.msk.f32.gmra.mrb[22].mxu1 %vm431_vm0, %v255_v24  ;;  %v271_v24 = vld [vmem:[%s26751_s8 + $0x108] sm:$0xff] }
 0x3a7   :  { %16342 = vmatprep.mubr.msk.f32.mxu1 %vm431_vm0, %v256_v25  ;;  %v272_v25 = vld [vmem:[%s26751_s8 + $0x110] sm:$0xff] }
 0x3aa   :  { %16343 = vmatmul.mubr.msk.f32.gmra.mrb[24].mxu1 %vm431_vm0, %v257_v30  ;;  %v273_v30 = vld [vmem:[%s26751_s8 + $0x118] sm:$0xff] }
 0x3ab   :  { %16345 = vmatprep.mubr.msk.f32.mxu1 %vm431_vm0, %v258_v37  ;;  %v310_v37 = vld [vmem:[%s26752_s10] sm:$0xff] }
 0x3ae   :  { %16346 = vmatmul.mubr.msk.f32.gmra.mrb[26].mxu1 %vm431_vm0, %v259_v14  ;;  %v311_v14 = vld [vmem:[%s26752_s10 + $0x8] sm:$0xff] }
 0x3af   :  { %16348 = vmatprep.mubr.msk.f32.mxu1 %vm431_vm0, %v260_v33  ;;  %v312_v33 = vld [vmem:[%s26752_s10 + $0x10] sm:$0xff] }
 0x3b2   :  { %16349 = vmatmul.mubr.msk.f32.gmra.mrb[28].mxu1 %vm431_vm0, %v261_v26  ;;  %v313_v26 = vld [vmem:[%s26752_s10 + $0x18] sm:$0xff] }
 0x3b3   :  { %16351 = vmatprep.mubr.msk.f32.mxu1 %vm431_vm0, %v262_v35  ;;  %v314_v35 = vld [vmem:[%s26752_s10 + $0x20] sm:$0xff] }
 0x3b6   :  { %16352 = vmatmul.mubr.msk.f32.gmra.mrb[30].mxu1 %vm431_vm0, %v263_v36  ;;  %v315_v36 = vld [vmem:[%s26752_s10 + $0x28] sm:$0xff] }
 0x3b7   :  { %16354 = vmatprep.mubr.msk.f32.mxu1 %vm431_vm0, %v264_v61  ;;  %v316_v61 = vld [vmem:[%s26752_s10 + $0x30] sm:$0xff] }
 0x3ba   :  { %16355 = vmatmul.mubr.msk.f32.gmra.mrb[32].mxu1 %vm431_vm0, %v265_v34  ;;  %v317_v34 = vld [vmem:[%s26752_s10 + $0x38] sm:$0xff] }
 0x3bb   :  { %16357 = vmatprep.mubr.msk.f32.mxu1 %vm431_vm0, %v266_v28  ;;  %v318_v28 = vld [vmem:[%s26752_s10 + $0x40] sm:$0xff] }
 0x3be   :  { %16358 = vmatmul.mubr.msk.f32.gmra.mrb[34].mxu1 %vm431_vm0, %v267_v12  ;;  %v319_v12 = vld [vmem:[%s26752_s10 + $0x48] sm:$0xff] }
 0x3bf   :  { %16360 = vmatprep.mubr.msk.f32.mxu1 %vm431_vm0, %v268_v21  ;;  %v320_v21 = vld [vmem:[%s26752_s10 + $0x50] sm:$0xff] }
 0x3c2   :  { %16361 = vmatmul.mubr.msk.f32.gmra.mrb[36].mxu1 %vm431_vm0, %v269_v22  ;;  %v321_v22 = vld [vmem:[%s26752_s10 + $0x58] sm:$0xff] }
 0x3c3   :  { %16363 = vmatprep.mubr.msk.f32.mxu1 %vm431_vm0, %v270_v27  ;;  %v322_v27 = vld [vmem:[%s26752_s10 + $0x60] sm:$0xff] }
 0x3c6   :  { %16364 = vmatmul.mubr.msk.f32.gmra.mrb[38].mxu1 %vm431_vm0, %v271_v24  ;;  %v323_v24 = vld [vmem:[%s26752_s10 + $0x68] sm:$0xff] }
 0x3c7   :  { %16366 = vmatprep.mubr.msk.f32.mxu1 %vm431_vm0, %v272_v25  ;;  %v324_v25 = vld [vmem:[%s26752_s10 + $0x70] sm:$0xff] }
 0x3ca   :  { %16367 = vmatmul.mubr.msk.f32.gmra.mrb[40].mxu1 %vm431_vm0, %v273_v30  ;;  %v325_v30 = vld [vmem:[%s26752_s10 + $0x78] sm:$0xff] }
 0x3cb   :  { %16373 = vmatprep.mubr.msk.f32.mxu1 %vm431_vm0, %v310_v37  ;;  %v326_v37 = vld [vmem:[%s26752_s10 + $0x80] sm:$0xff] }
 0x3ce   :  { %16374 = vmatmul.mubr.msk.f32.vlgmr.msra.gmra.mrb[6].mxu1 %vm431_vm0, %v311_v14  ;;  %v327_v14 = vld [vmem:[%s26752_s10 + $0x88] sm:$0xff] }
 0x3cf   :  { %18015 = vmatpush3.bf16.msk.msra.mxu1 %vm20417_vm3, %v21378_v4  ;;  %16376 = vmatprep.mubr.msk.f32.mxu1 %vm431_vm0, %v312_v33  ;;  %v328_v33 = vld [vmem:[%s26752_s10 + $0x90] sm:$0xff] }
 0x3d2   :  { %16377 = vmatmul.mubr.msk.f32.gmra.mrb[8].mxu1 %vm431_vm0, %v313_v26  ;;  %v329_v26 = vld [vmem:[%s26752_s10 + $0x98] sm:$0xff] }
 0x3d3   :  { %16379 = vmatprep.mubr.msk.f32.mxu1 %vm431_vm0, %v314_v35  ;;  %v330_v35 = vld [vmem:[%s26752_s10 + $0xa0] sm:$0xff] }
 0x3d6   :  { %16380 = vmatmul.mubr.msk.f32.gmra.mrb[10].mxu1 %vm431_vm0, %v315_v36  ;;  %v331_v36 = vld [vmem:[%s26752_s10 + $0xa8] sm:$0xff] }
 0x3d7   :  { %16382 = vmatprep.mubr.msk.f32.mxu1 %vm431_vm0, %v316_v61  ;;  %v332_v61 = vld [vmem:[%s26752_s10 + $0xb0] sm:$0xff] }
 0x3da   :  { %16383 = vmatmul.mubr.msk.f32.gmra.mrb[12].mxu1 %vm431_vm0, %v317_v34  ;;  %v333_v34 = vld [vmem:[%s26752_s10 + $0xb8] sm:$0xff] }
 0x3db   :  { %16385 = vmatprep.mubr.msk.f32.mxu1 %vm431_vm0, %v318_v28  ;;  %v334_v28 = vld [vmem:[%s26752_s10 + $0xc0] sm:$0xff] }
 0x3de   :  { %16386 = vmatmul.mubr.msk.f32.gmra.mrb[14].mxu1 %vm431_vm0, %v319_v12  ;;  %v335_v12 = vld [vmem:[%s26752_s10 + $0xc8] sm:$0xff] }
 0x3df   :  { %16388 = vmatprep.mubr.msk.f32.mxu1 %vm431_vm0, %v320_v21  ;;  %v336_v21 = vld [vmem:[%s26752_s10 + $0xd0] sm:$0xff] }
 0x3e2   :  { %16389 = vmatmul.mubr.msk.f32.gmra.mrb[16].mxu1 %vm431_vm0, %v321_v22  ;;  %v337_v22 = vld [vmem:[%s26752_s10 + $0xd8] sm:$0xff] }
 0x3e3   :  { %16391 = vmatprep.mubr.msk.f32.mxu1 %vm431_vm0, %v322_v27  ;;  %v338_v27 = vld [vmem:[%s26752_s10 + $0xe0] sm:$0xff] }
 0x3e6   :  { %16392 = vmatmul.mubr.msk.f32.gmra.mrb[18].mxu1 %vm431_vm0, %v323_v24  ;;  %v339_v24 = vld [vmem:[%s26752_s10 + $0xe8] sm:$0xff] }
 0x3e7   :  { %16394 = vmatprep.mubr.msk.f32.mxu1 %vm431_vm0, %v324_v25  ;;  %v340_v25 = vld [vmem:[%s26752_s10 + $0xf0] sm:$0xff] }
 0x3ea   :  { %16395 = vmatmul.mubr.msk.f32.gmra.mrb[20].mxu1 %vm431_vm0, %v325_v30  ;;  %v341_v30 = vld [vmem:[%s26752_s10 + $0xf8] sm:$0xff] }
 0x3eb   :  { %16397 = vmatprep.mubr.msk.f32.mxu1 %vm431_vm0, %v326_v37  ;;  %v342_v37 = vld [vmem:[%s26752_s10 + $0x100] sm:$0xff] }
 0x3ee   :  { %16398 = vmatmul.mubr.msk.f32.gmra.mrb[22].mxu1 %vm431_vm0, %v327_v14  ;;  %v343_v14 = vld [vmem:[%s26752_s10 + $0x108] sm:$0xff] }
 0x3ef   :  { %16400 = vmatprep.mubr.msk.f32.mxu1 %vm431_vm0, %v328_v33  ;;  %v344_v33 = vld [vmem:[%s26752_s10 + $0x110] sm:$0xff] }
 0x3f2   :  { %16401 = vmatmul.mubr.msk.f32.gmra.mrb[24].mxu1 %vm431_vm0, %v329_v26  ;;  %v345_v26 = vld [vmem:[%s26752_s10 + $0x118] sm:$0xff] }
 0x3f3   :  { %16403 = vmatprep.mubr.msk.f32.mxu1 %vm431_vm0, %v330_v35  ;;  %v346_v35 = vld [vmem:[%s26753_s11] sm:$0xff] }
 0x3f6   :  { %16404 = vmatmul.mubr.msk.f32.gmra.mrb[26].mxu1 %vm431_vm0, %v331_v36  ;;  %v347_v36 = vld [vmem:[%s26753_s11 + $0x8] sm:$0xff] }
 0x3f7   :  { %16406 = vmatprep.mubr.msk.f32.mxu1 %vm431_vm0, %v332_v61  ;;  %v348_v61 = vld [vmem:[%s26753_s11 + $0x10] sm:$0xff] }
 0x3fa   :  { %16407 = vmatmul.mubr.msk.f32.gmra.mrb[28].mxu1 %vm431_vm0, %v333_v34  ;;  %v349_v34 = vld [vmem:[%s26753_s11 + $0x18] sm:$0xff] }
 0x3fb   :  { %16409 = vmatprep.mubr.msk.f32.mxu1 %vm431_vm0, %v334_v28  ;;  %v350_v28 = vld [vmem:[%s26753_s11 + $0x20] sm:$0xff] }
 0x3fe   :  { %16410 = vmatmul.mubr.msk.f32.gmra.mrb[30].mxu1 %vm431_vm0, %v335_v12  ;;  %v351_v12 = vld [vmem:[%s26753_s11 + $0x28] sm:$0xff] }
 0x3ff   :  { %16412 = vmatprep.mubr.msk.f32.mxu1 %vm431_vm0, %v336_v21  ;;  %v352_v21 = vld [vmem:[%s26753_s11 + $0x30] sm:$0xff] }
 0x402   :  { %16413 = vmatmul.mubr.msk.f32.gmra.mrb[32].mxu1 %vm431_vm0, %v337_v22  ;;  %v353_v22 = vld [vmem:[%s26753_s11 + $0x38] sm:$0xff] }
 0x403   :  { %16415 = vmatprep.mubr.msk.f32.mxu1 %vm431_vm0, %v338_v27  ;;  %v354_v27 = vld [vmem:[%s26753_s11 + $0x40] sm:$0xff] }
 0x406   :  { %16416 = vmatmul.mubr.msk.f32.gmra.mrb[34].mxu1 %vm431_vm0, %v339_v24  ;;  %v355_v24 = vld [vmem:[%s26753_s11 + $0x48] sm:$0xff] }
 0x407   :  { %16418 = vmatprep.mubr.msk.f32.mxu1 %vm431_vm0, %v340_v25  ;;  %v356_v25 = vld [vmem:[%s26753_s11 + $0x50] sm:$0xff] }
 0x40a   :  { %16419 = vmatmul.mubr.msk.f32.gmra.mrb[36].mxu1 %vm431_vm0, %v341_v30  ;;  %v357_v30 = vld [vmem:[%s26753_s11 + $0x58] sm:$0xff] }
 0x40b   :  { %16421 = vmatprep.mubr.msk.f32.mxu1 %vm431_vm0, %v342_v37  ;;  %v358_v37 = vld [vmem:[%s26753_s11 + $0x60] sm:$0xff] }
 0x40e   :  { %16422 = vmatmul.mubr.msk.f32.gmra.mrb[38].mxu1 %vm431_vm0, %v343_v14  ;;  %v359_v14 = vld [vmem:[%s26753_s11 + $0x68] sm:$0xff] }
 0x40f   :  { %16424 = vmatprep.mubr.msk.f32.mxu1 %vm431_vm0, %v344_v33  ;;  %v360_v33 = vld [vmem:[%s26753_s11 + $0x70] sm:$0xff] }
 0x412   :  { %16425 = vmatmul.mubr.msk.f32.gmra.mrb[40].mxu1 %vm431_vm0, %v345_v26  ;;  %v361_v26 = vld [vmem:[%s26753_s11 + $0x78] sm:$0xff] }
 0x413   :  { %16431 = vmatprep.mubr.msk.f32.mxu1 %vm431_vm0, %v346_v35  ;;  %v362_v35 = vld [vmem:[%s26753_s11 + $0x80] sm:$0xff] }
 0x416   :  { %16432 = vmatmul.mubr.msk.f32.vlgmr.msra.gmra.mrb[6].mxu1 %vm431_vm0, %v347_v36  ;;  %v363_v36 = vld [vmem:[%s26753_s11 + $0x88] sm:$0xff] }
 0x417   :  { %16434 = vmatprep.mubr.msk.f32.mxu1 %vm431_vm0, %v348_v61  ;;  %v364_v61 = vld [vmem:[%s26753_s11 + $0x90] sm:$0xff] }
 0x41a   :  { %16435 = vmatmul.mubr.msk.f32.gmra.mrb[8].mxu1 %vm431_vm0, %v349_v34  ;;  %v365_v34 = vld [vmem:[%s26753_s11 + $0x98] sm:$0xff] }
 0x41b   :  { %16437 = vmatprep.mubr.msk.f32.mxu1 %vm431_vm0, %v350_v28  ;;  %v366_v28 = vld [vmem:[%s26753_s11 + $0xa0] sm:$0xff] }
 0x41e   :  { %16438 = vmatmul.mubr.msk.f32.gmra.mrb[10].mxu1 %vm431_vm0, %v351_v12  ;;  %v367_v12 = vld [vmem:[%s26753_s11 + $0xa8] sm:$0xff] }
 0x41f   :  { %16440 = vmatprep.mubr.msk.f32.mxu1 %vm431_vm0, %v352_v21  ;;  %v368_v21 = vld [vmem:[%s26753_s11 + $0xb0] sm:$0xff] }
 0x422   :  { %16441 = vmatmul.mubr.msk.f32.gmra.mrb[12].mxu1 %vm431_vm0, %v353_v22  ;;  %v369_v22 = vld [vmem:[%s26753_s11 + $0xb8] sm:$0xff] }
 0x423   :  { %16443 = vmatprep.mubr.msk.f32.mxu1 %vm431_vm0, %v354_v27  ;;  %v370_v27 = vld [vmem:[%s26753_s11 + $0xc0] sm:$0xff] }
 0x426   :  { %16444 = vmatmul.mubr.msk.f32.gmra.mrb[14].mxu1 %vm431_vm0, %v355_v24  ;;  %v371_v24 = vld [vmem:[%s26753_s11 + $0xc8] sm:$0xff] }
 0x427   :  { %16446 = vmatprep.mubr.msk.f32.mxu1 %vm431_vm0, %v356_v25  ;;  %v372_v25 = vld [vmem:[%s26753_s11 + $0xd0] sm:$0xff] }
 0x42a   :  { %16447 = vmatmul.mubr.msk.f32.gmra.mrb[16].mxu1 %vm431_vm0, %v357_v30  ;;  %v373_v30 = vld [vmem:[%s26753_s11 + $0xd8] sm:$0xff] }
 0x42b   :  { %16449 = vmatprep.mubr.msk.f32.mxu1 %vm431_vm0, %v358_v37  ;;  %v374_v37 = vld [vmem:[%s26753_s11 + $0xe0] sm:$0xff] }
 0x42e   :  { %16450 = vmatmul.mubr.msk.f32.gmra.mrb[18].mxu1 %vm431_vm0, %v359_v14  ;;  %v375_v14 = vld [vmem:[%s26753_s11 + $0xe8] sm:$0xff] }
 0x42f   :  { %16452 = vmatprep.mubr.msk.f32.mxu1 %vm431_vm0, %v360_v33  ;;  %v376_v33 = vld [vmem:[%s26753_s11 + $0xf0] sm:$0xff] }
 0x432   :  { %16453 = vmatmul.mubr.msk.f32.gmra.mrb[20].mxu1 %vm431_vm0, %v361_v26  ;;  %v377_v26 = vld [vmem:[%s26753_s11 + $0xf8] sm:$0xff] }
 0x433   :  { %16455 = vmatprep.mubr.msk.f32.mxu1 %vm431_vm0, %v362_v35  ;;  %v378_v35 = vld [vmem:[%s26753_s11 + $0x100] sm:$0xff] }
 0x436   :  { %16456 = vmatmul.mubr.msk.f32.gmra.mrb[22].mxu1 %vm431_vm0, %v363_v36  ;;  %v379_v36 = vld [vmem:[%s26753_s11 + $0x108] sm:$0xff] }
 0x437   :  { %16458 = vmatprep.mubr.msk.f32.mxu1 %vm431_vm0, %v364_v61  ;;  %v380_v61 = vld [vmem:[%s26753_s11 + $0x110] sm:$0xff] }
 0x43a   :  { %16459 = vmatmul.mubr.msk.f32.gmra.mrb[24].mxu1 %vm431_vm0, %v365_v34  ;;  %v381_v34 = vld [vmem:[%s26753_s11 + $0x118] sm:$0xff] }
 0x43b   :  { %16461 = vmatprep.mubr.msk.f32.mxu1 %vm431_vm0, %v366_v28  ;;  %v19382_v28 = vld [vmem:[%s26748_s6 + $0x8] sm:$0xff] }
 0x43e   :  { %16462 = vmatmul.mubr.msk.f32.gmra.mrb[26].mxu1 %vm431_vm0, %v367_v12  ;;  %v21985_v12 = vpop.permute.xlu1 %4048 }
 0x43f   :  { %16464 = vmatprep.mubr.msk.f32.mxu1 %vm431_vm0, %v368_v21  ;;  %26916 = vst [vmem:[#allocation35_spill] sm:$0xff] %v21985_v12  ;;  %v21987_v21 = vpop.permute.xlu0 %4043 }
 0x442   :  { %16465 = vmatmul.mubr.msk.f32.gmra.mrb[28].mxu1 %vm431_vm0, %v369_v22  ;;  %v21992_v22 = vld [vmem:[%s26754_s13 + $0x8] sm:$0xff] }
 0x443   :  { %16467 = vmatprep.mubr.msk.f32.mxu1 %vm431_vm0, %v370_v27  ;;  %v21994_v27 = vpop.permute.xlu1 %3968  ;;  %4293 = vmatprep.mubr.f32.mxu0 %v21992_v22 }
 0x444   :  { %26917 = vst [vmem:[#allocation36_spill] sm:$0xff] %v21994_v27 }
 0x446   :  { %16468 = vmatmul.mubr.msk.f32.gmra.mrb[30].mxu1 %vm431_vm0, %v371_v24  ;;  %v21997_v24 = vpop.permute.xlu0 %3963 }
 0x447   :  { %16470 = vmatprep.mubr.msk.f32.mxu1 %vm431_vm0, %v372_v25  ;;  %26918 = vst [vmem:[#allocation37_spill] sm:$0xff] %v21997_v24  ;;  %v21999_v25 = vpop.permute.xlu1 %4058 }
 0x44a   :  { %16471 = vmatmul.mubr.msk.f32.gmra.mrb[32].mxu1 %vm431_vm0, %v373_v30  ;;  %v22001_v30 = vpop.permute.xlu0 %4053 }
 0x44b   :  { %16473 = vmatprep.mubr.msk.f32.mxu1 %vm431_vm0, %v374_v37  ;;  %v22003_v37 = vpop.permute.xlu1 %3978 }
 0x44c   :  { %26919 = vst [vmem:[#allocation38_spill] sm:$0xff] %v22003_v37 }
 0x44e   :  { %16474 = vmatmul.mubr.msk.f32.gmra.mrb[34].mxu1 %vm431_vm0, %v375_v14  ;;  %v22005_v14 = vpop.permute.xlu0 %3973 }
 0x44f   :  { %16476 = vmatprep.mubr.msk.f32.mxu1 %vm431_vm0, %v376_v33  ;;  %26920 = vst [vmem:[#allocation39_spill] sm:$0xff] %v22005_v14  ;;  %v22007_v33 = vpop.permute.xlu1 %4068 }
 0x452   :  { %16477 = vmatmul.mubr.msk.f32.gmra.mrb[36].mxu1 %vm431_vm0, %v377_v26  ;;  %v22009_v26 = vpop.permute.xlu0 %4063 }
 0x453   :  { %16479 = vmatprep.mubr.msk.f32.mxu1 %vm431_vm0, %v378_v35  ;;  %v22011_v35 = vpop.permute.xlu1 %3988 }
 0x454   :  { %26921 = vst [vmem:[#allocation40_spill] sm:$0xff] %v22011_v35 }
 0x456   :  { %16480 = vmatmul.mubr.msk.f32.gmra.mrb[38].mxu1 %vm431_vm0, %v379_v36  ;;  %v22013_v36 = vpop.permute.xlu0 %3983 }
 0x457   :  { %16482 = vmatprep.mubr.msk.f32.mxu1 %vm431_vm0, %v380_v61  ;;  %26922 = vst [vmem:[#allocation41_spill] sm:$0xff] %v22013_v36  ;;  %v22015_v61 = vpop.permute.xlu1 %4078 }
 0x45a   :  { %16483 = vmatmul.mubr.msk.f32.gmra.mrb[40].mxu1 %vm431_vm0, %v381_v34  ;;  %v22017_v34 = vpop.permute.xlu0 %4073 }
 0x45b   :  { %5722 = vmatprep.mubr.f32.mxu1 %v19382_v28  ;;  %v22019_v28 = vpop.permute.xlu1 %3998 }
 0x45c   :  { %26923 = vst [vmem:[#allocation42_spill] sm:$0xff] %v22019_v28 }
 0x45e   :  { %v22021_v0 = vpop.permute.xlu0 %3993 }
 0x45f   :  { %26924 = vst [vmem:[#allocation43_spill] sm:$0xff] %v22021_v0  ;;  %v22023_v8 = vpop.permute.xlu1 %4088 }
 0x462   :  { %v22025_v7 = vpop.permute.xlu0 %4083 }
 0x463   :  { %v22027_v31 = vpop.permute.xlu1 %4008 }
 0x464   :  { %26925 = vst [vmem:[#allocation44_spill] sm:$0xff] %v22027_v31 }
 0x466   :  { %v22029_v16 = vpop.permute.xlu0 %4003 }
 0x467   :  { %26926 = vst [vmem:[#allocation45_spill] sm:$0xff] %v22029_v16  ;;  %v22031_v18 = vpop.permute.xlu1 %4098 }
 0x46a   :  { %v22033_v10 = vpop.permute.xlu0 %4093 }
 0x46b   :  { %26927 = vst [vmem:[#allocation46_spill] sm:$0xff] %v22033_v10  ;;  %v22037_v60 = vpop.permute.xlu1 %4018 }
 0x46c   :  { %26928 = vst [vmem:[#allocation47_spill] sm:$0xff] %v22037_v60 }
 0x46e   :  { %v22039_v55 = vpop.permute.xlu0 %4013 }
 0x46f   :  { %26929 = vst [vmem:[#allocation48_spill] sm:$0xff] %v22039_v55 }
 0x472   :  { %v22051_v39 = vpop.permute.xlu0 %4103 }
 0x473   :  { %26931 = vst [vmem:[#allocation50_spill] sm:$0xff] %v22051_v39 }
 0x4e9   :  { %v16433_v40 = vpop.f32.mrb[6].mxu1 }
 0x4ea   :  { %v4142_v5 = vadd.f32 %v16433_v40, %v21994_v27  ;;  %v3746_v1 = vpop.f32.mrb[7].mxu1 }
 0x4eb   :  { %v4141_v20 = vadd.f32 %v21997_v24, %v3746_v1 }
 0x4ec   :  { %v4178_v17 = vmax.f32 %v4142_v5, 0.0  ;;  %v22046_v5 = vpop.permute.xlu1 %4108 }
 0x4ed   :  { %v4177_v59 = vmax.f32 %v4141_v20, 0.0  ;;  %v16436_v56 = vpop.f32.mrb[8].mxu1  ;;  %26930 = vst [vmem:[#allocation49_spill] sm:$0xff] %v22046_v5 }
 0x4ee   :  { %v4144_v52 = vadd.f32 %v16436_v56, %v22003_v37  ;;  %v3756_v51 = vpop.f32.mrb[9].mxu1 }
 0x4ef   :  { %v22042_v48 = vpack.c.bf16 %v4178_v17, %v4177_v59  ;;  %v4143_v47 = vadd.f32 %v22005_v14, %v3756_v51 }
 0x4f0   :  { %v4180_v44 = vmax.f32 %v4144_v52, 0.0 }
 0x4f1   :  { %v4179_v43 = vmax.f32 %v4143_v47, 0.0  ;;  %v16439_v40 = vpop.f32.mrb[10].mxu1 }
 0x4f2   :  { %v4146_v27 = vadd.f32 %v16439_v40, %v22011_v35  ;;  %v3766_v1 = vpop.f32.mrb[11].mxu1  ;;  %v22057_v35 = vpop.permute.xlu1 %4028 }
 0x4f3   :  { %v22048_v24 = vpack.c.bf16 %v4180_v44, %v4179_v43  ;;  %v4145_v20 = vadd.f32 %v22013_v36, %v3766_v1  ;;  %26932 = vst [vmem:[#allocation51_spill] sm:$0xff] %v22057_v35  ;;  %v22059_v44 = vpop.permute.xlu0 %4023 }
 0x4f4   :  { %v4182_v56 = vmax.f32 %v4146_v27, 0.0  ;;  %26933 = vst [vmem:[#allocation52_spill] sm:$0xff] %v22059_v44 }
 0x4f5   :  { %v4181_v37 = vmax.f32 %v4145_v20, 0.0  ;;  %v16442_v59 = vpop.f32.mrb[12].mxu1 }
 0x4f6   :  { %v4148_v17 = vadd.f32 %v16442_v59, %v22019_v28  ;;  %v3776_v51 = vpop.f32.mrb[13].mxu1 }
 0x4f7   :  { %v22054_v52 = vpack.c.bf16 %v4182_v56, %v4181_v37  ;;  %v4147_v47 = vadd.f32 %v22021_v0, %v3776_v51  ;;  %v22071_v42 = vpop.permute.xlu0 %4113 }
 0x4f8   :  { %v4184_v40 = vmax.f32 %v4148_v17, 0.0  ;;  %v22066_v17 = vpop.permute.xlu1 %4118  ;;  %26935 = vst [vmem:[#allocation54_spill] sm:$0xff] %v22071_v42 }
 0x4f9   :  { %v4183_v14 = vmax.f32 %v4147_v47, 0.0  ;;  %v16445_v43 = vpop.f32.mrb[14].mxu1  ;;  %26934 = vst [vmem:[#allocation53_spill] sm:$0xff] %v22066_v17 }
 0x4fa   :  { %v4150_v1 = vadd.f32 %v16445_v43, %v22027_v31  ;;  %v3786_v36 = vpop.f32.mrb[15].mxu1 }
 0x4fb   :  { %v22062_v27 = vpack.c.bf16 %v4184_v40, %v4183_v14  ;;  %v4149_v20 = vadd.f32 %v22029_v16, %v3786_v36 }
 0x4fc   :  { %v4186_v59 = vmax.f32 %v4150_v1, 0.0 }
 0x4fd   :  { %v4185_v28 = vmax.f32 %v4149_v20, 0.0  ;;  %v16448_v37 = vpop.f32.mrb[16].mxu1 }
 0x4fe   :  { %v4152_v56 = vadd.f32 %v16448_v37, %v22037_v60  ;;  %v3796_v51 = vpop.f32.mrb[17].mxu1  ;;  %v22077_v60 = vpop.permute.xlu1 %4038 }
 0x4ff   :  { %v22068_v0 = vpack.c.bf16 %v4186_v59, %v4185_v28  ;;  %v4151_v47 = vadd.f32 %v22039_v55, %v3796_v51  ;;  %26936 = vst [vmem:[#allocation55_spill] sm:$0xff] %v22077_v60  ;;  %v22079_v59 = vpop.permute.xlu0 %4033 }
 0x500   :  { %v4188_v43 = vmax.f32 %v4152_v56, 0.0 }
 0x501   :  { %v4187_v31 = vmax.f32 %v4151_v47, 0.0  ;;  %v16451_v14 = vpop.f32.mrb[18].mxu1 }
 0x502   :  { %v4154_v40 = vadd.f32 %v16451_v14, %v22057_v35  ;;  %v3806_v36 = vpop.f32.mrb[19].mxu1 }
 0x503   :  { %v22074_v1 = vpack.c.bf16 %v4188_v43, %v4187_v31  ;;  %v4153_v20 = vadd.f32 %v22059_v44, %v3806_v36 }
 0x504   :  { %v4190_v37 = vmax.f32 %v4154_v40, 0.0 }
 0x505   :  { %v4189_v16 = vmax.f32 %v4153_v20, 0.0  ;;  %v16454_v28 = vpop.f32.mrb[20].mxu1 }
 0x506   :  { %v4156_v51 = vadd.f32 %v16454_v28, %v22077_v60  ;;  %v3816_v55 = vpop.f32.mrb[21].mxu1 }
 0x507   :  { %v22082_v56 = vpack.c.bf16 %v4190_v37, %v4189_v16  ;;  %v4155_v47 = vadd.f32 %v22079_v59, %v3816_v55 }
 0x508   :  { %v4192_v14 = vmax.f32 %v4156_v51, 0.0 }
 0x509   :  { %v4191_v35 = vmax.f32 %v4155_v47, 0.0  ;;  %v16457_v31 = vpop.f32.mrb[22].mxu1 }
 0x50a   :  { %v4158_v43 = vadd.f32 %v16457_v31, %v21985_v12  ;;  %v3826_v36 = vpop.f32.mrb[23].mxu1 }
 0x50b   :  { %v22086_v40 = vpack.c.bf16 %v4192_v14, %v4191_v35  ;;  %v4157_v20 = vadd.f32 %v21987_v21, %v3826_v36 }
 0x50c   :  { %v4194_v44 = vmax.f32 %v4158_v43, 0.0 }
 0x50d   :  { %v4193_v23 = vmax.f32 %v4157_v20, 0.0  ;;  %v16460_v19 = vpop.f32.mrb[24].mxu1 }
 0x50e   :  { %v4160_v28 = vadd.f32 %v16460_v19, %v21999_v25  ;;  %v3836_v60 = vpop.f32.mrb[25].mxu1 }
 0x50f   :  { %v18016_v16 = vpack.c.bf16 %v4194_v44, %v4193_v23  ;;  %v4159_v37 = vadd.f32 %v22001_v30, %v3836_v60 }
 0x510   :  { %v4196_v55 = vmax.f32 %v4160_v28, 0.0 }
 0x511   :  { %v4195_v51 = vmax.f32 %v4159_v37, 0.0  ;;  %v16463_v47 = vpop.f32.mrb[26].mxu1  ;;  %18017 = vmatprep.subr.bf16.mxu0 %v18016_v16 }
 0x512   :  { %v4162_v31 = vadd.f32 %v16463_v47, %v22007_v33  ;;  %v3846_v12 = vpop.f32.mrb[27].mxu1  ;;  %18019 = vmatpush3.bf16.msra.mxu0 %v22042_v48 }
 0x513   :  { %v18020_v35 = vpack.c.bf16 %v4196_v55, %v4195_v51  ;;  %v4161_v14 = vadd.f32 %v22009_v26, %v3846_v12 }
 0x514   :  { %v4198_v43 = vmax.f32 %v4162_v31, 0.0 }
 0x515   :  { %v4197_v36 = vmax.f32 %v4161_v14, 0.0  ;;  %v16466_v20 = vpop.f32.mrb[28].mxu1  ;;  %18021 = vmatprep.subr.bf16.mxu0 %v18020_v35 }
 0x516   :  { %v4164_v19 = vadd.f32 %v16466_v20, %v22015_v61  ;;  %v3856_v23 = vpop.f32.mrb[29].mxu1  ;;  %18023 = vmatpush3.bf16.msra.mxu0 %v22048_v24 }
 0x517   :  { %v18024_v60 = vpack.c.bf16 %v4198_v43, %v4197_v36  ;;  %v4163_v44 = vadd.f32 %v22017_v34, %v3856_v23 }
 0x518   :  { %v4200_v28 = vmax.f32 %v4164_v19, 0.0 }
 0x519   :  { %v4199_v16 = vmax.f32 %v4163_v44, 0.0  ;;  %v16469_v37 = vpop.f32.mrb[30].mxu1  ;;  %18025 = vmatprep.subr.bf16.mxu0 %v18024_v60 }
 0x51a   :  { %v4166_v48 = vadd.f32 %v16469_v37, %v22023_v8  ;;  %v3866_v55 = vpop.f32.mrb[31].mxu1  ;;  %18027 = vmatpush3.bf16.msra.mxu0 %v22054_v52 }
 0x51b   :  { %v18028_v12 = vpack.c.bf16 %v4200_v28, %v4199_v16  ;;  %v4165_v51 = vadd.f32 %v22025_v7, %v3866_v55 }
 0x51c   :  { %v4202_v47 = vmax.f32 %v4166_v48, 0.0 }
 0x51d   :  { %v4201_v31 = vmax.f32 %v4165_v51, 0.0  ;;  %v16472_v35 = vpop.f32.mrb[32].mxu1  ;;  %18029 = vmatprep.subr.bf16.mxu0 %v18028_v12  ;;  %v22108_v12 = vpop.permute.xlu1 %4128 }
 0x51e   :  { %v4168_v24 = vadd.f32 %v16472_v35, %v22031_v18  ;;  %v3876_v14 = vpop.f32.mrb[33].mxu1  ;;  %18031 = vmatpush3.bf16.msra.mxu0 %v22062_v27  ;;  %26937 = vst [vmem:[#allocation56_spill] sm:$0xff] %v22108_v12 }
 0x51f   :  { %v18032_v43 = vpack.c.bf16 %v4202_v47, %v4201_v31  ;;  %v4167_v36 = vadd.f32 %v22033_v10, %v3876_v14  ;;  %v22111_v31 = vpop.permute.xlu0 %4123 }
 0x520   :  { %v4204_v20 = vmax.f32 %v4168_v24, 0.0  ;;  %26938 = vst [vmem:[#allocation57_spill] sm:$0xff] %v22111_v31 }
 0x521   :  { %v4203_v19 = vmax.f32 %v4167_v36, 0.0  ;;  %v16475_v23 = vpop.f32.mrb[34].mxu1  ;;  %18033 = vmatprep.subr.bf16.mxu0 %v18032_v43 }
 0x522   :  { %v4170_v52 = vadd.f32 %v16475_v23, %v22046_v5  ;;  %v3886_v60 = vpop.f32.mrb[35].mxu1  ;;  %18035 = vmatpush3.bf16.msra.mxu0 %v22068_v0 }
 0x523   :  { %v18036_v44 = vpack.c.bf16 %v4204_v20, %v4203_v19  ;;  %v4169_v28 = vadd.f32 %v22051_v39, %v3886_v60  ;;  %v22116_v19 = vpop.permute.xlu1 %4138  ;;  %v22118_v60 = vpop.permute.xlu0 %4133 }
 0x524   :  { %v4206_v16 = vmax.f32 %v4170_v52, 0.0  ;;  %26939 = vst [vmem:[#allocation58_spill] sm:$0xff] %v22116_v19  ;;  %26940 = vst [vmem:[#allocation59_spill] sm:$0xff] %v22118_v60 }
 0x525   :  { %v4205_v37 = vmax.f32 %v4169_v28, 0.0  ;;  %v16478_v48 = vpop.f32.mrb[36].mxu1  ;;  %18037 = vmatprep.subr.bf16.mxu0 %v18036_v44 }
 0x526   :  { %v4172_v27 = vadd.f32 %v16478_v48, %v22066_v17  ;;  %v3896_v55 = vpop.f32.mrb[37].mxu1  ;;  %18039 = vmatpush3.bf16.msra.mxu0 %v22074_v1  ;;  %v422_v48 = vld [vmem:[%s26754_s13 + $0x20] sm:$0x1] }
 0x527   :  { %v18040_v51 = vpack.c.bf16 %v4206_v16, %v4205_v37  ;;  %v4171_v47 = vadd.f32 %v22071_v42, %v3896_v55 }
 0x528   :  { %v4208_v0 = vmax.f32 %v4172_v27, 0.0 }
 0x529   :  { %v4207_v35 = vmax.f32 %v4171_v47, 0.0  ;;  %v16481_v24 = vpop.f32.mrb[38].mxu1  ;;  %18041 = vmatprep.subr.bf16.mxu0 %v18040_v51  ;;  %v420_v47 = vld [vmem:[%s26754_s13 + $0x10] sm:$0xff] }
 0x52a   :  { %v4174_v14 = vadd.f32 %v16481_v24, %v22108_v12  ;;  %v3906_v43 = vpop.f32.mrb[39].mxu1  ;;  %18043 = vmatpush3.bf16.msra.mxu0 %v22082_v56  ;;  %v418_v56 = vld [vmem:[%s26754_s13] sm:$0xff] }
 0x52b   :  { %v18044_v36 = vpack.c.bf16 %v4208_v0, %v4207_v35  ;;  %v4173_v20 = vadd.f32 %v22111_v31, %v3906_v43  ;;  %v423_v0 = vld [vmem:[%s26754_s13 + $0x28] sm:$0x1]  ;;  %v19383_v35 = vld [vmem:[%s26740_s2] sm:$0xff] }
 0x52c   :  { %v4210_v1 = vmax.f32 %v4174_v14, 0.0 }
 0x52d   :  { %v4209_v23 = vmax.f32 %v4173_v20, 0.0  ;;  %v16484_v52 = vpop.f32.mrb[40].mxu1  ;;  %18045 = vmatprep.subr.bf16.mxu0 %v18044_v36 }
 0x52e   :  { %v4176_v44 = vadd.f32 %v16484_v52, %v22116_v19  ;;  %v3916_v28 = vpop.f32.mrb[41].mxu1  ;;  %18047 = vmatpush3.bf16.msra.mxu0 %v22086_v40  ;;  %v421_v40 = vld [vmem:[%s26754_s13 + $0x18] sm:$0x1]  ;;  %v22146_v52 = vpop.permute.xlu1 %4215 }
 0x52f   :  { %v18048_v16 = vpack.c.bf16 %v4210_v1, %v4209_v23  ;;  %v4175_v37 = vadd.f32 %v22118_v60, %v3916_v28  ;;  %v22144_v23 = vpop.permute.xlu0 %4220  ;;  %26942 = vst [vmem:[#allocation61_spill] sm:$0xff] %v22146_v52 }
 0x530   :  { %v4212_v27 = vmax.f32 %v4176_v44, 0.0  ;;  %26941 = vst [vmem:[#allocation60_spill] sm:$0xff] %v22144_v23 }
 0x531   :  { %v4211_v55 = vmax.f32 %v4175_v37, 0.0  ;;  %4294 = vmatmul.mubr.f32.vlgmr.msra.gmra.mrb[36].mxu0 %v418_v56  ;;  %18049 = vmatprep.subr.bf16.mxu0 %v18048_v16  ;;  %v13365_v37 = vld [vmem:[%s26750_s0 + $0x10] sm:$0xff] }
 0x532   :  { %18051 = vmatpush3.bf16.msra.mxu0 %v18048_v16  ;;  %4298 = vmatprep.mubr.f32.mxu0 %v422_v48  ;;  %v13366_v16 = vld [vmem:[%s26750_s0 + $0x18] sm:$0x1] }
 0x533   :  { %v18052_v51 = vpack.c.bf16 %v4212_v27, %v4211_v55 }
 0x535   :  { %4299 = vmatmul.mubr.f32.gmra.mrb[38].mxu0 %v421_v40  ;;  %18053 = vmatprep.subr.bf16.mxu0 %v18052_v51 }
 0x536   :  { %18055 = vmatpush3.bf16.msra.mxu0 %v18052_v51  ;;  %16493 = vmatprep.mubr.msk.f32.mxu0 %vm2185_vm4, %v420_v47 }
 0x539   :  { %16494 = vmatmul.mubr.msk.f32.vlgmr.msra.gmra.mrb[40].mxu0 %vm2185_vm4, %v423_v0 }
 0x53a   :  { %16500 = vmatprep.mubr.msk.f32.mxu0 %vm431_vm0, %v19383_v35 }
 0x604   :  { %v14830_v24 = vpop.f32.mrb[36].mxu0 }
 0x605   :  { %v14831_v14 = vpop.f32.mrb[37].mxu0 }
 0x606   :  { %v14832_v43 = vadd.f32 %v14831_v14, %v14830_v24 }
 0x608   :  { %v14833_v36 = vpop.f32.mrb[38].mxu0  ;;  %v4296_v56 = vadd.f32 %v14832_v43, %v22146_v52 }
 0x609   :  { %v14834_v20 = vpop.f32.mrb[39].mxu0 }
 0x60a   :  { %v14835_v1 = vadd.f32 %v14834_v20, %v14833_v36 }
 0x60c   :  { %v4301_v44 = vadd.f32 %v14835_v1, %v22144_v23  ;;  %v16495_v28 = vpop.f32.mrb[40].mxu0 }
 0x60d   :  { %v4370_v48 = vpop.f32.mrb[41].mxu0 }
 0x60e   :  { %v4376_v27 = vadd.f32 %v16495_v28, %v4301_v44  ;;  %v4371_v55 = vadd.f32 %v4370_v48, %v4296_v56 }
 0x610   :  { %v4382_v40 = vmul.f32 %v4376_v27, %v4376_v27  ;;  %v4396_v51 = vadd.f32 %v13366_v16, %v4376_v27  ;;  %v4381_v47 = vmul.f32 %v4371_v55, %v4371_v55  ;;  %v4395_v0 = vadd.f32 %v13365_v37, %v4371_v55 }
 0x612   :  { %v4386_v35 = vmul.f32 %v4382_v40, %v21387_v15  ;;  %v4397_v24 = vsel %vm540_vm1, %v4396_v51, -inf  ;;  %v4385_v14 = vmul.f32 %v4381_v47, %v21384_v9 }
 0x613   :  { %v4398_v43 = vmax.f32 %v4395_v0, %v4397_v24 }
 0x614   :  { %v4387_v36 = vsel %vm540_vm1, %v4386_v35, 0.0 }
 0x615   :  { %v22160_v20 = vadd.f32 %v4387_v36, %v4385_v14  ;;  %v4399_v1 = vrot.slane %v4398_v43, 4 }
 0x617   :  { %26943 = vst [vmem:[#allocation62_spill] sm:$0xff] %v22160_v20  ;;  %v4400_v52 = vmax.f32 %v4398_v43, %v4399_v1 }
 0x619   :  { %v4401_v23 = vrot.slane %v4400_v52, 2 }
 0x61b   :  { %v4402_v44 = vmax.f32 %v4400_v52, %v4401_v23  ;;  %v2416_v23 = vrot.slane %v21372_v62, 1 }
 0x61d   :  { %v4403_v28 = vrot.slane %v4402_v44, 1 }
 0x61f   :  { %v4404_v56 = vmax.f32 %v4402_v44, %v4403_v28  ;;  %v2427_v28 = vrot.slane %v21374_v2, 2 }
 0x621   :  { %v4405_v16 = vsub.f32 %v4395_v0, %v4404_v56  ;;  %v4406_v48 = vsub.f32 %v4396_v51, %v4404_v56  ;;  %v2418_v51 = vmul.f32 %v2416_v23, %v21372_v62  ;;  %v2419_v0 = vrot.slane %v21372_v62, 2 }
 0x622   :  { %v2437_v23 = vrot.slane %v21372_v62, 6 }
 0x623   :  { %v4407_v37 = vmul.f32 1.442695, %v4405_v16  ;;  %v4409_v27 = vmul.f32 1.442695, %v4406_v48  ;;  %v2421_v1 = vmul.f32 %v2419_v0, %v2418_v51  ;;  %v2429_v16 = vmul.f32 %v2427_v28, %v2418_v51 }
 0x624   :  { %v2434_v48 = vrot.slane %v21372_v62, 3  ;;  %v2445_v51 = vrot.slane %v21374_v2, 6 }
 0x625   :  { %19316 = vpow2.f32 %v4407_v37  ;;  %v2423_v44 = vrot.slane %v2421_v1, 3 }
 0x626   :  { %19318 = vpow2.f32 %v4409_v27 }
 0x62f   :  { %v19317_v55 = vpop.eup %19316 }
 0x630   :  { %v19319_v40 = vpop.eup %19318 }
 0x631   :  { %v4411_v47 = vsel %vm540_vm1, %v19319_v40, 0.0 }
 0x632   :  { %v4412_v24 = vadd.f32 %v19317_v55, %v4411_v47  ;;  %v2425_v47 = vadd.f32 %v2423_v44, %v2421_v1  ;;  %v2452_v1 = vrot.slane %v21372_v62, 4 }
 0x634   :  { %v4413_v35 = vrot.slane %v4412_v24, 4 }
 0x636   :  { %v4414_v14 = vadd.f32 %v4413_v35, %v4412_v24 }
 0x638   :  { %v4415_v36 = vrot.slane %v4414_v14, 2 }
 0x63a   :  { %v4416_v20 = vadd.f32 %v4415_v36, %v4414_v14  ;;  %v2436_v14 = vmul.f32 %v2434_v48, %v21372_v62  ;;  %v2454_v48 = vmul.f32 %v2452_v1, %v21372_v62 }
 0x63c   :  { %v4417_v43 = vrot.slane %v4416_v20, 1  ;;  %v2439_v60 = vmul.f32 %v2437_v23, %v2436_v14 }
 0x63e   :  { %v4418_v52 = vadd.f32 %v4417_v43, %v4416_v20  ;;  %v2431_v20 = vrot.slane %v2429_v16, 6 }
 0x640   :  { %19320 = vrcp.f32 %v4418_v52  ;;  %v2433_v43 = vadd.f32 %v2431_v20, %v2425_v47  ;;  %v2457_v47 = vmul.f32 %v2419_v0, %v21372_v62 }
 0x642   :  { %v2440_v31 = vadd.f32 %v2439_v60, %v2433_v43 }
 0x64a   :  { %v19321_v56 = vpop.eup %19320 }
 0x64b   :  { %v4420_v37 = vmul.f32 %v19321_v56, %v19317_v55  ;;  %v4421_v27 = vmul.f32 %v19321_v56, %v19319_v40  ;;  %v2442_v55 = vrot.slane %v2439_v60, 1  ;;  %v2447_v40 = vmul.f32 %v2445_v51, %v2436_v14 }
 0x64c   :  { %v2455_v60 = vmul.f32 %v2454_v48, %v21374_v2  ;;  %v2458_v14 = vmul.f32 %v2457_v47, %v2452_v1 }
 0x64d   :  { %v4422_v24 = vsel %vm540_vm1, %v4421_v27, -inf  ;;  %v2444_v56 = vadd.f32 %v2442_v55, %v2440_v31 }
 0x64e   :  { %v4423_v35 = vmax.f32 %v4420_v37, %v4422_v24  ;;  %v2449_v24 = vrot.slane %v2447_v40, 2 }
 0x650   :  { %v4424_v36 = vrot.slane %v4423_v35, 4 }
 0x652   :  { %v4425_v52 = vmax.f32 %v4423_v35, %v4424_v36  ;;  %v2451_v35 = vadd.f32 %v2449_v24, %v2444_v56  ;;  %v26944_v24 = vmov 0.0  }
 0x654   :  { %v4426_v19 = vrot.slane %v4425_v52, 2  ;;  %v2456_v43 = vadd.f32 %v2455_v60, %v2451_v35 }
 0x656   :  { %v4427_v28 = vmax.f32 %v4425_v52, %v4426_v19  ;;  %v2460_v52 = vrot.slane %v2458_v14, 2 }
 0x658   :  { %v4428_v44 = vrot.slane %v4427_v28, 1  ;;  %v2462_v0 = vadd.f32 %v2460_v52, %v2456_v43 }
 0x65a   :  { %v4429_v16 = vmax.f32 %v4427_v28, %v4428_v44  ;;  %v22179_v40 = vmax.f32 %v2462_v0, 0.0 }
 0x65c   :  { %vm4430_vm13 = vcmp.eq.f32.partialorder %v4420_v37, %v4429_v16  ;;  %vm4431_vm14 = vcmp.eq.f32.partialorder %v4421_v27, %v4429_v16  ;;  %v4457_v1 = vsub.f32 1.0, %v22179_v40  ;;  %v22185_v16 = vsub.s32 0, %v21360_v63 }
 0x65d   :  { %v4432_v20 = vsel %vm4430_vm13, %v21360_v63, 9  ;;  %v4433_v36 = vsel %vm4431_vm14, %v21363_v11, 9 }
 0x65e   :  { %v4434_v19 = vsel %vm540_vm1, %v4433_v36, 2147483647  ;;  %v4461_v60 = vrot.slane %v4457_v1, %v22185_v16  ;;  %v19392_v1 = vld [vmem:[%s26740_s2 + $0x48] sm:$0xff] }
 0x65f   :  { %vm4435_vm15 = vcmp.lt.s32.totalorder %v4432_v20, %v4434_v19 }
 0x660   :  { %v4436_v31 = vsel %vm4435_vm15, %v4432_v20, %v4434_v19 }
 0x661   :  { %v4437_v23 = vrot.slane %v4436_v31, 4 }
 0x663   :  { %vm4438_vm2 = vcmp.lt.s32.totalorder %v4436_v31, %v4437_v23 }
 0x664   :  { %v4439_v51 = vsel %vm4438_vm2, %v4436_v31, %v4437_v23 }
 0x665   :  { %v4440_v28 = vrot.slane %v4439_v51, 2 }
 0x667   :  { %vm4441_vm5 = vcmp.lt.s32.totalorder %v4439_v51, %v4440_v28 }
 0x668   :  { %v4442_v55 = vsel %vm4441_vm5, %v4439_v51, %v4440_v28  ;;  %v19384_v51 = vld [vmem:[%s26740_s2 + $0x8] sm:$0xff] }
 0x669   :  { %v4443_v44 = vrot.slane %v4442_v55, 1  ;;  %v19388_v28 = vld [vmem:[%s26740_s2 + $0x28] sm:$0xff] }
 0x66b   :  { %vm4444_vm6 = vcmp.lt.s32.totalorder %v4442_v55, %v4443_v44 }
 0x66c   :  { %v4445_v56 = vsel %vm4444_vm6, %v4442_v55, %v4443_v44  ;;  %v19389_v55 = vld [vmem:[%s26740_s2 + $0x30] sm:$0xff]  ;;  %v19390_v44 = vld [vmem:[%s26740_s2 + $0x38] sm:$0xff] }
 0x66d   :  { %vm4446_vm7 = vcmp.eq.s32.totalorder %v21360_v63, %v4445_v56  ;;  %vm4447_vm8 = vcmp.eq.s32.totalorder %v21363_v11, %v4445_v56  ;;  %v19391_v56 = vld [vmem:[%s26740_s2 + $0x40] sm:$0xff] }
 0x66e   :  { %v13516_v48 = vsel %vm4446_vm7, 1.0, %v26944_v24  ;;  %v13517_v47 = vsel %vm4447_vm8, 1.0, %v26944_v24 }
 0x66f   :  { %v4452_v35 = vsub.f32 %v13516_v48, %v4420_v37  ;;  %v4453_v20 = vsub.f32 %v13517_v47, %v4421_v27  ;;  %v19393_v48 = vld [vmem:[%s26740_s2 + $0x50] sm:$0xff]  ;;  %v19394_v47 = vld [vmem:[%s26740_s2 + $0x58] sm:$0xff] }
 0x671   :  { %v4454_v36 = vadd.f32 %v4452_v35, %v4420_v37  ;;  %v4455_v19 = vadd.f32 %v4453_v20, %v4421_v27  ;;  %v19395_v35 = vld [vmem:[%s26740_s2 + $0x60] sm:$0xff]  ;;  %v19396_v20 = vld [vmem:[%s26740_s2 + $0x68] sm:$0xff] }
 0x673   :  { %v4462_v14 = vmul.f32 %v4461_v60, %v4454_v36  ;;  %v4463_v31 = vmul.f32 %v4461_v60, %v4455_v19  ;;  %v19397_v36 = vld [vmem:[%s26740_s2 + $0x70] sm:$0xff]  ;;  %v19398_v19 = vld [vmem:[%s26740_s2 + $0x78] sm:$0xff]  ;;  %v19399_v60 = vld [vmem:[%s26740_s2 + $0x80] sm:$0xff] }
 0x675   :  { %v22191_v43 = vmul.f32 %v4462_v14, %v21384_v9  ;;  %v22194_v23 = vmul.f32 %v4463_v31, %v21387_v15  ;;  %v19400_v14 = vld [vmem:[%s26740_s2 + $0x88] sm:$0xff]  ;;  %v19401_v31 = vld [vmem:[%s26740_s2 + $0x90] sm:$0xff] }
 0x677   :  { %v22198_v52 = vpack.c.bf16 %v22194_v23, %v22191_v43  ;;  %v4524_v37 = vsub.f32 %v21384_v9, %v22191_v43  ;;  %v4525_v27 = vsub.f32 %v21387_v15, %v22194_v23  ;;  %v19385_v9 = vld [vmem:[%s26740_s2 + $0x10] sm:$0xff]  ;;  %v19386_v15 = vld [vmem:[%s26740_s2 + $0x18] sm:$0xff] }
 0x679   :  { %18058 = vmatprep.subr.msk.bf16.mxu0 %vm20417_vm3, %v22198_v52  ;;  %v22217_v0 = vpack.c.bf16 %v4525_v27, %v4524_v37  ;;  %v19402_v37 = vld [vmem:[%s26740_s2 + $0x98] sm:$0xff]  ;;  %v19403_v27 = vld [vmem:[%s26740_s2 + $0xa0] sm:$0xff] }
 0x67a   :  { %18061 = vmatpush3.bf16.msk.msra.mxu0 %vm20417_vm3, %v22198_v52 }
 0x67b   :  { %18064 = vmatprep.subr.msk.bf16.mxu0 %vm20417_vm3, %v21378_v4 }
 0x67d   :  { %16501 = vmatmul.mubr.msk.f32.vlgmr.msra.gmra.mrb[42].mxu0 %vm431_vm0, %v19384_v51  ;;  %v19404_v51 = vld [vmem:[%s26740_s2 + $0xa8] sm:$0xff] }
 0x67e   :  { %18067 = vmatpush3.bf16.msk.msra.mxu0 %vm20417_vm3, %v21378_v4  ;;  %16503 = vmatprep.mubr.msk.f32.mxu0 %vm431_vm0, %v19385_v9  ;;  %v19387_v4 = vld [vmem:[%s26740_s2 + $0x20] sm:$0xff]  ;;  %v19405_v9 = vld [vmem:[%s26740_s2 + $0xb0] sm:$0xff] }
 0x67f   :  { %18070 = vmatprep.subr.msk.bf16.mxu0 %vm20417_vm3, %v22217_v0 }
 0x681   :  { %16504 = vmatmul.mubr.msk.f32.gmra.mrb[44].mxu0 %vm431_vm0, %v19386_v15  ;;  %v19406_v15 = vld [vmem:[%s26740_s2 + $0xb8] sm:$0xff] }
 0x682   :  { %16506 = vmatprep.mubr.msk.f32.mxu0 %vm431_vm0, %v19387_v4  ;;  %v19407_v4 = vld [vmem:[%s26740_s2 + $0xc0] sm:$0xff] }
 0x685   :  { %16507 = vmatmul.mubr.msk.f32.gmra.mrb[46].mxu0 %vm431_vm0, %v19388_v28  ;;  %v19408_v28 = vld [vmem:[%s26740_s2 + $0xc8] sm:$0xff] }
 0x686   :  { %16509 = vmatprep.mubr.msk.f32.mxu0 %vm431_vm0, %v19389_v55  ;;  %v19409_v55 = vld [vmem:[%s26740_s2 + $0xd0] sm:$0xff] }
 0x689   :  { %16510 = vmatmul.mubr.msk.f32.gmra.mrb[48].mxu0 %vm431_vm0, %v19390_v44  ;;  %v19410_v44 = vld [vmem:[%s26740_s2 + $0xd8] sm:$0xff] }
 0x68a   :  { %16512 = vmatprep.mubr.msk.f32.mxu0 %vm431_vm0, %v19391_v56  ;;  %v19411_v56 = vld [vmem:[%s26740_s2 + $0xe0] sm:$0xff] }
 0x68d   :  { %16513 = vmatmul.mubr.msk.f32.gmra.mrb[50].mxu0 %vm431_vm0, %v19392_v1  ;;  %v19412_v1 = vld [vmem:[%s26740_s2 + $0xe8] sm:$0xff] }
 0x68e   :  { %16515 = vmatprep.mubr.msk.f32.mxu0 %vm431_vm0, %v19393_v48  ;;  %v19413_v48 = vld [vmem:[%s26740_s2 + $0xf0] sm:$0xff] }
 0x691   :  { %16516 = vmatmul.mubr.msk.f32.gmra.mrb[52].mxu0 %vm431_vm0, %v19394_v47  ;;  %v19414_v47 = vld [vmem:[%s26740_s2 + $0xf8] sm:$0xff] }
 0x692   :  { %16518 = vmatprep.mubr.msk.f32.mxu0 %vm431_vm0, %v19395_v35  ;;  %v19415_v35 = vld [vmem:[%s26740_s2 + $0x100] sm:$0xff] }
 0x695   :  { %16519 = vmatmul.mubr.msk.f32.gmra.mrb[54].mxu0 %vm431_vm0, %v19396_v20  ;;  %v19416_v20 = vld [vmem:[%s26740_s2 + $0x108] sm:$0xff] }
 0x696   :  { %16521 = vmatprep.mubr.msk.f32.mxu0 %vm431_vm0, %v19397_v36  ;;  %v19417_v36 = vld [vmem:[%s26740_s2 + $0x110] sm:$0xff] }
 0x699   :  { %16522 = vmatmul.mubr.msk.f32.gmra.mrb[56].mxu0 %vm431_vm0, %v19398_v19  ;;  %v19418_v19 = vld [vmem:[%s26740_s2 + $0x118] sm:$0xff] }
 0x69a   :  { %16524 = vmatprep.mubr.msk.f32.mxu0 %vm431_vm0, %v19399_v60  ;;  %v19419_v60 = vld [vmem:[%s26742_s1] sm:$0xff] }
 0x69d   :  { %16525 = vmatmul.mubr.msk.f32.gmra.mrb[58].mxu0 %vm431_vm0, %v19400_v14  ;;  %v19420_v14 = vld [vmem:[%s26742_s1 + $0x8] sm:$0xff] }
 0x69e   :  { %16527 = vmatprep.mubr.msk.f32.mxu0 %vm431_vm0, %v19401_v31  ;;  %v19421_v31 = vld [vmem:[%s26742_s1 + $0x10] sm:$0xff] }
 0x6a1   :  { %16528 = vmatmul.mubr.msk.f32.gmra.mrb[60].mxu0 %vm431_vm0, %v19402_v37  ;;  %v19422_v37 = vld [vmem:[%s26742_s1 + $0x18] sm:$0xff] }
 0x6a2   :  { %16530 = vmatprep.mubr.msk.f32.mxu0 %vm431_vm0, %v19403_v27  ;;  %v19424_v27 = vld [vmem:[%s26742_s1 + $0x28] sm:$0xff] }
 0x6a5   :  { %16531 = vmatmul.mubr.msk.f32.gmra.mrb[62].mxu0 %vm431_vm0, %v19404_v51  ;;  %v19425_v51 = vld [vmem:[%s26742_s1 + $0x30] sm:$0xff] }
 0x6a6   :  { %16533 = vmatprep.mubr.msk.f32.mxu0 %vm431_vm0, %v19405_v9  ;;  %v19426_v9 = vld [vmem:[%s26742_s1 + $0x38] sm:$0xff] }
 0x6a9   :  { %16534 = vmatmul.mubr.msk.f32.gmra.mrb[64].mxu0 %vm431_vm0, %v19406_v15  ;;  %v19427_v15 = vld [vmem:[%s26742_s1 + $0x40] sm:$0xff] }
 0x6aa   :  { %16536 = vmatprep.mubr.msk.f32.mxu0 %vm431_vm0, %v19407_v4  ;;  %v19428_v4 = vld [vmem:[%s26742_s1 + $0x48] sm:$0xff] }
 0x6ad   :  { %16537 = vmatmul.mubr.msk.f32.gmra.mrb[66].mxu0 %vm431_vm0, %v19408_v28  ;;  %v19429_v28 = vld [vmem:[%s26742_s1 + $0x50] sm:$0xff] }
 0x6ae   :  { %16539 = vmatprep.mubr.msk.f32.mxu0 %vm431_vm0, %v19409_v55  ;;  %v19430_v55 = vld [vmem:[%s26742_s1 + $0x58] sm:$0xff] }
 0x6b1   :  { %16540 = vmatmul.mubr.msk.f32.gmra.mrb[68].mxu0 %vm431_vm0, %v19410_v44  ;;  %v19431_v44 = vld [vmem:[%s26742_s1 + $0x60] sm:$0xff] }
 0x6b2   :  { %16542 = vmatprep.mubr.msk.f32.mxu0 %vm431_vm0, %v19411_v56  ;;  %v19432_v56 = vld [vmem:[%s26742_s1 + $0x68] sm:$0xff] }
 0x6b5   :  { %16543 = vmatmul.mubr.msk.f32.gmra.mrb[70].mxu0 %vm431_vm0, %v19412_v1  ;;  %v19433_v1 = vld [vmem:[%s26742_s1 + $0x70] sm:$0xff] }
 0x6b6   :  { %16545 = vmatprep.mubr.msk.f32.mxu0 %vm431_vm0, %v19413_v48  ;;  %v19434_v48 = vld [vmem:[%s26742_s1 + $0x78] sm:$0xff] }
 0x6b9   :  { %16546 = vmatmul.mubr.msk.f32.gmra.mrb[72].mxu0 %vm431_vm0, %v19414_v47  ;;  %v19435_v47 = vld [vmem:[%s26742_s1 + $0x80] sm:$0xff] }
 0x6ba   :  { %16548 = vmatprep.mubr.msk.f32.mxu0 %vm431_vm0, %v19415_v35  ;;  %v19436_v35 = vld [vmem:[%s26742_s1 + $0x88] sm:$0xff] }
 0x6bd   :  { %16549 = vmatmul.mubr.msk.f32.gmra.mrb[74].mxu0 %vm431_vm0, %v19416_v20  ;;  %v19437_v20 = vld [vmem:[%s26742_s1 + $0x90] sm:$0xff] }
 0x6be   :  { %16551 = vmatprep.mubr.msk.f32.mxu0 %vm431_vm0, %v19417_v36  ;;  %v19438_v36 = vld [vmem:[%s26742_s1 + $0x98] sm:$0xff] }
 0x6c1   :  { %16552 = vmatmul.mubr.msk.f32.gmra.mrb[76].mxu0 %vm431_vm0, %v19418_v19  ;;  %v19439_v19 = vld [vmem:[%s26742_s1 + $0xa0] sm:$0xff] }
 0x6c2   :  { %16558 = vmatprep.mubr.msk.f32.mxu0 %vm431_vm0, %v19419_v60  ;;  %v19440_v60 = vld [vmem:[%s26742_s1 + $0xa8] sm:$0xff] }
 0x6c5   :  { %16559 = vmatmul.mubr.msk.f32.vlgmr.msra.gmra.mrb[42].mxu0 %vm431_vm0, %v19420_v14  ;;  %v19441_v14 = vld [vmem:[%s26742_s1 + $0xb0] sm:$0xff] }
 0x6c6   :  { %18073 = vmatpush3.bf16.msk.msra.mxu0 %vm20417_vm3, %v22217_v0  ;;  %16561 = vmatprep.mubr.msk.f32.mxu0 %vm431_vm0, %v19421_v31  ;;  %v19423_v0 = vld [vmem:[%s26742_s1 + $0x20] sm:$0xff]  ;;  %v19442_v31 = vld [vmem:[%s26742_s1 + $0xb8] sm:$0xff] }
 0x6c7   :  { %18076 = vmatprep.subr.msk.bf16.mxu0 %vm20417_vm3, %v22198_v52 }
 0x6c9   :  { %16562 = vmatmul.mubr.msk.f32.gmra.mrb[44].mxu0 %vm431_vm0, %v19422_v37  ;;  %v19443_v37 = vld [vmem:[%s26742_s1 + $0xc0] sm:$0xff] }
 0x6ca   :  { %16564 = vmatprep.mubr.msk.f32.mxu0 %vm431_vm0, %v19423_v0  ;;  %v19444_v0 = vld [vmem:[%s26742_s1 + $0xc8] sm:$0xff] }
 0x6cd   :  { %16565 = vmatmul.mubr.msk.f32.gmra.mrb[46].mxu0 %vm431_vm0, %v19424_v27  ;;  %v19445_v27 = vld [vmem:[%s26742_s1 + $0xd0] sm:$0xff] }
 0x6ce   :  { %16567 = vmatprep.mubr.msk.f32.mxu0 %vm431_vm0, %v19425_v51  ;;  %v19446_v51 = vld [vmem:[%s26742_s1 + $0xd8] sm:$0xff] }
 0x6d1   :  { %16568 = vmatmul.mubr.msk.f32.gmra.mrb[48].mxu0 %vm431_vm0, %v19426_v9  ;;  %v19447_v9 = vld [vmem:[%s26742_s1 + $0xe0] sm:$0xff] }
 0x6d2   :  { %16570 = vmatprep.mubr.msk.f32.mxu0 %vm431_vm0, %v19427_v15  ;;  %v19448_v15 = vld [vmem:[%s26742_s1 + $0xe8] sm:$0xff] }
 0x6d5   :  { %16571 = vmatmul.mubr.msk.f32.gmra.mrb[50].mxu0 %vm431_vm0, %v19428_v4  ;;  %v19449_v4 = vld [vmem:[%s26742_s1 + $0xf0] sm:$0xff] }
 0x6d6   :  { %16573 = vmatprep.mubr.msk.f32.mxu0 %vm431_vm0, %v19429_v28  ;;  %v19450_v28 = vld [vmem:[%s26742_s1 + $0xf8] sm:$0xff] }
 0x6d9   :  { %16574 = vmatmul.mubr.msk.f32.gmra.mrb[52].mxu0 %vm431_vm0, %v19430_v55  ;;  %v19451_v55 = vld [vmem:[%s26742_s1 + $0x100] sm:$0xff] }
 0x6da   :  { %16576 = vmatprep.mubr.msk.f32.mxu0 %vm431_vm0, %v19431_v44  ;;  %v19452_v44 = vld [vmem:[%s26742_s1 + $0x108] sm:$0xff] }
 0x6dd   :  { %16577 = vmatmul.mubr.msk.f32.gmra.mrb[54].mxu0 %vm431_vm0, %v19432_v56  ;;  %v19453_v56 = vld [vmem:[%s26742_s1 + $0x110] sm:$0xff] }
 0x6de   :  { %16579 = vmatprep.mubr.msk.f32.mxu0 %vm431_vm0, %v19433_v1  ;;  %v19454_v1 = vld [vmem:[%s26742_s1 + $0x118] sm:$0xff] }
 0x6e1   :  { %16580 = vmatmul.mubr.msk.f32.gmra.mrb[56].mxu0 %vm431_vm0, %v19434_v48  ;;  %v19455_v48 = vld [vmem:[%s26745_s3] sm:$0xff] }
 0x6e2   :  { %16582 = vmatprep.mubr.msk.f32.mxu0 %vm431_vm0, %v19435_v47  ;;  %v19456_v47 = vld [vmem:[%s26745_s3 + $0x8] sm:$0xff] }
 0x6e5   :  { %16583 = vmatmul.mubr.msk.f32.gmra.mrb[58].mxu0 %vm431_vm0, %v19436_v35  ;;  %v19457_v35 = vld [vmem:[%s26745_s3 + $0x10] sm:$0xff] }
 0x6e6   :  { %16585 = vmatprep.mubr.msk.f32.mxu0 %vm431_vm0, %v19437_v20  ;;  %v19458_v20 = vld [vmem:[%s26745_s3 + $0x18] sm:$0xff] }
 0x6e9   :  { %16586 = vmatmul.mubr.msk.f32.gmra.mrb[60].mxu0 %vm431_vm0, %v19438_v36  ;;  %v19459_v36 = vld [vmem:[%s26745_s3 + $0x20] sm:$0xff] }
 0x6ea   :  { %16588 = vmatprep.mubr.msk.f32.mxu0 %vm431_vm0, %v19439_v19  ;;  %v19460_v19 = vld [vmem:[%s26745_s3 + $0x28] sm:$0xff] }
 0x6ed   :  { %16589 = vmatmul.mubr.msk.f32.gmra.mrb[62].mxu0 %vm431_vm0, %v19440_v60  ;;  %v19461_v60 = vld [vmem:[%s26745_s3 + $0x30] sm:$0xff] }
 0x6ee   :  { %16591 = vmatprep.mubr.msk.f32.mxu0 %vm431_vm0, %v19441_v14  ;;  %v19462_v14 = vld [vmem:[%s26745_s3 + $0x38] sm:$0xff] }
 0x6f1   :  { %16592 = vmatmul.mubr.msk.f32.gmra.mrb[64].mxu0 %vm431_vm0, %v19442_v31  ;;  %v19463_v31 = vld [vmem:[%s26745_s3 + $0x40] sm:$0xff] }
 0x6f2   :  { %16594 = vmatprep.mubr.msk.f32.mxu0 %vm431_vm0, %v19443_v37  ;;  %v19464_v37 = vld [vmem:[%s26745_s3 + $0x48] sm:$0xff] }
 0x6f5   :  { %16595 = vmatmul.mubr.msk.f32.gmra.mrb[66].mxu0 %vm431_vm0, %v19444_v0  ;;  %v19465_v0 = vld [vmem:[%s26745_s3 + $0x50] sm:$0xff] }
 0x6f6   :  { %16597 = vmatprep.mubr.msk.f32.mxu0 %vm431_vm0, %v19445_v27  ;;  %v19466_v27 = vld [vmem:[%s26745_s3 + $0x58] sm:$0xff] }
 0x6f9   :  { %16598 = vmatmul.mubr.msk.f32.gmra.mrb[68].mxu0 %vm431_vm0, %v19446_v51  ;;  %v19467_v51 = vld [vmem:[%s26745_s3 + $0x60] sm:$0xff] }
 0x6fa   :  { %16600 = vmatprep.mubr.msk.f32.mxu0 %vm431_vm0, %v19447_v9  ;;  %v19468_v9 = vld [vmem:[%s26745_s3 + $0x68] sm:$0xff] }
 0x6fd   :  { %16601 = vmatmul.mubr.msk.f32.gmra.mrb[70].mxu0 %vm431_vm0, %v19448_v15  ;;  %v19469_v15 = vld [vmem:[%s26745_s3 + $0x70] sm:$0xff] }
 0x6fe   :  { %16603 = vmatprep.mubr.msk.f32.mxu0 %vm431_vm0, %v19449_v4  ;;  %v19470_v4 = vld [vmem:[%s26745_s3 + $0x78] sm:$0xff] }
 0x701   :  { %16604 = vmatmul.mubr.msk.f32.gmra.mrb[72].mxu0 %vm431_vm0, %v19450_v28  ;;  %v19471_v28 = vld [vmem:[%s26745_s3 + $0x80] sm:$0xff] }
 0x702   :  { %16606 = vmatprep.mubr.msk.f32.mxu0 %vm431_vm0, %v19451_v55  ;;  %v19472_v55 = vld [vmem:[%s26745_s3 + $0x88] sm:$0xff] }
 0x705   :  { %16607 = vmatmul.mubr.msk.f32.gmra.mrb[74].mxu0 %vm431_vm0, %v19452_v44  ;;  %v19473_v44 = vld [vmem:[%s26745_s3 + $0x90] sm:$0xff] }
 0x706   :  { %16609 = vmatprep.mubr.msk.f32.mxu0 %vm431_vm0, %v19453_v56  ;;  %v19474_v56 = vld [vmem:[%s26745_s3 + $0x98] sm:$0xff] }
 0x709   :  { %16610 = vmatmul.mubr.msk.f32.gmra.mrb[76].mxu0 %vm431_vm0, %v19454_v1  ;;  %v19475_v1 = vld [vmem:[%s26745_s3 + $0xa0] sm:$0xff] }
 0x70a   :  { %16616 = vmatprep.mubr.msk.f32.mxu0 %vm431_vm0, %v19455_v48  ;;  %v19476_v48 = vld [vmem:[%s26745_s3 + $0xa8] sm:$0xff] }
 0x70d   :  { %16617 = vmatmul.mubr.msk.f32.vlgmr.msra.gmra.mrb[42].mxu0 %vm431_vm0, %v19456_v47  ;;  %v19477_v47 = vld [vmem:[%s26745_s3 + $0xb0] sm:$0xff] }
 0x70e   :  { %18079 = vmatpush3.bf16.msk.msra.mxu0 %vm20417_vm3, %v22198_v52  ;;  %16619 = vmatprep.mubr.msk.f32.mxu0 %vm431_vm0, %v19457_v35  ;;  %v19478_v35 = vld [vmem:[%s26745_s3 + $0xb8] sm:$0xff] }
 0x711   :  { %16620 = vmatmul.mubr.msk.f32.gmra.mrb[44].mxu0 %vm431_vm0, %v19458_v20  ;;  %v19479_v20 = vld [vmem:[%s26745_s3 + $0xc0] sm:$0xff] }
 0x712   :  { %16622 = vmatprep.mubr.msk.f32.mxu0 %vm431_vm0, %v19459_v36  ;;  %v19480_v36 = vld [vmem:[%s26745_s3 + $0xc8] sm:$0xff] }
 0x715   :  { %16623 = vmatmul.mubr.msk.f32.gmra.mrb[46].mxu0 %vm431_vm0, %v19460_v19  ;;  %v19481_v19 = vld [vmem:[%s26745_s3 + $0xd0] sm:$0xff] }
 0x716   :  { %16625 = vmatprep.mubr.msk.f32.mxu0 %vm431_vm0, %v19461_v60  ;;  %v19482_v60 = vld [vmem:[%s26745_s3 + $0xd8] sm:$0xff] }
 0x719   :  { %16626 = vmatmul.mubr.msk.f32.gmra.mrb[48].mxu0 %vm431_vm0, %v19462_v14  ;;  %v19483_v14 = vld [vmem:[%s26745_s3 + $0xe0] sm:$0xff] }
 0x71a   :  { %16628 = vmatprep.mubr.msk.f32.mxu0 %vm431_vm0, %v19463_v31  ;;  %v19484_v31 = vld [vmem:[%s26745_s3 + $0xe8] sm:$0xff] }
 0x71d   :  { %16629 = vmatmul.mubr.msk.f32.gmra.mrb[50].mxu0 %vm431_vm0, %v19464_v37  ;;  %v19485_v37 = vld [vmem:[%s26745_s3 + $0xf0] sm:$0xff] }
 0x71e   :  { %16631 = vmatprep.mubr.msk.f32.mxu0 %vm431_vm0, %v19465_v0  ;;  %v19486_v0 = vld [vmem:[%s26745_s3 + $0xf8] sm:$0xff] }
 0x721   :  { %16632 = vmatmul.mubr.msk.f32.gmra.mrb[52].mxu0 %vm431_vm0, %v19466_v27  ;;  %v19487_v27 = vld [vmem:[%s26745_s3 + $0x100] sm:$0xff] }
 0x722   :  { %16634 = vmatprep.mubr.msk.f32.mxu0 %vm431_vm0, %v19467_v51  ;;  %v19488_v51 = vld [vmem:[%s26745_s3 + $0x108] sm:$0xff] }
 0x725   :  { %16635 = vmatmul.mubr.msk.f32.gmra.mrb[54].mxu0 %vm431_vm0, %v19468_v9  ;;  %v19489_v9 = vld [vmem:[%s26745_s3 + $0x110] sm:$0xff] }
 0x726   :  { %16637 = vmatprep.mubr.msk.f32.mxu0 %vm431_vm0, %v19469_v15  ;;  %v19490_v15 = vld [vmem:[%s26745_s3 + $0x118] sm:$0xff] }
 0x729   :  { %16638 = vmatmul.mubr.msk.f32.gmra.mrb[56].mxu0 %vm431_vm0, %v19470_v4  ;;  %v19491_v4 = vld [vmem:[%s26747_s4] sm:$0xff] }
 0x72a   :  { %16640 = vmatprep.mubr.msk.f32.mxu0 %vm431_vm0, %v19471_v28  ;;  %v19492_v28 = vld [vmem:[%s26747_s4 + $0x8] sm:$0xff] }
 0x72d   :  { %16641 = vmatmul.mubr.msk.f32.gmra.mrb[58].mxu0 %vm431_vm0, %v19472_v55  ;;  %v19493_v55 = vld [vmem:[%s26747_s4 + $0x10] sm:$0xff] }
 0x72e   :  { %16643 = vmatprep.mubr.msk.f32.mxu0 %vm431_vm0, %v19473_v44  ;;  %v19494_v44 = vld [vmem:[%s26747_s4 + $0x18] sm:$0xff] }
 0x731   :  { %16644 = vmatmul.mubr.msk.f32.gmra.mrb[60].mxu0 %vm431_vm0, %v19474_v56  ;;  %v19495_v56 = vld [vmem:[%s26747_s4 + $0x20] sm:$0xff] }
 0x732   :  { %16646 = vmatprep.mubr.msk.f32.mxu0 %vm431_vm0, %v19475_v1  ;;  %v19496_v1 = vld [vmem:[%s26747_s4 + $0x28] sm:$0xff] }
 0x735   :  { %16647 = vmatmul.mubr.msk.f32.gmra.mrb[62].mxu0 %vm431_vm0, %v19476_v48  ;;  %v19497_v48 = vld [vmem:[%s26747_s4 + $0x30] sm:$0xff] }
 0x736   :  { %16649 = vmatprep.mubr.msk.f32.mxu0 %vm431_vm0, %v19477_v47  ;;  %v19498_v47 = vld [vmem:[%s26747_s4 + $0x38] sm:$0xff] }
 0x739   :  { %16650 = vmatmul.mubr.msk.f32.gmra.mrb[64].mxu0 %vm431_vm0, %v19478_v35  ;;  %v19499_v35 = vld [vmem:[%s26747_s4 + $0x40] sm:$0xff] }
 0x73a   :  { %16652 = vmatprep.mubr.msk.f32.mxu0 %vm431_vm0, %v19479_v20  ;;  %v19500_v20 = vld [vmem:[%s26747_s4 + $0x48] sm:$0xff] }
 0x73d   :  { %16653 = vmatmul.mubr.msk.f32.gmra.mrb[66].mxu0 %vm431_vm0, %v19480_v36  ;;  %v19501_v36 = vld [vmem:[%s26747_s4 + $0x50] sm:$0xff] }
 0x73e   :  { %16655 = vmatprep.mubr.msk.f32.mxu0 %vm431_vm0, %v19481_v19  ;;  %v19502_v19 = vld [vmem:[%s26747_s4 + $0x58] sm:$0xff] }
 0x741   :  { %16656 = vmatmul.mubr.msk.f32.gmra.mrb[68].mxu0 %vm431_vm0, %v19482_v60  ;;  %v19503_v60 = vld [vmem:[%s26747_s4 + $0x60] sm:$0xff] }
 0x742   :  { %16658 = vmatprep.mubr.msk.f32.mxu0 %vm431_vm0, %v19483_v14  ;;  %v19504_v14 = vld [vmem:[%s26747_s4 + $0x68] sm:$0xff] }
 0x745   :  { %16659 = vmatmul.mubr.msk.f32.gmra.mrb[70].mxu0 %vm431_vm0, %v19484_v31  ;;  %v19505_v31 = vld [vmem:[%s26747_s4 + $0x70] sm:$0xff] }
 0x746   :  { %16661 = vmatprep.mubr.msk.f32.mxu0 %vm431_vm0, %v19485_v37  ;;  %v19506_v37 = vld [vmem:[%s26747_s4 + $0x78] sm:$0xff] }
 0x749   :  { %16662 = vmatmul.mubr.msk.f32.gmra.mrb[72].mxu0 %vm431_vm0, %v19486_v0  ;;  %v19507_v0 = vld [vmem:[%s26747_s4 + $0x80] sm:$0xff] }
 0x74a   :  { %16664 = vmatprep.mubr.msk.f32.mxu0 %vm431_vm0, %v19487_v27  ;;  %v19508_v27 = vld [vmem:[%s26747_s4 + $0x88] sm:$0xff] }
 0x74d   :  { %16665 = vmatmul.mubr.msk.f32.gmra.mrb[74].mxu0 %vm431_vm0, %v19488_v51  ;;  %v19509_v51 = vld [vmem:[%s26747_s4 + $0x90] sm:$0xff] }
 0x74e   :  { %16667 = vmatprep.mubr.msk.f32.mxu0 %vm431_vm0, %v19489_v9  ;;  %v19510_v9 = vld [vmem:[%s26747_s4 + $0x98] sm:$0xff] }
 0x751   :  { %16668 = vmatmul.mubr.msk.f32.gmra.mrb[76].mxu0 %vm431_vm0, %v19490_v15  ;;  %v19511_v15 = vld [vmem:[%s26747_s4 + $0xa0] sm:$0xff] }
 0x752   :  { %16674 = vmatprep.mubr.msk.f32.mxu0 %vm431_vm0, %v19491_v4  ;;  %v19512_v4 = vld [vmem:[%s26747_s4 + $0xa8] sm:$0xff] }
 0x755   :  { %16675 = vmatmul.mubr.msk.f32.vlgmr.msra.gmra.mrb[42].mxu0 %vm431_vm0, %v19492_v28  ;;  %v19513_v28 = vld [vmem:[%s26747_s4 + $0xb0] sm:$0xff] }
 0x756   :  { %16677 = vmatprep.mubr.msk.f32.mxu0 %vm431_vm0, %v19493_v55  ;;  %v19514_v55 = vld [vmem:[%s26747_s4 + $0xb8] sm:$0xff] }
 0x759   :  { %16678 = vmatmul.mubr.msk.f32.gmra.mrb[44].mxu0 %vm431_vm0, %v19494_v44  ;;  %v19515_v44 = vld [vmem:[%s26747_s4 + $0xc0] sm:$0xff] }
 0x75a   :  { %16680 = vmatprep.mubr.msk.f32.mxu0 %vm431_vm0, %v19495_v56  ;;  %v19516_v56 = vld [vmem:[%s26747_s4 + $0xc8] sm:$0xff] }
 0x75d   :  { %16681 = vmatmul.mubr.msk.f32.gmra.mrb[46].mxu0 %vm431_vm0, %v19496_v1  ;;  %v19517_v1 = vld [vmem:[%s26747_s4 + $0xd0] sm:$0xff] }
 0x75e   :  { %16683 = vmatprep.mubr.msk.f32.mxu0 %vm431_vm0, %v19497_v48  ;;  %v19518_v48 = vld [vmem:[%s26747_s4 + $0xd8] sm:$0xff] }
 0x761   :  { %16684 = vmatmul.mubr.msk.f32.gmra.mrb[48].mxu0 %vm431_vm0, %v19498_v47  ;;  %v19519_v47 = vld [vmem:[%s26747_s4 + $0xe0] sm:$0xff] }
 0x762   :  { %16686 = vmatprep.mubr.msk.f32.mxu0 %vm431_vm0, %v19499_v35  ;;  %v19520_v35 = vld [vmem:[%s26747_s4 + $0xe8] sm:$0xff] }
 0x765   :  { %16687 = vmatmul.mubr.msk.f32.gmra.mrb[50].mxu0 %vm431_vm0, %v19500_v20  ;;  %v19521_v20 = vld [vmem:[%s26747_s4 + $0xf0] sm:$0xff] }
 0x766   :  { %16689 = vmatprep.mubr.msk.f32.mxu0 %vm431_vm0, %v19501_v36  ;;  %v19522_v36 = vld [vmem:[%s26747_s4 + $0xf8] sm:$0xff] }
 0x769   :  { %16690 = vmatmul.mubr.msk.f32.gmra.mrb[52].mxu0 %vm431_vm0, %v19502_v19  ;;  %v19523_v19 = vld [vmem:[%s26747_s4 + $0x100] sm:$0xff] }
 0x76a   :  { %16692 = vmatprep.mubr.msk.f32.mxu0 %vm431_vm0, %v19503_v60  ;;  %v19524_v60 = vld [vmem:[%s26747_s4 + $0x108] sm:$0xff] }
 0x76d   :  { %16693 = vmatmul.mubr.msk.f32.gmra.mrb[54].mxu0 %vm431_vm0, %v19504_v14  ;;  %v19525_v14 = vld [vmem:[%s26747_s4 + $0x110] sm:$0xff] }
 0x76e   :  { %16695 = vmatprep.mubr.msk.f32.mxu0 %vm431_vm0, %v19505_v31  ;;  %v19526_v31 = vld [vmem:[%s26747_s4 + $0x118] sm:$0xff] }
 0x771   :  { %16696 = vmatmul.mubr.msk.f32.gmra.mrb[56].mxu0 %vm431_vm0, %v19506_v37 }
 0x772   :  { %16698 = vmatprep.mubr.msk.f32.mxu0 %vm431_vm0, %v19507_v0 }
 0x775   :  { %16699 = vmatmul.mubr.msk.f32.gmra.mrb[58].mxu0 %vm431_vm0, %v19508_v27 }
 0x776   :  { %16701 = vmatprep.mubr.msk.f32.mxu0 %vm431_vm0, %v19509_v51 }
 0x779   :  { %16702 = vmatmul.mubr.msk.f32.gmra.mrb[60].mxu0 %vm431_vm0, %v19510_v9 }
 0x77a   :  { %16704 = vmatprep.mubr.msk.f32.mxu0 %vm431_vm0, %v19511_v15 }
 0x77d   :  { %16705 = vmatmul.mubr.msk.f32.gmra.mrb[62].mxu0 %vm431_vm0, %v19512_v4 }
 0x77e   :  { %16707 = vmatprep.mubr.msk.f32.mxu0 %vm431_vm0, %v19513_v28 }
 0x781   :  { %16708 = vmatmul.mubr.msk.f32.gmra.mrb[64].mxu0 %vm431_vm0, %v19514_v55 }
 0x782   :  { %16710 = vmatprep.mubr.msk.f32.mxu0 %vm431_vm0, %v19515_v44 }
 0x785   :  { %16711 = vmatmul.mubr.msk.f32.gmra.mrb[66].mxu0 %vm431_vm0, %v19516_v56 }
 0x786   :  { %16713 = vmatprep.mubr.msk.f32.mxu0 %vm431_vm0, %v19517_v1 }
 0x789   :  { %16714 = vmatmul.mubr.msk.f32.gmra.mrb[68].mxu0 %vm431_vm0, %v19518_v48 }
 0x78a   :  { %16716 = vmatprep.mubr.msk.f32.mxu0 %vm431_vm0, %v19519_v47 }
 0x78d   :  { %16717 = vmatmul.mubr.msk.f32.gmra.mrb[70].mxu0 %vm431_vm0, %v19520_v35 }
 0x78e   :  { %16719 = vmatprep.mubr.msk.f32.mxu0 %vm431_vm0, %v19521_v20 }
 0x791   :  { %16720 = vmatmul.mubr.msk.f32.gmra.mrb[72].mxu0 %vm431_vm0, %v19522_v36 }
 0x792   :  { %16722 = vmatprep.mubr.msk.f32.mxu0 %vm431_vm0, %v19523_v19 }
 0x795   :  { %16723 = vmatmul.mubr.msk.f32.gmra.mrb[74].mxu0 %vm431_vm0, %v19524_v60 }
 0x796   :  { %16725 = vmatprep.mubr.msk.f32.mxu0 %vm431_vm0, %v19525_v14 }
 0x799   :  { %16726 = vmatmul.mubr.msk.f32.gmra.mrb[76].mxu0 %vm431_vm0, %v19526_v31 }
 0x79a   :  { %7149 = vmatprep.mubr.f32.mxu0 %v21992_v22 }
 0x828   :  { %v16676_v37 = vpop.f32.mrb[42].mxu0 }
 0x829   :  { %v5587_v0 = vadd.f32 %v16676_v37, %v21193_v41  ;;  %v5371_v27 = vpop.f32.mrb[43].mxu0 }
 0x82a   :  { %v5586_v51 = vadd.f32 %v5371_v27, %v21186_v38 }
 0x82b   :  { %v5623_v9 = vmax.f32 %v5587_v0, 0.0 }
 0x82c   :  { %v5622_v15 = vmax.f32 %v5586_v51, 0.0  ;;  %v16679_v4 = vpop.f32.mrb[44].mxu0 }
 0x82d   :  { %v5589_v28 = vadd.f32 %v16679_v4, %v21201_v45  ;;  %v5381_v55 = vpop.f32.mrb[45].mxu0 }
 0x82e   :  { %v22806_v44 = vpack.c.bf16 %v5623_v9, %v5622_v15  ;;  %v5588_v56 = vadd.f32 %v5381_v55, %v21203_v46 }
 0x82f   :  { %v5625_v1 = vmax.f32 %v5589_v28, 0.0 }
 0x830   :  { %v5624_v48 = vmax.f32 %v5588_v56, 0.0  ;;  %v16682_v47 = vpop.f32.mrb[46].mxu0 }
 0x831   :  { %v5591_v22 = vadd.f32 %v16682_v47, %v21209_v49  ;;  %v5391_v35 = vpop.f32.mrb[47].mxu0 }
 0x832   :  { %v22810_v20 = vpack.c.bf16 %v5625_v1, %v5624_v48  ;;  %v5590_v36 = vadd.f32 %v5391_v35, %v21211_v50 }
 0x833   :  { %v5627_v19 = vmax.f32 %v5591_v22, 0.0 }
 0x834   :  { %v5626_v60 = vmax.f32 %v5590_v36, 0.0  ;;  %v16685_v14 = vpop.f32.mrb[48].mxu0 }
 0x835   :  { %v5593_v31 = vadd.f32 %v16685_v14, %v21217_v53  ;;  %v5401_v37 = vpop.f32.mrb[49].mxu0 }
 0x836   :  { %v22814_v0 = vpack.c.bf16 %v5627_v19, %v5626_v60  ;;  %v5592_v27 = vadd.f32 %v5401_v37, %v21219_v54 }
 0x837   :  { %v5629_v51 = vmax.f32 %v5593_v31, 0.0 }
 0x838   :  { %v5628_v9 = vmax.f32 %v5592_v27, 0.0  ;;  %v16688_v15 = vpop.f32.mrb[50].mxu0 }
 0x839   :  { %v5595_v4 = vadd.f32 %v16688_v15, %v21225_v57  ;;  %v5411_v28 = vpop.f32.mrb[51].mxu0  ;;  %v26949_v57 = vld [vmem:[#allocation4_spill] sm:$0xff] }
 0x83a   :  { %v22818_v55 = vpack.c.bf16 %v5629_v51, %v5628_v9  ;;  %v5594_v56 = vadd.f32 %v5411_v28, %v21227_v58  ;;  %v26947_v58 = vld [vmem:[#allocation3_spill] sm:$0xff] }
 0x83b   :  { %v5631_v1 = vmax.f32 %v5595_v4, 0.0 }
 0x83c   :  { %v5630_v48 = vmax.f32 %v5594_v56, 0.0  ;;  %v16691_v47 = vpop.f32.mrb[52].mxu0  ;;  %v26945_v56 = vld [vmem:[#allocation26_spill] sm:$0xff] }
 0x83d   :  { %v5597_v22 = vadd.f32 %v16691_v47, %v21235_v3  ;;  %v5421_v35 = vpop.f32.mrb[53].mxu0 }
 0x83e   :  { %v22822_v36 = vpack.c.bf16 %v5631_v1, %v5630_v48  ;;  %v5596_v19 = vadd.f32 %v5421_v35, %v21237_v6  ;;  %v26946_v48 = vld [vmem:[#allocation27_spill] sm:$0xff] }
 0x83f   :  { %v5633_v60 = vmax.f32 %v5597_v22, 0.0 }
 0x840   :  { %v5632_v14 = vmax.f32 %v5596_v19, 0.0  ;;  %v16694_v31 = vpop.f32.mrb[54].mxu0 }
 0x841   :  { %v5599_v37 = vadd.f32 %v16694_v31, %v21255_v29  ;;  %v5431_v27 = vpop.f32.mrb[55].mxu0 }
 0x842   :  { %v22826_v51 = vpack.c.bf16 %v5633_v60, %v5632_v14  ;;  %v5598_v9 = vadd.f32 %v5431_v27, %v21257_v32  ;;  %v26948_v14 = vld [vmem:[#allocation2_spill] sm:$0xff] }
 0x843   :  { %v5635_v15 = vmax.f32 %v5599_v37, 0.0 }
 0x844   :  { %v5634_v4 = vmax.f32 %v5598_v9, 0.0  ;;  %v16697_v28 = vpop.f32.mrb[56].mxu0 }
 0x845   :  { %v5601_v47 = vadd.f32 %v16697_v28, %v26945_v56  ;;  %v5441_v3 = vpop.f32.mrb[57].mxu0 }
 0x846   :  { %v22830_v1 = vpack.c.bf16 %v5635_v15, %v5634_v4  ;;  %v5600_v35 = vadd.f32 %v5441_v3, %v26946_v48  ;;  %v26950_v4 = vld [vmem:[#allocation5_spill] sm:$0xff]  ;;  %v26951_v48 = vld [vmem:[#allocation6_spill] sm:$0xff] }
 0x847   :  { %v5637_v22 = vmax.f32 %v5601_v47, 0.0 }
 0x848   :  { %v5636_v19 = vmax.f32 %v5600_v35, 0.0  ;;  %v16700_v6 = vpop.f32.mrb[58].mxu0 }
 0x849   :  { %v5603_v31 = vadd.f32 %v16700_v6, %v26947_v58  ;;  %v5451_v29 = vpop.f32.mrb[59].mxu0 }
 0x84a   :  { %v22834_v60 = vpack.c.bf16 %v5637_v22, %v5636_v19  ;;  %v5602_v27 = vadd.f32 %v5451_v29, %v26948_v14  ;;  %v26952_v29 = vld [vmem:[#allocation7_spill] sm:$0xff] }
 0x84b   :  { %v5639_v37 = vmax.f32 %v5603_v31, 0.0 }
 0x84c   :  { %v5638_v9 = vmax.f32 %v5602_v27, 0.0  ;;  %v16703_v32 = vpop.f32.mrb[60].mxu0 }
 0x84d   :  { %v5605_v28 = vadd.f32 %v16703_v32, %v26949_v57  ;;  %v5461_v56 = vpop.f32.mrb[61].mxu0  ;;  %v26953_v32 = vld [vmem:[#allocation8_spill] sm:$0xff] }
 0x84e   :  { %v18080_v15 = vpack.c.bf16 %v5639_v37, %v5638_v9  ;;  %v5604_v54 = vadd.f32 %v5461_v56, %v26950_v4  ;;  %v26954_v56 = vld [vmem:[#allocation9_spill] sm:$0xff] }
 0x84f   :  { %v5641_v3 = vmax.f32 %v5605_v28, 0.0 }
 0x850   :  { %v5640_v47 = vmax.f32 %v5604_v54, 0.0  ;;  %v16706_v35 = vpop.f32.mrb[62].mxu0  ;;  %18081 = vmatprep.subr.bf16.mxu1 %v18080_v15 }
 0x851   :  { %v5607_v6 = vadd.f32 %v16706_v35, %v26951_v48  ;;  %v5471_v58 = vpop.f32.mrb[63].mxu0  ;;  %18083 = vmatpush3.bf16.msra.mxu1 %v22806_v44  ;;  %v26955_v44 = vld [vmem:[#allocation12_spill] sm:$0xff] }
 0x852   :  { %v18084_v22 = vpack.c.bf16 %v5641_v3, %v5640_v47  ;;  %v5606_v19 = vadd.f32 %v5471_v58, %v26952_v29 }
 0x853   :  { %v5643_v31 = vmax.f32 %v5607_v6, 0.0  ;;  %v26956_v6 = vld [vmem:[#allocation13_spill] sm:$0xff] }
 0x854   :  { %v5642_v27 = vmax.f32 %v5606_v19, 0.0  ;;  %v16709_v14 = vpop.f32.mrb[64].mxu0  ;;  %18085 = vmatprep.subr.bf16.mxu1 %v18084_v22 }
 0x855   :  { %v5609_v37 = vadd.f32 %v16709_v14, %v26953_v32  ;;  %v5481_v9 = vpop.f32.mrb[65].mxu0  ;;  %18087 = vmatpush3.bf16.msra.mxu1 %v22810_v20  ;;  %v26957_v20 = vld [vmem:[#allocation16_spill] sm:$0xff] }
 0x856   :  { %v18088_v54 = vpack.c.bf16 %v5643_v31, %v5642_v27  ;;  %v5608_v28 = vadd.f32 %v5481_v9, %v26954_v56  ;;  %v26958_v9 = vld [vmem:[#allocation17_spill] sm:$0xff] }
 0x857   :  { %v5645_v15 = vmax.f32 %v5609_v37, 0.0 }
 0x858   :  { %v5644_v35 = vmax.f32 %v5608_v28, 0.0  ;;  %v16712_v48 = vpop.f32.mrb[66].mxu0  ;;  %18089 = vmatprep.subr.bf16.mxu1 %v18088_v54 }
 0x859   :  { %v5611_v3 = vadd.f32 %v16712_v48, %v26955_v44  ;;  %v5491_v47 = vpop.f32.mrb[67].mxu0  ;;  %18091 = vmatpush3.bf16.msra.mxu1 %v22814_v0  ;;  %v26959_v0 = vld [vmem:[#allocation20_spill] sm:$0xff] }
 0x85a   :  { %v18092_v58 = vpack.c.bf16 %v5645_v15, %v5644_v35  ;;  %v5610_v22 = vadd.f32 %v5491_v47, %v26956_v6  ;;  %v26960_v47 = vld [vmem:[#allocation21_spill] sm:$0xff] }
 0x85b   :  { %v5647_v19 = vmax.f32 %v5611_v3, 0.0 }
 0x85c   :  { %v5646_v14 = vmax.f32 %v5610_v22, 0.0  ;;  %v16715_v32 = vpop.f32.mrb[68].mxu0  ;;  %18093 = vmatprep.subr.bf16.mxu1 %v18092_v58 }
 0x85d   :  { %v5613_v31 = vadd.f32 %v16715_v32, %v26957_v20  ;;  %v5501_v27 = vpop.f32.mrb[69].mxu0  ;;  %18095 = vmatpush3.bf16.msra.mxu1 %v22818_v55  ;;  %v26961_v55 = vld [vmem:[#allocation24_spill] sm:$0xff] }
 0x85e   :  { %v18096_v37 = vpack.c.bf16 %v5647_v19, %v5646_v14  ;;  %v5612_v54 = vadd.f32 %v5501_v27, %v26958_v9  ;;  %v26962_v27 = vld [vmem:[#allocation25_spill] sm:$0xff] }
 0x85f   :  { %v5649_v28 = vmax.f32 %v5613_v31, 0.0 }
 0x860   :  { %v5648_v48 = vmax.f32 %v5612_v54, 0.0  ;;  %v16718_v44 = vpop.f32.mrb[70].mxu0  ;;  %18097 = vmatprep.subr.bf16.mxu1 %v18096_v37 }
 0x861   :  { %v5615_v15 = vadd.f32 %v16718_v44, %v26959_v0  ;;  %v5511_v35 = vpop.f32.mrb[71].mxu0  ;;  %18099 = vmatpush3.bf16.msra.mxu1 %v22822_v36  ;;  %v26963_v36 = vld [vmem:[#allocation28_spill] sm:$0xff] }
 0x862   :  { %v18100_v3 = vpack.c.bf16 %v5649_v28, %v5648_v48  ;;  %v5614_v58 = vadd.f32 %v5511_v35, %v26960_v47  ;;  %v26964_v35 = vld [vmem:[#allocation29_spill] sm:$0xff] }
 0x863   :  { %v5651_v22 = vmax.f32 %v5615_v15, 0.0 }
 0x864   :  { %v5650_v32 = vmax.f32 %v5614_v58, 0.0  ;;  %v16721_v20 = vpop.f32.mrb[72].mxu0  ;;  %18101 = vmatprep.subr.bf16.mxu1 %v18100_v3 }
 0x865   :  { %v5617_v19 = vadd.f32 %v16721_v20, %v26961_v55  ;;  %v5521_v14 = vpop.f32.mrb[73].mxu0  ;;  %18103 = vmatpush3.bf16.msra.mxu1 %v22826_v51  ;;  %v26965_v51 = vld [vmem:[#allocation30_spill] sm:$0xff] }
 0x866   :  { %v18104_v31 = vpack.c.bf16 %v5651_v22, %v5650_v32  ;;  %v5616_v37 = vadd.f32 %v5521_v14, %v26962_v27  ;;  %v26966_v14 = vld [vmem:[#allocation31_spill] sm:$0xff] }
 0x867   :  { %v5653_v54 = vmax.f32 %v5617_v19, 0.0 }
 0x868   :  { %v5652_v44 = vmax.f32 %v5616_v37, 0.0  ;;  %v16724_v0 = vpop.f32.mrb[74].mxu0  ;;  %18105 = vmatprep.subr.bf16.mxu1 %v18104_v31 }
 0x869   :  { %v5619_v28 = vadd.f32 %v16724_v0, %v26963_v36  ;;  %v5531_v48 = vpop.f32.mrb[75].mxu0  ;;  %18107 = vmatpush3.bf16.msra.mxu1 %v22830_v1  ;;  %v19527_v1 = vld [vmem:[%s26748_s6] sm:$0xff] }
 0x86a   :  { %v18108_v15 = vpack.c.bf16 %v5653_v54, %v5652_v44  ;;  %v5618_v3 = vadd.f32 %v5531_v48, %v26964_v35  ;;  %v19528_v54 = vld [vmem:[%s26748_s6 + $0x20] sm:$0x1]  ;;  %v19530_v44 = vld [vmem:[%s26748_s6 + $0x10] sm:$0xff] }
 0x86b   :  { %v5655_v58 = vmax.f32 %v5619_v28, 0.0  ;;  %v19531_v28 = vld [vmem:[%s26748_s6 + $0x28] sm:$0x1]  ;;  %v19532_v48 = vld [vmem:[%s26749_s9] sm:$0xff] }
 0x86c   :  { %v5654_v20 = vmax.f32 %v5618_v3, 0.0  ;;  %v16727_v55 = vpop.f32.mrb[76].mxu0  ;;  %18109 = vmatprep.subr.bf16.mxu1 %v18108_v15 }
 0x86d   :  { %v5621_v22 = vadd.f32 %v16727_v55, %v26965_v51  ;;  %v5541_v32 = vpop.f32.mrb[77].mxu0  ;;  %18111 = vmatpush3.bf16.msra.mxu1 %v22834_v60  ;;  %v19529_v60 = vld [vmem:[%s26748_s6 + $0x18] sm:$0x1] }
 0x86e   :  { %v18112_v19 = vpack.c.bf16 %v5655_v58, %v5654_v20  ;;  %v5620_v31 = vadd.f32 %v5541_v32, %v26966_v14  ;;  %v26967_v32 = vld [vmem:[#allocation34_spill] sm:$0xff] }
 0x86f   :  { %v5657_v37 = vmax.f32 %v5621_v22, 0.0 }
 0x870   :  { %v5656_v0 = vmax.f32 %v5620_v31, 0.0  ;;  %5723 = vmatmul.mubr.f32.vlgmr.msra.gmra.mrb[42].mxu1 %v19527_v1  ;;  %18113 = vmatprep.subr.bf16.mxu1 %v18112_v19  ;;  %v26968_v1 = vld [vmem:[#allocation32_spill] sm:$0xff] }
 0x871   :  { %18115 = vmatpush3.bf16.msra.mxu1 %v18112_v19  ;;  %5727 = vmatprep.mubr.f32.mxu1 %v19528_v54  ;;  %v2346_v19 = vrot.slane %v26967_v32, 4 }
 0x872   :  { %v18116_v55 = vpack.c.bf16 %v5657_v37, %v5656_v0  ;;  %v22887_v37 = vadd.f32 %v22194_v23, %v21374_v2  ;;  %v22891_v0 = vadd.f32 %v22191_v43, %v21372_v62 }
 0x874   :  { %5728 = vmatmul.mubr.f32.gmra.mrb[44].mxu1 %v19529_v60  ;;  %18117 = vmatprep.subr.bf16.mxu1 %v18116_v55  ;;  %v26969_v60 = vld [vmem:[#allocation33_spill] sm:$0xff]  ;;  %v26864_v14 = vsub.f32 1.0, %v22887_v37 }
 0x875   :  { %18119 = vmatpush3.bf16.msra.mxu1 %v18116_v55  ;;  %16736 = vmatprep.mubr.msk.f32.mxu1 %vm2185_vm4, %v19530_v44 }
 0x878   :  { %16737 = vmatmul.mubr.msk.f32.vlgmr.msra.gmra.mrb[46].mxu1 %vm2185_vm4, %v19531_v28  ;;  %v13519_v28 = vld [vmem:[%s26750_s0 + $0x28] sm:$0x1] }
 0x879   :  { %16743 = vmatprep.mubr.msk.f32.mxu1 %vm431_vm0, %v19532_v48  ;;  %v13518_v48 = vld [vmem:[%s26750_s0 + $0x20] sm:$0xff] }
 0x943   :  { %v15026_v15 = vpop.f32.mrb[42].mxu1 }
 0x944   :  { %v15027_v3 = vpop.f32.mrb[43].mxu1 }
 0x945   :  { %v15028_v58 = vadd.f32 %v15027_v3, %v15026_v15  ;;  %v2347_v3 = vadd.f32 %v2346_v19, %v26967_v32 }
 0x947   :  { %v15029_v20 = vpop.f32.mrb[44].mxu1  ;;  %v5725_v44 = vadd.f32 %v15028_v58, %v26969_v60  ;;  %v2348_v35 = vrot.slane %v2347_v3, 2 }
 0x948   :  { %v15030_v22 = vpop.f32.mrb[45].mxu1 }
 0x949   :  { %v15031_v31 = vadd.f32 %v15030_v22, %v15029_v20 }
 0x94b   :  { %v5730_v54 = vadd.f32 %v15031_v31, %v26968_v1  ;;  %v16738_v55 = vpop.f32.mrb[46].mxu1  ;;  %v26865_v31 = vsub.f32 1.0, %v22891_v0 }
 0x94c   :  { %v5799_v15 = vpop.f32.mrb[47].mxu1 }
 0x94d   :  { %v5805_v20 = vadd.f32 %v16738_v55, %v5730_v54  ;;  %v5800_v22 = vadd.f32 %v5799_v15, %v5725_v44  ;;  %v2349_v44 = vadd.f32 %v2348_v35, %v2347_v3 }
 0x94f   :  { %v5811_v1 = vmul.f32 %v5805_v20, %v5805_v20  ;;  %v5825_v51 = vadd.f32 %v13519_v28, %v5805_v20  ;;  %v5810_v58 = vmul.f32 %v5800_v22, %v5800_v22  ;;  %v5824_v60 = vadd.f32 %v13518_v48, %v5800_v22 }
 0x950   :  { %v2350_v48 = vrot.slane %v2349_v44, 1 }
 0x951   :  { %v5815_v36 = vmul.f32 %v26864_v14, %v5811_v1  ;;  %v5826_v27 = vsel %vm540_vm1, %v5825_v51, -inf  ;;  %v5814_v47 = vmul.f32 %v26865_v31, %v5810_v58 }
 0x952   :  { %v5827_v32 = vmax.f32 %v5824_v60, %v5826_v27  ;;  %v2351_v14 = vadd.f32 %v2350_v48, %v2349_v44 }
 0x953   :  { %v5816_v19 = vsel %vm540_vm1, %v5815_v36, 0.0 }
 0x954   :  { %v5817_v54 = vadd.f32 %v5816_v19, %v5814_v47  ;;  %v5828_v55 = vrot.slane %v5827_v32, 4  ;;  %v4517_v31 = vmul.f32 0.01, %v2351_v14 }
 0x956   :  { %v5818_v15 = vrot.slane %v5817_v54, 4  ;;  %v5829_v9 = vmax.f32 %v5827_v32, %v5828_v55 }
 0x958   :  { %v5819_v28 = vadd.f32 %v5818_v15, %v5817_v54  ;;  %v5830_v20 = vrot.slane %v5829_v9, 2 }
 0x95a   :  { %v5820_v22 = vrot.slane %v5819_v28, 2  ;;  %v5831_v6 = vmax.f32 %v5829_v9, %v5830_v20  ;;  %v4487_v20 = vrot.slane %v22191_v43, 3 }
 0x95c   :  { %v5821_v56 = vadd.f32 %v5820_v22, %v5819_v28  ;;  %v5832_v1 = vrot.slane %v5831_v6, 1 }
 0x95e   :  { %v5822_v29 = vrot.slane %v5821_v56, 1  ;;  %v5833_v4 = vmax.f32 %v5831_v6, %v5832_v1 }
 0x960   :  { %v5823_v57 = vadd.f32 %v5822_v29, %v5821_v56  ;;  %v5834_v58 = vsub.f32 %v5824_v60, %v5833_v4  ;;  %v5835_v27 = vsub.f32 %v5825_v51, %v5833_v4  ;;  %v4469_v29 = vrot.slane %v22191_v43, 1 }
 0x962   :  { %v5836_v36 = vmul.f32 1.442695, %v5834_v58  ;;  %v5838_v47 = vmul.f32 1.442695, %v5835_v27  ;;  %v7373_v19 = vmul.f32 0.005, %v5823_v57  ;;  %v4471_v6 = vmul.f32 %v4469_v29, %v22191_v43 }
 0x963   :  { %v4472_v57 = vrot.slane %v22191_v43, 2  ;;  %v4489_v58 = vmul.f32 %v4487_v20, %v22191_v43  ;;  %v4498_v29 = vrot.slane %v22194_v23, 6 }
 0x964   :  { %19322 = vpow2.f32 %v5836_v36  ;;  %v22910_v35 = vadd.f32 %v7373_v19, %v4517_v31  ;;  %v4480_v31 = vrot.slane %v22194_v23, 2  ;;  %v4490_v19 = vrot.slane %v22191_v43, 6 }
 0x965   :  { %19324 = vpow2.f32 %v5838_v47  ;;  %v4474_v14 = vmul.f32 %v4472_v57, %v4471_v6 }
 0x966   :  { %v4482_v28 = vmul.f32 %v4480_v31, %v4471_v6  ;;  %v4500_v6 = vmul.f32 %v4498_v29, %v4489_v58 }
 0x967   :  { %v4476_v60 = vrot.slane %v4474_v14, 3 }
 0x968   :  { %v4484_v1 = vrot.slane %v4482_v28, 6  ;;  %v4510_v28 = vmul.f32 %v4472_v57, %v22191_v43 }
 0x969   :  { %v4478_v48 = vadd.f32 %v4476_v60, %v4474_v14 }
 0x96b   :  { %v4486_v47 = vadd.f32 %v4484_v1, %v4478_v48 }
 0x96e   :  { %v19323_v3 = vpop.eup %19322 }
 0x96f   :  { %v19325_v32 = vpop.eup %19324 }
 0x970   :  { %v5840_v9 = vsel %vm540_vm1, %v19325_v32, 0.0 }
 0x971   :  { %v5841_v54 = vadd.f32 %v19323_v3, %v5840_v9 }
 0x973   :  { %v5842_v55 = vrot.slane %v5841_v54, 4 }
 0x975   :  { %v5843_v44 = vadd.f32 %v5842_v55, %v5841_v54  ;;  %v4492_v55 = vmul.f32 %v4490_v19, %v4489_v58 }
 0x977   :  { %v5844_v15 = vrot.slane %v5843_v44, 2 }
 0x979   :  { %v5845_v56 = vadd.f32 %v5844_v15, %v5843_v44  ;;  %v4493_v15 = vadd.f32 %v4492_v55, %v4486_v47 }
 0x97b   :  { %v5846_v4 = vrot.slane %v5845_v56, 1 }
 0x97d   :  { %v5847_v51 = vadd.f32 %v5846_v4, %v5845_v56  ;;  %v4495_v4 = vrot.slane %v4492_v55, 1 }
 0x97f   :  { %19326 = vrcp.f32 %v5847_v51  ;;  %v4505_v51 = vrot.slane %v22191_v43, 4  ;;  %v4497_v60 = vadd.f32 %v4495_v4, %v4493_v15 }
 0x981   :  { %v4507_v31 = vmul.f32 %v4505_v51, %v22191_v43  ;;  %v4511_v47 = vmul.f32 %v4510_v28, %v4505_v51 }
 0x983   :  { %v4508_v1 = vmul.f32 %v4507_v31, %v22194_v23  ;;  %v4513_v55 = vrot.slane %v4511_v47, 2 }
 0x989   :  { %v19327_v22 = vpop.eup %19326 }
 0x98a   :  { %v5849_v27 = vmul.f32 %v19327_v22, %v19323_v3  ;;  %v5850_v36 = vmul.f32 %v19327_v22, %v19325_v32  ;;  %v4502_v32 = vrot.slane %v4500_v6, 2 }
 0x98c   :  { %v5851_v9 = vsel %vm540_vm1, %v5850_v36, -inf  ;;  %v4504_v48 = vadd.f32 %v4502_v32, %v4497_v60 }
 0x98d   :  { %v5852_v54 = vmax.f32 %v5849_v27, %v5851_v9 }
 0x98e   :  { %v4509_v19 = vadd.f32 %v4508_v1, %v4504_v48 }
 0x98f   :  { %v5853_v44 = vrot.slane %v5852_v54, 4 }
 0x990   :  { %v4515_v15 = vadd.f32 %v4513_v55, %v4509_v19 }
 0x991   :  { %v5854_v56 = vmax.f32 %v5852_v54, %v5853_v44 }
 0x993   :  { %v5855_v14 = vrot.slane %v5854_v56, 2 }
 0x995   :  { %v5856_v3 = vmax.f32 %v5854_v56, %v5855_v14  ;;  %v22929_v56 = vmax.f32 %v4515_v15, 0.0 }
 0x997   :  { %v5857_v20 = vrot.slane %v5856_v3, 1  ;;  %v5885_v14 = vadd.f32 %v22929_v56, %v22179_v40 }
 0x999   :  { %v5858_v22 = vmax.f32 %v5856_v3, %v5857_v20  ;;  %v5886_v3 = vsub.f32 1.0, %v5885_v14  ;;  %v19538_v14 = vld [vmem:[%s26749_s9 + $0x30] sm:$0xff] }
 0x99b   :  { %vm5859_vm9 = vcmp.eq.f32.partialorder %v5849_v27, %v5858_v22  ;;  %vm5860_vm10 = vcmp.eq.f32.partialorder %v5850_v36, %v5858_v22  ;;  %v5890_v1 = vrot.slane %v5886_v3, %v22185_v16  ;;  %v19540_v3 = vld [vmem:[%s26749_s9 + $0x40] sm:$0xff] }
 0x99c   :  { %v5861_v58 = vsel %vm5859_vm9, %v21360_v63, 9  ;;  %v5862_v9 = vsel %vm5860_vm10, %v21363_v11, 9 }
 0x99d   :  { %v5863_v54 = vsel %vm540_vm1, %v5862_v9, 2147483647 }
 0x99e   :  { %vm5864_vm11 = vcmp.lt.s32.totalorder %v5861_v58, %v5863_v54 }
 0x99f   :  { %v5865_v44 = vsel %vm5864_vm11, %v5861_v58, %v5863_v54  ;;  %v26970_v58 = vsub.f32 1.0, %v22891_v0  ;;  %v26971_v54 = vsub.f32 1.0, %v22887_v37  ;;  %v5950_v0 = vsub.f32 1.0, %v22194_v23 }
 0x9a0   :  { %v5866_v57 = vrot.slane %v5865_v44, 4 }
 0x9a2   :  { %vm5867_vm12 = vcmp.lt.s32.totalorder %v5865_v44, %v5866_v57 }
 0x9a3   :  { %v5868_v29 = vsel %vm5867_vm12, %v5865_v44, %v5866_v57 }
 0x9a4   :  { %v5869_v4 = vrot.slane %v5868_v29, 2 }
 0x9a6   :  { %vm5870_vm13 = vcmp.lt.s32.totalorder %v5868_v29, %v5869_v4 }
 0x9a7   :  { %v5871_v6 = vsel %vm5870_vm13, %v5868_v29, %v5869_v4  ;;  %v19534_v4 = vld [vmem:[%s26749_s9 + $0x10] sm:$0xff] }
 0x9a8   :  { %v5872_v51 = vrot.slane %v5871_v6, 1 }
 0x9aa   :  { %vm5873_vm14 = vcmp.lt.s32.totalorder %v5871_v6, %v5872_v51 }
 0x9ab   :  { %v5874_v60 = vsel %vm5873_vm14, %v5871_v6, %v5872_v51  ;;  %v19535_v6 = vld [vmem:[%s26749_s9 + $0x18] sm:$0xff]  ;;  %v19537_v51 = vld [vmem:[%s26749_s9 + $0x28] sm:$0xff] }
 0x9ac   :  { %vm5875_vm15 = vcmp.eq.s32.totalorder %v21360_v63, %v5874_v60  ;;  %vm5876_vm2 = vcmp.eq.s32.totalorder %v21363_v11, %v5874_v60  ;;  %v19539_v60 = vld [vmem:[%s26749_s9 + $0x38] sm:$0xff] }
 0x9ad   :  { %v13670_v32 = vsel %vm5875_vm15, 1.0, %v26944_v24  ;;  %v13671_v31 = vsel %vm5876_vm2, 1.0, %v26944_v24 }
 0x9ae   :  { %v5881_v28 = vsub.f32 %v13670_v32, %v5849_v27  ;;  %v5882_v20 = vsub.f32 %v13671_v31, %v5850_v36  ;;  %v19541_v32 = vld [vmem:[%s26749_s9 + $0x48] sm:$0xff]  ;;  %v19542_v31 = vld [vmem:[%s26749_s9 + $0x50] sm:$0xff] }
 0x9b0   :  { %v5883_v48 = vadd.f32 %v5881_v28, %v5849_v27  ;;  %v5884_v22 = vadd.f32 %v5882_v20, %v5850_v36  ;;  %v5949_v36 = vsub.f32 1.0, %v22191_v43  ;;  %v19543_v28 = vld [vmem:[%s26749_s9 + $0x58] sm:$0xff]  ;;  %v19544_v20 = vld [vmem:[%s26749_s9 + $0x60] sm:$0xff] }
 0x9b2   :  { %v5891_v47 = vmul.f32 %v5890_v1, %v5883_v48  ;;  %v5892_v19 = vmul.f32 %v5890_v1, %v5884_v22  ;;  %v19545_v48 = vld [vmem:[%s26749_s9 + $0x68] sm:$0xff]  ;;  %v19546_v22 = vld [vmem:[%s26749_s9 + $0x70] sm:$0xff]  ;;  %v19547_v1 = vld [vmem:[%s26749_s9 + $0x78] sm:$0xff] }
 0x9b4   :  { %v5893_v9 = vmul.f32 %v5891_v47, %v26970_v58  ;;  %v5894_v55 = vmul.f32 %v5892_v19, %v26971_v54  ;;  %v19548_v47 = vld [vmem:[%s26749_s9 + $0x80] sm:$0xff]  ;;  %v19549_v19 = vld [vmem:[%s26749_s9 + $0x88] sm:$0xff]  ;;  %v19550_v58 = vld [vmem:[%s26749_s9 + $0x90] sm:$0xff] }
 0x9b5   :  { %v19552_v54 = vld [vmem:[%s26749_s9 + $0xa0] sm:$0xff] }
 0x9b6   :  { %v22943_v44 = vadd.f32 %v5893_v9, %v21372_v62  ;;  %v22946_v15 = vadd.f32 %v5894_v55, %v21374_v2  ;;  %v22948_v57 = vpack.c.bf16 %v5894_v55, %v5893_v9  ;;  %v19533_v2 = vld [vmem:[%s26749_s9 + $0x8] sm:$0xff]  ;;  %v19551_v9 = vld [vmem:[%s26749_s9 + $0x98] sm:$0xff] }
 0x9b7   :  { %v19553_v55 = vld [vmem:[%s26749_s9 + $0xa8] sm:$0xff] }
 0x9b8   :  { %v22952_v27 = vpack.c.bf16 %v22946_v15, %v22943_v44  ;;  %v5951_v62 = vsub.f32 %v5949_v36, %v22943_v44  ;;  %v5952_v37 = vsub.f32 %v5950_v0, %v22946_v15  ;;  %v19554_v36 = vld [vmem:[%s26749_s9 + $0xb0] sm:$0xff]  ;;  %v19555_v0 = vld [vmem:[%s26749_s9 + $0xb8] sm:$0xff] }
 0x9ba   :  { %18122 = vmatprep.subr.msk.bf16.mxu1 %vm20417_vm3, %v22952_v27  ;;  %v22971_v29 = vpack.c.bf16 %v5952_v37, %v5951_v62  ;;  %v19556_v62 = vld [vmem:[%s26749_s9 + $0xc0] sm:$0xff]  ;;  %v19557_v37 = vld [vmem:[%s26749_s9 + $0xc8] sm:$0xff] }
 0x9bb   :  { %18125 = vmatpush3.bf16.msk.msra.mxu1 %vm20417_vm3, %v22952_v27 }
 0x9bc   :  { %18128 = vmatprep.subr.msk.bf16.mxu1 %vm20417_vm3, %v22198_v52 }
 0x9be   :  { %16744 = vmatmul.mubr.msk.f32.vlgmr.msra.gmra.mrb[48].mxu1 %vm431_vm0, %v19533_v2  ;;  %v19558_v2 = vld [vmem:[%s26749_s9 + $0xd0] sm:$0xff] }
 0x9bf   :  { %18131 = vmatpush3.bf16.msk.msra.mxu1 %vm20417_vm3, %v22198_v52  ;;  %16746 = vmatprep.mubr.msk.f32.mxu1 %vm431_vm0, %v19534_v4  ;;  %v19536_v52 = vld [vmem:[%s26749_s9 + $0x20] sm:$0xff]  ;;  %v19559_v4 = vld [vmem:[%s26749_s9 + $0xd8] sm:$0xff] }
 0x9c0   :  { %18134 = vmatprep.subr.msk.bf16.mxu1 %vm20417_vm3, %v22971_v29 }
 0x9c2   :  { %16747 = vmatmul.mubr.msk.f32.gmra.mrb[50].mxu1 %vm431_vm0, %v19535_v6  ;;  %v19560_v6 = vld [vmem:[%s26749_s9 + $0xe0] sm:$0xff] }
 0x9c3   :  { %16749 = vmatprep.mubr.msk.f32.mxu1 %vm431_vm0, %v19536_v52  ;;  %v19561_v52 = vld [vmem:[%s26749_s9 + $0xe8] sm:$0xff] }
 0x9c6   :  { %16750 = vmatmul.mubr.msk.f32.gmra.mrb[52].mxu1 %vm431_vm0, %v19537_v51  ;;  %v19562_v51 = vld [vmem:[%s26749_s9 + $0xf0] sm:$0xff] }
 0x9c7   :  { %16752 = vmatprep.mubr.msk.f32.mxu1 %vm431_vm0, %v19538_v14  ;;  %v19563_v14 = vld [vmem:[%s26749_s9 + $0xf8] sm:$0xff] }
 0x9ca   :  { %16753 = vmatmul.mubr.msk.f32.gmra.mrb[54].mxu1 %vm431_vm0, %v19539_v60  ;;  %v19564_v60 = vld [vmem:[%s26749_s9 + $0x100] sm:$0xff] }
 0x9cb   :  { %16755 = vmatprep.mubr.msk.f32.mxu1 %vm431_vm0, %v19540_v3  ;;  %v19565_v3 = vld [vmem:[%s26749_s9 + $0x108] sm:$0xff] }
 0x9ce   :  { %16756 = vmatmul.mubr.msk.f32.gmra.mrb[56].mxu1 %vm431_vm0, %v19541_v32  ;;  %v19566_v32 = vld [vmem:[%s26749_s9 + $0x110] sm:$0xff] }
 0x9cf   :  { %16758 = vmatprep.mubr.msk.f32.mxu1 %vm431_vm0, %v19542_v31  ;;  %v19567_v31 = vld [vmem:[%s26749_s9 + $0x118] sm:$0xff] }
 0x9d2   :  { %16759 = vmatmul.mubr.msk.f32.gmra.mrb[58].mxu1 %vm431_vm0, %v19543_v28  ;;  %v19568_v28 = vld [vmem:[%s26751_s8] sm:$0xff] }
 0x9d3   :  { %16761 = vmatprep.mubr.msk.f32.mxu1 %vm431_vm0, %v19544_v20  ;;  %v19569_v20 = vld [vmem:[%s26751_s8 + $0x8] sm:$0xff] }
 0x9d6   :  { %16762 = vmatmul.mubr.msk.f32.gmra.mrb[60].mxu1 %vm431_vm0, %v19545_v48  ;;  %v19570_v48 = vld [vmem:[%s26751_s8 + $0x10] sm:$0xff] }
 0x9d7   :  { %16764 = vmatprep.mubr.msk.f32.mxu1 %vm431_vm0, %v19546_v22  ;;  %v19571_v22 = vld [vmem:[%s26751_s8 + $0x18] sm:$0xff] }
 0x9da   :  { %16765 = vmatmul.mubr.msk.f32.gmra.mrb[62].mxu1 %vm431_vm0, %v19547_v1  ;;  %v19573_v1 = vld [vmem:[%s26751_s8 + $0x28] sm:$0xff] }
 0x9db   :  { %16767 = vmatprep.mubr.msk.f32.mxu1 %vm431_vm0, %v19548_v47  ;;  %v19574_v47 = vld [vmem:[%s26751_s8 + $0x30] sm:$0xff] }
 0x9de   :  { %16768 = vmatmul.mubr.msk.f32.gmra.mrb[64].mxu1 %vm431_vm0, %v19549_v19  ;;  %v19575_v19 = vld [vmem:[%s26751_s8 + $0x38] sm:$0xff] }
 0x9df   :  { %16770 = vmatprep.mubr.msk.f32.mxu1 %vm431_vm0, %v19550_v58  ;;  %v19576_v58 = vld [vmem:[%s26751_s8 + $0x40] sm:$0xff] }
 0x9e2   :  { %16771 = vmatmul.mubr.msk.f32.gmra.mrb[66].mxu1 %vm431_vm0, %v19551_v9  ;;  %v19577_v9 = vld [vmem:[%s26751_s8 + $0x48] sm:$0xff] }
 0x9e3   :  { %16773 = vmatprep.mubr.msk.f32.mxu1 %vm431_vm0, %v19552_v54  ;;  %v19578_v54 = vld [vmem:[%s26751_s8 + $0x50] sm:$0xff] }
 0x9e6   :  { %16774 = vmatmul.mubr.msk.f32.gmra.mrb[68].mxu1 %vm431_vm0, %v19553_v55  ;;  %v19579_v55 = vld [vmem:[%s26751_s8 + $0x58] sm:$0xff] }
 0x9e7   :  { %16776 = vmatprep.mubr.msk.f32.mxu1 %vm431_vm0, %v19554_v36  ;;  %v19580_v36 = vld [vmem:[%s26751_s8 + $0x60] sm:$0xff] }
 0x9ea   :  { %16777 = vmatmul.mubr.msk.f32.gmra.mrb[70].mxu1 %vm431_vm0, %v19555_v0  ;;  %v19581_v0 = vld [vmem:[%s26751_s8 + $0x68] sm:$0xff] }
 0x9eb   :  { %16779 = vmatprep.mubr.msk.f32.mxu1 %vm431_vm0, %v19556_v62  ;;  %v19582_v62 = vld [vmem:[%s26751_s8 + $0x70] sm:$0xff] }
 0x9ee   :  { %16780 = vmatmul.mubr.msk.f32.gmra.mrb[72].mxu1 %vm431_vm0, %v19557_v37  ;;  %v19583_v37 = vld [vmem:[%s26751_s8 + $0x78] sm:$0xff] }
 0x9ef   :  { %16782 = vmatprep.mubr.msk.f32.mxu1 %vm431_vm0, %v19558_v2  ;;  %v19584_v2 = vld [vmem:[%s26751_s8 + $0x80] sm:$0xff] }
 0x9f2   :  { %16783 = vmatmul.mubr.msk.f32.gmra.mrb[74].mxu1 %vm431_vm0, %v19559_v4  ;;  %v19585_v4 = vld [vmem:[%s26751_s8 + $0x88] sm:$0xff] }
 0x9f3   :  { %16785 = vmatprep.mubr.msk.f32.mxu1 %vm431_vm0, %v19560_v6  ;;  %v19586_v6 = vld [vmem:[%s26751_s8 + $0x90] sm:$0xff] }
 0x9f6   :  { %16786 = vmatmul.mubr.msk.f32.gmra.mrb[76].mxu1 %vm431_vm0, %v19561_v52  ;;  %v19587_v52 = vld [vmem:[%s26751_s8 + $0x98] sm:$0xff] }
 0x9f7   :  { %16788 = vmatprep.mubr.msk.f32.mxu1 %vm431_vm0, %v19562_v51  ;;  %v19588_v51 = vld [vmem:[%s26751_s8 + $0xa0] sm:$0xff] }
 0x9fa   :  { %16789 = vmatmul.mubr.msk.f32.gmra.mrb[78].mxu1 %vm431_vm0, %v19563_v14  ;;  %v19589_v14 = vld [vmem:[%s26751_s8 + $0xa8] sm:$0xff] }
 0x9fb   :  { %16791 = vmatprep.mubr.msk.f32.mxu1 %vm431_vm0, %v19564_v60  ;;  %v19590_v60 = vld [vmem:[%s26751_s8 + $0xb0] sm:$0xff] }
 0x9fe   :  { %16792 = vmatmul.mubr.msk.f32.gmra.mrb[80].mxu1 %vm431_vm0, %v19565_v3  ;;  %v19591_v3 = vld [vmem:[%s26751_s8 + $0xb8] sm:$0xff] }
 0x9ff   :  { %16794 = vmatprep.mubr.msk.f32.mxu1 %vm431_vm0, %v19566_v32  ;;  %v19592_v32 = vld [vmem:[%s26751_s8 + $0xc0] sm:$0xff] }
 0xa02   :  { %16795 = vmatmul.mubr.msk.f32.gmra.mrb[82].mxu1 %vm431_vm0, %v19567_v31  ;;  %v19593_v31 = vld [vmem:[%s26751_s8 + $0xc8] sm:$0xff] }
 0xa03   :  { %16801 = vmatprep.mubr.msk.f32.mxu1 %vm431_vm0, %v19568_v28  ;;  %v19594_v28 = vld [vmem:[%s26751_s8 + $0xd0] sm:$0xff] }
 0xa06   :  { %16802 = vmatmul.mubr.msk.f32.vlgmr.msra.gmra.mrb[48].mxu1 %vm431_vm0, %v19569_v20  ;;  %v19595_v20 = vld [vmem:[%s26751_s8 + $0xd8] sm:$0xff] }
 0xa07   :  { %18137 = vmatpush3.bf16.msk.msra.mxu1 %vm20417_vm3, %v22971_v29  ;;  %16804 = vmatprep.mubr.msk.f32.mxu1 %vm431_vm0, %v19570_v48  ;;  %v19572_v29 = vld [vmem:[%s26751_s8 + $0x20] sm:$0xff] }
 0xa08   :  { %18140 = vmatprep.subr.msk.bf16.mxu1 %vm20417_vm3, %v22948_v57  ;;  %v19596_v48 = vld [vmem:[%s26751_s8 + $0xe0] sm:$0xff] }
 0xa0a   :  { %16805 = vmatmul.mubr.msk.f32.gmra.mrb[50].mxu1 %vm431_vm0, %v19571_v22  ;;  %v19597_v22 = vld [vmem:[%s26751_s8 + $0xe8] sm:$0xff] }
 0xa0b   :  { %16807 = vmatprep.mubr.msk.f32.mxu1 %vm431_vm0, %v19572_v29  ;;  %v19598_v29 = vld [vmem:[%s26751_s8 + $0xf0] sm:$0xff] }
 0xa0e   :  { %16808 = vmatmul.mubr.msk.f32.gmra.mrb[52].mxu1 %vm431_vm0, %v19573_v1  ;;  %v19599_v1 = vld [vmem:[%s26751_s8 + $0xf8] sm:$0xff] }
 0xa0f   :  { %16810 = vmatprep.mubr.msk.f32.mxu1 %vm431_vm0, %v19574_v47  ;;  %v19600_v47 = vld [vmem:[%s26751_s8 + $0x100] sm:$0xff] }
 0xa12   :  { %16811 = vmatmul.mubr.msk.f32.gmra.mrb[54].mxu1 %vm431_vm0, %v19575_v19  ;;  %v19601_v19 = vld [vmem:[%s26751_s8 + $0x108] sm:$0xff] }
 0xa13   :  { %16813 = vmatprep.mubr.msk.f32.mxu1 %vm431_vm0, %v19576_v58  ;;  %v19602_v58 = vld [vmem:[%s26751_s8 + $0x110] sm:$0xff] }
 0xa16   :  { %16814 = vmatmul.mubr.msk.f32.gmra.mrb[56].mxu1 %vm431_vm0, %v19577_v9  ;;  %v19603_v9 = vld [vmem:[%s26751_s8 + $0x118] sm:$0xff] }
 0xa17   :  { %16816 = vmatprep.mubr.msk.f32.mxu1 %vm431_vm0, %v19578_v54  ;;  %v19604_v54 = vld [vmem:[%s26752_s10] sm:$0xff] }
 0xa1a   :  { %16817 = vmatmul.mubr.msk.f32.gmra.mrb[58].mxu1 %vm431_vm0, %v19579_v55  ;;  %v19605_v55 = vld [vmem:[%s26752_s10 + $0x8] sm:$0xff] }
 0xa1b   :  { %16819 = vmatprep.mubr.msk.f32.mxu1 %vm431_vm0, %v19580_v36  ;;  %v19606_v36 = vld [vmem:[%s26752_s10 + $0x10] sm:$0xff] }
 0xa1e   :  { %16820 = vmatmul.mubr.msk.f32.gmra.mrb[60].mxu1 %vm431_vm0, %v19581_v0  ;;  %v19607_v0 = vld [vmem:[%s26752_s10 + $0x18] sm:$0xff] }
 0xa1f   :  { %16822 = vmatprep.mubr.msk.f32.mxu1 %vm431_vm0, %v19582_v62  ;;  %v19608_v62 = vld [vmem:[%s26752_s10 + $0x20] sm:$0xff] }
 0xa22   :  { %16823 = vmatmul.mubr.msk.f32.gmra.mrb[62].mxu1 %vm431_vm0, %v19583_v37  ;;  %v19610_v37 = vld [vmem:[%s26752_s10 + $0x30] sm:$0xff] }
 0xa23   :  { %16825 = vmatprep.mubr.msk.f32.mxu1 %vm431_vm0, %v19584_v2  ;;  %v19611_v2 = vld [vmem:[%s26752_s10 + $0x38] sm:$0xff] }
 0xa26   :  { %16826 = vmatmul.mubr.msk.f32.gmra.mrb[64].mxu1 %vm431_vm0, %v19585_v4  ;;  %v19612_v4 = vld [vmem:[%s26752_s10 + $0x40] sm:$0xff] }
 0xa27   :  { %16828 = vmatprep.mubr.msk.f32.mxu1 %vm431_vm0, %v19586_v6  ;;  %v19613_v6 = vld [vmem:[%s26752_s10 + $0x48] sm:$0xff] }
 0xa2a   :  { %16829 = vmatmul.mubr.msk.f32.gmra.mrb[66].mxu1 %vm431_vm0, %v19587_v52  ;;  %v19614_v52 = vld [vmem:[%s26752_s10 + $0x50] sm:$0xff] }
 0xa2b   :  { %16831 = vmatprep.mubr.msk.f32.mxu1 %vm431_vm0, %v19588_v51  ;;  %v19615_v51 = vld [vmem:[%s26752_s10 + $0x58] sm:$0xff] }
 0xa2e   :  { %16832 = vmatmul.mubr.msk.f32.gmra.mrb[68].mxu1 %vm431_vm0, %v19589_v14  ;;  %v19616_v14 = vld [vmem:[%s26752_s10 + $0x60] sm:$0xff] }
 0xa2f   :  { %16834 = vmatprep.mubr.msk.f32.mxu1 %vm431_vm0, %v19590_v60  ;;  %v19617_v60 = vld [vmem:[%s26752_s10 + $0x68] sm:$0xff] }
 0xa32   :  { %16835 = vmatmul.mubr.msk.f32.gmra.mrb[70].mxu1 %vm431_vm0, %v19591_v3  ;;  %v19618_v3 = vld [vmem:[%s26752_s10 + $0x70] sm:$0xff] }
 0xa33   :  { %16837 = vmatprep.mubr.msk.f32.mxu1 %vm431_vm0, %v19592_v32  ;;  %v19619_v32 = vld [vmem:[%s26752_s10 + $0x78] sm:$0xff] }
 0xa36   :  { %16838 = vmatmul.mubr.msk.f32.gmra.mrb[72].mxu1 %vm431_vm0, %v19593_v31  ;;  %v19620_v31 = vld [vmem:[%s26752_s10 + $0x80] sm:$0xff] }
 0xa37   :  { %16840 = vmatprep.mubr.msk.f32.mxu1 %vm431_vm0, %v19594_v28  ;;  %v19621_v28 = vld [vmem:[%s26752_s10 + $0x88] sm:$0xff] }
 0xa3a   :  { %16841 = vmatmul.mubr.msk.f32.gmra.mrb[74].mxu1 %vm431_vm0, %v19595_v20  ;;  %v19622_v20 = vld [vmem:[%s26752_s10 + $0x90] sm:$0xff] }
 0xa3b   :  { %16843 = vmatprep.mubr.msk.f32.mxu1 %vm431_vm0, %v19596_v48  ;;  %v19623_v48 = vld [vmem:[%s26752_s10 + $0x98] sm:$0xff] }
 0xa3e   :  { %16844 = vmatmul.mubr.msk.f32.gmra.mrb[76].mxu1 %vm431_vm0, %v19597_v22  ;;  %v19624_v22 = vld [vmem:[%s26752_s10 + $0xa0] sm:$0xff] }
 0xa3f   :  { %16846 = vmatprep.mubr.msk.f32.mxu1 %vm431_vm0, %v19598_v29  ;;  %v19625_v29 = vld [vmem:[%s26752_s10 + $0xa8] sm:$0xff] }
 0xa42   :  { %16847 = vmatmul.mubr.msk.f32.gmra.mrb[78].mxu1 %vm431_vm0, %v19599_v1  ;;  %v19626_v1 = vld [vmem:[%s26752_s10 + $0xb0] sm:$0xff] }
 0xa43   :  { %16849 = vmatprep.mubr.msk.f32.mxu1 %vm431_vm0, %v19600_v47  ;;  %v19627_v47 = vld [vmem:[%s26752_s10 + $0xb8] sm:$0xff] }
 0xa46   :  { %16850 = vmatmul.mubr.msk.f32.gmra.mrb[80].mxu1 %vm431_vm0, %v19601_v19  ;;  %v19628_v19 = vld [vmem:[%s26752_s10 + $0xc0] sm:$0xff] }
 0xa47   :  { %16852 = vmatprep.mubr.msk.f32.mxu1 %vm431_vm0, %v19602_v58  ;;  %v19629_v58 = vld [vmem:[%s26752_s10 + $0xc8] sm:$0xff] }
 0xa4a   :  { %16853 = vmatmul.mubr.msk.f32.gmra.mrb[82].mxu1 %vm431_vm0, %v19603_v9  ;;  %v19630_v9 = vld [vmem:[%s26752_s10 + $0xd0] sm:$0xff] }
 0xa4b   :  { %16859 = vmatprep.mubr.msk.f32.mxu1 %vm431_vm0, %v19604_v54  ;;  %v19631_v54 = vld [vmem:[%s26752_s10 + $0xd8] sm:$0xff] }
 0xa4e   :  { %16860 = vmatmul.mubr.msk.f32.vlgmr.msra.gmra.mrb[48].mxu1 %vm431_vm0, %v19605_v55  ;;  %v19632_v55 = vld [vmem:[%s26752_s10 + $0xe0] sm:$0xff] }
 0xa4f   :  { %18143 = vmatpush3.bf16.msk.msra.mxu1 %vm20417_vm3, %v22948_v57  ;;  %16862 = vmatprep.mubr.msk.f32.mxu1 %vm431_vm0, %v19606_v36  ;;  %v19609_v57 = vld [vmem:[%s26752_s10 + $0x28] sm:$0xff] }
 0xa50   :  { %v19633_v36 = vld [vmem:[%s26752_s10 + $0xe8] sm:$0xff] }
 0xa52   :  { %16863 = vmatmul.mubr.msk.f32.gmra.mrb[50].mxu1 %vm431_vm0, %v19607_v0  ;;  %v19634_v0 = vld [vmem:[%s26752_s10 + $0xf0] sm:$0xff] }
 0xa53   :  { %16865 = vmatprep.mubr.msk.f32.mxu1 %vm431_vm0, %v19608_v62  ;;  %v19635_v62 = vld [vmem:[%s26752_s10 + $0xf8] sm:$0xff] }
 0xa56   :  { %16866 = vmatmul.mubr.msk.f32.gmra.mrb[52].mxu1 %vm431_vm0, %v19609_v57  ;;  %v19636_v57 = vld [vmem:[%s26752_s10 + $0x100] sm:$0xff] }
 0xa57   :  { %16868 = vmatprep.mubr.msk.f32.mxu1 %vm431_vm0, %v19610_v37  ;;  %v19637_v37 = vld [vmem:[%s26752_s10 + $0x108] sm:$0xff] }
 0xa5a   :  { %16869 = vmatmul.mubr.msk.f32.gmra.mrb[54].mxu1 %vm431_vm0, %v19611_v2  ;;  %v19638_v2 = vld [vmem:[%s26752_s10 + $0x110] sm:$0xff] }
 0xa5b   :  { %16871 = vmatprep.mubr.msk.f32.mxu1 %vm431_vm0, %v19612_v4  ;;  %v19639_v4 = vld [vmem:[%s26752_s10 + $0x118] sm:$0xff] }
 0xa5e   :  { %16872 = vmatmul.mubr.msk.f32.gmra.mrb[56].mxu1 %vm431_vm0, %v19613_v6  ;;  %v19640_v6 = vld [vmem:[%s26753_s11] sm:$0xff] }
 0xa5f   :  { %16874 = vmatprep.mubr.msk.f32.mxu1 %vm431_vm0, %v19614_v52  ;;  %v19641_v52 = vld [vmem:[%s26753_s11 + $0x8] sm:$0xff] }
 0xa62   :  { %16875 = vmatmul.mubr.msk.f32.gmra.mrb[58].mxu1 %vm431_vm0, %v19615_v51  ;;  %v19642_v51 = vld [vmem:[%s26753_s11 + $0x10] sm:$0xff] }
 0xa63   :  { %16877 = vmatprep.mubr.msk.f32.mxu1 %vm431_vm0, %v19616_v14  ;;  %v19643_v14 = vld [vmem:[%s26753_s11 + $0x18] sm:$0xff] }
 0xa66   :  { %16878 = vmatmul.mubr.msk.f32.gmra.mrb[60].mxu1 %vm431_vm0, %v19617_v60  ;;  %v19644_v60 = vld [vmem:[%s26753_s11 + $0x20] sm:$0xff] }
 0xa67   :  { %16880 = vmatprep.mubr.msk.f32.mxu1 %vm431_vm0, %v19618_v3  ;;  %v19645_v3 = vld [vmem:[%s26753_s11 + $0x28] sm:$0xff] }
 0xa6a   :  { %16881 = vmatmul.mubr.msk.f32.gmra.mrb[62].mxu1 %vm431_vm0, %v19619_v32  ;;  %v19646_v32 = vld [vmem:[%s26753_s11 + $0x30] sm:$0xff] }
 0xa6b   :  { %16883 = vmatprep.mubr.msk.f32.mxu1 %vm431_vm0, %v19620_v31  ;;  %v19647_v31 = vld [vmem:[%s26753_s11 + $0x38] sm:$0xff] }
 0xa6e   :  { %16884 = vmatmul.mubr.msk.f32.gmra.mrb[64].mxu1 %vm431_vm0, %v19621_v28  ;;  %v19648_v28 = vld [vmem:[%s26753_s11 + $0x40] sm:$0xff] }
 0xa6f   :  { %16886 = vmatprep.mubr.msk.f32.mxu1 %vm431_vm0, %v19622_v20  ;;  %v19649_v20 = vld [vmem:[%s26753_s11 + $0x48] sm:$0xff] }
 0xa72   :  { %16887 = vmatmul.mubr.msk.f32.gmra.mrb[66].mxu1 %vm431_vm0, %v19623_v48  ;;  %v19650_v48 = vld [vmem:[%s26753_s11 + $0x50] sm:$0xff] }
 0xa73   :  { %16889 = vmatprep.mubr.msk.f32.mxu1 %vm431_vm0, %v19624_v22  ;;  %v19651_v22 = vld [vmem:[%s26753_s11 + $0x58] sm:$0xff] }
 0xa76   :  { %16890 = vmatmul.mubr.msk.f32.gmra.mrb[68].mxu1 %vm431_vm0, %v19625_v29  ;;  %v19652_v29 = vld [vmem:[%s26753_s11 + $0x60] sm:$0xff] }
 0xa77   :  { %16892 = vmatprep.mubr.msk.f32.mxu1 %vm431_vm0, %v19626_v1  ;;  %v19653_v1 = vld [vmem:[%s26753_s11 + $0x68] sm:$0xff] }
 0xa7a   :  { %16893 = vmatmul.mubr.msk.f32.gmra.mrb[70].mxu1 %vm431_vm0, %v19627_v47  ;;  %v19654_v47 = vld [vmem:[%s26753_s11 + $0x70] sm:$0xff] }
 0xa7b   :  { %16895 = vmatprep.mubr.msk.f32.mxu1 %vm431_vm0, %v19628_v19  ;;  %v19655_v19 = vld [vmem:[%s26753_s11 + $0x78] sm:$0xff] }
 0xa7e   :  { %16896 = vmatmul.mubr.msk.f32.gmra.mrb[72].mxu1 %vm431_vm0, %v19629_v58  ;;  %v19656_v58 = vld [vmem:[%s26753_s11 + $0x80] sm:$0xff] }
 0xa7f   :  { %16898 = vmatprep.mubr.msk.f32.mxu1 %vm431_vm0, %v19630_v9  ;;  %v19657_v9 = vld [vmem:[%s26753_s11 + $0x88] sm:$0xff] }
 0xa82   :  { %16899 = vmatmul.mubr.msk.f32.gmra.mrb[74].mxu1 %vm431_vm0, %v19631_v54  ;;  %v19658_v54 = vld [vmem:[%s26753_s11 + $0x90] sm:$0xff] }
 0xa83   :  { %16901 = vmatprep.mubr.msk.f32.mxu1 %vm431_vm0, %v19632_v55  ;;  %v19659_v55 = vld [vmem:[%s26753_s11 + $0x98] sm:$0xff] }
 0xa86   :  { %16902 = vmatmul.mubr.msk.f32.gmra.mrb[76].mxu1 %vm431_vm0, %v19633_v36  ;;  %v19660_v36 = vld [vmem:[%s26753_s11 + $0xa0] sm:$0xff] }
 0xa87   :  { %16904 = vmatprep.mubr.msk.f32.mxu1 %vm431_vm0, %v19634_v0  ;;  %v19661_v0 = vld [vmem:[%s26753_s11 + $0xa8] sm:$0xff] }
 0xa8a   :  { %16905 = vmatmul.mubr.msk.f32.gmra.mrb[78].mxu1 %vm431_vm0, %v19635_v62  ;;  %v19662_v62 = vld [vmem:[%s26753_s11 + $0xb0] sm:$0xff] }
 0xa8b   :  { %16907 = vmatprep.mubr.msk.f32.mxu1 %vm431_vm0, %v19636_v57  ;;  %v19663_v57 = vld [vmem:[%s26753_s11 + $0xb8] sm:$0xff] }
 0xa8e   :  { %16908 = vmatmul.mubr.msk.f32.gmra.mrb[80].mxu1 %vm431_vm0, %v19637_v37  ;;  %v19664_v37 = vld [vmem:[%s26753_s11 + $0xc0] sm:$0xff] }
 0xa8f   :  { %16910 = vmatprep.mubr.msk.f32.mxu1 %vm431_vm0, %v19638_v2  ;;  %v19665_v2 = vld [vmem:[%s26753_s11 + $0xc8] sm:$0xff] }
 0xa92   :  { %16911 = vmatmul.mubr.msk.f32.gmra.mrb[82].mxu1 %vm431_vm0, %v19639_v4  ;;  %v19666_v4 = vld [vmem:[%s26753_s11 + $0xd0] sm:$0xff] }
 0xa93   :  { %16917 = vmatprep.mubr.msk.f32.mxu1 %vm431_vm0, %v19640_v6  ;;  %v19667_v6 = vld [vmem:[%s26753_s11 + $0xd8] sm:$0xff] }
 0xa96   :  { %16918 = vmatmul.mubr.msk.f32.vlgmr.msra.gmra.mrb[48].mxu1 %vm431_vm0, %v19641_v52  ;;  %v19668_v52 = vld [vmem:[%s26753_s11 + $0xe0] sm:$0xff] }
 0xa97   :  { %16920 = vmatprep.mubr.msk.f32.mxu1 %vm431_vm0, %v19642_v51  ;;  %v19669_v51 = vld [vmem:[%s26753_s11 + $0xe8] sm:$0xff] }
 0xa9a   :  { %16921 = vmatmul.mubr.msk.f32.gmra.mrb[50].mxu1 %vm431_vm0, %v19643_v14  ;;  %v19670_v14 = vld [vmem:[%s26753_s11 + $0xf0] sm:$0xff] }
 0xa9b   :  { %16923 = vmatprep.mubr.msk.f32.mxu1 %vm431_vm0, %v19644_v60  ;;  %v19671_v60 = vld [vmem:[%s26753_s11 + $0xf8] sm:$0xff] }
 0xa9e   :  { %16924 = vmatmul.mubr.msk.f32.gmra.mrb[52].mxu1 %vm431_vm0, %v19645_v3  ;;  %v19672_v3 = vld [vmem:[%s26753_s11 + $0x100] sm:$0xff] }
 0xa9f   :  { %16926 = vmatprep.mubr.msk.f32.mxu1 %vm431_vm0, %v19646_v32  ;;  %v19673_v32 = vld [vmem:[%s26753_s11 + $0x108] sm:$0xff] }
 0xaa2   :  { %16927 = vmatmul.mubr.msk.f32.gmra.mrb[54].mxu1 %vm431_vm0, %v19647_v31  ;;  %v19674_v31 = vld [vmem:[%s26753_s11 + $0x110] sm:$0xff] }
 0xaa3   :  { %16929 = vmatprep.mubr.msk.f32.mxu1 %vm431_vm0, %v19648_v28  ;;  %v19675_v28 = vld [vmem:[%s26753_s11 + $0x118] sm:$0xff] }
 0xaa6   :  { %16930 = vmatmul.mubr.msk.f32.gmra.mrb[56].mxu1 %vm431_vm0, %v19649_v20  ;;  %v19676_v20 = vld [vmem:[%s26748_s6 + $0x8] sm:$0xff] }
 0xaa7   :  { %16932 = vmatprep.mubr.msk.f32.mxu1 %vm431_vm0, %v19650_v48 }
 0xaaa   :  { %16933 = vmatmul.mubr.msk.f32.gmra.mrb[58].mxu1 %vm431_vm0, %v19651_v22  ;;  %v26972_v22 = vld [vmem:[#allocation36_spill] sm:$0xff] }
 0xaab   :  { %16935 = vmatprep.mubr.msk.f32.mxu1 %vm431_vm0, %v19652_v29 }
 0xaae   :  { %16936 = vmatmul.mubr.msk.f32.gmra.mrb[60].mxu1 %vm431_vm0, %v19653_v1 }
 0xaaf   :  { %16938 = vmatprep.mubr.msk.f32.mxu1 %vm431_vm0, %v19654_v47  ;;  %v26973_v47 = vld [vmem:[#allocation37_spill] sm:$0xff] }
 0xab2   :  { %16939 = vmatmul.mubr.msk.f32.gmra.mrb[62].mxu1 %vm431_vm0, %v19655_v19 }
 0xab3   :  { %16941 = vmatprep.mubr.msk.f32.mxu1 %vm431_vm0, %v19656_v58 }
 0xab6   :  { %16942 = vmatmul.mubr.msk.f32.gmra.mrb[64].mxu1 %vm431_vm0, %v19657_v9 }
 0xab7   :  { %16944 = vmatprep.mubr.msk.f32.mxu1 %vm431_vm0, %v19658_v54 }
 0xaba   :  { %16945 = vmatmul.mubr.msk.f32.gmra.mrb[66].mxu1 %vm431_vm0, %v19659_v55  ;;  %v26974_v55 = vld [vmem:[#allocation38_spill] sm:$0xff] }
 0xabb   :  { %16947 = vmatprep.mubr.msk.f32.mxu1 %vm431_vm0, %v19660_v36 }
 0xabe   :  { %16948 = vmatmul.mubr.msk.f32.gmra.mrb[68].mxu1 %vm431_vm0, %v19661_v0 }
 0xabf   :  { %16950 = vmatprep.mubr.msk.f32.mxu1 %vm431_vm0, %v19662_v62 }
 0xac2   :  { %16951 = vmatmul.mubr.msk.f32.gmra.mrb[70].mxu1 %vm431_vm0, %v19663_v57  ;;  %v26975_v57 = vld [vmem:[#allocation39_spill] sm:$0xff] }
 0xac3   :  { %16953 = vmatprep.mubr.msk.f32.mxu1 %vm431_vm0, %v19664_v37 }
 0xac6   :  { %16954 = vmatmul.mubr.msk.f32.gmra.mrb[72].mxu1 %vm431_vm0, %v19665_v2 }
 0xac7   :  { %16956 = vmatprep.mubr.msk.f32.mxu1 %vm431_vm0, %v19666_v4 }
 0xaca   :  { %16957 = vmatmul.mubr.msk.f32.gmra.mrb[74].mxu1 %vm431_vm0, %v19667_v6 }
 0xacb   :  { %16959 = vmatprep.mubr.msk.f32.mxu1 %vm431_vm0, %v19668_v52  ;;  %v26976_v52 = vld [vmem:[#allocation40_spill] sm:$0xff] }
 0xace   :  { %16960 = vmatmul.mubr.msk.f32.gmra.mrb[76].mxu1 %vm431_vm0, %v19669_v51 }
 0xacf   :  { %16962 = vmatprep.mubr.msk.f32.mxu1 %vm431_vm0, %v19670_v14 }
 0xad2   :  { %16963 = vmatmul.mubr.msk.f32.gmra.mrb[78].mxu1 %vm431_vm0, %v19671_v60 }
 0xad3   :  { %16965 = vmatprep.mubr.msk.f32.mxu1 %vm431_vm0, %v19672_v3  ;;  %v26977_v3 = vld [vmem:[#allocation41_spill] sm:$0xff] }
 0xad6   :  { %16966 = vmatmul.mubr.msk.f32.gmra.mrb[80].mxu1 %vm431_vm0, %v19673_v32 }
 0xad7   :  { %16968 = vmatprep.mubr.msk.f32.mxu1 %vm431_vm0, %v19674_v31 }
 0xada   :  { %16969 = vmatmul.mubr.msk.f32.gmra.mrb[82].mxu1 %vm431_vm0, %v19675_v28 }
 0xadb   :  { %8580 = vmatprep.mubr.f32.mxu1 %v19676_v20 }
 0xb69   :  { %v16919_v48 = vpop.f32.mrb[48].mxu1 }
 0xb6a   :  { %v7014_v29 = vadd.f32 %v16919_v48, %v26972_v22  ;;  %v6798_v1 = vpop.f32.mrb[49].mxu1  ;;  %v26978_v48 = vld [vmem:[#allocation42_spill] sm:$0xff] }
 0xb6b   :  { %v7013_v19 = vadd.f32 %v6798_v1, %v26973_v47  ;;  %v26986_v47 = vld [vmem:[#allocation55_spill] sm:$0xff] }
 0xb6c   :  { %v7050_v58 = vmax.f32 %v7014_v29, 0.0 }
 0xb6d   :  { %v7049_v9 = vmax.f32 %v7013_v19, 0.0  ;;  %v16922_v54 = vpop.f32.mrb[50].mxu1 }
 0xb6e   :  { %v7016_v36 = vadd.f32 %v16922_v54, %v26974_v55  ;;  %v6808_v0 = vpop.f32.mrb[51].mxu1  ;;  %v26984_v55 = vld [vmem:[#allocation51_spill] sm:$0xff] }
 0xb6f   :  { %v23562_v62 = vpack.c.bf16 %v7050_v58, %v7049_v9  ;;  %v7015_v37 = vadd.f32 %v6808_v0, %v26975_v57  ;;  %v26979_v58 = vld [vmem:[#allocation43_spill] sm:$0xff] }
 0xb70   :  { %v7052_v2 = vmax.f32 %v7016_v36, 0.0  ;;  %v26982_v57 = vld [vmem:[#allocation47_spill] sm:$0xff] }
 0xb71   :  { %v7051_v4 = vmax.f32 %v7015_v37, 0.0  ;;  %v16925_v6 = vpop.f32.mrb[52].mxu1  ;;  %v26980_v37 = vld [vmem:[#allocation44_spill] sm:$0xff] }
 0xb72   :  { %v7018_v51 = vadd.f32 %v16925_v6, %v26976_v52  ;;  %v6818_v14 = vpop.f32.mrb[53].mxu1 }
 0xb73   :  { %v23566_v60 = vpack.c.bf16 %v7052_v2, %v7051_v4  ;;  %v7017_v32 = vadd.f32 %v6818_v14, %v26977_v3  ;;  %v26981_v4 = vld [vmem:[#allocation45_spill] sm:$0xff] }
 0xb74   :  { %v7054_v31 = vmax.f32 %v7018_v51, 0.0 }
 0xb75   :  { %v7053_v28 = vmax.f32 %v7017_v32, 0.0  ;;  %v16928_v20 = vpop.f32.mrb[54].mxu1 }
 0xb76   :  { %v7020_v29 = vadd.f32 %v16928_v20, %v26978_v48  ;;  %v6828_v1 = vpop.f32.mrb[55].mxu1 }
 0xb77   :  { %v23570_v19 = vpack.c.bf16 %v7054_v31, %v7053_v28  ;;  %v7019_v9 = vadd.f32 %v6828_v1, %v26979_v58  ;;  %v26983_v28 = vld [vmem:[#allocation48_spill] sm:$0xff] }
 0xb78   :  { %v7056_v54 = vmax.f32 %v7020_v29, 0.0 }
 0xb79   :  { %v7055_v36 = vmax.f32 %v7019_v9, 0.0  ;;  %v16931_v0 = vpop.f32.mrb[56].mxu1 }
 0xb7a   :  { %v7022_v6 = vadd.f32 %v16931_v0, %v26980_v37  ;;  %v6838_v52 = vpop.f32.mrb[57].mxu1 }
 0xb7b   :  { %v23574_v2 = vpack.c.bf16 %v7056_v54, %v7055_v36  ;;  %v7021_v14 = vadd.f32 %v6838_v52, %v26981_v4  ;;  %v26985_v36 = vld [vmem:[#allocation52_spill] sm:$0xff] }
 0xb7c   :  { %v7058_v51 = vmax.f32 %v7022_v6, 0.0 }
 0xb7d   :  { %v7057_v32 = vmax.f32 %v7021_v14, 0.0  ;;  %v16934_v3 = vpop.f32.mrb[58].mxu1 }
 0xb7e   :  { %v7024_v20 = vadd.f32 %v16934_v3, %v26982_v57  ;;  %v6848_v48 = vpop.f32.mrb[59].mxu1 }
 0xb7f   :  { %v23578_v31 = vpack.c.bf16 %v7058_v51, %v7057_v32  ;;  %v7023_v1 = vadd.f32 %v6848_v48, %v26983_v28  ;;  %v26987_v28 = vld [vmem:[#allocation35_spill] sm:$0xff] }
 0xb80   :  { %v7060_v29 = vmax.f32 %v7024_v20, 0.0 }
 0xb81   :  { %v7059_v9 = vmax.f32 %v7023_v1, 0.0  ;;  %v16937_v58 = vpop.f32.mrb[60].mxu1 }
 0xb82   :  { %v7026_v0 = vadd.f32 %v16937_v58, %v26984_v55  ;;  %v6858_v37 = vpop.f32.mrb[61].mxu1 }
 0xb83   :  { %v23582_v54 = vpack.c.bf16 %v7060_v29, %v7059_v9  ;;  %v7025_v52 = vadd.f32 %v6858_v37, %v26985_v36 }
 0xb84   :  { %v7062_v6 = vmax.f32 %v7026_v0, 0.0 }
 0xb85   :  { %v7061_v14 = vmax.f32 %v7025_v52, 0.0  ;;  %v16940_v4 = vpop.f32.mrb[62].mxu1 }
 0xb86   :  { %v7028_v3 = vadd.f32 %v16940_v4, %v26986_v47  ;;  %v6868_v57 = vpop.f32.mrb[63].mxu1 }
 0xb87   :  { %v23586_v51 = vpack.c.bf16 %v7062_v6, %v7061_v14  ;;  %v7027_v48 = vadd.f32 %v6868_v57, %v22079_v59 }
 0xb88   :  { %v7064_v32 = vmax.f32 %v7028_v3, 0.0 }
 0xb89   :  { %v7063_v20 = vmax.f32 %v7027_v48, 0.0  ;;  %v16943_v1 = vpop.f32.mrb[64].mxu1 }
 0xb8a   :  { %v7030_v58 = vadd.f32 %v16943_v1, %v26987_v28  ;;  %v6878_v55 = vpop.f32.mrb[65].mxu1 }
 0xb8b   :  { %v23590_v29 = vpack.c.bf16 %v7064_v32, %v7063_v20  ;;  %v7029_v37 = vadd.f32 %v6878_v55, %v21987_v21 }
 0xb8c   :  { %v7066_v9 = vmax.f32 %v7030_v58, 0.0 }
 0xb8d   :  { %v7065_v0 = vmax.f32 %v7029_v37, 0.0  ;;  %v16946_v52 = vpop.f32.mrb[66].mxu1 }
 0xb8e   :  { %v7032_v4 = vadd.f32 %v16946_v52, %v21999_v25  ;;  %v6888_v47 = vpop.f32.mrb[67].mxu1 }
 0xb8f   :  { %v18144_v6 = vpack.c.bf16 %v7066_v9, %v7065_v0  ;;  %v7031_v14 = vadd.f32 %v6888_v47, %v22001_v30 }
 0xb90   :  { %v7068_v57 = vmax.f32 %v7032_v4, 0.0 }
 0xb91   :  { %v7067_v3 = vmax.f32 %v7031_v14, 0.0  ;;  %v16949_v48 = vpop.f32.mrb[68].mxu1  ;;  %18145 = vmatprep.subr.bf16.mxu0 %v18144_v6 }
 0xb92   :  { %v7034_v1 = vadd.f32 %v16949_v48, %v22007_v33  ;;  %v6898_v28 = vpop.f32.mrb[69].mxu1  ;;  %18147 = vmatpush3.bf16.msra.mxu0 %v23562_v62 }
 0xb93   :  { %v18148_v32 = vpack.c.bf16 %v7068_v57, %v7067_v3  ;;  %v7033_v55 = vadd.f32 %v6898_v28, %v22009_v26 }
 0xb94   :  { %v7070_v20 = vmax.f32 %v7034_v1, 0.0 }
 0xb95   :  { %v7069_v58 = vmax.f32 %v7033_v55, 0.0  ;;  %v16952_v37 = vpop.f32.mrb[70].mxu1  ;;  %18149 = vmatprep.subr.bf16.mxu0 %v18148_v32 }
 0xb96   :  { %v7036_v9 = vadd.f32 %v16952_v37, %v22015_v61  ;;  %v6908_v0 = vpop.f32.mrb[71].mxu1  ;;  %18151 = vmatpush3.bf16.msra.mxu0 %v23566_v60 }
 0xb97   :  { %v18152_v47 = vpack.c.bf16 %v7070_v20, %v7069_v58  ;;  %v7035_v52 = vadd.f32 %v6908_v0, %v22017_v34 }
 0xb98   :  { %v7072_v4 = vmax.f32 %v7036_v9, 0.0 }
 0xb99   :  { %v7071_v6 = vmax.f32 %v7035_v52, 0.0  ;;  %v16955_v14 = vpop.f32.mrb[72].mxu1  ;;  %18153 = vmatprep.subr.bf16.mxu0 %v18152_v47 }
 0xb9a   :  { %v7038_v62 = vadd.f32 %v16955_v14, %v22023_v8  ;;  %v6918_v57 = vpop.f32.mrb[73].mxu1  ;;  %18155 = vmatpush3.bf16.msra.mxu0 %v23570_v19 }
 0xb9b   :  { %v18156_v28 = vpack.c.bf16 %v7072_v4, %v7071_v6  ;;  %v7037_v3 = vadd.f32 %v6918_v57, %v22025_v7 }
 0xb9c   :  { %v7074_v48 = vmax.f32 %v7038_v62, 0.0 }
 0xb9d   :  { %v7073_v1 = vmax.f32 %v7037_v3, 0.0  ;;  %v16958_v32 = vpop.f32.mrb[74].mxu1  ;;  %18157 = vmatprep.subr.bf16.mxu0 %v18156_v28 }
 0xb9e   :  { %v7040_v60 = vadd.f32 %v16958_v32, %v22031_v18  ;;  %v6928_v55 = vpop.f32.mrb[75].mxu1  ;;  %18159 = vmatpush3.bf16.msra.mxu0 %v23574_v2 }
 0xb9f   :  { %v18160_v20 = vpack.c.bf16 %v7074_v48, %v7073_v1  ;;  %v7039_v58 = vadd.f32 %v6928_v55, %v22033_v10 }
 0xba0   :  { %v7076_v37 = vmax.f32 %v7040_v60, 0.0 }
 0xba1   :  { %v7075_v9 = vmax.f32 %v7039_v58, 0.0  ;;  %v16961_v0 = vpop.f32.mrb[76].mxu1  ;;  %18161 = vmatprep.subr.bf16.mxu0 %v18160_v20  ;;  %v26988_v20 = vld [vmem:[#allocation57_spill] sm:$0xff] }
 0xba2   :  { %v7042_v19 = vadd.f32 %v16961_v0, %v22046_v5  ;;  %v6938_v47 = vpop.f32.mrb[77].mxu1  ;;  %18163 = vmatpush3.bf16.msra.mxu0 %v23578_v31 }
 0xba3   :  { %v18164_v52 = vpack.c.bf16 %v7076_v37, %v7075_v9  ;;  %v7041_v4 = vadd.f32 %v6938_v47, %v22051_v39 }
 0xba4   :  { %v7078_v6 = vmax.f32 %v7042_v19, 0.0 }
 0xba5   :  { %v7077_v14 = vmax.f32 %v7041_v4, 0.0  ;;  %v16964_v62 = vpop.f32.mrb[78].mxu1  ;;  %18165 = vmatprep.subr.bf16.mxu0 %v18164_v52  ;;  %v26990_v4 = vld [vmem:[#allocation59_spill] sm:$0xff] }
 0xba6   :  { %v7044_v2 = vadd.f32 %v16964_v62, %v22066_v17  ;;  %v6948_v57 = vpop.f32.mrb[79].mxu1  ;;  %18167 = vmatpush3.bf16.msra.mxu0 %v23582_v54  ;;  %v26989_v54 = vld [vmem:[#allocation58_spill] sm:$0xff] }
 0xba7   :  { %v18168_v28 = vpack.c.bf16 %v7078_v6, %v7077_v14  ;;  %v7043_v3 = vadd.f32 %v6948_v57, %v22071_v42 }
 0xba8   :  { %v7080_v48 = vmax.f32 %v7044_v2, 0.0  ;;  %v19678_v2 = vld [vmem:[%s26754_s13 + $0x20] sm:$0x1] }
 0xba9   :  { %v7079_v1 = vmax.f32 %v7043_v3, 0.0  ;;  %v16967_v32 = vpop.f32.mrb[80].mxu1  ;;  %18169 = vmatprep.subr.bf16.mxu0 %v18168_v28  ;;  %v19680_v28 = vld [vmem:[%s26754_s13 + $0x10] sm:$0xff]  ;;  %v19681_v3 = vld [vmem:[%s26754_s13 + $0x28] sm:$0x1] }
 0xbaa   :  { %v7046_v31 = vadd.f32 %v16967_v32, %v22108_v12  ;;  %v6958_v60 = vpop.f32.mrb[81].mxu1  ;;  %18171 = vmatpush3.bf16.msra.mxu0 %v23586_v51  ;;  %v19677_v51 = vld [vmem:[%s26754_s13] sm:$0xff] }
 0xbab   :  { %v18172_v55 = vpack.c.bf16 %v7080_v48, %v7079_v1  ;;  %v7045_v58 = vadd.f32 %v6958_v60, %v26988_v20  ;;  %v19682_v48 = vld [vmem:[%s26740_s2] sm:$0xff] }
 0xbac   :  { %v7082_v37 = vmax.f32 %v7046_v31, 0.0 }
 0xbad   :  { %v7081_v9 = vmax.f32 %v7045_v58, 0.0  ;;  %v16970_v0 = vpop.f32.mrb[82].mxu1  ;;  %18173 = vmatprep.subr.bf16.mxu0 %v18172_v55  ;;  %v26991_v58 = vld [vmem:[#allocation62_spill] sm:$0xff] }
 0xbae   :  { %v7048_v19 = vadd.f32 %v16970_v0, %v26989_v54  ;;  %v6968_v47 = vpop.f32.mrb[83].mxu1  ;;  %18175 = vmatpush3.bf16.msra.mxu0 %v23590_v29  ;;  %v19679_v29 = vld [vmem:[%s26754_s13 + $0x18] sm:$0x1]  ;;  %v23643_v0 = vadd.f32 %v22946_v15, %v22194_v23 }
 0xbaf   :  { %v18176_v52 = vpack.c.bf16 %v7082_v37, %v7081_v9  ;;  %v7047_v6 = vadd.f32 %v6968_v47, %v26990_v4  ;;  %v4389_v37 = vrot.slane %v26991_v58, 4  ;;  %v26992_v47 = vld [vmem:[#allocation60_spill] sm:$0xff] }
 0xbb0   :  { %v7084_v14 = vmax.f32 %v7048_v19, 0.0  ;;  %v23647_v19 = vadd.f32 %v22943_v44, %v22191_v43 }
 0xbb1   :  { %v7083_v62 = vmax.f32 %v7047_v6, 0.0  ;;  %7150 = vmatmul.mubr.f32.vlgmr.msra.gmra.mrb[78].mxu0 %v19677_v51  ;;  %18177 = vmatprep.subr.bf16.mxu0 %v18176_v52  ;;  %v13673_v51 = vld [vmem:[%s26750_s0 + $0x38] sm:$0x1] }
 0xbb2   :  { %18179 = vmatpush3.bf16.msra.mxu0 %v18176_v52  ;;  %7154 = vmatprep.mubr.f32.mxu0 %v19678_v2  ;;  %v13672_v2 = vld [vmem:[%s26750_s0 + $0x30] sm:$0xff] }
 0xbb3   :  { %v18180_v57 = vpack.c.bf16 %v7084_v14, %v7083_v62  ;;  %v26993_v14 = vld [vmem:[#allocation61_spill] sm:$0xff] }
 0xbb5   :  { %7155 = vmatmul.mubr.f32.gmra.mrb[80].mxu0 %v19679_v29  ;;  %18181 = vmatprep.subr.bf16.mxu0 %v18180_v57  ;;  %v4390_v29 = vadd.f32 %v4389_v37, %v26991_v58 }
 0xbb6   :  { %18183 = vmatpush3.bf16.msra.mxu0 %v18180_v57  ;;  %16979 = vmatprep.mubr.msk.f32.mxu0 %vm2185_vm4, %v19680_v28 }
 0xbb9   :  { %16980 = vmatmul.mubr.msk.f32.vlgmr.msra.gmra.mrb[82].mxu0 %vm2185_vm4, %v19681_v3 }
 0xbba   :  { %16986 = vmatprep.mubr.msk.f32.mxu0 %vm431_vm0, %v19682_v48  ;;  %v26868_v48 = vsub.f32 1.0, %v23643_v0 }
 0xc84   :  { %v15222_v1 = vpop.f32.mrb[78].mxu0 }
 0xc85   :  { %v15223_v32 = vpop.f32.mrb[79].mxu0 }
 0xc86   :  { %v15224_v31 = vadd.f32 %v15223_v32, %v15222_v1  ;;  %v26875_v1 = vsub.f32 1.0, %v23647_v19 }
 0xc88   :  { %v15225_v60 = vpop.f32.mrb[80].mxu0  ;;  %v7152_v62 = vadd.f32 %v15224_v31, %v26993_v14 }
 0xc89   :  { %v15226_v55 = vpop.f32.mrb[81].mxu0 }
 0xc8a   :  { %v15227_v9 = vadd.f32 %v15226_v55, %v15225_v60 }
 0xc8c   :  { %v7157_v52 = vadd.f32 %v15227_v9, %v26992_v47  ;;  %v16981_v6 = vpop.f32.mrb[82].mxu0  ;;  %v4391_v9 = vrot.slane %v4390_v29, 2 }
 0xc8d   :  { %v7226_v57 = vpop.f32.mrb[83].mxu0 }
 0xc8e   :  { %v7232_v28 = vadd.f32 %v16981_v6, %v7157_v52  ;;  %v7227_v3 = vadd.f32 %v7226_v57, %v7152_v62  ;;  %v4392_v62 = vadd.f32 %v4391_v9, %v4390_v29 }
 0xc90   :  { %v7238_v32 = vmul.f32 %v7232_v28, %v7232_v28  ;;  %v7252_v60 = vadd.f32 %v13673_v51, %v7232_v28  ;;  %v7237_v31 = vmul.f32 %v7227_v3, %v7227_v3  ;;  %v7251_v55 = vadd.f32 %v13672_v2, %v7227_v3 }
 0xc91   :  { %v4393_v2 = vrot.slane %v4392_v62, 1 }
 0xc92   :  { %v7242_v14 = vmul.f32 %v26868_v48, %v7238_v32  ;;  %v7253_v47 = vsel %vm540_vm1, %v7252_v60, -inf  ;;  %v7241_v4 = vmul.f32 %v26875_v1, %v7237_v31 }
 0xc93   :  { %v7254_v58 = vmax.f32 %v7251_v55, %v7253_v47  ;;  %v4394_v48 = vadd.f32 %v4393_v2, %v4392_v62 }
 0xc94   :  { %v7243_v37 = vsel %vm540_vm1, %v7242_v14, 0.0 }
 0xc95   :  { %v7244_v52 = vadd.f32 %v7243_v37, %v7241_v4  ;;  %v7255_v6 = vrot.slane %v7254_v58, 4  ;;  %v4519_v1 = vmul.f32 0.01, %v4394_v48 }
 0xc97   :  { %v7245_v57 = vrot.slane %v7244_v52, 4  ;;  %v7256_v54 = vmax.f32 %v7254_v58, %v7255_v6 }
 0xc99   :  { %v7246_v51 = vadd.f32 %v7245_v57, %v7244_v52  ;;  %v7257_v28 = vrot.slane %v7256_v54, 2 }
 0xc9b   :  { %v7247_v3 = vrot.slane %v7246_v51, 2  ;;  %v7258_v20 = vmax.f32 %v7256_v54, %v7257_v28  ;;  %v5916_v28 = vrot.slane %v22943_v44, 3 }
 0xc9d   :  { %v7248_v12 = vadd.f32 %v7247_v3, %v7246_v51  ;;  %v7259_v32 = vrot.slane %v7258_v20, 1 }
 0xc9f   :  { %v7249_v42 = vrot.slane %v7248_v12, 1  ;;  %v7260_v17 = vmax.f32 %v7258_v20, %v7259_v32 }
 0xca1   :  { %v7250_v39 = vadd.f32 %v7249_v42, %v7248_v12  ;;  %v7261_v31 = vsub.f32 %v7251_v55, %v7260_v17  ;;  %v7262_v47 = vsub.f32 %v7252_v60, %v7260_v17  ;;  %v5898_v42 = vrot.slane %v22943_v44, 1 }
 0xca2   :  { %v5909_v55 = vrot.slane %v22946_v15, 2 }
 0xca3   :  { %v7263_v14 = vmul.f32 1.442695, %v7261_v31  ;;  %v7265_v4 = vmul.f32 1.442695, %v7262_v47  ;;  %v7375_v37 = vmul.f32 0.005, %v7250_v39  ;;  %v5900_v20 = vmul.f32 %v5898_v42, %v22943_v44 }
 0xca4   :  { %v5901_v39 = vrot.slane %v22943_v44, 2  ;;  %v5918_v31 = vmul.f32 %v5916_v28, %v22943_v44  ;;  %v5927_v42 = vrot.slane %v22946_v15, 6 }
 0xca5   :  { %19328 = vpow2.f32 %v7263_v14  ;;  %v23666_v29 = vadd.f32 %v7375_v37, %v4519_v1  ;;  %v5911_v51 = vmul.f32 %v5909_v55, %v5900_v20  ;;  %v5919_v37 = vrot.slane %v22943_v44, 6 }
 0xca6   :  { %19330 = vpow2.f32 %v7265_v4  ;;  %v5903_v1 = vmul.f32 %v5901_v39, %v5900_v20  ;;  %v5929_v20 = vmul.f32 %v5927_v42, %v5918_v31 }
 0xca7   :  { %v5913_v32 = vrot.slane %v5911_v51, 6  ;;  %v5939_v51 = vmul.f32 %v5901_v39, %v22943_v44 }
 0xca8   :  { %v5905_v60 = vrot.slane %v5903_v1, 3 }
 0xcaa   :  { %v5907_v2 = vadd.f32 %v5905_v60, %v5903_v1 }
 0xcac   :  { %v5915_v4 = vadd.f32 %v5913_v32, %v5907_v2 }
 0xcaf   :  { %v19329_v9 = vpop.eup %19328 }
 0xcb0   :  { %v19331_v58 = vpop.eup %19330 }
 0xcb1   :  { %v7267_v54 = vsel %vm540_vm1, %v19331_v58, 0.0 }
 0xcb2   :  { %v7268_v52 = vadd.f32 %v19329_v9, %v7267_v54 }
 0xcb4   :  { %v7269_v6 = vrot.slane %v7268_v52, 4 }
 0xcb6   :  { %v7270_v62 = vadd.f32 %v7269_v6, %v7268_v52  ;;  %v5921_v6 = vmul.f32 %v5919_v37, %v5918_v31 }
 0xcb8   :  { %v7271_v57 = vrot.slane %v7270_v62, 2 }
 0xcba   :  { %v7272_v12 = vadd.f32 %v7271_v57, %v7270_v62  ;;  %v5922_v57 = vadd.f32 %v5921_v6, %v5915_v4 }
 0xcbc   :  { %v7273_v17 = vrot.slane %v7272_v12, 1 }
 0xcbe   :  { %v7274_v48 = vadd.f32 %v7273_v17, %v7272_v12  ;;  %v5924_v17 = vrot.slane %v5921_v6, 1 }
 0xcc0   :  { %19332 = vrcp.f32 %v7274_v48  ;;  %v5934_v48 = vrot.slane %v22943_v44, 4  ;;  %v5926_v60 = vadd.f32 %v5924_v17, %v5922_v57 }
 0xcc2   :  { %v5936_v55 = vmul.f32 %v5934_v48, %v22943_v44  ;;  %v5940_v4 = vmul.f32 %v5939_v51, %v5934_v48 }
 0xcc4   :  { %v5937_v32 = vmul.f32 %v5936_v55, %v22946_v15  ;;  %v5942_v6 = vrot.slane %v5940_v4, 2 }
 0xcca   :  { %v19333_v3 = vpop.eup %19332 }
 0xccb   :  { %v7276_v47 = vmul.f32 %v19333_v3, %v19329_v9  ;;  %v7277_v14 = vmul.f32 %v19333_v3, %v19331_v58  ;;  %v5931_v58 = vrot.slane %v5929_v20, 2 }
 0xccd   :  { %v7278_v54 = vsel %vm540_vm1, %v7277_v14, -inf  ;;  %v5933_v2 = vadd.f32 %v5931_v58, %v5926_v60 }
 0xcce   :  { %v7279_v52 = vmax.f32 %v7276_v47, %v7278_v54 }
 0xccf   :  { %v5938_v37 = vadd.f32 %v5937_v32, %v5933_v2 }
 0xcd0   :  { %v7280_v62 = vrot.slane %v7279_v52, 4 }
 0xcd1   :  { %v5944_v57 = vadd.f32 %v5942_v6, %v5938_v37  ;;  %v26994_v37 = vsub.f32 1.0, %v23647_v19  ;;  %v7381_v19 = vsub.f32 1.0, %v22946_v15 }
 0xcd2   :  { %v7281_v12 = vmax.f32 %v7279_v52, %v7280_v62 }
 0xcd4   :  { %v7282_v1 = vrot.slane %v7281_v12, 2 }
 0xcd6   :  { %v7283_v9 = vmax.f32 %v7281_v12, %v7282_v1  ;;  %v23686_v12 = vmax.f32 %v22179_v40, %v5944_v57 }
 0xcd8   :  { %v7284_v28 = vrot.slane %v7283_v9, 1  ;;  %v7312_v1 = vadd.f32 %v23686_v12, %v22929_v56 }
 0xcda   :  { %v7285_v3 = vmax.f32 %v7283_v9, %v7284_v28  ;;  %v7313_v9 = vsub.f32 1.0, %v7312_v1  ;;  %v19689_v1 = vld [vmem:[%s26740_s2 + $0x38] sm:$0xff] }
 0xcdc   :  { %vm7286_vm5 = vcmp.eq.f32.partialorder %v7276_v47, %v7285_v3  ;;  %vm7287_vm6 = vcmp.eq.f32.partialorder %v7277_v14, %v7285_v3  ;;  %v7317_v3 = vrot.slane %v7313_v9, %v22185_v16  ;;  %v19691_v9 = vld [vmem:[%s26740_s2 + $0x48] sm:$0xff] }
 0xcdd   :  { %v7288_v31 = vsel %vm7286_vm5, %v21360_v63, 9  ;;  %v7289_v54 = vsel %vm7287_vm6, %v21363_v11, 9 }
 0xcde   :  { %v7290_v52 = vsel %vm540_vm1, %v7289_v54, 2147483647  ;;  %v26995_v54 = vsub.f32 1.0, %v23643_v0 }
 0xcdf   :  { %vm7291_vm7 = vcmp.lt.s32.totalorder %v7288_v31, %v7290_v52 }
 0xce0   :  { %v7292_v62 = vsel %vm7291_vm7, %v7288_v31, %v7290_v52 }
 0xce1   :  { %v7293_v39 = vrot.slane %v7292_v62, 4 }
 0xce3   :  { %vm7294_vm8 = vcmp.lt.s32.totalorder %v7292_v62, %v7293_v39 }
 0xce4   :  { %v7295_v42 = vsel %vm7294_vm8, %v7292_v62, %v7293_v39 }
 0xce5   :  { %v7296_v17 = vrot.slane %v7295_v42, 2 }
 0xce7   :  { %vm7297_vm9 = vcmp.lt.s32.totalorder %v7295_v42, %v7296_v17 }
 0xce8   :  { %v7298_v20 = vsel %vm7297_vm9, %v7295_v42, %v7296_v17  ;;  %v19684_v42 = vld [vmem:[%s26740_s2 + $0x10] sm:$0xff]  ;;  %v19685_v17 = vld [vmem:[%s26740_s2 + $0x18] sm:$0xff] }
 0xce9   :  { %v7299_v48 = vrot.slane %v7298_v20, 1 }
 0xceb   :  { %vm7300_vm10 = vcmp.lt.s32.totalorder %v7298_v20, %v7299_v48 }
 0xcec   :  { %v7301_v60 = vsel %vm7300_vm10, %v7298_v20, %v7299_v48  ;;  %v19687_v20 = vld [vmem:[%s26740_s2 + $0x28] sm:$0xff]  ;;  %v19688_v48 = vld [vmem:[%s26740_s2 + $0x30] sm:$0xff] }
 0xced   :  { %vm7302_vm11 = vcmp.eq.s32.totalorder %v21360_v63, %v7301_v60  ;;  %vm7303_vm12 = vcmp.eq.s32.totalorder %v21363_v11, %v7301_v60  ;;  %v19690_v60 = vld [vmem:[%s26740_s2 + $0x40] sm:$0xff] }
 0xcee   :  { %v13824_v58 = vsel %vm7302_vm11, 1.0, %v26944_v24  ;;  %v13825_v55 = vsel %vm7303_vm12, 1.0, %v26944_v24 }
 0xcef   :  { %v7308_v40 = vsub.f32 %v13824_v58, %v7276_v47  ;;  %v7309_v51 = vsub.f32 %v13825_v55, %v7277_v14  ;;  %v19692_v58 = vld [vmem:[%s26740_s2 + $0x50] sm:$0xff]  ;;  %v19693_v55 = vld [vmem:[%s26740_s2 + $0x58] sm:$0xff] }
 0xcf1   :  { %v7310_v28 = vadd.f32 %v7308_v40, %v7276_v47  ;;  %v7311_v2 = vadd.f32 %v7309_v51, %v7277_v14  ;;  %v7380_v14 = vsub.f32 1.0, %v22943_v44  ;;  %v19694_v40 = vld [vmem:[%s26740_s2 + $0x60] sm:$0xff]  ;;  %v19695_v51 = vld [vmem:[%s26740_s2 + $0x68] sm:$0xff] }
 0xcf3   :  { %v7318_v32 = vmul.f32 %v7317_v3, %v7310_v28  ;;  %v7319_v4 = vmul.f32 %v7317_v3, %v7311_v2  ;;  %v19696_v28 = vld [vmem:[%s26740_s2 + $0x70] sm:$0xff]  ;;  %v19697_v2 = vld [vmem:[%s26740_s2 + $0x78] sm:$0xff]  ;;  %v19698_v3 = vld [vmem:[%s26740_s2 + $0x80] sm:$0xff] }
 0xcf5   :  { %v7320_v31 = vmul.f32 %v7318_v32, %v26994_v37  ;;  %v7321_v52 = vmul.f32 %v7319_v4, %v26995_v54  ;;  %v19699_v32 = vld [vmem:[%s26740_s2 + $0x88] sm:$0xff]  ;;  %v19700_v4 = vld [vmem:[%s26740_s2 + $0x90] sm:$0xff]  ;;  %v19701_v37 = vld [vmem:[%s26740_s2 + $0x98] sm:$0xff] }
 0xcf6   :  { %v19703_v54 = vld [vmem:[%s26740_s2 + $0xa8] sm:$0xff] }
 0xcf7   :  { %v23700_v6 = vadd.f32 %v7320_v31, %v22191_v43  ;;  %v23703_v62 = vadd.f32 %v7321_v52, %v22194_v23  ;;  %v23705_v57 = vpack.c.bf16 %v7321_v52, %v7320_v31  ;;  %v19683_v23 = vld [vmem:[%s26740_s2 + $0x8] sm:$0xff]  ;;  %v19702_v31 = vld [vmem:[%s26740_s2 + $0xa0] sm:$0xff]  ;;  %v19704_v52 = vld [vmem:[%s26740_s2 + $0xb0] sm:$0xff] }
 0xcf9   :  { %v23709_v47 = vpack.c.bf16 %v23703_v62, %v23700_v6  ;;  %v7382_v43 = vsub.f32 %v7380_v14, %v23700_v6  ;;  %v7383_v0 = vsub.f32 %v7381_v19, %v23703_v62  ;;  %v19705_v14 = vld [vmem:[%s26740_s2 + $0xb8] sm:$0xff]  ;;  %v19706_v19 = vld [vmem:[%s26740_s2 + $0xc0] sm:$0xff] }
 0xcfb   :  { %18186 = vmatprep.subr.msk.bf16.mxu0 %vm20417_vm3, %v23709_v47  ;;  %v23728_v39 = vpack.c.bf16 %v7383_v0, %v7382_v43  ;;  %v19707_v43 = vld [vmem:[%s26740_s2 + $0xc8] sm:$0xff]  ;;  %v19708_v0 = vld [vmem:[%s26740_s2 + $0xd0] sm:$0xff] }
 0xcfc   :  { %18189 = vmatpush3.bf16.msk.msra.mxu0 %vm20417_vm3, %v23709_v47 }
 0xcfd   :  { %18192 = vmatprep.subr.msk.bf16.mxu0 %vm20417_vm3, %v22952_v27 }
 0xcff   :  { %16987 = vmatmul.mubr.msk.f32.vlgmr.msra.gmra.mrb[84].mxu0 %vm431_vm0, %v19683_v23  ;;  %v19709_v23 = vld [vmem:[%s26740_s2 + $0xd8] sm:$0xff] }
 0xd00   :  { %18195 = vmatpush3.bf16.msk.msra.mxu0 %vm20417_vm3, %v22952_v27  ;;  %16989 = vmatprep.mubr.msk.f32.mxu0 %vm431_vm0, %v19684_v42  ;;  %v19686_v27 = vld [vmem:[%s26740_s2 + $0x20] sm:$0xff] }
 0xd01   :  { %18198 = vmatprep.subr.msk.bf16.mxu0 %vm20417_vm3, %v23728_v39  ;;  %v19710_v42 = vld [vmem:[%s26740_s2 + $0xe0] sm:$0xff] }
 0xd03   :  { %16990 = vmatmul.mubr.msk.f32.gmra.mrb[86].mxu0 %vm431_vm0, %v19685_v17  ;;  %v19711_v17 = vld [vmem:[%s26740_s2 + $0xe8] sm:$0xff] }
 0xd04   :  { %16992 = vmatprep.mubr.msk.f32.mxu0 %vm431_vm0, %v19686_v27  ;;  %v19712_v27 = vld [vmem:[%s26740_s2 + $0xf0] sm:$0xff] }
 0xd07   :  { %16993 = vmatmul.mubr.msk.f32.gmra.mrb[88].mxu0 %vm431_vm0, %v19687_v20  ;;  %v19713_v20 = vld [vmem:[%s26740_s2 + $0xf8] sm:$0xff] }
 0xd08   :  { %16995 = vmatprep.mubr.msk.f32.mxu0 %vm431_vm0, %v19688_v48  ;;  %v19714_v48 = vld [vmem:[%s26740_s2 + $0x100] sm:$0xff] }
 0xd0b   :  { %16996 = vmatmul.mubr.msk.f32.gmra.mrb[90].mxu0 %vm431_vm0, %v19689_v1  ;;  %v19715_v1 = vld [vmem:[%s26740_s2 + $0x108] sm:$0xff] }
 0xd0c   :  { %16998 = vmatprep.mubr.msk.f32.mxu0 %vm431_vm0, %v19690_v60  ;;  %v19716_v60 = vld [vmem:[%s26740_s2 + $0x110] sm:$0xff] }
 0xd0f   :  { %16999 = vmatmul.mubr.msk.f32.gmra.mrb[92].mxu0 %vm431_vm0, %v19691_v9  ;;  %v19717_v9 = vld [vmem:[%s26740_s2 + $0x118] sm:$0xff] }
 0xd10   :  { %17001 = vmatprep.mubr.msk.f32.mxu0 %vm431_vm0, %v19692_v58  ;;  %v19718_v58 = vld [vmem:[%s26742_s1] sm:$0xff] }
 0xd13   :  { %17002 = vmatmul.mubr.msk.f32.gmra.mrb[94].mxu0 %vm431_vm0, %v19693_v55  ;;  %v19719_v55 = vld [vmem:[%s26742_s1 + $0x8] sm:$0xff] }
 0xd14   :  { %17004 = vmatprep.mubr.msk.f32.mxu0 %vm431_vm0, %v19694_v40  ;;  %v19720_v40 = vld [vmem:[%s26742_s1 + $0x10] sm:$0xff] }
 0xd17   :  { %17005 = vmatmul.mubr.msk.f32.gmra.mrb[96].mxu0 %vm431_vm0, %v19695_v51  ;;  %v19721_v51 = vld [vmem:[%s26742_s1 + $0x18] sm:$0xff] }
 0xd18   :  { %17007 = vmatprep.mubr.msk.f32.mxu0 %vm431_vm0, %v19696_v28  ;;  %v19723_v28 = vld [vmem:[%s26742_s1 + $0x28] sm:$0xff] }
 0xd1b   :  { %17008 = vmatmul.mubr.msk.f32.gmra.mrb[98].mxu0 %vm431_vm0, %v19697_v2  ;;  %v19724_v2 = vld [vmem:[%s26742_s1 + $0x30] sm:$0xff] }
 0xd1c   :  { %17010 = vmatprep.mubr.msk.f32.mxu0 %vm431_vm0, %v19698_v3  ;;  %v19725_v3 = vld [vmem:[%s26742_s1 + $0x38] sm:$0xff] }
 0xd1f   :  { %17011 = vmatmul.mubr.msk.f32.gmra.mrb[100].mxu0 %vm431_vm0, %v19699_v32  ;;  %v19726_v32 = vld [vmem:[%s26742_s1 + $0x40] sm:$0xff] }
 0xd20   :  { %17013 = vmatprep.mubr.msk.f32.mxu0 %vm431_vm0, %v19700_v4  ;;  %v19727_v4 = vld [vmem:[%s26742_s1 + $0x48] sm:$0xff] }
 0xd23   :  { %17014 = vmatmul.mubr.msk.f32.gmra.mrb[102].mxu0 %vm431_vm0, %v19701_v37  ;;  %v19728_v37 = vld [vmem:[%s26742_s1 + $0x50] sm:$0xff] }
 0xd24   :  { %17016 = vmatprep.mubr.msk.f32.mxu0 %vm431_vm0, %v19702_v31  ;;  %v19729_v31 = vld [vmem:[%s26742_s1 + $0x58] sm:$0xff] }
 0xd27   :  { %17017 = vmatmul.mubr.msk.f32.gmra.mrb[104].mxu0 %vm431_vm0, %v19703_v54  ;;  %v19730_v54 = vld [vmem:[%s26742_s1 + $0x60] sm:$0xff] }
 0xd28   :  { %17019 = vmatprep.mubr.msk.f32.mxu0 %vm431_vm0, %v19704_v52  ;;  %v19731_v52 = vld [vmem:[%s26742_s1 + $0x68] sm:$0xff] }
 0xd2b   :  { %17020 = vmatmul.mubr.msk.f32.gmra.mrb[106].mxu0 %vm431_vm0, %v19705_v14  ;;  %v19732_v14 = vld [vmem:[%s26742_s1 + $0x70] sm:$0xff] }
 0xd2c   :  { %17022 = vmatprep.mubr.msk.f32.mxu0 %vm431_vm0, %v19706_v19  ;;  %v19733_v19 = vld [vmem:[%s26742_s1 + $0x78] sm:$0xff] }
 0xd2f   :  { %17023 = vmatmul.mubr.msk.f32.gmra.mrb[108].mxu0 %vm431_vm0, %v19707_v43  ;;  %v19734_v43 = vld [vmem:[%s26742_s1 + $0x80] sm:$0xff] }
 0xd30   :  { %17025 = vmatprep.mubr.msk.f32.mxu0 %vm431_vm0, %v19708_v0  ;;  %v19735_v0 = vld [vmem:[%s26742_s1 + $0x88] sm:$0xff] }
 0xd33   :  { %17026 = vmatmul.mubr.msk.f32.gmra.mrb[110].mxu0 %vm431_vm0, %v19709_v23  ;;  %v19736_v23 = vld [vmem:[%s26742_s1 + $0x90] sm:$0xff] }
 0xd34   :  { %17028 = vmatprep.mubr.msk.f32.mxu0 %vm431_vm0, %v19710_v42  ;;  %v19737_v42 = vld [vmem:[%s26742_s1 + $0x98] sm:$0xff] }
 0xd37   :  { %17029 = vmatmul.mubr.msk.f32.gmra.mrb[112].mxu0 %vm431_vm0, %v19711_v17  ;;  %v19738_v17 = vld [vmem:[%s26742_s1 + $0xa0] sm:$0xff] }
 0xd38   :  { %17031 = vmatprep.mubr.msk.f32.mxu0 %vm431_vm0, %v19712_v27  ;;  %v19739_v27 = vld [vmem:[%s26742_s1 + $0xa8] sm:$0xff] }
 0xd3b   :  { %17032 = vmatmul.mubr.msk.f32.gmra.mrb[114].mxu0 %vm431_vm0, %v19713_v20  ;;  %v19740_v20 = vld [vmem:[%s26742_s1 + $0xb0] sm:$0xff] }
 0xd3c   :  { %17034 = vmatprep.mubr.msk.f32.mxu0 %vm431_vm0, %v19714_v48  ;;  %v19741_v48 = vld [vmem:[%s26742_s1 + $0xb8] sm:$0xff] }
 0xd3f   :  { %17035 = vmatmul.mubr.msk.f32.gmra.mrb[116].mxu0 %vm431_vm0, %v19715_v1  ;;  %v19742_v1 = vld [vmem:[%s26742_s1 + $0xc0] sm:$0xff] }
 0xd40   :  { %17037 = vmatprep.mubr.msk.f32.mxu0 %vm431_vm0, %v19716_v60  ;;  %v19743_v60 = vld [vmem:[%s26742_s1 + $0xc8] sm:$0xff] }
 0xd43   :  { %17038 = vmatmul.mubr.msk.f32.gmra.mrb[118].mxu0 %vm431_vm0, %v19717_v9  ;;  %v19744_v9 = vld [vmem:[%s26742_s1 + $0xd0] sm:$0xff] }
 0xd44   :  { %17044 = vmatprep.mubr.msk.f32.mxu0 %vm431_vm0, %v19718_v58  ;;  %v19745_v58 = vld [vmem:[%s26742_s1 + $0xd8] sm:$0xff] }
 0xd47   :  { %17045 = vmatmul.mubr.msk.f32.vlgmr.msra.gmra.mrb[84].mxu0 %vm431_vm0, %v19719_v55  ;;  %v19746_v55 = vld [vmem:[%s26742_s1 + $0xe0] sm:$0xff] }
 0xd48   :  { %18201 = vmatpush3.bf16.msk.msra.mxu0 %vm20417_vm3, %v23728_v39  ;;  %17047 = vmatprep.mubr.msk.f32.mxu0 %vm431_vm0, %v19720_v40  ;;  %v19722_v39 = vld [vmem:[%s26742_s1 + $0x20] sm:$0xff]  ;;  %v19747_v40 = vld [vmem:[%s26742_s1 + $0xe8] sm:$0xff] }
 0xd49   :  { %18204 = vmatprep.subr.msk.bf16.mxu0 %vm20417_vm3, %v23705_v57 }
 0xd4b   :  { %17048 = vmatmul.mubr.msk.f32.gmra.mrb[86].mxu0 %vm431_vm0, %v19721_v51  ;;  %v19748_v51 = vld [vmem:[%s26742_s1 + $0xf0] sm:$0xff] }
 0xd4c   :  { %17050 = vmatprep.mubr.msk.f32.mxu0 %vm431_vm0, %v19722_v39  ;;  %v19749_v39 = vld [vmem:[%s26742_s1 + $0xf8] sm:$0xff] }
 0xd4f   :  { %17051 = vmatmul.mubr.msk.f32.gmra.mrb[88].mxu0 %vm431_vm0, %v19723_v28  ;;  %v19750_v28 = vld [vmem:[%s26742_s1 + $0x100] sm:$0xff] }
 0xd50   :  { %17053 = vmatprep.mubr.msk.f32.mxu0 %vm431_vm0, %v19724_v2  ;;  %v19751_v2 = vld [vmem:[%s26742_s1 + $0x108] sm:$0xff] }
 0xd53   :  { %17054 = vmatmul.mubr.msk.f32.gmra.mrb[90].mxu0 %vm431_vm0, %v19725_v3  ;;  %v19752_v3 = vld [vmem:[%s26742_s1 + $0x110] sm:$0xff] }
 0xd54   :  { %17056 = vmatprep.mubr.msk.f32.mxu0 %vm431_vm0, %v19726_v32  ;;  %v19753_v32 = vld [vmem:[%s26742_s1 + $0x118] sm:$0xff] }
 0xd57   :  { %17057 = vmatmul.mubr.msk.f32.gmra.mrb[92].mxu0 %vm431_vm0, %v19727_v4  ;;  %v19754_v4 = vld [vmem:[%s26745_s3] sm:$0xff] }
 0xd58   :  { %17059 = vmatprep.mubr.msk.f32.mxu0 %vm431_vm0, %v19728_v37  ;;  %v19755_v37 = vld [vmem:[%s26745_s3 + $0x8] sm:$0xff] }
 0xd5b   :  { %17060 = vmatmul.mubr.msk.f32.gmra.mrb[94].mxu0 %vm431_vm0, %v19729_v31  ;;  %v19756_v31 = vld [vmem:[%s26745_s3 + $0x10] sm:$0xff] }
 0xd5c   :  { %17062 = vmatprep.mubr.msk.f32.mxu0 %vm431_vm0, %v19730_v54  ;;  %v19757_v54 = vld [vmem:[%s26745_s3 + $0x18] sm:$0xff] }
 0xd5f   :  { %17063 = vmatmul.mubr.msk.f32.gmra.mrb[96].mxu0 %vm431_vm0, %v19731_v52  ;;  %v19758_v52 = vld [vmem:[%s26745_s3 + $0x20] sm:$0xff] }
 0xd60   :  { %17065 = vmatprep.mubr.msk.f32.mxu0 %vm431_vm0, %v19732_v14  ;;  %v19760_v14 = vld [vmem:[%s26745_s3 + $0x30] sm:$0xff] }
 0xd63   :  { %17066 = vmatmul.mubr.msk.f32.gmra.mrb[98].mxu0 %vm431_vm0, %v19733_v19  ;;  %v19761_v19 = vld [vmem:[%s26745_s3 + $0x38] sm:$0xff] }
 0xd64   :  { %17068 = vmatprep.mubr.msk.f32.mxu0 %vm431_vm0, %v19734_v43  ;;  %v19762_v43 = vld [vmem:[%s26745_s3 + $0x40] sm:$0xff] }
 0xd67   :  { %17069 = vmatmul.mubr.msk.f32.gmra.mrb[100].mxu0 %vm431_vm0, %v19735_v0  ;;  %v19763_v0 = vld [vmem:[%s26745_s3 + $0x48] sm:$0xff] }
 0xd68   :  { %17071 = vmatprep.mubr.msk.f32.mxu0 %vm431_vm0, %v19736_v23  ;;  %v19764_v23 = vld [vmem:[%s26745_s3 + $0x50] sm:$0xff] }
 0xd6b   :  { %17072 = vmatmul.mubr.msk.f32.gmra.mrb[102].mxu0 %vm431_vm0, %v19737_v42  ;;  %v19765_v42 = vld [vmem:[%s26745_s3 + $0x58] sm:$0xff] }
 0xd6c   :  { %17074 = vmatprep.mubr.msk.f32.mxu0 %vm431_vm0, %v19738_v17  ;;  %v19766_v17 = vld [vmem:[%s26745_s3 + $0x60] sm:$0xff] }
 0xd6f   :  { %17075 = vmatmul.mubr.msk.f32.gmra.mrb[104].mxu0 %vm431_vm0, %v19739_v27  ;;  %v19767_v27 = vld [vmem:[%s26745_s3 + $0x68] sm:$0xff] }
 0xd70   :  { %17077 = vmatprep.mubr.msk.f32.mxu0 %vm431_vm0, %v19740_v20  ;;  %v19768_v20 = vld [vmem:[%s26745_s3 + $0x70] sm:$0xff] }
 0xd73   :  { %17078 = vmatmul.mubr.msk.f32.gmra.mrb[106].mxu0 %vm431_vm0, %v19741_v48  ;;  %v19769_v48 = vld [vmem:[%s26745_s3 + $0x78] sm:$0xff] }
 0xd74   :  { %17080 = vmatprep.mubr.msk.f32.mxu0 %vm431_vm0, %v19742_v1  ;;  %v19770_v1 = vld [vmem:[%s26745_s3 + $0x80] sm:$0xff] }
 0xd77   :  { %17081 = vmatmul.mubr.msk.f32.gmra.mrb[108].mxu0 %vm431_vm0, %v19743_v60  ;;  %v19771_v60 = vld [vmem:[%s26745_s3 + $0x88] sm:$0xff] }
 0xd78   :  { %17083 = vmatprep.mubr.msk.f32.mxu0 %vm431_vm0, %v19744_v9  ;;  %v19772_v9 = vld [vmem:[%s26745_s3 + $0x90] sm:$0xff] }
 0xd7b   :  { %17084 = vmatmul.mubr.msk.f32.gmra.mrb[110].mxu0 %vm431_vm0, %v19745_v58  ;;  %v19773_v58 = vld [vmem:[%s26745_s3 + $0x98] sm:$0xff] }
 0xd7c   :  { %17086 = vmatprep.mubr.msk.f32.mxu0 %vm431_vm0, %v19746_v55  ;;  %v19774_v55 = vld [vmem:[%s26745_s3 + $0xa0] sm:$0xff] }
 0xd7f   :  { %17087 = vmatmul.mubr.msk.f32.gmra.mrb[112].mxu0 %vm431_vm0, %v19747_v40  ;;  %v19775_v40 = vld [vmem:[%s26745_s3 + $0xa8] sm:$0xff] }
 0xd80   :  { %17089 = vmatprep.mubr.msk.f32.mxu0 %vm431_vm0, %v19748_v51  ;;  %v19776_v51 = vld [vmem:[%s26745_s3 + $0xb0] sm:$0xff] }
 0xd83   :  { %17090 = vmatmul.mubr.msk.f32.gmra.mrb[114].mxu0 %vm431_vm0, %v19749_v39  ;;  %v19777_v39 = vld [vmem:[%s26745_s3 + $0xb8] sm:$0xff] }
 0xd84   :  { %17092 = vmatprep.mubr.msk.f32.mxu0 %vm431_vm0, %v19750_v28  ;;  %v19778_v28 = vld [vmem:[%s26745_s3 + $0xc0] sm:$0xff] }
 0xd87   :  { %17093 = vmatmul.mubr.msk.f32.gmra.mrb[116].mxu0 %vm431_vm0, %v19751_v2  ;;  %v19779_v2 = vld [vmem:[%s26745_s3 + $0xc8] sm:$0xff] }
 0xd88   :  { %17095 = vmatprep.mubr.msk.f32.mxu0 %vm431_vm0, %v19752_v3  ;;  %v19780_v3 = vld [vmem:[%s26745_s3 + $0xd0] sm:$0xff] }
 0xd8b   :  { %17096 = vmatmul.mubr.msk.f32.gmra.mrb[118].mxu0 %vm431_vm0, %v19753_v32  ;;  %v19781_v32 = vld [vmem:[%s26745_s3 + $0xd8] sm:$0xff] }
 0xd8c   :  { %17102 = vmatprep.mubr.msk.f32.mxu0 %vm431_vm0, %v19754_v4  ;;  %v19782_v4 = vld [vmem:[%s26745_s3 + $0xe0] sm:$0xff] }
 0xd8f   :  { %17103 = vmatmul.mubr.msk.f32.vlgmr.msra.gmra.mrb[84].mxu0 %vm431_vm0, %v19755_v37  ;;  %v19783_v37 = vld [vmem:[%s26745_s3 + $0xe8] sm:$0xff] }
 0xd90   :  { %18207 = vmatpush3.bf16.msk.msra.mxu0 %vm20417_vm3, %v23705_v57  ;;  %17105 = vmatprep.mubr.msk.f32.mxu0 %vm431_vm0, %v19756_v31  ;;  %v19759_v57 = vld [vmem:[%s26745_s3 + $0x28] sm:$0xff]  ;;  %v19784_v31 = vld [vmem:[%s26745_s3 + $0xf0] sm:$0xff] }
 0xd93   :  { %17106 = vmatmul.mubr.msk.f32.gmra.mrb[86].mxu0 %vm431_vm0, %v19757_v54  ;;  %v19785_v54 = vld [vmem:[%s26745_s3 + $0xf8] sm:$0xff] }
 0xd94   :  { %17108 = vmatprep.mubr.msk.f32.mxu0 %vm431_vm0, %v19758_v52  ;;  %v19786_v52 = vld [vmem:[%s26745_s3 + $0x100] sm:$0xff] }
 0xd97   :  { %17109 = vmatmul.mubr.msk.f32.gmra.mrb[88].mxu0 %vm431_vm0, %v19759_v57  ;;  %v19787_v57 = vld [vmem:[%s26745_s3 + $0x108] sm:$0xff] }
 0xd98   :  { %17111 = vmatprep.mubr.msk.f32.mxu0 %vm431_vm0, %v19760_v14  ;;  %v19788_v14 = vld [vmem:[%s26745_s3 + $0x110] sm:$0xff] }
 0xd9b   :  { %17112 = vmatmul.mubr.msk.f32.gmra.mrb[90].mxu0 %vm431_vm0, %v19761_v19  ;;  %v19789_v19 = vld [vmem:[%s26745_s3 + $0x118] sm:$0xff] }
 0xd9c   :  { %17114 = vmatprep.mubr.msk.f32.mxu0 %vm431_vm0, %v19762_v43  ;;  %v19790_v43 = vld [vmem:[%s26747_s4] sm:$0xff] }
 0xd9f   :  { %17115 = vmatmul.mubr.msk.f32.gmra.mrb[92].mxu0 %vm431_vm0, %v19763_v0  ;;  %v19791_v0 = vld [vmem:[%s26747_s4 + $0x8] sm:$0xff] }
 0xda0   :  { %17117 = vmatprep.mubr.msk.f32.mxu0 %vm431_vm0, %v19764_v23  ;;  %v19792_v23 = vld [vmem:[%s26747_s4 + $0x10] sm:$0xff] }
 0xda3   :  { %17118 = vmatmul.mubr.msk.f32.gmra.mrb[94].mxu0 %vm431_vm0, %v19765_v42  ;;  %v19793_v42 = vld [vmem:[%s26747_s4 + $0x18] sm:$0xff] }
 0xda4   :  { %17120 = vmatprep.mubr.msk.f32.mxu0 %vm431_vm0, %v19766_v17  ;;  %v19794_v17 = vld [vmem:[%s26747_s4 + $0x20] sm:$0xff] }
 0xda7   :  { %17121 = vmatmul.mubr.msk.f32.gmra.mrb[96].mxu0 %vm431_vm0, %v19767_v27  ;;  %v19795_v27 = vld [vmem:[%s26747_s4 + $0x28] sm:$0xff] }
 0xda8   :  { %17123 = vmatprep.mubr.msk.f32.mxu0 %vm431_vm0, %v19768_v20  ;;  %v19796_v20 = vld [vmem:[%s26747_s4 + $0x30] sm:$0xff] }
 0xdab   :  { %17124 = vmatmul.mubr.msk.f32.gmra.mrb[98].mxu0 %vm431_vm0, %v19769_v48  ;;  %v19797_v48 = vld [vmem:[%s26747_s4 + $0x38] sm:$0xff] }
 0xdac   :  { %17126 = vmatprep.mubr.msk.f32.mxu0 %vm431_vm0, %v19770_v1  ;;  %v19798_v1 = vld [vmem:[%s26747_s4 + $0x40] sm:$0xff] }
 0xdaf   :  { %17127 = vmatmul.mubr.msk.f32.gmra.mrb[100].mxu0 %vm431_vm0, %v19771_v60  ;;  %v19799_v60 = vld [vmem:[%s26747_s4 + $0x48] sm:$0xff] }
 0xdb0   :  { %17129 = vmatprep.mubr.msk.f32.mxu0 %vm431_vm0, %v19772_v9  ;;  %v19800_v9 = vld [vmem:[%s26747_s4 + $0x50] sm:$0xff] }
 0xdb3   :  { %17130 = vmatmul.mubr.msk.f32.gmra.mrb[102].mxu0 %vm431_vm0, %v19773_v58  ;;  %v19801_v58 = vld [vmem:[%s26747_s4 + $0x58] sm:$0xff] }
 0xdb4   :  { %17132 = vmatprep.mubr.msk.f32.mxu0 %vm431_vm0, %v19774_v55  ;;  %v19802_v55 = vld [vmem:[%s26747_s4 + $0x60] sm:$0xff] }
 0xdb7   :  { %17133 = vmatmul.mubr.msk.f32.gmra.mrb[104].mxu0 %vm431_vm0, %v19775_v40  ;;  %v19803_v40 = vld [vmem:[%s26747_s4 + $0x68] sm:$0xff] }
 0xdb8   :  { %17135 = vmatprep.mubr.msk.f32.mxu0 %vm431_vm0, %v19776_v51  ;;  %v19804_v51 = vld [vmem:[%s26747_s4 + $0x70] sm:$0xff] }
 0xdbb   :  { %17136 = vmatmul.mubr.msk.f32.gmra.mrb[106].mxu0 %vm431_vm0, %v19777_v39  ;;  %v19805_v39 = vld [vmem:[%s26747_s4 + $0x78] sm:$0xff] }
 0xdbc   :  { %17138 = vmatprep.mubr.msk.f32.mxu0 %vm431_vm0, %v19778_v28  ;;  %v19806_v28 = vld [vmem:[%s26747_s4 + $0x80] sm:$0xff] }
 0xdbf   :  { %17139 = vmatmul.mubr.msk.f32.gmra.mrb[108].mxu0 %vm431_vm0, %v19779_v2  ;;  %v19807_v2 = vld [vmem:[%s26747_s4 + $0x88] sm:$0xff] }
 0xdc0   :  { %17141 = vmatprep.mubr.msk.f32.mxu0 %vm431_vm0, %v19780_v3  ;;  %v19808_v3 = vld [vmem:[%s26747_s4 + $0x90] sm:$0xff] }
 0xdc3   :  { %17142 = vmatmul.mubr.msk.f32.gmra.mrb[110].mxu0 %vm431_vm0, %v19781_v32  ;;  %v19809_v32 = vld [vmem:[%s26747_s4 + $0x98] sm:$0xff] }
 0xdc4   :  { %17144 = vmatprep.mubr.msk.f32.mxu0 %vm431_vm0, %v19782_v4  ;;  %v19810_v4 = vld [vmem:[%s26747_s4 + $0xa0] sm:$0xff] }
 0xdc7   :  { %17145 = vmatmul.mubr.msk.f32.gmra.mrb[112].mxu0 %vm431_vm0, %v19783_v37  ;;  %v19811_v37 = vld [vmem:[%s26747_s4 + $0xa8] sm:$0xff] }
 0xdc8   :  { %17147 = vmatprep.mubr.msk.f32.mxu0 %vm431_vm0, %v19784_v31  ;;  %v19812_v31 = vld [vmem:[%s26747_s4 + $0xb0] sm:$0xff] }
 0xdcb   :  { %17148 = vmatmul.mubr.msk.f32.gmra.mrb[114].mxu0 %vm431_vm0, %v19785_v54  ;;  %v19813_v54 = vld [vmem:[%s26747_s4 + $0xb8] sm:$0xff] }
 0xdcc   :  { %17150 = vmatprep.mubr.msk.f32.mxu0 %vm431_vm0, %v19786_v52  ;;  %v19814_v52 = vld [vmem:[%s26747_s4 + $0xc0] sm:$0xff] }
 0xdcf   :  { %17151 = vmatmul.mubr.msk.f32.gmra.mrb[116].mxu0 %vm431_vm0, %v19787_v57  ;;  %v19815_v57 = vld [vmem:[%s26747_s4 + $0xc8] sm:$0xff] }
 0xdd0   :  { %17153 = vmatprep.mubr.msk.f32.mxu0 %vm431_vm0, %v19788_v14  ;;  %v19816_v14 = vld [vmem:[%s26747_s4 + $0xd0] sm:$0xff] }
 0xdd3   :  { %17154 = vmatmul.mubr.msk.f32.gmra.mrb[118].mxu0 %vm431_vm0, %v19789_v19  ;;  %v19817_v19 = vld [vmem:[%s26747_s4 + $0xd8] sm:$0xff] }
 0xdd4   :  { %17160 = vmatprep.mubr.msk.f32.mxu0 %vm431_vm0, %v19790_v43  ;;  %v19818_v43 = vld [vmem:[%s26747_s4 + $0xe0] sm:$0xff] }
 0xdd7   :  { %17161 = vmatmul.mubr.msk.f32.vlgmr.msra.gmra.mrb[84].mxu0 %vm431_vm0, %v19791_v0  ;;  %v19819_v0 = vld [vmem:[%s26747_s4 + $0xe8] sm:$0xff] }
 0xdd8   :  { %17163 = vmatprep.mubr.msk.f32.mxu0 %vm431_vm0, %v19792_v23  ;;  %v19820_v23 = vld [vmem:[%s26747_s4 + $0xf0] sm:$0xff] }
 0xddb   :  { %17164 = vmatmul.mubr.msk.f32.gmra.mrb[86].mxu0 %vm431_vm0, %v19793_v42  ;;  %v19821_v42 = vld [vmem:[%s26747_s4 + $0xf8] sm:$0xff] }
 0xddc   :  { %17166 = vmatprep.mubr.msk.f32.mxu0 %vm431_vm0, %v19794_v17  ;;  %v19822_v17 = vld [vmem:[%s26747_s4 + $0x100] sm:$0xff] }
 0xddf   :  { %17167 = vmatmul.mubr.msk.f32.gmra.mrb[88].mxu0 %vm431_vm0, %v19795_v27  ;;  %v19823_v27 = vld [vmem:[%s26747_s4 + $0x108] sm:$0xff] }
 0xde0   :  { %17169 = vmatprep.mubr.msk.f32.mxu0 %vm431_vm0, %v19796_v20  ;;  %v19824_v20 = vld [vmem:[%s26747_s4 + $0x110] sm:$0xff] }
 0xde3   :  { %17170 = vmatmul.mubr.msk.f32.gmra.mrb[90].mxu0 %vm431_vm0, %v19797_v48  ;;  %v19825_v48 = vld [vmem:[%s26747_s4 + $0x118] sm:$0xff] }
 0xde4   :  { %17172 = vmatprep.mubr.msk.f32.mxu0 %vm431_vm0, %v19798_v1  ;;  %v19826_v1 = vld [vmem:[%s26754_s13 + $0x8] sm:$0xff] }
 0xde7   :  { %17173 = vmatmul.mubr.msk.f32.gmra.mrb[92].mxu0 %vm431_vm0, %v19799_v60 }
 0xde8   :  { %17175 = vmatprep.mubr.msk.f32.mxu0 %vm431_vm0, %v19800_v9 }
 0xdeb   :  { %17176 = vmatmul.mubr.msk.f32.gmra.mrb[94].mxu0 %vm431_vm0, %v19801_v58 }
 0xdec   :  { %17178 = vmatprep.mubr.msk.f32.mxu0 %vm431_vm0, %v19802_v55 }
 0xdef   :  { %17179 = vmatmul.mubr.msk.f32.gmra.mrb[96].mxu0 %vm431_vm0, %v19803_v40 }
 0xdf0   :  { %17181 = vmatprep.mubr.msk.f32.mxu0 %vm431_vm0, %v19804_v51 }
 0xdf3   :  { %17182 = vmatmul.mubr.msk.f32.gmra.mrb[98].mxu0 %vm431_vm0, %v19805_v39 }
 0xdf4   :  { %17184 = vmatprep.mubr.msk.f32.mxu0 %vm431_vm0, %v19806_v28 }
 0xdf7   :  { %17185 = vmatmul.mubr.msk.f32.gmra.mrb[100].mxu0 %vm431_vm0, %v19807_v2 }
 0xdf8   :  { %17187 = vmatprep.mubr.msk.f32.mxu0 %vm431_vm0, %v19808_v3 }
 0xdfb   :  { %17188 = vmatmul.mubr.msk.f32.gmra.mrb[102].mxu0 %vm431_vm0, %v19809_v32 }
 0xdfc   :  { %17190 = vmatprep.mubr.msk.f32.mxu0 %vm431_vm0, %v19810_v4 }
 0xdff   :  { %17191 = vmatmul.mubr.msk.f32.gmra.mrb[104].mxu0 %vm431_vm0, %v19811_v37 }
 0xe00   :  { %17193 = vmatprep.mubr.msk.f32.mxu0 %vm431_vm0, %v19812_v31 }
 0xe03   :  { %17194 = vmatmul.mubr.msk.f32.gmra.mrb[106].mxu0 %vm431_vm0, %v19813_v54 }
 0xe04   :  { %17196 = vmatprep.mubr.msk.f32.mxu0 %vm431_vm0, %v19814_v52 }
 0xe07   :  { %17197 = vmatmul.mubr.msk.f32.gmra.mrb[108].mxu0 %vm431_vm0, %v19815_v57 }
 0xe08   :  { %17199 = vmatprep.mubr.msk.f32.mxu0 %vm431_vm0, %v19816_v14 }
 0xe0b   :  { %17200 = vmatmul.mubr.msk.f32.gmra.mrb[110].mxu0 %vm431_vm0, %v19817_v19 }
 0xe0c   :  { %17202 = vmatprep.mubr.msk.f32.mxu0 %vm431_vm0, %v19818_v43 }
 0xe0f   :  { %17203 = vmatmul.mubr.msk.f32.gmra.mrb[112].mxu0 %vm431_vm0, %v19819_v0 }
 0xe10   :  { %17205 = vmatprep.mubr.msk.f32.mxu0 %vm431_vm0, %v19820_v23 }
 0xe13   :  { %17206 = vmatmul.mubr.msk.f32.gmra.mrb[114].mxu0 %vm431_vm0, %v19821_v42 }
 0xe14   :  { %17208 = vmatprep.mubr.msk.f32.mxu0 %vm431_vm0, %v19822_v17 }
 0xe17   :  { %17209 = vmatmul.mubr.msk.f32.gmra.mrb[116].mxu0 %vm431_vm0, %v19823_v27  ;;  %v26996_v27 = vld [vmem:[#allocation11_spill] sm:$0xff] }
 0xe18   :  { %17211 = vmatprep.mubr.msk.f32.mxu0 %vm431_vm0, %v19824_v20 }
 0xe1b   :  { %17212 = vmatmul.mubr.msk.f32.gmra.mrb[118].mxu0 %vm431_vm0, %v19825_v48 }
 0xe1c   :  { %10007 = vmatprep.mubr.f32.mxu0 %v19826_v1 }
 0xeaa   :  { %v17162_v60 = vpop.f32.mrb[84].mxu0 }
 0xeab   :  { %v8445_v9 = vadd.f32 %v17162_v60, %v21193_v41  ;;  %v8229_v58 = vpop.f32.mrb[85].mxu0 }
 0xeac   :  { %v8444_v55 = vadd.f32 %v8229_v58, %v21186_v38 }
 0xead   :  { %v8481_v40 = vmax.f32 %v8445_v9, 0.0  ;;  %v26997_v9 = vld [vmem:[#allocation14_spill] sm:$0xff] }
 0xeae   :  { %v8480_v51 = vmax.f32 %v8444_v55, 0.0  ;;  %v17165_v39 = vpop.f32.mrb[86].mxu0 }
 0xeaf   :  { %v8447_v28 = vadd.f32 %v17165_v39, %v21201_v45  ;;  %v8239_v2 = vpop.f32.mrb[87].mxu0 }
 0xeb0   :  { %v24319_v3 = vpack.c.bf16 %v8481_v40, %v8480_v51  ;;  %v8446_v32 = vadd.f32 %v8239_v2, %v21203_v46  ;;  %v26998_v51 = vld [vmem:[#allocation15_spill] sm:$0xff] }
 0xeb1   :  { %v8483_v4 = vmax.f32 %v8447_v28, 0.0 }
 0xeb2   :  { %v8482_v37 = vmax.f32 %v8446_v32, 0.0  ;;  %v17168_v31 = vpop.f32.mrb[88].mxu0 }
 0xeb3   :  { %v8449_v54 = vadd.f32 %v17168_v31, %v21209_v49  ;;  %v8249_v52 = vpop.f32.mrb[89].mxu0 }
 0xeb4   :  { %v24323_v57 = vpack.c.bf16 %v8483_v4, %v8482_v37  ;;  %v8448_v14 = vadd.f32 %v8249_v52, %v21211_v50  ;;  %v26999_v4 = vld [vmem:[#allocation18_spill] sm:$0xff]  ;;  %v27000_v52 = vld [vmem:[#allocation19_spill] sm:$0xff] }
 0xeb5   :  { %v8485_v19 = vmax.f32 %v8449_v54, 0.0 }
 0xeb6   :  { %v8484_v43 = vmax.f32 %v8448_v14, 0.0  ;;  %v17171_v0 = vpop.f32.mrb[90].mxu0 }
 0xeb7   :  { %v8451_v23 = vadd.f32 %v17171_v0, %v21217_v53  ;;  %v8259_v42 = vpop.f32.mrb[91].mxu0 }
 0xeb8   :  { %v24327_v17 = vpack.c.bf16 %v8485_v19, %v8484_v43  ;;  %v8450_v20 = vadd.f32 %v8259_v42, %v26996_v27  ;;  %v27007_v27 = vld [vmem:[#allocation4_spill] sm:$0xff] }
 0xeb9   :  { %v8487_v48 = vmax.f32 %v8451_v23, 0.0  ;;  %v27001_v23 = vld [vmem:[#allocation22_spill] sm:$0xff] }
 0xeba   :  { %v8486_v1 = vmax.f32 %v8450_v20, 0.0  ;;  %v17174_v60 = vpop.f32.mrb[92].mxu0 }
 0xebb   :  { %v8453_v58 = vadd.f32 %v17174_v60, %v26997_v9  ;;  %v8269_v55 = vpop.f32.mrb[93].mxu0  ;;  %v27005_v9 = vld [vmem:[#allocation3_spill] sm:$0xff] }
 0xebc   :  { %v24331_v40 = vpack.c.bf16 %v8487_v48, %v8486_v1  ;;  %v8452_v39 = vadd.f32 %v8269_v55, %v26998_v51  ;;  %v27002_v1 = vld [vmem:[#allocation23_spill] sm:$0xff]  ;;  %v27003_v51 = vld [vmem:[#allocation26_spill] sm:$0xff] }
 0xebd   :  { %v8489_v28 = vmax.f32 %v8453_v58, 0.0 }
 0xebe   :  { %v8488_v2 = vmax.f32 %v8452_v39, 0.0  ;;  %v17177_v32 = vpop.f32.mrb[94].mxu0 }
 0xebf   :  { %v8455_v37 = vadd.f32 %v17177_v32, %v26999_v4  ;;  %v8279_v31 = vpop.f32.mrb[95].mxu0 }
 0xec0   :  { %v24335_v54 = vpack.c.bf16 %v8489_v28, %v8488_v2  ;;  %v8454_v14 = vadd.f32 %v8279_v31, %v27000_v52  ;;  %v27004_v2 = vld [vmem:[#allocation27_spill] sm:$0xff] }
 0xec1   :  { %v8491_v19 = vmax.f32 %v8455_v37, 0.0 }
 0xec2   :  { %v8490_v43 = vmax.f32 %v8454_v14, 0.0  ;;  %v17180_v0 = vpop.f32.mrb[96].mxu0 }
 0xec3   :  { %v8457_v42 = vadd.f32 %v17180_v0, %v27001_v23  ;;  %v8289_v20 = vpop.f32.mrb[97].mxu0 }
 0xec4   :  { %v24339_v48 = vpack.c.bf16 %v8491_v19, %v8490_v43  ;;  %v8456_v60 = vadd.f32 %v8289_v20, %v27002_v1  ;;  %v27006_v43 = vld [vmem:[#allocation2_spill] sm:$0xff] }
 0xec5   :  { %v8493_v58 = vmax.f32 %v8457_v42, 0.0 }
 0xec6   :  { %v8492_v55 = vmax.f32 %v8456_v60, 0.0  ;;  %v17183_v39 = vpop.f32.mrb[98].mxu0 }
 0xec7   :  { %v8459_v32 = vadd.f32 %v17183_v39, %v27003_v51  ;;  %v8299_v4 = vpop.f32.mrb[99].mxu0 }
 0xec8   :  { %v24343_v28 = vpack.c.bf16 %v8493_v58, %v8492_v55  ;;  %v8458_v31 = vadd.f32 %v8299_v4, %v27004_v2  ;;  %v27008_v55 = vld [vmem:[#allocation5_spill] sm:$0xff]  ;;  %v27009_v2 = vld [vmem:[#allocation6_spill] sm:$0xff] }
 0xec9   :  { %v8495_v37 = vmax.f32 %v8459_v32, 0.0 }
 0xeca   :  { %v8494_v14 = vmax.f32 %v8458_v31, 0.0  ;;  %v17186_v52 = vpop.f32.mrb[100].mxu0 }
 0xecb   :  { %v8461_v0 = vadd.f32 %v17186_v52, %v27005_v9  ;;  %v8309_v23 = vpop.f32.mrb[101].mxu0 }
 0xecc   :  { %v24347_v19 = vpack.c.bf16 %v8495_v37, %v8494_v14  ;;  %v8460_v20 = vadd.f32 %v8309_v23, %v27006_v43  ;;  %v27010_v23 = vld [vmem:[#allocation7_spill] sm:$0xff] }
 0xecd   :  { %v8497_v42 = vmax.f32 %v8461_v0, 0.0 }
 0xece   :  { %v8496_v60 = vmax.f32 %v8460_v20, 0.0  ;;  %v17189_v1 = vpop.f32.mrb[102].mxu0 }
 0xecf   :  { %v8463_v39 = vadd.f32 %v17189_v1, %v27007_v27  ;;  %v8319_v51 = vpop.f32.mrb[103].mxu0  ;;  %v27011_v1 = vld [vmem:[#allocation8_spill] sm:$0xff] }
 0xed0   :  { %v18208_v58 = vpack.c.bf16 %v8497_v42, %v8496_v60  ;;  %v8462_v53 = vadd.f32 %v8319_v51, %v27008_v55  ;;  %v27012_v51 = vld [vmem:[#allocation9_spill] sm:$0xff] }
 0xed1   :  { %v8499_v4 = vmax.f32 %v8463_v39, 0.0 }
 0xed2   :  { %v8498_v32 = vmax.f32 %v8462_v53, 0.0  ;;  %v17192_v31 = vpop.f32.mrb[104].mxu0  ;;  %18209 = vmatprep.subr.bf16.mxu1 %v18208_v58 }
 0xed3   :  { %v8465_v52 = vadd.f32 %v17192_v31, %v27009_v2  ;;  %v8329_v9 = vpop.f32.mrb[105].mxu0  ;;  %18211 = vmatpush3.bf16.msra.mxu1 %v24319_v3  ;;  %v27013_v3 = vld [vmem:[#allocation12_spill] sm:$0xff] }
 0xed4   :  { %v18212_v37 = vpack.c.bf16 %v8499_v4, %v8498_v32  ;;  %v8464_v14 = vadd.f32 %v8329_v9, %v27010_v23 }
 0xed5   :  { %v8501_v0 = vmax.f32 %v8465_v52, 0.0  ;;  %v27014_v52 = vld [vmem:[#allocation13_spill] sm:$0xff] }
 0xed6   :  { %v8500_v20 = vmax.f32 %v8464_v14, 0.0  ;;  %v17195_v43 = vpop.f32.mrb[106].mxu0  ;;  %18213 = vmatprep.subr.bf16.mxu1 %v18212_v37 }
 0xed7   :  { %v8467_v42 = vadd.f32 %v17195_v43, %v27011_v1  ;;  %v8339_v60 = vpop.f32.mrb[107].mxu0  ;;  %18215 = vmatpush3.bf16.msra.mxu1 %v24323_v57  ;;  %v27015_v57 = vld [vmem:[#allocation16_spill] sm:$0xff] }
 0xed8   :  { %v18216_v53 = vpack.c.bf16 %v8501_v0, %v8500_v20  ;;  %v8466_v39 = vadd.f32 %v8339_v60, %v27012_v51  ;;  %v27016_v60 = vld [vmem:[#allocation17_spill] sm:$0xff] }
 0xed9   :  { %v8503_v58 = vmax.f32 %v8467_v42, 0.0 }
 0xeda   :  { %v8502_v31 = vmax.f32 %v8466_v39, 0.0  ;;  %v17198_v2 = vpop.f32.mrb[108].mxu0  ;;  %18217 = vmatprep.subr.bf16.mxu1 %v18216_v53 }
 0xedb   :  { %v8469_v4 = vadd.f32 %v17198_v2, %v27013_v3  ;;  %v8349_v32 = vpop.f32.mrb[109].mxu0  ;;  %18219 = vmatpush3.bf16.msra.mxu1 %v24327_v17  ;;  %v27017_v17 = vld [vmem:[#allocation20_spill] sm:$0xff] }
 0xedc   :  { %v18220_v9 = vpack.c.bf16 %v8503_v58, %v8502_v31  ;;  %v8468_v37 = vadd.f32 %v8349_v32, %v27014_v52  ;;  %v27018_v32 = vld [vmem:[#allocation21_spill] sm:$0xff] }
 0xedd   :  { %v8505_v14 = vmax.f32 %v8469_v4, 0.0 }
 0xede   :  { %v8504_v43 = vmax.f32 %v8468_v37, 0.0  ;;  %v17201_v1 = vpop.f32.mrb[110].mxu0  ;;  %18221 = vmatprep.subr.bf16.mxu1 %v18220_v9 }
 0xedf   :  { %v8471_v0 = vadd.f32 %v17201_v1, %v27015_v57  ;;  %v8359_v20 = vpop.f32.mrb[111].mxu0  ;;  %18223 = vmatpush3.bf16.msra.mxu1 %v24331_v40  ;;  %v27019_v40 = vld [vmem:[#allocation24_spill] sm:$0xff] }
 0xee0   :  { %v18224_v42 = vpack.c.bf16 %v8505_v14, %v8504_v43  ;;  %v8470_v53 = vadd.f32 %v8359_v20, %v27016_v60  ;;  %v27020_v20 = vld [vmem:[#allocation25_spill] sm:$0xff] }
 0xee1   :  { %v8507_v39 = vmax.f32 %v8471_v0, 0.0 }
 0xee2   :  { %v8506_v2 = vmax.f32 %v8470_v53, 0.0  ;;  %v17204_v3 = vpop.f32.mrb[112].mxu0  ;;  %18225 = vmatprep.subr.bf16.mxu1 %v18224_v42 }
 0xee3   :  { %v8473_v58 = vadd.f32 %v17204_v3, %v27017_v17  ;;  %v8369_v31 = vpop.f32.mrb[113].mxu0  ;;  %18227 = vmatpush3.bf16.msra.mxu1 %v24335_v54  ;;  %v27021_v54 = vld [vmem:[#allocation28_spill] sm:$0xff] }
 0xee4   :  { %v18228_v4 = vpack.c.bf16 %v8507_v39, %v8506_v2  ;;  %v8472_v9 = vadd.f32 %v8369_v31, %v27018_v32  ;;  %v27022_v31 = vld [vmem:[#allocation29_spill] sm:$0xff] }
 0xee5   :  { %v8509_v37 = vmax.f32 %v8473_v58, 0.0 }
 0xee6   :  { %v8508_v1 = vmax.f32 %v8472_v9, 0.0  ;;  %v17207_v57 = vpop.f32.mrb[114].mxu0  ;;  %18229 = vmatprep.subr.bf16.mxu1 %v18228_v4 }
 0xee7   :  { %v8475_v14 = vadd.f32 %v17207_v57, %v27019_v40  ;;  %v8379_v43 = vpop.f32.mrb[115].mxu0  ;;  %18231 = vmatpush3.bf16.msra.mxu1 %v24339_v48  ;;  %v27023_v48 = vld [vmem:[#allocation30_spill] sm:$0xff] }
 0xee8   :  { %v18232_v0 = vpack.c.bf16 %v8509_v37, %v8508_v1  ;;  %v8474_v42 = vadd.f32 %v8379_v43, %v27020_v20  ;;  %v27024_v43 = vld [vmem:[#allocation31_spill] sm:$0xff] }
 0xee9   :  { %v8511_v53 = vmax.f32 %v8475_v14, 0.0 }
 0xeea   :  { %v8510_v3 = vmax.f32 %v8474_v42, 0.0  ;;  %v17210_v17 = vpop.f32.mrb[116].mxu0  ;;  %18233 = vmatprep.subr.bf16.mxu1 %v18232_v0 }
 0xeeb   :  { %v8477_v39 = vadd.f32 %v17210_v17, %v27021_v54  ;;  %v8389_v2 = vpop.f32.mrb[117].mxu0  ;;  %18235 = vmatpush3.bf16.msra.mxu1 %v24343_v28  ;;  %v19827_v28 = vld [vmem:[%s26748_s6] sm:$0xff] }
 0xeec   :  { %v18236_v58 = vpack.c.bf16 %v8511_v53, %v8510_v3  ;;  %v8476_v4 = vadd.f32 %v8389_v2, %v27022_v31  ;;  %v19828_v53 = vld [vmem:[%s26748_s6 + $0x20] sm:$0x1]  ;;  %v19830_v3 = vld [vmem:[%s26748_s6 + $0x10] sm:$0xff] }
 0xeed   :  { %v8513_v9 = vmax.f32 %v8477_v39, 0.0  ;;  %v19831_v39 = vld [vmem:[%s26748_s6 + $0x28] sm:$0x1]  ;;  %v19832_v2 = vld [vmem:[%s26749_s9] sm:$0xff] }
 0xeee   :  { %v8512_v57 = vmax.f32 %v8476_v4, 0.0  ;;  %v17213_v40 = vpop.f32.mrb[118].mxu0  ;;  %18237 = vmatprep.subr.bf16.mxu1 %v18236_v58 }
 0xeef   :  { %v8479_v37 = vadd.f32 %v17213_v40, %v27023_v48  ;;  %v8399_v1 = vpop.f32.mrb[119].mxu0  ;;  %18239 = vmatpush3.bf16.msra.mxu1 %v24347_v19  ;;  %v19829_v19 = vld [vmem:[%s26748_s6 + $0x18] sm:$0x1] }
 0xef0   :  { %v18240_v14 = vpack.c.bf16 %v8513_v9, %v8512_v57  ;;  %v8478_v0 = vadd.f32 %v8399_v1, %v27024_v43 }
 0xef1   :  { %v8515_v42 = vmax.f32 %v8479_v37, 0.0 }
 0xef2   :  { %v8514_v17 = vmax.f32 %v8478_v0, 0.0  ;;  %8581 = vmatmul.mubr.f32.vlgmr.msra.gmra.mrb[84].mxu1 %v19827_v28  ;;  %18241 = vmatprep.subr.bf16.mxu1 %v18240_v14  ;;  %v24403_v0 = vadd.f32 %v23700_v6, %v22943_v44 }
 0xef3   :  { %18243 = vmatpush3.bf16.msra.mxu1 %v18240_v14  ;;  %8585 = vmatprep.mubr.f32.mxu1 %v19828_v53  ;;  %v24399_v14 = vadd.f32 %v23703_v62, %v22946_v15  ;;  %v27026_v53 = vld [vmem:[#allocation33_spill] sm:$0xff] }
 0xef4   :  { %v18244_v40 = vpack.c.bf16 %v8515_v42, %v8514_v17  ;;  %v27025_v42 = vld [vmem:[#allocation32_spill] sm:$0xff] }
 0xef6   :  { %8586 = vmatmul.mubr.f32.gmra.mrb[86].mxu1 %v19829_v19  ;;  %18245 = vmatprep.subr.bf16.mxu1 %v18244_v40  ;;  %v13827_v19 = vld [vmem:[%s26750_s0 + $0x48] sm:$0x1] }
 0xef7   :  { %18247 = vmatpush3.bf16.msra.mxu1 %v18244_v40  ;;  %17222 = vmatprep.mubr.msk.f32.mxu1 %vm2185_vm4, %v19830_v3  ;;  %v13826_v3 = vld [vmem:[%s26750_s0 + $0x40] sm:$0xff] }
 0xefa   :  { %17223 = vmatmul.mubr.msk.f32.vlgmr.msra.gmra.mrb[88].mxu1 %vm2185_vm4, %v19831_v39 }
 0xefb   :  { %17229 = vmatprep.mubr.msk.f32.mxu1 %vm431_vm0, %v19832_v2 }
 0xfc5   :  { %v15418_v58 = vpop.f32.mrb[84].mxu1 }
 0xfc6   :  { %v15419_v4 = vpop.f32.mrb[85].mxu1 }
 0xfc7   :  { %v15420_v9 = vadd.f32 %v15419_v4, %v15418_v58  ;;  %v26877_v4 = vsub.f32 1.0, %v24399_v14 }
 0xfc9   :  { %v15421_v57 = vpop.f32.mrb[86].mxu1  ;;  %v8583_v40 = vadd.f32 %v15420_v9, %v27026_v53 }
 0xfca   :  { %v15422_v37 = vpop.f32.mrb[87].mxu1 }
 0xfcb   :  { %v15423_v1 = vadd.f32 %v15422_v37, %v15421_v57  ;;  %v8670_v57 = vsub.f32 1.0, %v24403_v0  ;;  %v8808_v0 = vsub.f32 1.0, %v23703_v62 }
 0xfcd   :  { %v8588_v17 = vadd.f32 %v15423_v1, %v27025_v42  ;;  %v17224_v28 = vpop.f32.mrb[88].mxu1 }
 0xfce   :  { %v8657_v39 = vpop.f32.mrb[89].mxu1 }
 0xfcf   :  { %v8663_v2 = vadd.f32 %v17224_v28, %v8588_v17  ;;  %v8658_v58 = vadd.f32 %v8657_v39, %v8583_v40 }
 0xfd1   :  { %v8669_v37 = vmul.f32 %v8663_v2, %v8663_v2  ;;  %v8683_v1 = vadd.f32 %v13827_v19, %v8663_v2  ;;  %v8668_v42 = vmul.f32 %v8658_v58, %v8658_v58  ;;  %v8682_v43 = vadd.f32 %v13826_v3, %v8658_v58 }
 0xfd3   :  { %v8673_v9 = vmul.f32 %v26877_v4, %v8669_v37  ;;  %v8684_v53 = vsel %vm540_vm1, %v8683_v1, -inf  ;;  %v8672_v48 = vmul.f32 %v8670_v57, %v8668_v42 }
 0xfd4   :  { %v8685_v31 = vmax.f32 %v8682_v43, %v8684_v53 }
 0xfd5   :  { %v8674_v17 = vsel %vm540_vm1, %v8673_v9, 0.0 }
 0xfd6   :  { %v8675_v28 = vadd.f32 %v8674_v17, %v8672_v48  ;;  %v8686_v40 = vrot.slane %v8685_v31, 4 }
 0xfd8   :  { %v8676_v39 = vrot.slane %v8675_v28, 4  ;;  %v8687_v54 = vmax.f32 %v8685_v31, %v8686_v40  ;;  %v7336_v40 = vrot.slane %v23703_v62, 2 }
 0xfda   :  { %v8677_v20 = vadd.f32 %v8676_v39, %v8675_v28  ;;  %v8688_v32 = vrot.slane %v8687_v54, 2 }
 0xfdc   :  { %v8678_v19 = vrot.slane %v8677_v20, 2  ;;  %v8689_v2 = vmax.f32 %v8687_v54, %v8688_v32 }
 0xfde   :  { %v8679_v3 = vadd.f32 %v8678_v19, %v8677_v20  ;;  %v8690_v58 = vrot.slane %v8689_v2, 1  ;;  %v7343_v19 = vrot.slane %v23700_v6, 3 }
 0xfe0   :  { %v8680_v60 = vrot.slane %v8679_v3, 1  ;;  %v8691_v37 = vmax.f32 %v8689_v2, %v8690_v58 }
 0xfe2   :  { %v8681_v4 = vadd.f32 %v8680_v60, %v8679_v3  ;;  %v8692_v52 = vsub.f32 %v8682_v43, %v8691_v37  ;;  %v8693_v51 = vsub.f32 %v8683_v1, %v8691_v37  ;;  %v7325_v60 = vrot.slane %v23700_v6, 1 }
 0xfe3   :  { %v7345_v37 = vmul.f32 %v7343_v19, %v23700_v6 }
 0xfe4   :  { %v8694_v23 = vmul.f32 1.442695, %v8692_v52  ;;  %v8696_v42 = vmul.f32 1.442695, %v8693_v51  ;;  %v10231_v53 = vmul.f32 0.0033333334, %v8681_v4  ;;  %v7327_v51 = vmul.f32 %v7325_v60, %v23700_v6 }
 0xfe6   :  { %19334 = vpow2.f32 %v8694_v23  ;;  %v24422_v48 = vadd.f32 %v10231_v53, %v22910_v35  ;;  %v7328_v23 = vrot.slane %v23700_v6, 2  ;;  %v7338_v39 = vmul.f32 %v7336_v40, %v7327_v51 }
 0xfe7   :  { %19336 = vpow2.f32 %v8696_v42 }
 0xfe8   :  { %v7330_v35 = vmul.f32 %v7328_v23, %v7327_v51  ;;  %v7340_v58 = vrot.slane %v7338_v39, 6 }
 0xfea   :  { %v7332_v4 = vrot.slane %v7330_v35, 3 }
 0xfec   :  { %v7334_v2 = vadd.f32 %v7332_v4, %v7330_v35  ;;  %v7361_v4 = vrot.slane %v23700_v6, 4 }
 0xfee   :  { %v7363_v19 = vmul.f32 %v7361_v4, %v23700_v6 }
 0xff0   :  { %v19335_v31 = vpop.eup %19334 }
 0xff1   :  { %v19337_v9 = vpop.eup %19336 }
 0xff2   :  { %v8698_v17 = vsel %vm540_vm1, %v19337_v9, 0.0 }
 0xff3   :  { %v8699_v32 = vadd.f32 %v19335_v31, %v8698_v17  ;;  %v7342_v17 = vadd.f32 %v7340_v58, %v7334_v2  ;;  %v7366_v2 = vmul.f32 %v7328_v23, %v23700_v6 }
 0xff5   :  { %v8700_v20 = vrot.slane %v8699_v32, 4 }
 0xff7   :  { %v8701_v54 = vadd.f32 %v8700_v20, %v8699_v32  ;;  %v7346_v32 = vrot.slane %v23700_v6, 6 }
 0xff9   :  { %v8702_v28 = vrot.slane %v8701_v54, 2 }
 0xffb   :  { %v8703_v43 = vadd.f32 %v8702_v28, %v8701_v54  ;;  %v7348_v28 = vmul.f32 %v7346_v32, %v7345_v37 }
 0xffd   :  { %v8704_v1 = vrot.slane %v8703_v43, 1 }
 0xfff   :  { %v8705_v52 = vadd.f32 %v8704_v1, %v8703_v43  ;;  %v7349_v43 = vadd.f32 %v7348_v28, %v7342_v17  ;;  %v7354_v1 = vrot.slane %v23703_v62, 6  ;;  %v7364_v17 = vmul.f32 %v7363_v19, %v23703_v62 }
0x1001   :  { %19338 = vrcp.f32 %v8705_v52  ;;  %v7351_v52 = vrot.slane %v7348_v28, 1  ;;  %v7356_v35 = vmul.f32 %v7354_v1, %v7345_v37 }
0x1003   :  { %v7353_v39 = vadd.f32 %v7351_v52, %v7349_v43 }
0x100b   :  { %v19339_v3 = vpop.eup %19338 }
0x100c   :  { %v8707_v42 = vmul.f32 %v19339_v3, %v19335_v31  ;;  %v8708_v53 = vmul.f32 %v19339_v3, %v19337_v9  ;;  %v7358_v9 = vrot.slane %v7356_v35, 2 }
0x100e   :  { %v8709_v20 = vsel %vm540_vm1, %v8708_v53, -inf  ;;  %v7360_v58 = vadd.f32 %v7358_v9, %v7353_v39 }
0x100f   :  { %v8710_v54 = vmax.f32 %v8707_v42, %v8709_v20  ;;  %v7367_v20 = vmul.f32 %v7366_v2, %v7361_v4 }
0x1011   :  { %v8711_v60 = vrot.slane %v8710_v54, 4  ;;  %v7369_v43 = vrot.slane %v7367_v20, 2 }
0x1013   :  { %v8712_v51 = vmax.f32 %v8710_v54, %v8711_v60  ;;  %v7365_v54 = vadd.f32 %v7364_v17, %v7360_v58 }
0x1015   :  { %v8713_v40 = vrot.slane %v8712_v51, 2 }
0x1017   :  { %v8714_v31 = vmax.f32 %v8712_v51, %v8713_v40  ;;  %v7371_v51 = vadd.f32 %v7369_v43, %v7365_v54 }
0x1019   :  { %v8715_v3 = vrot.slane %v8714_v31, 1  ;;  %v24442_v35 = vmax.f32 %v22929_v56, %v7371_v51 }
0x101b   :  { %v8716_v32 = vmax.f32 %v8714_v31, %v8715_v3  ;;  %v8743_v31 = vadd.f32 %v24442_v35, %v23686_v12 }
0x101d   :  { %vm8717_vm13 = vcmp.eq.f32.partialorder %v8707_v42, %v8716_v32  ;;  %vm8718_vm14 = vcmp.eq.f32.partialorder %v8708_v53, %v8716_v32  ;;  %v8744_v19 = vsub.f32 1.0, %v8743_v31  ;;  %v19839_v31 = vld [vmem:[%s26749_s9 + $0x38] sm:$0xff] }
0x101e   :  { %v8719_v37 = vsel %vm8717_vm13, %v21360_v63, 9  ;;  %v8720_v28 = vsel %vm8718_vm14, %v21363_v11, 9 }
0x101f   :  { %v8721_v60 = vsel %vm540_vm1, %v8720_v28, 2147483647  ;;  %v8748_v20 = vrot.slane %v8744_v19, %v22185_v16  ;;  %v19841_v19 = vld [vmem:[%s26749_s9 + $0x48] sm:$0xff] }
0x1020   :  { %vm8722_vm15 = vcmp.lt.s32.totalorder %v8719_v37, %v8721_v60 }
0x1021   :  { %v8723_v1 = vsel %vm8722_vm15, %v8719_v37, %v8721_v60  ;;  %v27027_v60 = vsub.f32 1.0, %v24399_v14 }
0x1022   :  { %v8724_v23 = vrot.slane %v8723_v1, 4 }
0x1024   :  { %vm8725_vm2 = vcmp.lt.s32.totalorder %v8723_v1, %v8724_v23 }
0x1025   :  { %v8726_v52 = vsel %vm8725_vm2, %v8723_v1, %v8724_v23 }
0x1026   :  { %v8727_v4 = vrot.slane %v8726_v52, 2 }
0x1028   :  { %vm8728_vm5 = vcmp.lt.s32.totalorder %v8726_v52, %v8727_v4 }
0x1029   :  { %v8729_v40 = vsel %vm8728_vm5, %v8726_v52, %v8727_v4  ;;  %v19834_v52 = vld [vmem:[%s26749_s9 + $0x10] sm:$0xff]  ;;  %v19835_v4 = vld [vmem:[%s26749_s9 + $0x18] sm:$0xff] }
0x102a   :  { %v8730_v39 = vrot.slane %v8729_v40, 1 }
0x102c   :  { %vm8731_vm6 = vcmp.lt.s32.totalorder %v8729_v40, %v8730_v39 }
0x102d   :  { %v8732_v9 = vsel %vm8731_vm6, %v8729_v40, %v8730_v39  ;;  %v19837_v40 = vld [vmem:[%s26749_s9 + $0x28] sm:$0xff]  ;;  %v19838_v39 = vld [vmem:[%s26749_s9 + $0x30] sm:$0xff] }
0x102e   :  { %vm8733_vm7 = vcmp.eq.s32.totalorder %v21360_v63, %v8732_v9  ;;  %vm8734_vm8 = vcmp.eq.s32.totalorder %v21363_v11, %v8732_v9  ;;  %v19840_v9 = vld [vmem:[%s26749_s9 + $0x40] sm:$0xff] }
0x102f   :  { %v13978_v2 = vsel %vm8733_vm7, 1.0, %v26944_v24  ;;  %v13979_v3 = vsel %vm8734_vm8, 1.0, %v26944_v24 }
0x1030   :  { %v8739_v56 = vsub.f32 %v13978_v2, %v8707_v42  ;;  %v8740_v58 = vsub.f32 %v13979_v3, %v8708_v53  ;;  %v19842_v2 = vld [vmem:[%s26749_s9 + $0x50] sm:$0xff]  ;;  %v19843_v3 = vld [vmem:[%s26749_s9 + $0x58] sm:$0xff] }
0x1032   :  { %v8741_v32 = vadd.f32 %v8739_v56, %v8707_v42  ;;  %v8742_v17 = vadd.f32 %v8740_v58, %v8708_v53  ;;  %v8807_v53 = vsub.f32 1.0, %v23700_v6  ;;  %v19844_v56 = vld [vmem:[%s26749_s9 + $0x60] sm:$0xff]  ;;  %v19845_v58 = vld [vmem:[%s26749_s9 + $0x68] sm:$0xff] }
0x1034   :  { %v8749_v54 = vmul.f32 %v8748_v20, %v8741_v32  ;;  %v8750_v37 = vmul.f32 %v8748_v20, %v8742_v17  ;;  %v19846_v32 = vld [vmem:[%s26749_s9 + $0x70] sm:$0xff]  ;;  %v19847_v17 = vld [vmem:[%s26749_s9 + $0x78] sm:$0xff]  ;;  %v19848_v20 = vld [vmem:[%s26749_s9 + $0x80] sm:$0xff] }
0x1036   :  { %v8751_v28 = vmul.f32 %v8749_v54, %v8670_v57  ;;  %v8752_v43 = vmul.f32 %v8750_v37, %v27027_v60  ;;  %v19849_v54 = vld [vmem:[%s26749_s9 + $0x88] sm:$0xff]  ;;  %v19850_v37 = vld [vmem:[%s26749_s9 + $0x90] sm:$0xff]  ;;  %v19852_v60 = vld [vmem:[%s26749_s9 + $0xa0] sm:$0xff] }
0x1038   :  { %v24456_v1 = vadd.f32 %v8751_v28, %v22943_v44  ;;  %v24459_v51 = vadd.f32 %v8752_v43, %v22946_v15  ;;  %v24461_v23 = vpack.c.bf16 %v8752_v43, %v8751_v28  ;;  %v19833_v15 = vld [vmem:[%s26749_s9 + $0x8] sm:$0xff]  ;;  %v19851_v28 = vld [vmem:[%s26749_s9 + $0x98] sm:$0xff] }
0x1039   :  { %v19853_v43 = vld [vmem:[%s26749_s9 + $0xa8] sm:$0xff] }
0x103a   :  { %v24465_v42 = vpack.c.bf16 %v24459_v51, %v24456_v1  ;;  %v8809_v44 = vsub.f32 %v8807_v53, %v24456_v1  ;;  %v8810_v14 = vsub.f32 %v8808_v0, %v24459_v51  ;;  %v19854_v53 = vld [vmem:[%s26749_s9 + $0xb0] sm:$0xff]  ;;  %v19855_v0 = vld [vmem:[%s26749_s9 + $0xb8] sm:$0xff] }
0x103c   :  { %18250 = vmatprep.subr.msk.bf16.mxu1 %vm20417_vm3, %v24465_v42  ;;  %v24484_v57 = vpack.c.bf16 %v8810_v14, %v8809_v44  ;;  %v19856_v44 = vld [vmem:[%s26749_s9 + $0xc0] sm:$0xff]  ;;  %v19857_v14 = vld [vmem:[%s26749_s9 + $0xc8] sm:$0xff] }
0x103d   :  { %18253 = vmatpush3.bf16.msk.msra.mxu1 %vm20417_vm3, %v24465_v42 }
0x103e   :  { %18256 = vmatprep.subr.msk.bf16.mxu1 %vm20417_vm3, %v23709_v47 }
0x1040   :  { %17230 = vmatmul.mubr.msk.f32.vlgmr.msra.gmra.mrb[90].mxu1 %vm431_vm0, %v19833_v15  ;;  %v19858_v15 = vld [vmem:[%s26749_s9 + $0xd0] sm:$0xff] }
0x1041   :  { %18259 = vmatpush3.bf16.msk.msra.mxu1 %vm20417_vm3, %v23709_v47  ;;  %17232 = vmatprep.mubr.msk.f32.mxu1 %vm431_vm0, %v19834_v52  ;;  %v19836_v47 = vld [vmem:[%s26749_s9 + $0x20] sm:$0xff]  ;;  %v19859_v52 = vld [vmem:[%s26749_s9 + $0xd8] sm:$0xff] }
0x1042   :  { %18262 = vmatprep.subr.msk.bf16.mxu1 %vm20417_vm3, %v24484_v57 }
0x1044   :  { %17233 = vmatmul.mubr.msk.f32.gmra.mrb[92].mxu1 %vm431_vm0, %v19835_v4  ;;  %v19860_v4 = vld [vmem:[%s26749_s9 + $0xe0] sm:$0xff] }
0x1045   :  { %17235 = vmatprep.mubr.msk.f32.mxu1 %vm431_vm0, %v19836_v47  ;;  %v19861_v47 = vld [vmem:[%s26749_s9 + $0xe8] sm:$0xff] }
0x1048   :  { %17236 = vmatmul.mubr.msk.f32.gmra.mrb[94].mxu1 %vm431_vm0, %v19837_v40  ;;  %v19862_v40 = vld [vmem:[%s26749_s9 + $0xf0] sm:$0xff] }
0x1049   :  { %17238 = vmatprep.mubr.msk.f32.mxu1 %vm431_vm0, %v19838_v39  ;;  %v19863_v39 = vld [vmem:[%s26749_s9 + $0xf8] sm:$0xff] }
0x104c   :  { %17239 = vmatmul.mubr.msk.f32.gmra.mrb[96].mxu1 %vm431_vm0, %v19839_v31  ;;  %v19864_v31 = vld [vmem:[%s26749_s9 + $0x100] sm:$0xff] }
0x104d   :  { %17241 = vmatprep.mubr.msk.f32.mxu1 %vm431_vm0, %v19840_v9  ;;  %v19865_v9 = vld [vmem:[%s26749_s9 + $0x108] sm:$0xff] }
0x1050   :  { %17242 = vmatmul.mubr.msk.f32.gmra.mrb[98].mxu1 %vm431_vm0, %v19841_v19  ;;  %v19866_v19 = vld [vmem:[%s26749_s9 + $0x110] sm:$0xff] }
0x1051   :  { %17244 = vmatprep.mubr.msk.f32.mxu1 %vm431_vm0, %v19842_v2  ;;  %v19867_v2 = vld [vmem:[%s26749_s9 + $0x118] sm:$0xff] }
0x1054   :  { %17245 = vmatmul.mubr.msk.f32.gmra.mrb[100].mxu1 %vm431_vm0, %v19843_v3  ;;  %v19868_v3 = vld [vmem:[%s26751_s8] sm:$0xff] }
0x1055   :  { %17247 = vmatprep.mubr.msk.f32.mxu1 %vm431_vm0, %v19844_v56  ;;  %v19869_v56 = vld [vmem:[%s26751_s8 + $0x8] sm:$0xff] }
0x1058   :  { %17248 = vmatmul.mubr.msk.f32.gmra.mrb[102].mxu1 %vm431_vm0, %v19845_v58  ;;  %v19870_v58 = vld [vmem:[%s26751_s8 + $0x10] sm:$0xff] }
0x1059   :  { %17250 = vmatprep.mubr.msk.f32.mxu1 %vm431_vm0, %v19846_v32  ;;  %v19871_v32 = vld [vmem:[%s26751_s8 + $0x18] sm:$0xff] }
0x105c   :  { %17251 = vmatmul.mubr.msk.f32.gmra.mrb[104].mxu1 %vm431_vm0, %v19847_v17  ;;  %v19873_v17 = vld [vmem:[%s26751_s8 + $0x28] sm:$0xff] }
0x105d   :  { %17253 = vmatprep.mubr.msk.f32.mxu1 %vm431_vm0, %v19848_v20  ;;  %v19874_v20 = vld [vmem:[%s26751_s8 + $0x30] sm:$0xff] }
0x1060   :  { %17254 = vmatmul.mubr.msk.f32.gmra.mrb[106].mxu1 %vm431_vm0, %v19849_v54  ;;  %v19875_v54 = vld [vmem:[%s26751_s8 + $0x38] sm:$0xff] }
0x1061   :  { %17256 = vmatprep.mubr.msk.f32.mxu1 %vm431_vm0, %v19850_v37  ;;  %v19876_v37 = vld [vmem:[%s26751_s8 + $0x40] sm:$0xff] }
0x1064   :  { %17257 = vmatmul.mubr.msk.f32.gmra.mrb[108].mxu1 %vm431_vm0, %v19851_v28  ;;  %v19877_v28 = vld [vmem:[%s26751_s8 + $0x48] sm:$0xff] }
0x1065   :  { %17259 = vmatprep.mubr.msk.f32.mxu1 %vm431_vm0, %v19852_v60  ;;  %v19878_v60 = vld [vmem:[%s26751_s8 + $0x50] sm:$0xff] }
0x1068   :  { %17260 = vmatmul.mubr.msk.f32.gmra.mrb[110].mxu1 %vm431_vm0, %v19853_v43  ;;  %v19879_v43 = vld [vmem:[%s26751_s8 + $0x58] sm:$0xff] }
0x1069   :  { %17262 = vmatprep.mubr.msk.f32.mxu1 %vm431_vm0, %v19854_v53  ;;  %v19880_v53 = vld [vmem:[%s26751_s8 + $0x60] sm:$0xff] }
0x106c   :  { %17263 = vmatmul.mubr.msk.f32.gmra.mrb[112].mxu1 %vm431_vm0, %v19855_v0  ;;  %v19881_v0 = vld [vmem:[%s26751_s8 + $0x68] sm:$0xff] }
0x106d   :  { %17265 = vmatprep.mubr.msk.f32.mxu1 %vm431_vm0, %v19856_v44  ;;  %v19882_v44 = vld [vmem:[%s26751_s8 + $0x70] sm:$0xff] }
0x1070   :  { %17266 = vmatmul.mubr.msk.f32.gmra.mrb[114].mxu1 %vm431_vm0, %v19857_v14  ;;  %v19883_v14 = vld [vmem:[%s26751_s8 + $0x78] sm:$0xff] }
0x1071   :  { %17268 = vmatprep.mubr.msk.f32.mxu1 %vm431_vm0, %v19858_v15  ;;  %v19884_v15 = vld [vmem:[%s26751_s8 + $0x80] sm:$0xff] }
0x1074   :  { %17269 = vmatmul.mubr.msk.f32.gmra.mrb[116].mxu1 %vm431_vm0, %v19859_v52  ;;  %v19885_v52 = vld [vmem:[%s26751_s8 + $0x88] sm:$0xff] }
0x1075   :  { %17271 = vmatprep.mubr.msk.f32.mxu1 %vm431_vm0, %v19860_v4  ;;  %v19886_v4 = vld [vmem:[%s26751_s8 + $0x90] sm:$0xff] }
0x1078   :  { %17272 = vmatmul.mubr.msk.f32.gmra.mrb[118].mxu1 %vm431_vm0, %v19861_v47  ;;  %v19887_v47 = vld [vmem:[%s26751_s8 + $0x98] sm:$0xff] }
0x1079   :  { %17274 = vmatprep.mubr.msk.f32.mxu1 %vm431_vm0, %v19862_v40  ;;  %v19888_v40 = vld [vmem:[%s26751_s8 + $0xa0] sm:$0xff] }
0x107c   :  { %17275 = vmatmul.mubr.msk.f32.gmra.mrb[120].mxu1 %vm431_vm0, %v19863_v39  ;;  %v19889_v39 = vld [vmem:[%s26751_s8 + $0xa8] sm:$0xff] }
0x107d   :  { %17277 = vmatprep.mubr.msk.f32.mxu1 %vm431_vm0, %v19864_v31  ;;  %v19890_v31 = vld [vmem:[%s26751_s8 + $0xb0] sm:$0xff] }
0x1080   :  { %17278 = vmatmul.mubr.msk.f32.gmra.mrb[122].mxu1 %vm431_vm0, %v19865_v9  ;;  %v19891_v9 = vld [vmem:[%s26751_s8 + $0xb8] sm:$0xff] }
0x1081   :  { %17280 = vmatprep.mubr.msk.f32.mxu1 %vm431_vm0, %v19866_v19  ;;  %v19892_v19 = vld [vmem:[%s26751_s8 + $0xc0] sm:$0xff] }
0x1084   :  { %17281 = vmatmul.mubr.msk.f32.gmra.mrb[124].mxu1 %vm431_vm0, %v19867_v2  ;;  %v19893_v2 = vld [vmem:[%s26751_s8 + $0xc8] sm:$0xff] }
0x1085   :  { %17287 = vmatprep.mubr.msk.f32.mxu1 %vm431_vm0, %v19868_v3  ;;  %v19894_v3 = vld [vmem:[%s26751_s8 + $0xd0] sm:$0xff] }
0x1088   :  { %17288 = vmatmul.mubr.msk.f32.vlgmr.msra.gmra.mrb[90].mxu1 %vm431_vm0, %v19869_v56  ;;  %v19895_v56 = vld [vmem:[%s26751_s8 + $0xd8] sm:$0xff] }
0x1089   :  { %18265 = vmatpush3.bf16.msk.msra.mxu1 %vm20417_vm3, %v24484_v57  ;;  %17290 = vmatprep.mubr.msk.f32.mxu1 %vm431_vm0, %v19870_v58  ;;  %v19872_v57 = vld [vmem:[%s26751_s8 + $0x20] sm:$0xff] }
0x108a   :  { %18268 = vmatprep.subr.msk.bf16.mxu1 %vm20417_vm3, %v24461_v23  ;;  %v19896_v58 = vld [vmem:[%s26751_s8 + $0xe0] sm:$0xff] }
0x108c   :  { %17291 = vmatmul.mubr.msk.f32.gmra.mrb[92].mxu1 %vm431_vm0, %v19871_v32  ;;  %v19897_v32 = vld [vmem:[%s26751_s8 + $0xe8] sm:$0xff] }
0x108d   :  { %17293 = vmatprep.mubr.msk.f32.mxu1 %vm431_vm0, %v19872_v57  ;;  %v19898_v57 = vld [vmem:[%s26751_s8 + $0xf0] sm:$0xff] }
0x1090   :  { %17294 = vmatmul.mubr.msk.f32.gmra.mrb[94].mxu1 %vm431_vm0, %v19873_v17  ;;  %v19899_v17 = vld [vmem:[%s26751_s8 + $0xf8] sm:$0xff] }
0x1091   :  { %17296 = vmatprep.mubr.msk.f32.mxu1 %vm431_vm0, %v19874_v20  ;;  %v19900_v20 = vld [vmem:[%s26751_s8 + $0x100] sm:$0xff] }
0x1094   :  { %17297 = vmatmul.mubr.msk.f32.gmra.mrb[96].mxu1 %vm431_vm0, %v19875_v54  ;;  %v19901_v54 = vld [vmem:[%s26751_s8 + $0x108] sm:$0xff] }
0x1095   :  { %17299 = vmatprep.mubr.msk.f32.mxu1 %vm431_vm0, %v19876_v37  ;;  %v19902_v37 = vld [vmem:[%s26751_s8 + $0x110] sm:$0xff] }
0x1098   :  { %17300 = vmatmul.mubr.msk.f32.gmra.mrb[98].mxu1 %vm431_vm0, %v19877_v28  ;;  %v19903_v28 = vld [vmem:[%s26751_s8 + $0x118] sm:$0xff] }
0x1099   :  { %17302 = vmatprep.mubr.msk.f32.mxu1 %vm431_vm0, %v19878_v60  ;;  %v19904_v60 = vld [vmem:[%s26752_s10] sm:$0xff] }
0x109c   :  { %17303 = vmatmul.mubr.msk.f32.gmra.mrb[100].mxu1 %vm431_vm0, %v19879_v43  ;;  %v19905_v43 = vld [vmem:[%s26752_s10 + $0x8] sm:$0xff] }
0x109d   :  { %17305 = vmatprep.mubr.msk.f32.mxu1 %vm431_vm0, %v19880_v53  ;;  %v19906_v53 = vld [vmem:[%s26752_s10 + $0x10] sm:$0xff] }
0x10a0   :  { %17306 = vmatmul.mubr.msk.f32.gmra.mrb[102].mxu1 %vm431_vm0, %v19881_v0  ;;  %v19907_v0 = vld [vmem:[%s26752_s10 + $0x18] sm:$0xff] }
0x10a1   :  { %17308 = vmatprep.mubr.msk.f32.mxu1 %vm431_vm0, %v19882_v44  ;;  %v19908_v44 = vld [vmem:[%s26752_s10 + $0x20] sm:$0xff] }
0x10a4   :  { %17309 = vmatmul.mubr.msk.f32.gmra.mrb[104].mxu1 %vm431_vm0, %v19883_v14  ;;  %v19910_v14 = vld [vmem:[%s26752_s10 + $0x30] sm:$0xff] }
0x10a5   :  { %17311 = vmatprep.mubr.msk.f32.mxu1 %vm431_vm0, %v19884_v15  ;;  %v19911_v15 = vld [vmem:[%s26752_s10 + $0x38] sm:$0xff] }
0x10a8   :  { %17312 = vmatmul.mubr.msk.f32.gmra.mrb[106].mxu1 %vm431_vm0, %v19885_v52  ;;  %v19912_v52 = vld [vmem:[%s26752_s10 + $0x40] sm:$0xff] }
0x10a9   :  { %17314 = vmatprep.mubr.msk.f32.mxu1 %vm431_vm0, %v19886_v4  ;;  %v19913_v4 = vld [vmem:[%s26752_s10 + $0x48] sm:$0xff] }
0x10ac   :  { %17315 = vmatmul.mubr.msk.f32.gmra.mrb[108].mxu1 %vm431_vm0, %v19887_v47  ;;  %v19914_v47 = vld [vmem:[%s26752_s10 + $0x50] sm:$0xff] }
0x10ad   :  { %17317 = vmatprep.mubr.msk.f32.mxu1 %vm431_vm0, %v19888_v40  ;;  %v19915_v40 = vld [vmem:[%s26752_s10 + $0x58] sm:$0xff] }
0x10b0   :  { %17318 = vmatmul.mubr.msk.f32.gmra.mrb[110].mxu1 %vm431_vm0, %v19889_v39  ;;  %v19916_v39 = vld [vmem:[%s26752_s10 + $0x60] sm:$0xff] }
0x10b1   :  { %17320 = vmatprep.mubr.msk.f32.mxu1 %vm431_vm0, %v19890_v31  ;;  %v19917_v31 = vld [vmem:[%s26752_s10 + $0x68] sm:$0xff] }
0x10b4   :  { %17321 = vmatmul.mubr.msk.f32.gmra.mrb[112].mxu1 %vm431_vm0, %v19891_v9  ;;  %v19918_v9 = vld [vmem:[%s26752_s10 + $0x70] sm:$0xff] }
0x10b5   :  { %17323 = vmatprep.mubr.msk.f32.mxu1 %vm431_vm0, %v19892_v19  ;;  %v19919_v19 = vld [vmem:[%s26752_s10 + $0x78] sm:$0xff] }
0x10b8   :  { %17324 = vmatmul.mubr.msk.f32.gmra.mrb[114].mxu1 %vm431_vm0, %v19893_v2  ;;  %v19920_v2 = vld [vmem:[%s26752_s10 + $0x80] sm:$0xff] }
0x10b9   :  { %17326 = vmatprep.mubr.msk.f32.mxu1 %vm431_vm0, %v19894_v3  ;;  %v19921_v3 = vld [vmem:[%s26752_s10 + $0x88] sm:$0xff] }
0x10bc   :  { %17327 = vmatmul.mubr.msk.f32.gmra.mrb[116].mxu1 %vm431_vm0, %v19895_v56  ;;  %v19922_v56 = vld [vmem:[%s26752_s10 + $0x90] sm:$0xff] }
0x10bd   :  { %17329 = vmatprep.mubr.msk.f32.mxu1 %vm431_vm0, %v19896_v58  ;;  %v19923_v58 = vld [vmem:[%s26752_s10 + $0x98] sm:$0xff] }
0x10c0   :  { %17330 = vmatmul.mubr.msk.f32.gmra.mrb[118].mxu1 %vm431_vm0, %v19897_v32  ;;  %v19924_v32 = vld [vmem:[%s26752_s10 + $0xa0] sm:$0xff] }
0x10c1   :  { %17332 = vmatprep.mubr.msk.f32.mxu1 %vm431_vm0, %v19898_v57  ;;  %v19925_v57 = vld [vmem:[%s26752_s10 + $0xa8] sm:$0xff] }
0x10c4   :  { %17333 = vmatmul.mubr.msk.f32.gmra.mrb[120].mxu1 %vm431_vm0, %v19899_v17  ;;  %v19926_v17 = vld [vmem:[%s26752_s10 + $0xb0] sm:$0xff] }
0x10c5   :  { %17335 = vmatprep.mubr.msk.f32.mxu1 %vm431_vm0, %v19900_v20  ;;  %v19927_v20 = vld [vmem:[%s26752_s10 + $0xb8] sm:$0xff] }
0x10c8   :  { %17336 = vmatmul.mubr.msk.f32.gmra.mrb[122].mxu1 %vm431_vm0, %v19901_v54  ;;  %v19928_v54 = vld [vmem:[%s26752_s10 + $0xc0] sm:$0xff] }
0x10c9   :  { %17338 = vmatprep.mubr.msk.f32.mxu1 %vm431_vm0, %v19902_v37  ;;  %v19929_v37 = vld [vmem:[%s26752_s10 + $0xc8] sm:$0xff] }
0x10cc   :  { %17339 = vmatmul.mubr.msk.f32.gmra.mrb[124].mxu1 %vm431_vm0, %v19903_v28  ;;  %v19930_v28 = vld [vmem:[%s26752_s10 + $0xd0] sm:$0xff] }
0x10cd   :  { %17345 = vmatprep.mubr.msk.f32.mxu1 %vm431_vm0, %v19904_v60  ;;  %v19931_v60 = vld [vmem:[%s26752_s10 + $0xd8] sm:$0xff] }
0x10d0   :  { %17346 = vmatmul.mubr.msk.f32.vlgmr.msra.gmra.mrb[90].mxu1 %vm431_vm0, %v19905_v43  ;;  %v19932_v43 = vld [vmem:[%s26752_s10 + $0xe0] sm:$0xff] }
0x10d1   :  { %18271 = vmatpush3.bf16.msk.msra.mxu1 %vm20417_vm3, %v24461_v23  ;;  %17348 = vmatprep.mubr.msk.f32.mxu1 %vm431_vm0, %v19906_v53  ;;  %v19909_v23 = vld [vmem:[%s26752_s10 + $0x28] sm:$0xff] }
0x10d2   :  { %v19933_v53 = vld [vmem:[%s26752_s10 + $0xe8] sm:$0xff] }
0x10d4   :  { %17349 = vmatmul.mubr.msk.f32.gmra.mrb[92].mxu1 %vm431_vm0, %v19907_v0  ;;  %v19934_v0 = vld [vmem:[%s26752_s10 + $0xf0] sm:$0xff] }
0x10d5   :  { %17351 = vmatprep.mubr.msk.f32.mxu1 %vm431_vm0, %v19908_v44  ;;  %v19935_v44 = vld [vmem:[%s26752_s10 + $0xf8] sm:$0xff] }
0x10d8   :  { %17352 = vmatmul.mubr.msk.f32.gmra.mrb[94].mxu1 %vm431_vm0, %v19909_v23  ;;  %v19936_v23 = vld [vmem:[%s26752_s10 + $0x100] sm:$0xff] }
0x10d9   :  { %17354 = vmatprep.mubr.msk.f32.mxu1 %vm431_vm0, %v19910_v14  ;;  %v19937_v14 = vld [vmem:[%s26752_s10 + $0x108] sm:$0xff] }
0x10dc   :  { %17355 = vmatmul.mubr.msk.f32.gmra.mrb[96].mxu1 %vm431_vm0, %v19911_v15  ;;  %v19938_v15 = vld [vmem:[%s26752_s10 + $0x110] sm:$0xff] }
0x10dd   :  { %17357 = vmatprep.mubr.msk.f32.mxu1 %vm431_vm0, %v19912_v52  ;;  %v19939_v52 = vld [vmem:[%s26752_s10 + $0x118] sm:$0xff] }
0x10e0   :  { %17358 = vmatmul.mubr.msk.f32.gmra.mrb[98].mxu1 %vm431_vm0, %v19913_v4  ;;  %v19940_v4 = vld [vmem:[%s26753_s11] sm:$0xff] }
0x10e1   :  { %17360 = vmatprep.mubr.msk.f32.mxu1 %vm431_vm0, %v19914_v47  ;;  %v19941_v47 = vld [vmem:[%s26753_s11 + $0x8] sm:$0xff] }
0x10e4   :  { %17361 = vmatmul.mubr.msk.f32.gmra.mrb[100].mxu1 %vm431_vm0, %v19915_v40  ;;  %v19942_v40 = vld [vmem:[%s26753_s11 + $0x10] sm:$0xff] }
0x10e5   :  { %17363 = vmatprep.mubr.msk.f32.mxu1 %vm431_vm0, %v19916_v39  ;;  %v19943_v39 = vld [vmem:[%s26753_s11 + $0x18] sm:$0xff] }
0x10e8   :  { %17364 = vmatmul.mubr.msk.f32.gmra.mrb[102].mxu1 %vm431_vm0, %v19917_v31  ;;  %v19944_v31 = vld [vmem:[%s26753_s11 + $0x20] sm:$0xff] }
0x10e9   :  { %17366 = vmatprep.mubr.msk.f32.mxu1 %vm431_vm0, %v19918_v9  ;;  %v19945_v9 = vld [vmem:[%s26753_s11 + $0x28] sm:$0xff] }
0x10ec   :  { %17367 = vmatmul.mubr.msk.f32.gmra.mrb[104].mxu1 %vm431_vm0, %v19919_v19  ;;  %v19946_v19 = vld [vmem:[%s26753_s11 + $0x30] sm:$0xff] }
0x10ed   :  { %17369 = vmatprep.mubr.msk.f32.mxu1 %vm431_vm0, %v19920_v2  ;;  %v19947_v2 = vld [vmem:[%s26753_s11 + $0x38] sm:$0xff] }
0x10f0   :  { %17370 = vmatmul.mubr.msk.f32.gmra.mrb[106].mxu1 %vm431_vm0, %v19921_v3  ;;  %v19948_v3 = vld [vmem:[%s26753_s11 + $0x40] sm:$0xff] }
0x10f1   :  { %17372 = vmatprep.mubr.msk.f32.mxu1 %vm431_vm0, %v19922_v56  ;;  %v19949_v56 = vld [vmem:[%s26753_s11 + $0x48] sm:$0xff] }
0x10f4   :  { %17373 = vmatmul.mubr.msk.f32.gmra.mrb[108].mxu1 %vm431_vm0, %v19923_v58  ;;  %v19950_v58 = vld [vmem:[%s26753_s11 + $0x50] sm:$0xff] }
0x10f5   :  { %17375 = vmatprep.mubr.msk.f32.mxu1 %vm431_vm0, %v19924_v32  ;;  %v19951_v32 = vld [vmem:[%s26753_s11 + $0x58] sm:$0xff] }
0x10f8   :  { %17376 = vmatmul.mubr.msk.f32.gmra.mrb[110].mxu1 %vm431_vm0, %v19925_v57  ;;  %v19952_v57 = vld [vmem:[%s26753_s11 + $0x60] sm:$0xff] }
0x10f9   :  { %17378 = vmatprep.mubr.msk.f32.mxu1 %vm431_vm0, %v19926_v17  ;;  %v19953_v17 = vld [vmem:[%s26753_s11 + $0x68] sm:$0xff] }
0x10fc   :  { %17379 = vmatmul.mubr.msk.f32.gmra.mrb[112].mxu1 %vm431_vm0, %v19927_v20  ;;  %v19954_v20 = vld [vmem:[%s26753_s11 + $0x70] sm:$0xff] }
0x10fd   :  { %17381 = vmatprep.mubr.msk.f32.mxu1 %vm431_vm0, %v19928_v54  ;;  %v19955_v54 = vld [vmem:[%s26753_s11 + $0x78] sm:$0xff] }
0x1100   :  { %17382 = vmatmul.mubr.msk.f32.gmra.mrb[114].mxu1 %vm431_vm0, %v19929_v37  ;;  %v19956_v37 = vld [vmem:[%s26753_s11 + $0x80] sm:$0xff] }
0x1101   :  { %17384 = vmatprep.mubr.msk.f32.mxu1 %vm431_vm0, %v19930_v28  ;;  %v19957_v28 = vld [vmem:[%s26753_s11 + $0x88] sm:$0xff] }
0x1104   :  { %17385 = vmatmul.mubr.msk.f32.gmra.mrb[116].mxu1 %vm431_vm0, %v19931_v60  ;;  %v19958_v60 = vld [vmem:[%s26753_s11 + $0x90] sm:$0xff] }
0x1105   :  { %17387 = vmatprep.mubr.msk.f32.mxu1 %vm431_vm0, %v19932_v43  ;;  %v19959_v43 = vld [vmem:[%s26753_s11 + $0x98] sm:$0xff] }
0x1108   :  { %17388 = vmatmul.mubr.msk.f32.gmra.mrb[118].mxu1 %vm431_vm0, %v19933_v53  ;;  %v19960_v53 = vld [vmem:[%s26753_s11 + $0xa0] sm:$0xff] }
0x1109   :  { %17390 = vmatprep.mubr.msk.f32.mxu1 %vm431_vm0, %v19934_v0  ;;  %v19961_v0 = vld [vmem:[%s26753_s11 + $0xa8] sm:$0xff] }
0x110c   :  { %17391 = vmatmul.mubr.msk.f32.gmra.mrb[120].mxu1 %vm431_vm0, %v19935_v44  ;;  %v19962_v44 = vld [vmem:[%s26753_s11 + $0xb0] sm:$0xff] }
0x110d   :  { %17393 = vmatprep.mubr.msk.f32.mxu1 %vm431_vm0, %v19936_v23  ;;  %v19963_v23 = vld [vmem:[%s26753_s11 + $0xb8] sm:$0xff] }
0x1110   :  { %17394 = vmatmul.mubr.msk.f32.gmra.mrb[122].mxu1 %vm431_vm0, %v19937_v14  ;;  %v19964_v14 = vld [vmem:[%s26753_s11 + $0xc0] sm:$0xff] }
0x1111   :  { %17396 = vmatprep.mubr.msk.f32.mxu1 %vm431_vm0, %v19938_v15  ;;  %v19965_v15 = vld [vmem:[%s26753_s11 + $0xc8] sm:$0xff] }
0x1114   :  { %17397 = vmatmul.mubr.msk.f32.gmra.mrb[124].mxu1 %vm431_vm0, %v19939_v52  ;;  %v19966_v52 = vld [vmem:[%s26753_s11 + $0xd0] sm:$0xff] }
0x1115   :  { %17403 = vmatprep.mubr.msk.f32.mxu1 %vm431_vm0, %v19940_v4  ;;  %v19967_v4 = vld [vmem:[%s26753_s11 + $0xd8] sm:$0xff] }
0x1118   :  { %17404 = vmatmul.mubr.msk.f32.vlgmr.msra.gmra.mrb[90].mxu1 %vm431_vm0, %v19941_v47  ;;  %v19968_v47 = vld [vmem:[%s26753_s11 + $0xe0] sm:$0xff] }
0x1119   :  { %17406 = vmatprep.mubr.msk.f32.mxu1 %vm431_vm0, %v19942_v40  ;;  %v19969_v40 = vld [vmem:[%s26753_s11 + $0xe8] sm:$0xff] }
0x111c   :  { %17407 = vmatmul.mubr.msk.f32.gmra.mrb[92].mxu1 %vm431_vm0, %v19943_v39  ;;  %v19970_v39 = vld [vmem:[%s26753_s11 + $0xf0] sm:$0xff] }
0x111d   :  { %17409 = vmatprep.mubr.msk.f32.mxu1 %vm431_vm0, %v19944_v31  ;;  %v19971_v31 = vld [vmem:[%s26753_s11 + $0xf8] sm:$0xff] }
0x1120   :  { %17410 = vmatmul.mubr.msk.f32.gmra.mrb[94].mxu1 %vm431_vm0, %v19945_v9  ;;  %v19972_v9 = vld [vmem:[%s26753_s11 + $0x100] sm:$0xff] }
0x1121   :  { %17412 = vmatprep.mubr.msk.f32.mxu1 %vm431_vm0, %v19946_v19  ;;  %v19973_v19 = vld [vmem:[%s26753_s11 + $0x108] sm:$0xff] }
0x1124   :  { %17413 = vmatmul.mubr.msk.f32.gmra.mrb[96].mxu1 %vm431_vm0, %v19947_v2  ;;  %v19974_v2 = vld [vmem:[%s26753_s11 + $0x110] sm:$0xff] }
0x1125   :  { %17415 = vmatprep.mubr.msk.f32.mxu1 %vm431_vm0, %v19948_v3  ;;  %v19975_v3 = vld [vmem:[%s26753_s11 + $0x118] sm:$0xff] }
0x1128   :  { %17416 = vmatmul.mubr.msk.f32.gmra.mrb[98].mxu1 %vm431_vm0, %v19949_v56  ;;  %v19976_v56 = vld [vmem:[%s26748_s6 + $0x8] sm:$0xff] }
0x1129   :  { %17418 = vmatprep.mubr.msk.f32.mxu1 %vm431_vm0, %v19950_v58 }
0x112c   :  { %17419 = vmatmul.mubr.msk.f32.gmra.mrb[100].mxu1 %vm431_vm0, %v19951_v32 }
0x112d   :  { %17421 = vmatprep.mubr.msk.f32.mxu1 %vm431_vm0, %v19952_v57 }
0x1130   :  { %17422 = vmatmul.mubr.msk.f32.gmra.mrb[102].mxu1 %vm431_vm0, %v19953_v17  ;;  %v27028_v17 = vld [vmem:[#allocation37_spill] sm:$0xff] }
0x1131   :  { %17424 = vmatprep.mubr.msk.f32.mxu1 %vm431_vm0, %v19954_v20 }
0x1134   :  { %17425 = vmatmul.mubr.msk.f32.gmra.mrb[104].mxu1 %vm431_vm0, %v19955_v54 }
0x1135   :  { %17427 = vmatprep.mubr.msk.f32.mxu1 %vm431_vm0, %v19956_v37 }
0x1138   :  { %17428 = vmatmul.mubr.msk.f32.gmra.mrb[106].mxu1 %vm431_vm0, %v19957_v28 }
0x1139   :  { %17430 = vmatprep.mubr.msk.f32.mxu1 %vm431_vm0, %v19958_v60  ;;  %v27029_v60 = vld [vmem:[#allocation38_spill] sm:$0xff] }
0x113c   :  { %17431 = vmatmul.mubr.msk.f32.gmra.mrb[108].mxu1 %vm431_vm0, %v19959_v43 }
0x113d   :  { %17433 = vmatprep.mubr.msk.f32.mxu1 %vm431_vm0, %v19960_v53 }
0x1140   :  { %17434 = vmatmul.mubr.msk.f32.gmra.mrb[110].mxu1 %vm431_vm0, %v19961_v0 }
0x1141   :  { %17436 = vmatprep.mubr.msk.f32.mxu1 %vm431_vm0, %v19962_v44  ;;  %v27030_v44 = vld [vmem:[#allocation39_spill] sm:$0xff] }
0x1144   :  { %17437 = vmatmul.mubr.msk.f32.gmra.mrb[112].mxu1 %vm431_vm0, %v19963_v23 }
0x1145   :  { %17439 = vmatprep.mubr.msk.f32.mxu1 %vm431_vm0, %v19964_v14 }
0x1148   :  { %17440 = vmatmul.mubr.msk.f32.gmra.mrb[114].mxu1 %vm431_vm0, %v19965_v15 }
0x1149   :  { %17442 = vmatprep.mubr.msk.f32.mxu1 %vm431_vm0, %v19966_v52 }
0x114c   :  { %17443 = vmatmul.mubr.msk.f32.gmra.mrb[116].mxu1 %vm431_vm0, %v19967_v4  ;;  %v27031_v4 = vld [vmem:[#allocation40_spill] sm:$0xff] }
0x114d   :  { %17445 = vmatprep.mubr.msk.f32.mxu1 %vm431_vm0, %v19968_v47 }
0x1150   :  { %17446 = vmatmul.mubr.msk.f32.gmra.mrb[118].mxu1 %vm431_vm0, %v19969_v40 }
0x1151   :  { %17448 = vmatprep.mubr.msk.f32.mxu1 %vm431_vm0, %v19970_v39 }
0x1154   :  { %17449 = vmatmul.mubr.msk.f32.gmra.mrb[120].mxu1 %vm431_vm0, %v19971_v31  ;;  %v27032_v31 = vld [vmem:[#allocation41_spill] sm:$0xff] }
0x1155   :  { %17451 = vmatprep.mubr.msk.f32.mxu1 %vm431_vm0, %v19972_v9 }
0x1158   :  { %17452 = vmatmul.mubr.msk.f32.gmra.mrb[122].mxu1 %vm431_vm0, %v19973_v19 }
0x1159   :  { %17454 = vmatprep.mubr.msk.f32.mxu1 %vm431_vm0, %v19974_v2 }
0x115c   :  { %17455 = vmatmul.mubr.msk.f32.gmra.mrb[124].mxu1 %vm431_vm0, %v19975_v3 }
0x115d   :  { %11438 = vmatprep.mubr.f32.mxu1 %v19976_v56  ;;  %v27033_v56 = vld [vmem:[#allocation42_spill] sm:$0xff] }
0x11eb   :  { %v17405_v58 = vpop.f32.mrb[90].mxu1 }
0x11ec   :  { %v9872_v32 = vadd.f32 %v17405_v58, %v26972_v22  ;;  %v9656_v57 = vpop.f32.mrb[91].mxu1 }
0x11ed   :  { %v9871_v20 = vadd.f32 %v9656_v57, %v27028_v17 }
0x11ee   :  { %v9908_v54 = vmax.f32 %v9872_v32, 0.0 }
0x11ef   :  { %v9907_v37 = vmax.f32 %v9871_v20, 0.0  ;;  %v17408_v28 = vpop.f32.mrb[92].mxu1  ;;  %v27034_v20 = vld [vmem:[#allocation43_spill] sm:$0xff] }
0x11f0   :  { %v9874_v43 = vadd.f32 %v17408_v28, %v27029_v60  ;;  %v9666_v53 = vpop.f32.mrb[93].mxu1 }
0x11f1   :  { %v25075_v0 = vpack.c.bf16 %v9908_v54, %v9907_v37  ;;  %v9873_v23 = vadd.f32 %v9666_v53, %v27030_v44  ;;  %v27035_v53 = vld [vmem:[#allocation44_spill] sm:$0xff]  ;;  %v27039_v44 = vld [vmem:[#allocation51_spill] sm:$0xff] }
0x11f2   :  { %v9910_v14 = vmax.f32 %v9874_v43, 0.0 }
0x11f3   :  { %v9909_v15 = vmax.f32 %v9873_v23, 0.0  ;;  %v17411_v52 = vpop.f32.mrb[94].mxu1 }
0x11f4   :  { %v9876_v47 = vadd.f32 %v17411_v52, %v27031_v4  ;;  %v9676_v40 = vpop.f32.mrb[95].mxu1  ;;  %v27037_v4 = vld [vmem:[#allocation47_spill] sm:$0xff] }
0x11f5   :  { %v25079_v39 = vpack.c.bf16 %v9910_v14, %v9909_v15  ;;  %v9875_v9 = vadd.f32 %v9676_v40, %v27032_v31  ;;  %v27036_v15 = vld [vmem:[#allocation45_spill] sm:$0xff] }
0x11f6   :  { %v9912_v19 = vmax.f32 %v9876_v47, 0.0 }
0x11f7   :  { %v9911_v2 = vmax.f32 %v9875_v9, 0.0  ;;  %v17414_v3 = vpop.f32.mrb[96].mxu1 }
0x11f8   :  { %v9878_v58 = vadd.f32 %v17414_v3, %v27033_v56  ;;  %v9686_v32 = vpop.f32.mrb[97].mxu1 }
0x11f9   :  { %v25083_v57 = vpack.c.bf16 %v9912_v19, %v9911_v2  ;;  %v9877_v54 = vadd.f32 %v9686_v32, %v27034_v20  ;;  %v27038_v2 = vld [vmem:[#allocation48_spill] sm:$0xff] }
0x11fa   :  { %v9914_v37 = vmax.f32 %v9878_v58, 0.0 }
0x11fb   :  { %v9913_v28 = vmax.f32 %v9877_v54, 0.0  ;;  %v17417_v43 = vpop.f32.mrb[98].mxu1 }
0x11fc   :  { %v9880_v23 = vadd.f32 %v17417_v43, %v27035_v53  ;;  %v9696_v52 = vpop.f32.mrb[99].mxu1 }
0x11fd   :  { %v25087_v14 = vpack.c.bf16 %v9914_v37, %v9913_v28  ;;  %v9879_v40 = vadd.f32 %v9696_v52, %v27036_v15  ;;  %v27040_v15 = vld [vmem:[#allocation55_spill] sm:$0xff] }
0x11fe   :  { %v9916_v47 = vmax.f32 %v9880_v23, 0.0 }
0x11ff   :  { %v9915_v9 = vmax.f32 %v9879_v40, 0.0  ;;  %v17420_v31 = vpop.f32.mrb[100].mxu1 }
0x1200   :  { %v9882_v3 = vadd.f32 %v17420_v31, %v27037_v4  ;;  %v9706_v56 = vpop.f32.mrb[101].mxu1 }
0x1201   :  { %v25091_v19 = vpack.c.bf16 %v9916_v47, %v9915_v9  ;;  %v9881_v32 = vadd.f32 %v9706_v56, %v27038_v2  ;;  %v27041_v2 = vld [vmem:[#allocation35_spill] sm:$0xff] }
0x1202   :  { %v9918_v58 = vmax.f32 %v9882_v3, 0.0 }
0x1203   :  { %v9917_v54 = vmax.f32 %v9881_v32, 0.0  ;;  %v17423_v20 = vpop.f32.mrb[102].mxu1 }
0x1204   :  { %v9884_v43 = vadd.f32 %v17423_v20, %v27039_v44  ;;  %v9716_v53 = vpop.f32.mrb[103].mxu1 }
0x1205   :  { %v25095_v37 = vpack.c.bf16 %v9918_v58, %v9917_v54  ;;  %v9883_v28 = vadd.f32 %v9716_v53, %v26985_v36 }
0x1206   :  { %v9920_v23 = vmax.f32 %v9884_v43, 0.0 }
0x1207   :  { %v9919_v52 = vmax.f32 %v9883_v28, 0.0  ;;  %v17426_v40 = vpop.f32.mrb[104].mxu1 }
0x1208   :  { %v9886_v31 = vadd.f32 %v17426_v40, %v27040_v15  ;;  %v9726_v4 = vpop.f32.mrb[105].mxu1 }
0x1209   :  { %v25099_v47 = vpack.c.bf16 %v9920_v23, %v9919_v52  ;;  %v9885_v56 = vadd.f32 %v9726_v4, %v22079_v59 }
0x120a   :  { %v9922_v9 = vmax.f32 %v9886_v31, 0.0 }
0x120b   :  { %v9921_v3 = vmax.f32 %v9885_v56, 0.0  ;;  %v17429_v32 = vpop.f32.mrb[106].mxu1 }
0x120c   :  { %v9888_v20 = vadd.f32 %v17429_v32, %v27041_v2  ;;  %v9736_v44 = vpop.f32.mrb[107].mxu1 }
0x120d   :  { %v25103_v58 = vpack.c.bf16 %v9922_v9, %v9921_v3  ;;  %v9887_v53 = vadd.f32 %v9736_v44, %v21987_v21 }
0x120e   :  { %v9924_v54 = vmax.f32 %v9888_v20, 0.0 }
0x120f   :  { %v9923_v43 = vmax.f32 %v9887_v53, 0.0  ;;  %v17432_v28 = vpop.f32.mrb[108].mxu1 }
0x1210   :  { %v9890_v40 = vadd.f32 %v17432_v28, %v21999_v25  ;;  %v9746_v15 = vpop.f32.mrb[109].mxu1 }
0x1211   :  { %v18272_v23 = vpack.c.bf16 %v9924_v54, %v9923_v43  ;;  %v9889_v52 = vadd.f32 %v9746_v15, %v22001_v30 }
0x1212   :  { %v9926_v4 = vmax.f32 %v9890_v40, 0.0 }
0x1213   :  { %v9925_v31 = vmax.f32 %v9889_v52, 0.0  ;;  %v17435_v56 = vpop.f32.mrb[110].mxu1  ;;  %18273 = vmatprep.subr.bf16.mxu0 %v18272_v23 }
0x1214   :  { %v9892_v32 = vadd.f32 %v17435_v56, %v22007_v33  ;;  %v9756_v2 = vpop.f32.mrb[111].mxu1  ;;  %18275 = vmatpush3.bf16.msra.mxu0 %v25075_v0 }
0x1215   :  { %v18276_v9 = vpack.c.bf16 %v9926_v4, %v9925_v31  ;;  %v9891_v44 = vadd.f32 %v9756_v2, %v22009_v26 }
0x1216   :  { %v9928_v3 = vmax.f32 %v9892_v32, 0.0 }
0x1217   :  { %v9927_v20 = vmax.f32 %v9891_v44, 0.0  ;;  %v17438_v53 = vpop.f32.mrb[112].mxu1  ;;  %18277 = vmatprep.subr.bf16.mxu0 %v18276_v9 }
0x1218   :  { %v9894_v54 = vadd.f32 %v17438_v53, %v22015_v61  ;;  %v9766_v43 = vpop.f32.mrb[113].mxu1  ;;  %18279 = vmatpush3.bf16.msra.mxu0 %v25079_v39 }
0x1219   :  { %v18280_v15 = vpack.c.bf16 %v9928_v3, %v9927_v20  ;;  %v9893_v28 = vadd.f32 %v9766_v43, %v22017_v34 }
0x121a   :  { %v9930_v40 = vmax.f32 %v9894_v54, 0.0 }
0x121b   :  { %v9929_v23 = vmax.f32 %v9893_v28, 0.0  ;;  %v17441_v52 = vpop.f32.mrb[114].mxu1  ;;  %18281 = vmatprep.subr.bf16.mxu0 %v18280_v15 }
0x121c   :  { %v9896_v0 = vadd.f32 %v17441_v52, %v22023_v8  ;;  %v9776_v4 = vpop.f32.mrb[115].mxu1  ;;  %18283 = vmatpush3.bf16.msra.mxu0 %v25083_v57 }
0x121d   :  { %v18284_v2 = vpack.c.bf16 %v9930_v40, %v9929_v23  ;;  %v9895_v31 = vadd.f32 %v9776_v4, %v22025_v7  ;;  %v27042_v40 = vld [vmem:[#allocation50_spill] sm:$0xff] }
0x121e   :  { %v9932_v56 = vmax.f32 %v9896_v0, 0.0 }
0x121f   :  { %v9931_v32 = vmax.f32 %v9895_v31, 0.0  ;;  %v17444_v9 = vpop.f32.mrb[116].mxu1  ;;  %18285 = vmatprep.subr.bf16.mxu0 %v18284_v2 }
0x1220   :  { %v9898_v39 = vadd.f32 %v17444_v9, %v22031_v18  ;;  %v9786_v44 = vpop.f32.mrb[117].mxu1  ;;  %18287 = vmatpush3.bf16.msra.mxu0 %v25087_v14  ;;  %v27043_v14 = vld [vmem:[#allocation53_spill] sm:$0xff] }
0x1221   :  { %v18288_v3 = vpack.c.bf16 %v9932_v56, %v9931_v32  ;;  %v9897_v20 = vadd.f32 %v9786_v44, %v22033_v10  ;;  %v27044_v32 = vld [vmem:[#allocation54_spill] sm:$0xff] }
0x1222   :  { %v9934_v53 = vmax.f32 %v9898_v39, 0.0 }
0x1223   :  { %v9933_v54 = vmax.f32 %v9897_v20, 0.0  ;;  %v17447_v43 = vpop.f32.mrb[118].mxu1  ;;  %18289 = vmatprep.subr.bf16.mxu0 %v18288_v3 }
0x1224   :  { %v9900_v57 = vadd.f32 %v17447_v43, %v22046_v5  ;;  %v9796_v15 = vpop.f32.mrb[119].mxu1  ;;  %18291 = vmatpush3.bf16.msra.mxu0 %v25091_v19  ;;  %v27045_v19 = vld [vmem:[#allocation56_spill] sm:$0xff]  ;;  %v27046_v43 = vld [vmem:[#allocation57_spill] sm:$0xff] }
0x1225   :  { %v18292_v28 = vpack.c.bf16 %v9934_v53, %v9933_v54  ;;  %v9899_v23 = vadd.f32 %v9796_v15, %v27042_v40 }
0x1226   :  { %v9936_v52 = vmax.f32 %v9900_v57, 0.0 }
0x1227   :  { %v9935_v0 = vmax.f32 %v9899_v23, 0.0  ;;  %v17450_v4 = vpop.f32.mrb[120].mxu1  ;;  %18293 = vmatprep.subr.bf16.mxu0 %v18292_v28 }
0x1228   :  { %v9902_v2 = vadd.f32 %v17450_v4, %v27043_v14  ;;  %v9806_v31 = vpop.f32.mrb[121].mxu1  ;;  %18295 = vmatpush3.bf16.msra.mxu0 %v25095_v37  ;;  %v27047_v37 = vld [vmem:[#allocation58_spill] sm:$0xff] }
0x1229   :  { %v18296_v56 = vpack.c.bf16 %v9936_v52, %v9935_v0  ;;  %v9901_v9 = vadd.f32 %v9806_v31, %v27044_v32 }
0x122a   :  { %v9938_v39 = vmax.f32 %v9902_v2, 0.0  ;;  %v27048_v2 = vld [vmem:[#allocation59_spill] sm:$0xff] }
0x122b   :  { %v9937_v44 = vmax.f32 %v9901_v9, 0.0  ;;  %v17453_v3 = vpop.f32.mrb[122].mxu1  ;;  %18297 = vmatprep.subr.bf16.mxu0 %v18296_v56 }
0x122c   :  { %v9904_v20 = vadd.f32 %v17453_v3, %v27045_v19  ;;  %v9816_v53 = vpop.f32.mrb[123].mxu1  ;;  %18299 = vmatpush3.bf16.msra.mxu0 %v25099_v47  ;;  %v19977_v47 = vld [vmem:[%s26754_s13] sm:$0xff]  ;;  %v19980_v3 = vld [vmem:[%s26754_s13 + $0x10] sm:$0xff] }
0x122d   :  { %v18300_v54 = vpack.c.bf16 %v9938_v39, %v9937_v44  ;;  %v9903_v57 = vadd.f32 %v9816_v53, %v27046_v43  ;;  %v19978_v39 = vld [vmem:[%s26754_s13 + $0x20] sm:$0x1] }
0x122e   :  { %v9940_v15 = vmax.f32 %v9904_v20, 0.0  ;;  %v19981_v20 = vld [vmem:[%s26754_s13 + $0x28] sm:$0x1]  ;;  %v19982_v53 = vld [vmem:[%s26740_s2] sm:$0xff] }
0x122f   :  { %v9939_v28 = vmax.f32 %v9903_v57, 0.0  ;;  %v17456_v23 = vpop.f32.mrb[124].mxu1  ;;  %18301 = vmatprep.subr.bf16.mxu0 %v18300_v54 }
0x1230   :  { %v9906_v52 = vadd.f32 %v17456_v23, %v27047_v37  ;;  %v9826_v0 = vpop.f32.mrb[125].mxu1  ;;  %18303 = vmatpush3.bf16.msra.mxu0 %v25103_v58  ;;  %v19979_v58 = vld [vmem:[%s26754_s13 + $0x18] sm:$0x1] }
0x1231   :  { %v18304_v4 = vpack.c.bf16 %v9940_v15, %v9939_v28  ;;  %v9905_v31 = vadd.f32 %v9826_v0, %v27048_v2  ;;  %v25155_v0 = vadd.f32 %v24459_v51, %v23703_v62 }
0x1232   :  { %v9942_v56 = vmax.f32 %v9906_v52, 0.0 }
0x1233   :  { %v9941_v9 = vmax.f32 %v9905_v31, 0.0  ;;  %10008 = vmatmul.mubr.f32.vlgmr.msra.gmra.mrb[120].mxu0 %v19977_v47  ;;  %18305 = vmatprep.subr.bf16.mxu0 %v18304_v4  ;;  %v27049_v31 = vld [vmem:[#allocation60_spill] sm:$0xff]  ;;  %v27050_v47 = vld [vmem:[#allocation61_spill] sm:$0xff] }
0x1234   :  { %18307 = vmatpush3.bf16.msra.mxu0 %v18304_v4  ;;  %10012 = vmatprep.mubr.f32.mxu0 %v19978_v39  ;;  %v25159_v4 = vadd.f32 %v24456_v1, %v23700_v6 }
0x1235   :  { %v18308_v44 = vpack.c.bf16 %v9942_v56, %v9941_v9 }
0x1237   :  { %10013 = vmatmul.mubr.f32.gmra.mrb[122].mxu0 %v19979_v58  ;;  %18309 = vmatprep.subr.bf16.mxu0 %v18308_v44  ;;  %v13980_v58 = vld [vmem:[%s26750_s0 + $0x50] sm:$0xff] }
0x1238   :  { %18311 = vmatpush3.bf16.msra.mxu0 %v18308_v44  ;;  %17465 = vmatprep.mubr.msk.f32.mxu0 %vm2185_vm4, %v19980_v3  ;;  %v13981_v44 = vld [vmem:[%s26750_s0 + $0x58] sm:$0x1] }
0x123b   :  { %17466 = vmatmul.mubr.msk.f32.vlgmr.msra.gmra.mrb[124].mxu0 %vm2185_vm4, %v19981_v20 }
0x123c   :  { %17472 = vmatprep.mubr.msk.f32.mxu0 %vm431_vm0, %v19982_v53 }
0x1306   :  { %v15614_v54 = vpop.f32.mrb[120].mxu0 }
0x1307   :  { %v15615_v57 = vpop.f32.mrb[121].mxu0 }
0x1308   :  { %v15616_v15 = vadd.f32 %v15615_v57, %v15614_v54  ;;  %v26878_v54 = vsub.f32 1.0, %v25155_v0  ;;  %v10097_v57 = vsub.f32 1.0, %v25159_v4  ;;  %v10239_v4 = vsub.f32 1.0, %v24459_v51 }
0x130a   :  { %v15617_v28 = vpop.f32.mrb[122].mxu0  ;;  %v10010_v39 = vadd.f32 %v15616_v15, %v27050_v47 }
0x130b   :  { %v15618_v23 = vpop.f32.mrb[123].mxu0 }
0x130c   :  { %v15619_v52 = vadd.f32 %v15618_v23, %v15617_v28 }
0x130e   :  { %v10015_v56 = vadd.f32 %v15619_v52, %v27049_v31  ;;  %v17467_v9 = vpop.f32.mrb[124].mxu0 }
0x130f   :  { %v10084_v3 = vpop.f32.mrb[125].mxu0 }
0x1310   :  { %v10090_v20 = vadd.f32 %v17467_v9, %v10015_v56  ;;  %v10085_v53 = vadd.f32 %v10084_v3, %v10010_v39 }
0x1312   :  { %v10096_v28 = vmul.f32 %v10090_v20, %v10090_v20  ;;  %v10110_v23 = vadd.f32 %v13981_v44, %v10090_v20  ;;  %v10095_v52 = vmul.f32 %v10085_v53, %v10085_v53  ;;  %v10109_v31 = vadd.f32 %v13980_v58, %v10085_v53 }
0x1314   :  { %v10100_v15 = vmul.f32 %v26878_v54, %v10096_v28  ;;  %v10111_v47 = vsel %vm540_vm1, %v10110_v23, -inf  ;;  %v10099_v2 = vmul.f32 %v10097_v57, %v10095_v52 }
0x1315   :  { %v10112_v37 = vmax.f32 %v10109_v31, %v10111_v47 }
0x1316   :  { %v10101_v56 = vsel %vm540_vm1, %v10100_v15, 0.0 }
0x1317   :  { %v10102_v9 = vadd.f32 %v10101_v56, %v10099_v2  ;;  %v10113_v39 = vrot.slane %v10112_v37, 4 }
0x1319   :  { %v10103_v3 = vrot.slane %v10102_v9, 4  ;;  %v10114_v43 = vmax.f32 %v10112_v37, %v10113_v39  ;;  %v8767_v39 = vrot.slane %v24459_v51, 2 }
0x131b   :  { %v10104_v19 = vadd.f32 %v10103_v3, %v10102_v9  ;;  %v10115_v32 = vrot.slane %v10114_v43, 2 }
0x131d   :  { %v10105_v44 = vrot.slane %v10104_v19, 2  ;;  %v10116_v20 = vmax.f32 %v10114_v43, %v10115_v32 }
0x131f   :  { %v10106_v58 = vadd.f32 %v10105_v44, %v10104_v19  ;;  %v10117_v53 = vrot.slane %v10116_v20, 1  ;;  %v8774_v44 = vrot.slane %v24456_v1, 3 }
0x1321   :  { %v10107_v14 = vrot.slane %v10106_v58, 1  ;;  %v10118_v28 = vmax.f32 %v10116_v20, %v10117_v53 }
0x1323   :  { %v10108_v54 = vadd.f32 %v10107_v14, %v10106_v58  ;;  %v10119_v40 = vsub.f32 %v10109_v31, %v10118_v28  ;;  %v10120_v5 = vsub.f32 %v10110_v23, %v10118_v28  ;;  %v8756_v14 = vrot.slane %v24456_v1, 1 }
0x1324   :  { %v8776_v28 = vmul.f32 %v8774_v44, %v24456_v1 }
0x1325   :  { %v10121_v10 = vmul.f32 1.442695, %v10119_v40  ;;  %v10123_v52 = vmul.f32 1.442695, %v10120_v5  ;;  %v10233_v47 = vmul.f32 0.0033333334, %v10108_v54  ;;  %v8758_v5 = vmul.f32 %v8756_v14, %v24456_v1 }
0x1327   :  { %19340 = vpow2.f32 %v10121_v10  ;;  %v25178_v2 = vadd.f32 %v10233_v47, %v23666_v29  ;;  %v8759_v10 = vrot.slane %v24456_v1, 2  ;;  %v8769_v3 = vmul.f32 %v8767_v39, %v8758_v5 }
0x1328   :  { %19342 = vpow2.f32 %v10123_v52 }
0x1329   :  { %v8761_v29 = vmul.f32 %v8759_v10, %v8758_v5  ;;  %v8771_v53 = vrot.slane %v8769_v3, 6 }
0x132b   :  { %v8763_v54 = vrot.slane %v8761_v29, 3 }
0x132d   :  { %v8765_v20 = vadd.f32 %v8763_v54, %v8761_v29  ;;  %v8792_v54 = vrot.slane %v24456_v1, 4 }
0x132f   :  { %v8794_v44 = vmul.f32 %v8792_v54, %v24456_v1 }
0x1331   :  { %v19341_v37 = vpop.eup %19340 }
0x1332   :  { %v19343_v15 = vpop.eup %19342 }
0x1333   :  { %v10125_v56 = vsel %vm540_vm1, %v19343_v15, 0.0 }
0x1334   :  { %v10126_v32 = vadd.f32 %v19341_v37, %v10125_v56  ;;  %v8773_v56 = vadd.f32 %v8771_v53, %v8765_v20  ;;  %v8797_v20 = vmul.f32 %v8759_v10, %v24456_v1 }
0x1336   :  { %v10127_v19 = vrot.slane %v10126_v32, 4 }
0x1338   :  { %v10128_v43 = vadd.f32 %v10127_v19, %v10126_v32  ;;  %v8777_v32 = vrot.slane %v24456_v1, 6 }
0x133a   :  { %v10129_v9 = vrot.slane %v10128_v43, 2 }
0x133c   :  { %v10130_v31 = vadd.f32 %v10129_v9, %v10128_v43  ;;  %v8779_v9 = vmul.f32 %v8777_v32, %v8776_v28 }
0x133e   :  { %v10131_v23 = vrot.slane %v10130_v31, 1 }
0x1340   :  { %v10132_v40 = vadd.f32 %v10131_v23, %v10130_v31  ;;  %v8780_v31 = vadd.f32 %v8779_v9, %v8773_v56  ;;  %v8785_v23 = vrot.slane %v24459_v51, 6  ;;  %v8795_v56 = vmul.f32 %v8794_v44, %v24459_v51 }
0x1342   :  { %19344 = vrcp.f32 %v10132_v40  ;;  %v8782_v40 = vrot.slane %v8779_v9, 1  ;;  %v8787_v29 = vmul.f32 %v8785_v23, %v8776_v28 }
0x1344   :  { %v8784_v3 = vadd.f32 %v8782_v40, %v8780_v31 }
0x134c   :  { %v19345_v58 = vpop.eup %19344 }
0x134d   :  { %v10134_v52 = vmul.f32 %v19345_v58, %v19341_v37  ;;  %v10135_v47 = vmul.f32 %v19345_v58, %v19343_v15  ;;  %v8789_v15 = vrot.slane %v8787_v29, 2 }
0x134f   :  { %v10136_v19 = vsel %vm540_vm1, %v10135_v47, -inf  ;;  %v8791_v53 = vadd.f32 %v8789_v15, %v8784_v3 }
0x1350   :  { %v10137_v43 = vmax.f32 %v10134_v52, %v10136_v19  ;;  %v8798_v19 = vmul.f32 %v8797_v20, %v8792_v54 }
0x1352   :  { %v10138_v14 = vrot.slane %v10137_v43, 4  ;;  %v8800_v31 = vrot.slane %v8798_v19, 2 }
0x1354   :  { %v10139_v5 = vmax.f32 %v10137_v43, %v10138_v14  ;;  %v8796_v43 = vadd.f32 %v8795_v56, %v8791_v53 }
0x1356   :  { %v10140_v39 = vrot.slane %v10139_v5, 2 }
0x1358   :  { %v10141_v37 = vmax.f32 %v10139_v5, %v10140_v39  ;;  %v8802_v5 = vadd.f32 %v8800_v31, %v8796_v43 }
0x135a   :  { %v10142_v58 = vrot.slane %v10141_v37, 1  ;;  %v25198_v29 = vmax.f32 %v23686_v12, %v8802_v5 }
0x135c   :  { %v10143_v32 = vmax.f32 %v10141_v37, %v10142_v58  ;;  %v10170_v37 = vadd.f32 %v25198_v29, %v24442_v35 }
0x135e   :  { %vm10144_vm9 = vcmp.eq.f32.partialorder %v10134_v52, %v10143_v32  ;;  %vm10145_vm10 = vcmp.eq.f32.partialorder %v10135_v47, %v10143_v32  ;;  %v10171_v44 = vsub.f32 1.0, %v10170_v37  ;;  %v19989_v37 = vld [vmem:[%s26740_s2 + $0x38] sm:$0xff] }
0x135f   :  { %v10146_v28 = vsel %vm10144_vm9, %v21360_v63, 9  ;;  %v10147_v9 = vsel %vm10145_vm10, %v21363_v11, 9 }
0x1360   :  { %v10148_v14 = vsel %vm540_vm1, %v10147_v9, 2147483647  ;;  %v10175_v19 = vrot.slane %v10171_v44, %v22185_v16  ;;  %v19991_v44 = vld [vmem:[%s26740_s2 + $0x48] sm:$0xff] }
0x1361   :  { %vm10149_vm11 = vcmp.lt.s32.totalorder %v10146_v28, %v10148_v14 }
0x1362   :  { %v10150_v23 = vsel %vm10149_vm11, %v10146_v28, %v10148_v14  ;;  %v27051_v14 = vsub.f32 1.0, %v25155_v0 }
0x1363   :  { %v10151_v10 = vrot.slane %v10150_v23, 4 }
0x1365   :  { %vm10152_vm12 = vcmp.lt.s32.totalorder %v10150_v23, %v10151_v10 }
0x1366   :  { %v10153_v40 = vsel %vm10152_vm12, %v10150_v23, %v10151_v10 }
0x1367   :  { %v10154_v54 = vrot.slane %v10153_v40, 2 }
0x1369   :  { %vm10155_vm13 = vcmp.lt.s32.totalorder %v10153_v40, %v10154_v54 }
0x136a   :  { %v10156_v39 = vsel %vm10155_vm13, %v10153_v40, %v10154_v54  ;;  %v19984_v40 = vld [vmem:[%s26740_s2 + $0x10] sm:$0xff]  ;;  %v19985_v54 = vld [vmem:[%s26740_s2 + $0x18] sm:$0xff] }
0x136b   :  { %v10157_v3 = vrot.slane %v10156_v39, 1 }
0x136d   :  { %vm10158_vm14 = vcmp.lt.s32.totalorder %v10156_v39, %v10157_v3 }
0x136e   :  { %v10159_v15 = vsel %vm10158_vm14, %v10156_v39, %v10157_v3  ;;  %v19987_v39 = vld [vmem:[%s26740_s2 + $0x28] sm:$0xff]  ;;  %v19988_v3 = vld [vmem:[%s26740_s2 + $0x30] sm:$0xff] }
0x136f   :  { %vm10160_vm15 = vcmp.eq.s32.totalorder %v21360_v63, %v10159_v15  ;;  %vm10161_vm2 = vcmp.eq.s32.totalorder %v21363_v11, %v10159_v15  ;;  %v19990_v15 = vld [vmem:[%s26740_s2 + $0x40] sm:$0xff] }
0x1370   :  { %v14132_v20 = vsel %vm10160_vm15, 1.0, %v26944_v24  ;;  %v14133_v58 = vsel %vm10161_vm2, 1.0, %v26944_v24 }
0x1371   :  { %v10166_v12 = vsub.f32 %v14132_v20, %v10134_v52  ;;  %v10167_v53 = vsub.f32 %v14133_v58, %v10135_v47  ;;  %v19992_v20 = vld [vmem:[%s26740_s2 + $0x50] sm:$0xff]  ;;  %v19993_v58 = vld [vmem:[%s26740_s2 + $0x58] sm:$0xff] }
0x1373   :  { %v10168_v32 = vadd.f32 %v10166_v12, %v10134_v52  ;;  %v10169_v56 = vadd.f32 %v10167_v53, %v10135_v47  ;;  %v10238_v47 = vsub.f32 1.0, %v24456_v1  ;;  %v19994_v12 = vld [vmem:[%s26740_s2 + $0x60] sm:$0xff]  ;;  %v19995_v53 = vld [vmem:[%s26740_s2 + $0x68] sm:$0xff] }
0x1375   :  { %v10176_v43 = vmul.f32 %v10175_v19, %v10168_v32  ;;  %v10177_v28 = vmul.f32 %v10175_v19, %v10169_v56  ;;  %v19996_v32 = vld [vmem:[%s26740_s2 + $0x70] sm:$0xff]  ;;  %v19997_v56 = vld [vmem:[%s26740_s2 + $0x78] sm:$0xff]  ;;  %v19998_v19 = vld [vmem:[%s26740_s2 + $0x80] sm:$0xff] }
0x1377   :  { %v10178_v9 = vmul.f32 %v10176_v43, %v10097_v57  ;;  %v10179_v31 = vmul.f32 %v10177_v28, %v27051_v14  ;;  %v19999_v43 = vld [vmem:[%s26740_s2 + $0x88] sm:$0xff]  ;;  %v20000_v28 = vld [vmem:[%s26740_s2 + $0x90] sm:$0xff]  ;;  %v20002_v14 = vld [vmem:[%s26740_s2 + $0xa0] sm:$0xff] }
0x1379   :  { %v25212_v23 = vadd.f32 %v10178_v9, %v23700_v6  ;;  %v25215_v5 = vadd.f32 %v10179_v31, %v23703_v62  ;;  %v25217_v10 = vpack.c.bf16 %v10179_v31, %v10178_v9  ;;  %v19983_v62 = vld [vmem:[%s26740_s2 + $0x8] sm:$0xff]  ;;  %v20001_v9 = vld [vmem:[%s26740_s2 + $0x98] sm:$0xff] }
0x137a   :  { %v20003_v31 = vld [vmem:[%s26740_s2 + $0xa8] sm:$0xff] }
0x137b   :  { %v25221_v52 = vpack.c.bf16 %v25215_v5, %v25212_v23  ;;  %v10240_v6 = vsub.f32 %v10238_v47, %v25212_v23  ;;  %v10241_v0 = vsub.f32 %v10239_v4, %v25215_v5  ;;  %v20004_v47 = vld [vmem:[%s26740_s2 + $0xb0] sm:$0xff]  ;;  %v20005_v4 = vld [vmem:[%s26740_s2 + $0xb8] sm:$0xff] }
0x137d   :  { %18314 = vmatprep.subr.msk.bf16.mxu0 %vm20417_vm3, %v25221_v52  ;;  %v25240_v57 = vpack.c.bf16 %v10241_v0, %v10240_v6  ;;  %v20006_v6 = vld [vmem:[%s26740_s2 + $0xc0] sm:$0xff]  ;;  %v20007_v0 = vld [vmem:[%s26740_s2 + $0xc8] sm:$0xff] }
0x137e   :  { %18317 = vmatpush3.bf16.msk.msra.mxu0 %vm20417_vm3, %v25221_v52 }
0x137f   :  { %18320 = vmatprep.subr.msk.bf16.mxu0 %vm20417_vm3, %v24465_v42 }
0x1381   :  { %17473 = vmatmul.mubr.msk.f32.vlgmr.msra.gmra.mrb[126].mxu0 %vm431_vm0, %v19983_v62  ;;  %v20008_v62 = vld [vmem:[%s26740_s2 + $0xd0] sm:$0xff] }
0x1382   :  { %18323 = vmatpush3.bf16.msk.msra.mxu0 %vm20417_vm3, %v24465_v42  ;;  %17475 = vmatprep.mubr.msk.f32.mxu0 %vm431_vm0, %v19984_v40  ;;  %v19986_v42 = vld [vmem:[%s26740_s2 + $0x20] sm:$0xff]  ;;  %v20009_v40 = vld [vmem:[%s26740_s2 + $0xd8] sm:$0xff] }
0x1383   :  { %18326 = vmatprep.subr.msk.bf16.mxu0 %vm20417_vm3, %v25240_v57 }
0x1385   :  { %17476 = vmatmul.mubr.msk.f32.gmra.mrb[128].mxu0 %vm431_vm0, %v19985_v54  ;;  %v20010_v54 = vld [vmem:[%s26740_s2 + $0xe0] sm:$0xff] }
0x1386   :  { %17478 = vmatprep.mubr.msk.f32.mxu0 %vm431_vm0, %v19986_v42  ;;  %v20011_v42 = vld [vmem:[%s26740_s2 + $0xe8] sm:$0xff] }
0x1389   :  { %17479 = vmatmul.mubr.msk.f32.gmra.mrb[130].mxu0 %vm431_vm0, %v19987_v39  ;;  %v20012_v39 = vld [vmem:[%s26740_s2 + $0xf0] sm:$0xff] }
0x138a   :  { %17481 = vmatprep.mubr.msk.f32.mxu0 %vm431_vm0, %v19988_v3  ;;  %v20013_v3 = vld [vmem:[%s26740_s2 + $0xf8] sm:$0xff] }
0x138d   :  { %17482 = vmatmul.mubr.msk.f32.gmra.mrb[132].mxu0 %vm431_vm0, %v19989_v37  ;;  %v20014_v37 = vld [vmem:[%s26740_s2 + $0x100] sm:$0xff] }
0x138e   :  { %17484 = vmatprep.mubr.msk.f32.mxu0 %vm431_vm0, %v19990_v15  ;;  %v20015_v15 = vld [vmem:[%s26740_s2 + $0x108] sm:$0xff] }
0x1391   :  { %17485 = vmatmul.mubr.msk.f32.gmra.mrb[134].mxu0 %vm431_vm0, %v19991_v44  ;;  %v20016_v44 = vld [vmem:[%s26740_s2 + $0x110] sm:$0xff] }
0x1392   :  { %17487 = vmatprep.mubr.msk.f32.mxu0 %vm431_vm0, %v19992_v20  ;;  %v20017_v20 = vld [vmem:[%s26740_s2 + $0x118] sm:$0xff] }
0x1395   :  { %17488 = vmatmul.mubr.msk.f32.gmra.mrb[136].mxu0 %vm431_vm0, %v19993_v58  ;;  %v20018_v58 = vld [vmem:[%s26742_s1] sm:$0xff] }
0x1396   :  { %17490 = vmatprep.mubr.msk.f32.mxu0 %vm431_vm0, %v19994_v12  ;;  %v20019_v12 = vld [vmem:[%s26742_s1 + $0x8] sm:$0xff] }
0x1399   :  { %17491 = vmatmul.mubr.msk.f32.gmra.mrb[138].mxu0 %vm431_vm0, %v19995_v53  ;;  %v20020_v53 = vld [vmem:[%s26742_s1 + $0x10] sm:$0xff] }
0x139a   :  { %17493 = vmatprep.mubr.msk.f32.mxu0 %vm431_vm0, %v19996_v32  ;;  %v20021_v32 = vld [vmem:[%s26742_s1 + $0x18] sm:$0xff] }
0x139d   :  { %17494 = vmatmul.mubr.msk.f32.gmra.mrb[140].mxu0 %vm431_vm0, %v19997_v56  ;;  %v20023_v56 = vld [vmem:[%s26742_s1 + $0x28] sm:$0xff] }
0x139e   :  { %17496 = vmatprep.mubr.msk.f32.mxu0 %vm431_vm0, %v19998_v19  ;;  %v20024_v19 = vld [vmem:[%s26742_s1 + $0x30] sm:$0xff] }
0x13a1   :  { %17497 = vmatmul.mubr.msk.f32.gmra.mrb[142].mxu0 %vm431_vm0, %v19999_v43  ;;  %v20025_v43 = vld [vmem:[%s26742_s1 + $0x38] sm:$0xff] }
0x13a2   :  { %17499 = vmatprep.mubr.msk.f32.mxu0 %vm431_vm0, %v20000_v28  ;;  %v20026_v28 = vld [vmem:[%s26742_s1 + $0x40] sm:$0xff] }
0x13a5   :  { %17500 = vmatmul.mubr.msk.f32.gmra.mrb[144].mxu0 %vm431_vm0, %v20001_v9  ;;  %v20027_v9 = vld [vmem:[%s26742_s1 + $0x48] sm:$0xff] }
0x13a6   :  { %17502 = vmatprep.mubr.msk.f32.mxu0 %vm431_vm0, %v20002_v14  ;;  %v20028_v14 = vld [vmem:[%s26742_s1 + $0x50] sm:$0xff] }
0x13a9   :  { %17503 = vmatmul.mubr.msk.f32.gmra.mrb[146].mxu0 %vm431_vm0, %v20003_v31  ;;  %v20029_v31 = vld [vmem:[%s26742_s1 + $0x58] sm:$0xff] }
0x13aa   :  { %17505 = vmatprep.mubr.msk.f32.mxu0 %vm431_vm0, %v20004_v47  ;;  %v20030_v47 = vld [vmem:[%s26742_s1 + $0x60] sm:$0xff] }
0x13ad   :  { %17506 = vmatmul.mubr.msk.f32.gmra.mrb[148].mxu0 %vm431_vm0, %v20005_v4  ;;  %v20031_v4 = vld [vmem:[%s26742_s1 + $0x68] sm:$0xff] }
0x13ae   :  { %17508 = vmatprep.mubr.msk.f32.mxu0 %vm431_vm0, %v20006_v6  ;;  %v20032_v6 = vld [vmem:[%s26742_s1 + $0x70] sm:$0xff] }
0x13b1   :  { %17509 = vmatmul.mubr.msk.f32.gmra.mrb[150].mxu0 %vm431_vm0, %v20007_v0  ;;  %v20033_v0 = vld [vmem:[%s26742_s1 + $0x78] sm:$0xff] }
0x13b2   :  { %17511 = vmatprep.mubr.msk.f32.mxu0 %vm431_vm0, %v20008_v62  ;;  %v20034_v62 = vld [vmem:[%s26742_s1 + $0x80] sm:$0xff] }
0x13b5   :  { %17512 = vmatmul.mubr.msk.f32.gmra.mrb[152].mxu0 %vm431_vm0, %v20009_v40  ;;  %v20035_v40 = vld [vmem:[%s26742_s1 + $0x88] sm:$0xff] }
0x13b6   :  { %17514 = vmatprep.mubr.msk.f32.mxu0 %vm431_vm0, %v20010_v54  ;;  %v20036_v54 = vld [vmem:[%s26742_s1 + $0x90] sm:$0xff] }
0x13b9   :  { %17515 = vmatmul.mubr.msk.f32.gmra.mrb[154].mxu0 %vm431_vm0, %v20011_v42  ;;  %v20037_v42 = vld [vmem:[%s26742_s1 + $0x98] sm:$0xff] }
0x13ba   :  { %17517 = vmatprep.mubr.msk.f32.mxu0 %vm431_vm0, %v20012_v39  ;;  %v20038_v39 = vld [vmem:[%s26742_s1 + $0xa0] sm:$0xff] }
0x13bd   :  { %17518 = vmatmul.mubr.msk.f32.gmra.mrb[156].mxu0 %vm431_vm0, %v20013_v3  ;;  %v20039_v3 = vld [vmem:[%s26742_s1 + $0xa8] sm:$0xff] }
0x13be   :  { %17520 = vmatprep.mubr.msk.f32.mxu0 %vm431_vm0, %v20014_v37  ;;  %v20040_v37 = vld [vmem:[%s26742_s1 + $0xb0] sm:$0xff] }
0x13c1   :  { %17521 = vmatmul.mubr.msk.f32.gmra.mrb[158].mxu0 %vm431_vm0, %v20015_v15  ;;  %v20041_v15 = vld [vmem:[%s26742_s1 + $0xb8] sm:$0xff] }
0x13c2   :  { %17523 = vmatprep.mubr.msk.f32.mxu0 %vm431_vm0, %v20016_v44  ;;  %v20042_v44 = vld [vmem:[%s26742_s1 + $0xc0] sm:$0xff] }
0x13c5   :  { %17524 = vmatmul.mubr.msk.f32.gmra.mrb[160].mxu0 %vm431_vm0, %v20017_v20  ;;  %v20043_v20 = vld [vmem:[%s26742_s1 + $0xc8] sm:$0xff] }
0x13c6   :  { %17530 = vmatprep.mubr.msk.f32.mxu0 %vm431_vm0, %v20018_v58  ;;  %v20044_v58 = vld [vmem:[%s26742_s1 + $0xd0] sm:$0xff] }
0x13c9   :  { %17531 = vmatmul.mubr.msk.f32.vlgmr.msra.gmra.mrb[126].mxu0 %vm431_vm0, %v20019_v12  ;;  %v20045_v12 = vld [vmem:[%s26742_s1 + $0xd8] sm:$0xff] }
0x13ca   :  { %18329 = vmatpush3.bf16.msk.msra.mxu0 %vm20417_vm3, %v25240_v57  ;;  %17533 = vmatprep.mubr.msk.f32.mxu0 %vm431_vm0, %v20020_v53  ;;  %v20022_v57 = vld [vmem:[%s26742_s1 + $0x20] sm:$0xff] }
0x13cb   :  { %18332 = vmatprep.subr.msk.bf16.mxu0 %vm20417_vm3, %v25217_v10  ;;  %v20046_v53 = vld [vmem:[%s26742_s1 + $0xe0] sm:$0xff] }
0x13cd   :  { %17534 = vmatmul.mubr.msk.f32.gmra.mrb[128].mxu0 %vm431_vm0, %v20021_v32  ;;  %v20047_v32 = vld [vmem:[%s26742_s1 + $0xe8] sm:$0xff] }
0x13ce   :  { %17536 = vmatprep.mubr.msk.f32.mxu0 %vm431_vm0, %v20022_v57  ;;  %v20048_v57 = vld [vmem:[%s26742_s1 + $0xf0] sm:$0xff] }
0x13d1   :  { %17537 = vmatmul.mubr.msk.f32.gmra.mrb[130].mxu0 %vm431_vm0, %v20023_v56  ;;  %v20049_v56 = vld [vmem:[%s26742_s1 + $0xf8] sm:$0xff] }
0x13d2   :  { %17539 = vmatprep.mubr.msk.f32.mxu0 %vm431_vm0, %v20024_v19  ;;  %v20050_v19 = vld [vmem:[%s26742_s1 + $0x100] sm:$0xff] }
0x13d5   :  { %17540 = vmatmul.mubr.msk.f32.gmra.mrb[132].mxu0 %vm431_vm0, %v20025_v43  ;;  %v20051_v43 = vld [vmem:[%s26742_s1 + $0x108] sm:$0xff] }
0x13d6   :  { %17542 = vmatprep.mubr.msk.f32.mxu0 %vm431_vm0, %v20026_v28  ;;  %v20052_v28 = vld [vmem:[%s26742_s1 + $0x110] sm:$0xff] }
0x13d9   :  { %17543 = vmatmul.mubr.msk.f32.gmra.mrb[134].mxu0 %vm431_vm0, %v20027_v9  ;;  %v20053_v9 = vld [vmem:[%s26742_s1 + $0x118] sm:$0xff] }
0x13da   :  { %17545 = vmatprep.mubr.msk.f32.mxu0 %vm431_vm0, %v20028_v14  ;;  %v20054_v14 = vld [vmem:[%s26745_s3] sm:$0xff] }
0x13dd   :  { %17546 = vmatmul.mubr.msk.f32.gmra.mrb[136].mxu0 %vm431_vm0, %v20029_v31  ;;  %v20055_v31 = vld [vmem:[%s26745_s3 + $0x8] sm:$0xff] }
0x13de   :  { %17548 = vmatprep.mubr.msk.f32.mxu0 %vm431_vm0, %v20030_v47  ;;  %v20056_v47 = vld [vmem:[%s26745_s3 + $0x10] sm:$0xff] }
0x13e1   :  { %17549 = vmatmul.mubr.msk.f32.gmra.mrb[138].mxu0 %vm431_vm0, %v20031_v4  ;;  %v20057_v4 = vld [vmem:[%s26745_s3 + $0x18] sm:$0xff] }
0x13e2   :  { %17551 = vmatprep.mubr.msk.f32.mxu0 %vm431_vm0, %v20032_v6  ;;  %v20058_v6 = vld [vmem:[%s26745_s3 + $0x20] sm:$0xff] }
0x13e5   :  { %17552 = vmatmul.mubr.msk.f32.gmra.mrb[140].mxu0 %vm431_vm0, %v20033_v0  ;;  %v20060_v0 = vld [vmem:[%s26745_s3 + $0x30] sm:$0xff] }
0x13e6   :  { %17554 = vmatprep.mubr.msk.f32.mxu0 %vm431_vm0, %v20034_v62  ;;  %v20061_v62 = vld [vmem:[%s26745_s3 + $0x38] sm:$0xff] }
0x13e9   :  { %17555 = vmatmul.mubr.msk.f32.gmra.mrb[142].mxu0 %vm431_vm0, %v20035_v40  ;;  %v20062_v40 = vld [vmem:[%s26745_s3 + $0x40] sm:$0xff] }
0x13ea   :  { %17557 = vmatprep.mubr.msk.f32.mxu0 %vm431_vm0, %v20036_v54  ;;  %v20063_v54 = vld [vmem:[%s26745_s3 + $0x48] sm:$0xff] }
0x13ed   :  { %17558 = vmatmul.mubr.msk.f32.gmra.mrb[144].mxu0 %vm431_vm0, %v20037_v42  ;;  %v20064_v42 = vld [vmem:[%s26745_s3 + $0x50] sm:$0xff] }
0x13ee   :  { %17560 = vmatprep.mubr.msk.f32.mxu0 %vm431_vm0, %v20038_v39  ;;  %v20065_v39 = vld [vmem:[%s26745_s3 + $0x58] sm:$0xff] }
0x13f1   :  { %17561 = vmatmul.mubr.msk.f32.gmra.mrb[146].mxu0 %vm431_vm0, %v20039_v3  ;;  %v20066_v3 = vld [vmem:[%s26745_s3 + $0x60] sm:$0xff] }
0x13f2   :  { %17563 = vmatprep.mubr.msk.f32.mxu0 %vm431_vm0, %v20040_v37  ;;  %v20067_v37 = vld [vmem:[%s26745_s3 + $0x68] sm:$0xff] }
0x13f5   :  { %17564 = vmatmul.mubr.msk.f32.gmra.mrb[148].mxu0 %vm431_vm0, %v20041_v15  ;;  %v20068_v15 = vld [vmem:[%s26745_s3 + $0x70] sm:$0xff] }
0x13f6   :  { %17566 = vmatprep.mubr.msk.f32.mxu0 %vm431_vm0, %v20042_v44  ;;  %v20069_v44 = vld [vmem:[%s26745_s3 + $0x78] sm:$0xff] }
0x13f9   :  { %17567 = vmatmul.mubr.msk.f32.gmra.mrb[150].mxu0 %vm431_vm0, %v20043_v20  ;;  %v20070_v20 = vld [vmem:[%s26745_s3 + $0x80] sm:$0xff] }
0x13fa   :  { %17569 = vmatprep.mubr.msk.f32.mxu0 %vm431_vm0, %v20044_v58  ;;  %v20071_v58 = vld [vmem:[%s26745_s3 + $0x88] sm:$0xff] }
0x13fd   :  { %17570 = vmatmul.mubr.msk.f32.gmra.mrb[152].mxu0 %vm431_vm0, %v20045_v12  ;;  %v20072_v12 = vld [vmem:[%s26745_s3 + $0x90] sm:$0xff] }
0x13fe   :  { %17572 = vmatprep.mubr.msk.f32.mxu0 %vm431_vm0, %v20046_v53  ;;  %v20073_v53 = vld [vmem:[%s26745_s3 + $0x98] sm:$0xff] }
0x1401   :  { %17573 = vmatmul.mubr.msk.f32.gmra.mrb[154].mxu0 %vm431_vm0, %v20047_v32  ;;  %v20074_v32 = vld [vmem:[%s26745_s3 + $0xa0] sm:$0xff] }
0x1402   :  { %17575 = vmatprep.mubr.msk.f32.mxu0 %vm431_vm0, %v20048_v57  ;;  %v20075_v57 = vld [vmem:[%s26745_s3 + $0xa8] sm:$0xff] }
0x1405   :  { %17576 = vmatmul.mubr.msk.f32.gmra.mrb[156].mxu0 %vm431_vm0, %v20049_v56  ;;  %v20076_v56 = vld [vmem:[%s26745_s3 + $0xb0] sm:$0xff] }
0x1406   :  { %17578 = vmatprep.mubr.msk.f32.mxu0 %vm431_vm0, %v20050_v19  ;;  %v20077_v19 = vld [vmem:[%s26745_s3 + $0xb8] sm:$0xff] }
0x1409   :  { %17579 = vmatmul.mubr.msk.f32.gmra.mrb[158].mxu0 %vm431_vm0, %v20051_v43  ;;  %v20078_v43 = vld [vmem:[%s26745_s3 + $0xc0] sm:$0xff] }
0x140a   :  { %17581 = vmatprep.mubr.msk.f32.mxu0 %vm431_vm0, %v20052_v28  ;;  %v20079_v28 = vld [vmem:[%s26745_s3 + $0xc8] sm:$0xff] }
0x140d   :  { %17582 = vmatmul.mubr.msk.f32.gmra.mrb[160].mxu0 %vm431_vm0, %v20053_v9  ;;  %v20080_v9 = vld [vmem:[%s26745_s3 + $0xd0] sm:$0xff] }
0x140e   :  { %17588 = vmatprep.mubr.msk.f32.mxu0 %vm431_vm0, %v20054_v14  ;;  %v20081_v14 = vld [vmem:[%s26745_s3 + $0xd8] sm:$0xff] }
0x1411   :  { %17589 = vmatmul.mubr.msk.f32.vlgmr.msra.gmra.mrb[126].mxu0 %vm431_vm0, %v20055_v31  ;;  %v20082_v31 = vld [vmem:[%s26745_s3 + $0xe0] sm:$0xff] }
0x1412   :  { %18335 = vmatpush3.bf16.msk.msra.mxu0 %vm20417_vm3, %v25217_v10  ;;  %17591 = vmatprep.mubr.msk.f32.mxu0 %vm431_vm0, %v20056_v47  ;;  %v20059_v10 = vld [vmem:[%s26745_s3 + $0x28] sm:$0xff] }
0x1413   :  { %v20083_v47 = vld [vmem:[%s26745_s3 + $0xe8] sm:$0xff] }
0x1415   :  { %17592 = vmatmul.mubr.msk.f32.gmra.mrb[128].mxu0 %vm431_vm0, %v20057_v4  ;;  %v20084_v4 = vld [vmem:[%s26745_s3 + $0xf0] sm:$0xff] }
0x1416   :  { %17594 = vmatprep.mubr.msk.f32.mxu0 %vm431_vm0, %v20058_v6  ;;  %v20085_v6 = vld [vmem:[%s26745_s3 + $0xf8] sm:$0xff] }
0x1419   :  { %17595 = vmatmul.mubr.msk.f32.gmra.mrb[130].mxu0 %vm431_vm0, %v20059_v10  ;;  %v20086_v10 = vld [vmem:[%s26745_s3 + $0x100] sm:$0xff] }
0x141a   :  { %17597 = vmatprep.mubr.msk.f32.mxu0 %vm431_vm0, %v20060_v0  ;;  %v20087_v0 = vld [vmem:[%s26745_s3 + $0x108] sm:$0xff] }
0x141d   :  { %17598 = vmatmul.mubr.msk.f32.gmra.mrb[132].mxu0 %vm431_vm0, %v20061_v62  ;;  %v20088_v62 = vld [vmem:[%s26745_s3 + $0x110] sm:$0xff] }
0x141e   :  { %17600 = vmatprep.mubr.msk.f32.mxu0 %vm431_vm0, %v20062_v40  ;;  %v20089_v40 = vld [vmem:[%s26745_s3 + $0x118] sm:$0xff] }
0x1421   :  { %17601 = vmatmul.mubr.msk.f32.gmra.mrb[134].mxu0 %vm431_vm0, %v20063_v54  ;;  %v20090_v54 = vld [vmem:[%s26747_s4] sm:$0xff] }
0x1422   :  { %17603 = vmatprep.mubr.msk.f32.mxu0 %vm431_vm0, %v20064_v42  ;;  %v20091_v42 = vld [vmem:[%s26747_s4 + $0x8] sm:$0xff] }
0x1425   :  { %17604 = vmatmul.mubr.msk.f32.gmra.mrb[136].mxu0 %vm431_vm0, %v20065_v39  ;;  %v20092_v39 = vld [vmem:[%s26747_s4 + $0x10] sm:$0xff] }
0x1426   :  { %17606 = vmatprep.mubr.msk.f32.mxu0 %vm431_vm0, %v20066_v3  ;;  %v20093_v3 = vld [vmem:[%s26747_s4 + $0x18] sm:$0xff] }
0x1429   :  { %17607 = vmatmul.mubr.msk.f32.gmra.mrb[138].mxu0 %vm431_vm0, %v20067_v37  ;;  %v20094_v37 = vld [vmem:[%s26747_s4 + $0x20] sm:$0xff] }
0x142a   :  { %17609 = vmatprep.mubr.msk.f32.mxu0 %vm431_vm0, %v20068_v15  ;;  %v20095_v15 = vld [vmem:[%s26747_s4 + $0x28] sm:$0xff] }
0x142d   :  { %17610 = vmatmul.mubr.msk.f32.gmra.mrb[140].mxu0 %vm431_vm0, %v20069_v44  ;;  %v20096_v44 = vld [vmem:[%s26747_s4 + $0x30] sm:$0xff] }
0x142e   :  { %17612 = vmatprep.mubr.msk.f32.mxu0 %vm431_vm0, %v20070_v20  ;;  %v20097_v20 = vld [vmem:[%s26747_s4 + $0x38] sm:$0xff] }
0x1431   :  { %17613 = vmatmul.mubr.msk.f32.gmra.mrb[142].mxu0 %vm431_vm0, %v20071_v58  ;;  %v20098_v58 = vld [vmem:[%s26747_s4 + $0x40] sm:$0xff] }
0x1432   :  { %17615 = vmatprep.mubr.msk.f32.mxu0 %vm431_vm0, %v20072_v12  ;;  %v20099_v12 = vld [vmem:[%s26747_s4 + $0x48] sm:$0xff] }
0x1435   :  { %17616 = vmatmul.mubr.msk.f32.gmra.mrb[144].mxu0 %vm431_vm0, %v20073_v53  ;;  %v20100_v53 = vld [vmem:[%s26747_s4 + $0x50] sm:$0xff] }
0x1436   :  { %17618 = vmatprep.mubr.msk.f32.mxu0 %vm431_vm0, %v20074_v32  ;;  %v20101_v32 = vld [vmem:[%s26747_s4 + $0x58] sm:$0xff] }
0x1439   :  { %17619 = vmatmul.mubr.msk.f32.gmra.mrb[146].mxu0 %vm431_vm0, %v20075_v57  ;;  %v20102_v57 = vld [vmem:[%s26747_s4 + $0x60] sm:$0xff] }
0x143a   :  { %17621 = vmatprep.mubr.msk.f32.mxu0 %vm431_vm0, %v20076_v56  ;;  %v20103_v56 = vld [vmem:[%s26747_s4 + $0x68] sm:$0xff] }
0x143d   :  { %17622 = vmatmul.mubr.msk.f32.gmra.mrb[148].mxu0 %vm431_vm0, %v20077_v19  ;;  %v20104_v19 = vld [vmem:[%s26747_s4 + $0x70] sm:$0xff] }
0x143e   :  { %17624 = vmatprep.mubr.msk.f32.mxu0 %vm431_vm0, %v20078_v43  ;;  %v20105_v43 = vld [vmem:[%s26747_s4 + $0x78] sm:$0xff] }
0x1441   :  { %17625 = vmatmul.mubr.msk.f32.gmra.mrb[150].mxu0 %vm431_vm0, %v20079_v28  ;;  %v20106_v28 = vld [vmem:[%s26747_s4 + $0x80] sm:$0xff] }
0x1442   :  { %17627 = vmatprep.mubr.msk.f32.mxu0 %vm431_vm0, %v20080_v9  ;;  %v20107_v9 = vld [vmem:[%s26747_s4 + $0x88] sm:$0xff] }
0x1445   :  { %17628 = vmatmul.mubr.msk.f32.gmra.mrb[152].mxu0 %vm431_vm0, %v20081_v14  ;;  %v20108_v14 = vld [vmem:[%s26747_s4 + $0x90] sm:$0xff] }
0x1446   :  { %17630 = vmatprep.mubr.msk.f32.mxu0 %vm431_vm0, %v20082_v31  ;;  %v20109_v31 = vld [vmem:[%s26747_s4 + $0x98] sm:$0xff] }
0x1449   :  { %17631 = vmatmul.mubr.msk.f32.gmra.mrb[154].mxu0 %vm431_vm0, %v20083_v47  ;;  %v20110_v47 = vld [vmem:[%s26747_s4 + $0xa0] sm:$0xff] }
0x144a   :  { %17633 = vmatprep.mubr.msk.f32.mxu0 %vm431_vm0, %v20084_v4  ;;  %v20111_v4 = vld [vmem:[%s26747_s4 + $0xa8] sm:$0xff] }
0x144d   :  { %17634 = vmatmul.mubr.msk.f32.gmra.mrb[156].mxu0 %vm431_vm0, %v20085_v6  ;;  %v20112_v6 = vld [vmem:[%s26747_s4 + $0xb0] sm:$0xff] }
0x144e   :  { %17636 = vmatprep.mubr.msk.f32.mxu0 %vm431_vm0, %v20086_v10  ;;  %v20113_v10 = vld [vmem:[%s26747_s4 + $0xb8] sm:$0xff] }
0x1451   :  { %17637 = vmatmul.mubr.msk.f32.gmra.mrb[158].mxu0 %vm431_vm0, %v20087_v0  ;;  %v20114_v0 = vld [vmem:[%s26747_s4 + $0xc0] sm:$0xff] }
0x1452   :  { %17639 = vmatprep.mubr.msk.f32.mxu0 %vm431_vm0, %v20088_v62  ;;  %v20115_v62 = vld [vmem:[%s26747_s4 + $0xc8] sm:$0xff] }
0x1455   :  { %17640 = vmatmul.mubr.msk.f32.gmra.mrb[160].mxu0 %vm431_vm0, %v20089_v40  ;;  %v20116_v40 = vld [vmem:[%s26747_s4 + $0xd0] sm:$0xff] }
0x1456   :  { %17646 = vmatprep.mubr.msk.f32.mxu0 %vm431_vm0, %v20090_v54  ;;  %v20117_v54 = vld [vmem:[%s26747_s4 + $0xd8] sm:$0xff] }
0x1459   :  { %17647 = vmatmul.mubr.msk.f32.vlgmr.msra.gmra.mrb[126].mxu0 %vm431_vm0, %v20091_v42  ;;  %v20118_v42 = vld [vmem:[%s26747_s4 + $0xe0] sm:$0xff] }
0x145a   :  { %17649 = vmatprep.mubr.msk.f32.mxu0 %vm431_vm0, %v20092_v39  ;;  %v20119_v39 = vld [vmem:[%s26747_s4 + $0xe8] sm:$0xff] }
0x145d   :  { %17650 = vmatmul.mubr.msk.f32.gmra.mrb[128].mxu0 %vm431_vm0, %v20093_v3  ;;  %v20120_v3 = vld [vmem:[%s26747_s4 + $0xf0] sm:$0xff] }
0x145e   :  { %17652 = vmatprep.mubr.msk.f32.mxu0 %vm431_vm0, %v20094_v37  ;;  %v20121_v37 = vld [vmem:[%s26747_s4 + $0xf8] sm:$0xff] }
0x1461   :  { %17653 = vmatmul.mubr.msk.f32.gmra.mrb[130].mxu0 %vm431_vm0, %v20095_v15  ;;  %v20122_v15 = vld [vmem:[%s26747_s4 + $0x100] sm:$0xff] }
0x1462   :  { %17655 = vmatprep.mubr.msk.f32.mxu0 %vm431_vm0, %v20096_v44  ;;  %v20123_v44 = vld [vmem:[%s26747_s4 + $0x108] sm:$0xff] }
0x1465   :  { %17656 = vmatmul.mubr.msk.f32.gmra.mrb[132].mxu0 %vm431_vm0, %v20097_v20  ;;  %v20124_v20 = vld [vmem:[%s26747_s4 + $0x110] sm:$0xff] }
0x1466   :  { %17658 = vmatprep.mubr.msk.f32.mxu0 %vm431_vm0, %v20098_v58  ;;  %v20125_v58 = vld [vmem:[%s26747_s4 + $0x118] sm:$0xff] }
0x1469   :  { %17659 = vmatmul.mubr.msk.f32.gmra.mrb[134].mxu0 %vm431_vm0, %v20099_v12  ;;  %v20126_v12 = vld [vmem:[%s26754_s13 + $0x8] sm:$0xff] }
0x146a   :  { %17661 = vmatprep.mubr.msk.f32.mxu0 %vm431_vm0, %v20100_v53 }
0x146d   :  { %17662 = vmatmul.mubr.msk.f32.gmra.mrb[136].mxu0 %vm431_vm0, %v20101_v32 }
0x146e   :  { %17664 = vmatprep.mubr.msk.f32.mxu0 %vm431_vm0, %v20102_v57 }
0x1471   :  { %17665 = vmatmul.mubr.msk.f32.gmra.mrb[138].mxu0 %vm431_vm0, %v20103_v56 }
0x1472   :  { %17667 = vmatprep.mubr.msk.f32.mxu0 %vm431_vm0, %v20104_v19 }
0x1475   :  { %17668 = vmatmul.mubr.msk.f32.gmra.mrb[140].mxu0 %vm431_vm0, %v20105_v43 }
0x1476   :  { %17670 = vmatprep.mubr.msk.f32.mxu0 %vm431_vm0, %v20106_v28 }
0x1479   :  { %17671 = vmatmul.mubr.msk.f32.gmra.mrb[142].mxu0 %vm431_vm0, %v20107_v9 }
0x147a   :  { %17673 = vmatprep.mubr.msk.f32.mxu0 %vm431_vm0, %v20108_v14 }
0x147d   :  { %17674 = vmatmul.mubr.msk.f32.gmra.mrb[144].mxu0 %vm431_vm0, %v20109_v31 }
0x147e   :  { %17676 = vmatprep.mubr.msk.f32.mxu0 %vm431_vm0, %v20110_v47 }
0x1481   :  { %17677 = vmatmul.mubr.msk.f32.gmra.mrb[146].mxu0 %vm431_vm0, %v20111_v4 }
0x1482   :  { %17679 = vmatprep.mubr.msk.f32.mxu0 %vm431_vm0, %v20112_v6 }
0x1485   :  { %17680 = vmatmul.mubr.msk.f32.gmra.mrb[148].mxu0 %vm431_vm0, %v20113_v10 }
0x1486   :  { %17682 = vmatprep.mubr.msk.f32.mxu0 %vm431_vm0, %v20114_v0 }
0x1489   :  { %17683 = vmatmul.mubr.msk.f32.gmra.mrb[150].mxu0 %vm431_vm0, %v20115_v62 }
0x148a   :  { %17685 = vmatprep.mubr.msk.f32.mxu0 %vm431_vm0, %v20116_v40 }
0x148d   :  { %17686 = vmatmul.mubr.msk.f32.gmra.mrb[152].mxu0 %vm431_vm0, %v20117_v54 }
0x148e   :  { %17688 = vmatprep.mubr.msk.f32.mxu0 %vm431_vm0, %v20118_v42 }
0x1491   :  { %17689 = vmatmul.mubr.msk.f32.gmra.mrb[154].mxu0 %vm431_vm0, %v20119_v39  ;;  %v27052_v39 = vld [vmem:[#allocation10_spill] sm:$0xff] }
0x1492   :  { %17691 = vmatprep.mubr.msk.f32.mxu0 %vm431_vm0, %v20120_v3 }
0x1495   :  { %17692 = vmatmul.mubr.msk.f32.gmra.mrb[156].mxu0 %vm431_vm0, %v20121_v37 }
0x1496   :  { %17694 = vmatprep.mubr.msk.f32.mxu0 %vm431_vm0, %v20122_v15  ;;  %v27053_v15 = vld [vmem:[#allocation11_spill] sm:$0xff] }
0x1499   :  { %17695 = vmatmul.mubr.msk.f32.gmra.mrb[158].mxu0 %vm431_vm0, %v20123_v44 }
0x149a   :  { %17697 = vmatprep.mubr.msk.f32.mxu0 %vm431_vm0, %v20124_v20 }
0x149d   :  { %17698 = vmatmul.mubr.msk.f32.gmra.mrb[160].mxu0 %vm431_vm0, %v20125_v58 }
0x149e   :  { %12865 = vmatprep.mubr.f32.mxu0 %v20126_v12  ;;  %v27054_v12 = vld [vmem:[#allocation14_spill] sm:$0xff] }
0x152c   :  { %v17648_v53 = vpop.f32.mrb[126].mxu0 }
0x152d   :  { %v11303_v32 = vadd.f32 %v17648_v53, %v21193_v41  ;;  %v11087_v57 = vpop.f32.mrb[127].mxu0 }
0x152e   :  { %v11302_v56 = vadd.f32 %v11087_v57, %v21186_v38  ;;  %v27055_v57 = vld [vmem:[#allocation15_spill] sm:$0xff] }
0x152f   :  { %v11339_v19 = vmax.f32 %v11303_v32, 0.0 }
0x1530   :  { %v11338_v43 = vmax.f32 %v11302_v56, 0.0  ;;  %v17651_v28 = vpop.f32.mrb[128].mxu0 }
0x1531   :  { %v11305_v9 = vadd.f32 %v17651_v28, %v21201_v45  ;;  %v11097_v14 = vpop.f32.mrb[129].mxu0  ;;  %v27056_v28 = vld [vmem:[#allocation18_spill] sm:$0xff] }
0x1532   :  { %v25831_v31 = vpack.c.bf16 %v11339_v19, %v11338_v43  ;;  %v11304_v47 = vadd.f32 %v11097_v14, %v21203_v46 }
0x1533   :  { %v11341_v4 = vmax.f32 %v11305_v9, 0.0 }
0x1534   :  { %v11340_v6 = vmax.f32 %v11304_v47, 0.0  ;;  %v17654_v10 = vpop.f32.mrb[130].mxu0 }
0x1535   :  { %v11307_v0 = vadd.f32 %v17654_v10, %v21209_v49  ;;  %v11107_v62 = vpop.f32.mrb[131].mxu0 }
0x1536   :  { %v25835_v41 = vpack.c.bf16 %v11341_v4, %v11340_v6  ;;  %v11306_v38 = vadd.f32 %v11107_v62, %v21211_v50  ;;  %v27057_v4 = vld [vmem:[#allocation19_spill] sm:$0xff] }
0x1537   :  { %v11343_v40 = vmax.f32 %v11307_v0, 0.0 }
0x1538   :  { %v11342_v54 = vmax.f32 %v11306_v38, 0.0  ;;  %v17657_v42 = vpop.f32.mrb[132].mxu0  ;;  %v27058_v38 = vld [vmem:[#allocation22_spill] sm:$0xff] }
0x1539   :  { %v11309_v45 = vadd.f32 %v17657_v42, %v27052_v39  ;;  %v11117_v3 = vpop.f32.mrb[133].mxu0  ;;  %v27059_v39 = vld [vmem:[#allocation23_spill] sm:$0xff] }
0x153a   :  { %v25839_v37 = vpack.c.bf16 %v11343_v40, %v11342_v54  ;;  %v11308_v46 = vadd.f32 %v11117_v3, %v27053_v15 }
0x153b   :  { %v11345_v44 = vmax.f32 %v11309_v45, 0.0 }
0x153c   :  { %v11344_v20 = vmax.f32 %v11308_v46, 0.0  ;;  %v17660_v58 = vpop.f32.mrb[134].mxu0 }
0x153d   :  { %v11311_v49 = vadd.f32 %v17660_v58, %v27054_v12  ;;  %v11127_v53 = vpop.f32.mrb[135].mxu0 }
0x153e   :  { %v25843_v32 = vpack.c.bf16 %v11345_v44, %v11344_v20  ;;  %v11310_v50 = vadd.f32 %v11127_v53, %v27055_v57  ;;  %v27060_v44 = vld [vmem:[#allocation26_spill] sm:$0xff] }
0x153f   :  { %v11347_v56 = vmax.f32 %v11311_v49, 0.0  ;;  %v27061_v49 = vld [vmem:[#allocation27_spill] sm:$0xff] }
0x1540   :  { %v11346_v19 = vmax.f32 %v11310_v50, 0.0  ;;  %v17663_v43 = vpop.f32.mrb[136].mxu0 }
0x1541   :  { %v11313_v9 = vadd.f32 %v17663_v43, %v27056_v28  ;;  %v11137_v14 = vpop.f32.mrb[137].mxu0 }
0x1542   :  { %v25847_v47 = vpack.c.bf16 %v11347_v56, %v11346_v19  ;;  %v11312_v6 = vadd.f32 %v11137_v14, %v27057_v4  ;;  %v27062_v19 = vld [vmem:[#allocation3_spill] sm:$0xff]  ;;  %v27063_v14 = vld [vmem:[#allocation2_spill] sm:$0xff] }
0x1543   :  { %v11349_v10 = vmax.f32 %v11313_v9, 0.0 }
0x1544   :  { %v11348_v0 = vmax.f32 %v11312_v6, 0.0  ;;  %v17666_v62 = vpop.f32.mrb[138].mxu0 }
0x1545   :  { %v11315_v40 = vadd.f32 %v17666_v62, %v27058_v38  ;;  %v11147_v54 = vpop.f32.mrb[139].mxu0 }
0x1546   :  { %v25851_v42 = vpack.c.bf16 %v11349_v10, %v11348_v0  ;;  %v11314_v45 = vadd.f32 %v11147_v54, %v27059_v39 }
0x1547   :  { %v11351_v3 = vmax.f32 %v11315_v40, 0.0 }
0x1548   :  { %v11350_v15 = vmax.f32 %v11314_v45, 0.0  ;;  %v17669_v46 = vpop.f32.mrb[140].mxu0 }
0x1549   :  { %v11317_v20 = vadd.f32 %v17669_v46, %v27060_v44  ;;  %v11157_v58 = vpop.f32.mrb[141].mxu0 }
0x154a   :  { %v25855_v12 = vpack.c.bf16 %v11351_v3, %v11350_v15  ;;  %v11316_v53 = vadd.f32 %v11157_v58, %v27061_v49  ;;  %v27064_v15 = vld [vmem:[#allocation6_spill] sm:$0xff]  ;;  %v27065_v58 = vld [vmem:[#allocation7_spill] sm:$0xff] }
0x154b   :  { %v11353_v57 = vmax.f32 %v11317_v20, 0.0 }
0x154c   :  { %v11352_v50 = vmax.f32 %v11316_v53, 0.0  ;;  %v17672_v56 = vpop.f32.mrb[142].mxu0 }
0x154d   :  { %v11319_v43 = vadd.f32 %v17672_v56, %v27062_v19  ;;  %v11167_v28 = vpop.f32.mrb[143].mxu0 }
0x154e   :  { %v25859_v9 = vpack.c.bf16 %v11353_v57, %v11352_v50  ;;  %v11318_v4 = vadd.f32 %v11167_v28, %v27063_v14 }
0x154f   :  { %v11355_v6 = vmax.f32 %v11319_v43, 0.0  ;;  %v27067_v43 = vld [vmem:[#allocation9_spill] sm:$0xff] }
0x1550   :  { %v11354_v10 = vmax.f32 %v11318_v4, 0.0  ;;  %v17675_v0 = vpop.f32.mrb[144].mxu0 }
0x1551   :  { %v11321_v62 = vadd.f32 %v17675_v0, %v27007_v27  ;;  %v11177_v38 = vpop.f32.mrb[145].mxu0  ;;  %v27066_v27 = vld [vmem:[#allocation8_spill] sm:$0xff] }
0x1552   :  { %v18336_v40 = vpack.c.bf16 %v11355_v6, %v11354_v10  ;;  %v11320_v54 = vadd.f32 %v11177_v38, %v27008_v55  ;;  %v27069_v38 = vld [vmem:[#allocation13_spill] sm:$0xff] }
0x1553   :  { %v11357_v39 = vmax.f32 %v11321_v62, 0.0 }
0x1554   :  { %v11356_v45 = vmax.f32 %v11320_v54, 0.0  ;;  %v17678_v3 = vpop.f32.mrb[146].mxu0  ;;  %18337 = vmatprep.subr.bf16.mxu1 %v18336_v40 }
0x1555   :  { %v11323_v46 = vadd.f32 %v17678_v3, %v27064_v15  ;;  %v11187_v44 = vpop.f32.mrb[147].mxu0  ;;  %18339 = vmatpush3.bf16.msra.mxu1 %v25831_v31  ;;  %v27068_v31 = vld [vmem:[#allocation12_spill] sm:$0xff] }
0x1556   :  { %v18340_v20 = vpack.c.bf16 %v11357_v39, %v11356_v45  ;;  %v11322_v49 = vadd.f32 %v11187_v44, %v27065_v58  ;;  %v27071_v44 = vld [vmem:[#allocation17_spill] sm:$0xff] }
0x1557   :  { %v11359_v53 = vmax.f32 %v11323_v46, 0.0 }
0x1558   :  { %v11358_v57 = vmax.f32 %v11322_v49, 0.0  ;;  %v17681_v50 = vpop.f32.mrb[148].mxu0  ;;  %18341 = vmatprep.subr.bf16.mxu1 %v18340_v20 }
0x1559   :  { %v11325_v56 = vadd.f32 %v17681_v50, %v27066_v27  ;;  %v11197_v19 = vpop.f32.mrb[149].mxu0  ;;  %18343 = vmatpush3.bf16.msra.mxu1 %v25835_v41  ;;  %v27070_v41 = vld [vmem:[#allocation16_spill] sm:$0xff] }
0x155a   :  { %v18344_v55 = vpack.c.bf16 %v11359_v53, %v11358_v57  ;;  %v11324_v28 = vadd.f32 %v11197_v19, %v27067_v43 }
0x155b   :  { %v11361_v14 = vmax.f32 %v11325_v56, 0.0  ;;  %v27073_v56 = vld [vmem:[#allocation21_spill] sm:$0xff] }
0x155c   :  { %v11360_v4 = vmax.f32 %v11324_v28, 0.0  ;;  %v17684_v6 = vpop.f32.mrb[150].mxu0  ;;  %18345 = vmatprep.subr.bf16.mxu1 %v18344_v55 }
0x155d   :  { %v11327_v10 = vadd.f32 %v17684_v6, %v27068_v31  ;;  %v11207_v0 = vpop.f32.mrb[151].mxu0  ;;  %18347 = vmatpush3.bf16.msra.mxu1 %v25839_v37  ;;  %v27072_v37 = vld [vmem:[#allocation20_spill] sm:$0xff]  ;;  %v27075_v31 = vld [vmem:[#allocation25_spill] sm:$0xff] }
0x155e   :  { %v18348_v62 = vpack.c.bf16 %v11361_v14, %v11360_v4  ;;  %v11326_v40 = vadd.f32 %v11207_v0, %v27069_v38 }
0x155f   :  { %v11363_v54 = vmax.f32 %v11327_v10, 0.0 }
0x1560   :  { %v11362_v39 = vmax.f32 %v11326_v40, 0.0  ;;  %v17687_v45 = vpop.f32.mrb[152].mxu0  ;;  %18349 = vmatprep.subr.bf16.mxu1 %v18348_v62 }
0x1561   :  { %v11329_v3 = vadd.f32 %v17687_v45, %v27070_v41  ;;  %v11217_v15 = vpop.f32.mrb[153].mxu0  ;;  %18351 = vmatpush3.bf16.msra.mxu1 %v25843_v32  ;;  %v27074_v32 = vld [vmem:[#allocation24_spill] sm:$0xff]  ;;  %v27077_v45 = vld [vmem:[#allocation29_spill] sm:$0xff] }
0x1562   :  { %v18352_v46 = vpack.c.bf16 %v11363_v54, %v11362_v39  ;;  %v11328_v20 = vadd.f32 %v11217_v15, %v27071_v44 }
0x1563   :  { %v11365_v58 = vmax.f32 %v11329_v3, 0.0 }
0x1564   :  { %v11364_v49 = vmax.f32 %v11328_v20, 0.0  ;;  %v17690_v53 = vpop.f32.mrb[154].mxu0  ;;  %18353 = vmatprep.subr.bf16.mxu1 %v18352_v46 }
0x1565   :  { %v11331_v57 = vadd.f32 %v17690_v53, %v27072_v37  ;;  %v11227_v50 = vpop.f32.mrb[155].mxu0  ;;  %18355 = vmatpush3.bf16.msra.mxu1 %v25847_v47  ;;  %v27076_v47 = vld [vmem:[#allocation28_spill] sm:$0xff] }
0x1566   :  { %v18356_v27 = vpack.c.bf16 %v11365_v58, %v11364_v49  ;;  %v11330_v19 = vadd.f32 %v11227_v50, %v27073_v56  ;;  %v27079_v49 = vld [vmem:[#allocation31_spill] sm:$0xff]  ;;  %v20128_v50 = vld [vmem:[%s26748_s6 + $0x20] sm:$0x1]  ;;  %v20130_v56 = vld [vmem:[%s26748_s6 + $0x10] sm:$0xff] }
0x1567   :  { %v11367_v55 = vmax.f32 %v11331_v57, 0.0 }
0x1568   :  { %v11366_v43 = vmax.f32 %v11330_v19, 0.0  ;;  %v17693_v28 = vpop.f32.mrb[156].mxu0  ;;  %18357 = vmatprep.subr.bf16.mxu1 %v18356_v27  ;;  %v20131_v19 = vld [vmem:[%s26748_s6 + $0x28] sm:$0x1] }
0x1569   :  { %v11333_v14 = vadd.f32 %v17693_v28, %v27074_v32  ;;  %v11237_v4 = vpop.f32.mrb[157].mxu0  ;;  %18359 = vmatpush3.bf16.msra.mxu1 %v25851_v42  ;;  %v27078_v42 = vld [vmem:[#allocation30_spill] sm:$0xff] }
0x156a   :  { %v18360_v6 = vpack.c.bf16 %v11367_v55, %v11366_v43  ;;  %v11332_v10 = vadd.f32 %v11237_v4, %v27075_v31  ;;  %v20132_v55 = vld [vmem:[%s26749_s9] sm:$0xff]  ;;  %v25911_v31 = vadd.f32 %v25215_v5, %v24459_v51 }
0x156b   :  { %v11369_v0 = vmax.f32 %v11333_v14, 0.0 }
0x156c   :  { %v11368_v62 = vmax.f32 %v11332_v10, 0.0  ;;  %v17696_v38 = vpop.f32.mrb[158].mxu0  ;;  %18361 = vmatprep.subr.bf16.mxu1 %v18360_v6  ;;  %v25915_v10 = vadd.f32 %v25212_v23, %v24456_v1 }
0x156d   :  { %v11335_v40 = vadd.f32 %v17696_v38, %v27076_v47  ;;  %v11247_v54 = vpop.f32.mrb[159].mxu0  ;;  %18363 = vmatpush3.bf16.msra.mxu1 %v25855_v12  ;;  %v20127_v12 = vld [vmem:[%s26748_s6] sm:$0xff]  ;;  %v27081_v47 = vld [vmem:[#allocation33_spill] sm:$0xff] }
0x156e   :  { %v18364_v39 = vpack.c.bf16 %v11369_v0, %v11368_v62  ;;  %v11334_v41 = vadd.f32 %v11247_v54, %v27077_v45  ;;  %v27080_v0 = vld [vmem:[#allocation32_spill] sm:$0xff]  ;;  %v14135_v54 = vld [vmem:[%s26750_s0 + $0x68] sm:$0x1] }
0x156f   :  { %v11371_v3 = vmax.f32 %v11335_v40, 0.0 }
0x1570   :  { %v11370_v15 = vmax.f32 %v11334_v41, 0.0  ;;  %v17699_v46 = vpop.f32.mrb[160].mxu0  ;;  %18365 = vmatprep.subr.bf16.mxu1 %v18364_v39  ;;  %v14134_v39 = vld [vmem:[%s26750_s0 + $0x60] sm:$0xff] }
0x1571   :  { %v11337_v44 = vadd.f32 %v17699_v46, %v27078_v42  ;;  %v11257_v20 = vpop.f32.mrb[161].mxu0  ;;  %18367 = vmatpush3.bf16.msra.mxu1 %v25859_v9  ;;  %v20129_v9 = vld [vmem:[%s26748_s6 + $0x18] sm:$0x1]  ;;  %v11528_v46 = vsub.f32 1.0, %v25915_v10 }
0x1572   :  { %v18368_v58 = vpack.c.bf16 %v11371_v3, %v11370_v15  ;;  %v11336_v53 = vadd.f32 %v11257_v20, %v27079_v49  ;;  %v11529_v15 = vsub.f32 1.0, %v25911_v31 }
0x1573   :  { %v11373_v37 = vmax.f32 %v11337_v44, 0.0 }
0x1574   :  { %v11372_v57 = vmax.f32 %v11336_v53, 0.0  ;;  %11439 = vmatmul.mubr.f32.vlgmr.msra.gmra.mrb[126].mxu1 %v20127_v12  ;;  %18369 = vmatprep.subr.bf16.mxu1 %v18368_v58 }
0x1575   :  { %18371 = vmatpush3.bf16.msra.mxu1 %v18368_v58  ;;  %11443 = vmatprep.mubr.f32.mxu1 %v20128_v50 }
0x1576   :  { %v18372_v27 = vpack.c.bf16 %v11373_v37, %v11372_v57 }
0x1578   :  { %11444 = vmatmul.mubr.f32.gmra.mrb[128].mxu1 %v20129_v9  ;;  %18373 = vmatprep.subr.bf16.mxu1 %v18372_v27 }
0x1579   :  { %18375 = vmatpush3.bf16.msra.mxu1 %v18372_v27  ;;  %17708 = vmatprep.mubr.msk.f32.mxu1 %vm2185_vm4, %v20130_v56 }
0x157c   :  { %17709 = vmatmul.mubr.msk.f32.vlgmr.msra.gmra.mrb[130].mxu1 %vm2185_vm4, %v20131_v19 }
0x157d   :  { %17715 = vmatprep.mubr.msk.f32.mxu1 %vm431_vm0, %v20132_v55 }
0x1647   :  { %v15810_v43 = vpop.f32.mrb[126].mxu1 }
0x1648   :  { %v15811_v28 = vpop.f32.mrb[127].mxu1 }
0x1649   :  { %v15812_v32 = vadd.f32 %v15811_v28, %v15810_v43 }
0x164b   :  { %v15813_v14 = vpop.f32.mrb[128].mxu1  ;;  %v11441_v40 = vadd.f32 %v15812_v32, %v27081_v47 }
0x164c   :  { %v15814_v4 = vpop.f32.mrb[129].mxu1 }
0x164d   :  { %v15815_v6 = vadd.f32 %v15814_v4, %v15813_v14 }
0x164f   :  { %v11446_v62 = vadd.f32 %v15815_v6, %v27080_v0  ;;  %v17710_v38 = vpop.f32.mrb[130].mxu1 }
0x1650   :  { %v11515_v45 = vpop.f32.mrb[131].mxu1 }
0x1651   :  { %v11521_v41 = vadd.f32 %v17710_v38, %v11446_v62  ;;  %v11516_v3 = vadd.f32 %v11515_v45, %v11441_v40 }
0x1653   :  { %v11527_v42 = vmul.f32 %v11521_v41, %v11521_v41  ;;  %v11541_v44 = vadd.f32 %v14135_v54, %v11521_v41  ;;  %v11526_v20 = vmul.f32 %v11516_v3, %v11516_v3  ;;  %v11540_v58 = vadd.f32 %v14134_v39, %v11516_v3 }
0x1655   :  { %v11531_v49 = vmul.f32 %v11529_v15, %v11527_v42  ;;  %v11542_v53 = vsel %vm540_vm1, %v11541_v44, -inf  ;;  %v11530_v37 = vmul.f32 %v11528_v46, %v11526_v20 }
0x1656   :  { %v11543_v57 = vmax.f32 %v11540_v58, %v11542_v53 }
0x1657   :  { %v11532_v12 = vsel %vm540_vm1, %v11531_v49, 0.0 }
0x1658   :  { %v11533_v50 = vadd.f32 %v11532_v12, %v11530_v37  ;;  %v11544_v27 = vrot.slane %v11543_v57, 4  ;;  %v10183_v37 = vrot.slane %v25212_v23, 1 }
0x165a   :  { %v11534_v9 = vrot.slane %v11533_v50, 4  ;;  %v11545_v56 = vmax.f32 %v11543_v57, %v11544_v27  ;;  %v10185_v57 = vmul.f32 %v10183_v37, %v25212_v23 }
0x165c   :  { %v11535_v19 = vadd.f32 %v11534_v9, %v11533_v50  ;;  %v11546_v55 = vrot.slane %v11545_v56, 2  ;;  %v10186_v50 = vrot.slane %v25212_v23, 2  ;;  %v10194_v9 = vrot.slane %v25215_v5, 2 }
0x165e   :  { %v11536_v43 = vrot.slane %v11535_v19, 2  ;;  %v11547_v28 = vmax.f32 %v11545_v56, %v11546_v55  ;;  %v10196_v56 = vmul.f32 %v10194_v9, %v10185_v57 }
0x1660   :  { %v11537_v32 = vadd.f32 %v11536_v43, %v11535_v19  ;;  %v11548_v14 = vrot.slane %v11547_v28, 1  ;;  %v10201_v19 = vrot.slane %v25212_v23, 3 }
0x1662   :  { %v11538_v4 = vrot.slane %v11537_v32, 1  ;;  %v11549_v6 = vmax.f32 %v11547_v28, %v11548_v14  ;;  %v10198_v28 = vrot.slane %v10196_v56, 6 }
0x1664   :  { %v11539_v0 = vadd.f32 %v11538_v4, %v11537_v32  ;;  %v11550_v62 = vsub.f32 %v11540_v58, %v11549_v6  ;;  %v11551_v38 = vsub.f32 %v11541_v44, %v11549_v6  ;;  %v10203_v32 = vmul.f32 %v10201_v19, %v25212_v23 }
0x1666   :  { %v11552_v47 = vmul.f32 1.442695, %v11550_v62  ;;  %v11554_v40 = vmul.f32 1.442695, %v11551_v38  ;;  %v13088_v54 = vmul.f32 0.0025, %v11539_v0 }
0x1667   :  { %v10204_v0 = vrot.slane %v25212_v23, 6 }
0x1668   :  { %19346 = vpow2.f32 %v11552_v47  ;;  %v25934_v39 = vadd.f32 %v13088_v54, %v24422_v48  ;;  %v10188_v48 = vmul.f32 %v10186_v50, %v10185_v57  ;;  %v10224_v57 = vmul.f32 %v10186_v50, %v25212_v23 }
0x1669   :  { %19348 = vpow2.f32 %v11554_v40  ;;  %v10206_v47 = vmul.f32 %v10204_v0, %v10203_v32 }
0x166a   :  { %v10190_v27 = vrot.slane %v10188_v48, 3 }
0x166c   :  { %v10192_v55 = vadd.f32 %v10190_v27, %v10188_v48 }
0x166e   :  { %v10200_v6 = vadd.f32 %v10198_v28, %v10192_v55 }
0x1670   :  { %v10207_v54 = vadd.f32 %v10206_v47, %v10200_v6 }
0x1672   :  { %v19347_v45 = vpop.eup %19346 }
0x1673   :  { %v19349_v41 = vpop.eup %19348 }
0x1674   :  { %v11556_v3 = vsel %vm540_vm1, %v19349_v41, 0.0 }
0x1675   :  { %v11557_v42 = vadd.f32 %v19347_v45, %v11556_v3  ;;  %v10212_v3 = vrot.slane %v25215_v5, 6 }
0x1677   :  { %v11558_v20 = vrot.slane %v11557_v42, 4 }
0x1679   :  { %v11559_v49 = vadd.f32 %v11558_v20, %v11557_v42  ;;  %v10209_v20 = vrot.slane %v10206_v47, 1 }
0x167b   :  { %v11560_v53 = vrot.slane %v11559_v49, 2 }
0x167d   :  { %v11561_v58 = vadd.f32 %v11560_v53, %v11559_v49  ;;  %v10214_v49 = vmul.f32 %v10212_v3, %v10203_v32  ;;  %v10219_v53 = vrot.slane %v25212_v23, 4 }
0x167f   :  { %v11562_v44 = vrot.slane %v11561_v58, 1  ;;  %v10225_v56 = vmul.f32 %v10224_v57, %v10219_v53 }
0x1681   :  { %v11563_v12 = vadd.f32 %v11562_v44, %v11561_v58  ;;  %v10211_v58 = vadd.f32 %v10209_v20, %v10207_v54  ;;  %v10221_v44 = vmul.f32 %v10219_v53, %v25212_v23  ;;  %v10227_v32 = vrot.slane %v10225_v56, 2 }
0x1683   :  { %19350 = vrcp.f32 %v11563_v12  ;;  %v10222_v9 = vmul.f32 %v10221_v44, %v25215_v5 }
0x168d   :  { %v19351_v43 = vpop.eup %19350 }
0x168e   :  { %v11565_v14 = vmul.f32 %v19351_v43, %v19347_v45  ;;  %v11566_v4 = vmul.f32 %v19351_v43, %v19349_v41  ;;  %v10216_v41 = vrot.slane %v10214_v49, 2 }
0x1690   :  { %v11567_v62 = vsel %vm540_vm1, %v11566_v4, -inf  ;;  %v10218_v48 = vadd.f32 %v10216_v41, %v10211_v58 }
0x1691   :  { %v11568_v38 = vmax.f32 %v11565_v14, %v11567_v62 }
0x1692   :  { %v10223_v19 = vadd.f32 %v10222_v9, %v10218_v48 }
0x1693   :  { %v11569_v40 = vrot.slane %v11568_v38, 4 }
0x1694   :  { %v10229_v0 = vadd.f32 %v10227_v32, %v10223_v19 }
0x1695   :  { %v11570_v42 = vmax.f32 %v11568_v38, %v11569_v40 }
0x1696   :  { %v25954_v38 = vmax.f32 %v24442_v35, %v10229_v0 }
0x1697   :  { %v11571_v37 = vrot.slane %v11570_v42, 2 }
0x1698   :  { %v11601_v3 = vadd.f32 %v25954_v38, %v25198_v29 }
0x1699   :  { %v11572_v45 = vmax.f32 %v11570_v42, %v11571_v37 }
0x169a   :  { %v11602_v20 = vsub.f32 1.0, %v11601_v3 }
0x169b   :  { %v11573_v12 = vrot.slane %v11572_v45, 1 }
0x169c   :  { %v11606_v41 = vrot.slane %v11602_v20, %v22185_v16 }
0x169d   :  { %v11574_v27 = vmax.f32 %v11572_v45, %v11573_v12 }
0x169f   :  { %vm11575_vm5 = vcmp.eq.f32.partialorder %v11565_v14, %v11574_v27  ;;  %vm11576_vm6 = vcmp.eq.f32.partialorder %v11566_v4, %v11574_v27 }
0x16a0   :  { %v11577_v55 = vsel %vm11575_vm5, %v21360_v63, 9  ;;  %v11578_v43 = vsel %vm11576_vm6, %v21363_v11, 9 }
0x16a1   :  { %v11579_v28 = vsel %vm540_vm1, %v11578_v43, 2147483647 }
0x16a2   :  { %vm11580_vm7 = vcmp.lt.s32.totalorder %v11577_v55, %v11579_v28 }
0x16a3   :  { %v11581_v6 = vsel %vm11580_vm7, %v11577_v55, %v11579_v28 }
0x16a4   :  { %v11582_v50 = vrot.slane %v11581_v6, 4 }
0x16a6   :  { %vm11583_vm8 = vcmp.lt.s32.totalorder %v11581_v6, %v11582_v50 }
0x16a7   :  { %v11584_v62 = vsel %vm11583_vm8, %v11581_v6, %v11582_v50 }
0x16a8   :  { %v11585_v47 = vrot.slane %v11584_v62, 2 }
0x16aa   :  { %vm11586_vm9 = vcmp.lt.s32.totalorder %v11584_v62, %v11585_v47 }
0x16ab   :  { %v11587_v40 = vsel %vm11586_vm9, %v11584_v62, %v11585_v47 }
0x16ac   :  { %v11588_v54 = vrot.slane %v11587_v40, 1 }
0x16ae   :  { %vm11589_vm10 = vcmp.lt.s32.totalorder %v11587_v40, %v11588_v54 }
0x16af   :  { %v11590_v42 = vsel %vm11589_vm10, %v11587_v40, %v11588_v54 }
0x16b0   :  { %vm11591_vm11 = vcmp.eq.s32.totalorder %v21360_v63, %v11590_v42  ;;  %vm11592_vm12 = vcmp.eq.s32.totalorder %v21363_v11, %v11590_v42 }
0x16b1   :  { %v14286_v49 = vsel %vm11591_vm11, 1.0, %v26944_v24  ;;  %v14287_v53 = vsel %vm11592_vm12, 1.0, %v26944_v24 }
0x16b2   :  { %v11597_v35 = vsub.f32 %v14286_v49, %v11565_v14  ;;  %v11598_v37 = vsub.f32 %v14287_v53, %v11566_v4 }
0x16b4   :  { %v11599_v58 = vadd.f32 %v11597_v35, %v11565_v14  ;;  %v11600_v45 = vadd.f32 %v11598_v37, %v11566_v4  ;;  %v11665_v14 = vsub.f32 1.0, %v25212_v23  ;;  %v11666_v4 = vsub.f32 1.0, %v25215_v5 }
0x16b6   :  { %v11607_v44 = vmul.f32 %v11606_v41, %v11599_v58  ;;  %v11608_v57 = vmul.f32 %v11606_v41, %v11600_v45  ;;  %v20133_v45 = vld [vmem:[%s26749_s9 + $0x8] sm:$0xff] }
0x16b8   :  { %v11609_v12 = vmul.f32 %v11607_v44, %v11528_v46  ;;  %v11610_v48 = vmul.f32 %v11608_v57, %v11529_v15 }
0x16ba   :  { %v25968_v27 = vadd.f32 %v11609_v12, %v24456_v1  ;;  %v25971_v9 = vadd.f32 %v11610_v48, %v24459_v51  ;;  %v25973_v56 = vpack.c.bf16 %v11610_v48, %v11609_v12 }
0x16bc   :  { %v11614_v19 = vrot.slane %v25968_v27, 1  ;;  %v11617_v10 = vrot.slane %v25968_v27, 2  ;;  %v11625_v46 = vrot.slane %v25971_v9, 2  ;;  %v11632_v31 = vrot.slane %v25968_v27, 3 }
0x16bd   :  { %v11635_v1 = vrot.slane %v25968_v27, 6  ;;  %v11643_v15 = vrot.slane %v25971_v9, 6  ;;  %v25984_v51 = vrot.slane %v25968_v27, 4  ;;  %v18376_v55 = vpack.c.bf16 %v25971_v9, %v25968_v27 }
0x16be   :  { %v13092_v43 = vadd.f32 %v11614_v19, %v25968_v27  ;;  %v13111_v28 = vadd.f32 %v11632_v31, %v25968_v27  ;;  %v13138_v32 = vadd.f32 %v11617_v10, %v25968_v27  ;;  %v11667_v6 = vsub.f32 %v11665_v14, %v25968_v27  ;;  %v20134_v14 = vld [vmem:[%s26749_s9 + $0x10] sm:$0xff] }
0x16bf   :  { %v13131_v0 = vadd.f32 %v25984_v51, %v25968_v27  ;;  %18378 = vmatprep.subr.msk.bf16.mxu1 %vm20417_vm3, %v18376_v55  ;;  %v11668_v50 = vsub.f32 %v11666_v4, %v25971_v9  ;;  %v11616_v62 = vmul.f32 %v11614_v19, %v25968_v27 }
0x16c0   :  { %v13093_v47 = vadd.f32 %v13092_v43, %v11617_v10  ;;  %v13102_v40 = vadd.f32 %v13092_v43, %v11625_v46  ;;  %v13112_v54 = vadd.f32 %v13111_v28, %v11635_v1  ;;  %v13122_v3 = vadd.f32 %v13111_v28, %v11643_v15  ;;  %18381 = vmatpush3.bf16.msk.msra.mxu1 %vm20417_vm3, %v18376_v55 }
0x16c1   :  { %v13132_v42 = vadd.f32 %v13131_v0, %v25971_v9  ;;  %v13139_v20 = vadd.f32 %v13138_v32, %v25984_v51  ;;  %18384 = vmatprep.subr.msk.bf16.mxu1 %vm20417_vm3, %v25221_v52  ;;  %v26005_v49 = vpack.c.bf16 %v11668_v50, %v11667_v6  ;;  %v11619_v41 = vmul.f32 %v11617_v10, %v11616_v62 }
0x16c2   :  { %v14442_v53 = vadd.f32 -3.0, %v13093_v47  ;;  %v14443_v35 = vadd.f32 -3.0, %v13102_v40  ;;  %v14444_v37 = vadd.f32 -3.0, %v13112_v54  ;;  %v14445_v58 = vadd.f32 -3.0, %v13122_v3 }
0x16c3   :  { %17716 = vmatmul.mubr.msk.f32.vlgmr.msra.gmra.mrb[132].mxu1 %vm431_vm0, %v20133_v45  ;;  %v11627_v44 = vmul.f32 %v11625_v46, %v11616_v62  ;;  %v14447_v4 = vadd.f32 -3.0, %v13139_v20  ;;  %v11621_v19 = vrot.slane %v11619_v41, 3  ;;  %v11634_v28 = vmul.f32 %v11632_v31, %v25968_v27  ;;  %v20136_v62 = vld [vmem:[%s26749_s9 + $0x20] sm:$0xff] }
0x16c4   :  { %v13095_v57 = vmul.f32 2.0, %v14442_v53  ;;  %v13104_v12 = vmul.f32 2.0, %v14443_v35  ;;  %v13114_v48 = vmul.f32 2.0, %v14444_v37  ;;  %18387 = vmatpush3.bf16.msk.msra.mxu1 %vm20417_vm3, %v25221_v52  ;;  %17718 = vmatprep.mubr.msk.f32.mxu1 %vm431_vm0, %v20134_v14  ;;  %v13124_v43 = vmul.f32 2.0, %v14445_v58  ;;  %v20135_v52 = vld [vmem:[%s26749_s9 + $0x18] sm:$0xff]  ;;  %v20137_v35 = vld [vmem:[%s26749_s9 + $0x28] sm:$0xff] }
0x16c5   :  { %18390 = vmatprep.subr.msk.bf16.mxu1 %vm20417_vm3, %v26005_v49  ;;  %v14446_v6 = vadd.f32 -3.0, %v13132_v42  ;;  %v11623_v0 = vadd.f32 %v11621_v19, %v11619_v41  ;;  %v11629_v50 = vrot.slane %v11627_v44, 6  ;;  %v11637_v47 = vmul.f32 %v11635_v1, %v11634_v28  ;;  %v20138_v58 = vld [vmem:[%s26749_s9 + $0x30] sm:$0xff]  ;;  %v20140_v14 = vld [vmem:[%s26749_s9 + $0x40] sm:$0xff] }
0x16c6   :  { %v13096_v46 = vmul.f32 1.442695, %v13095_v57  ;;  %v13105_v55 = vmul.f32 1.442695, %v13104_v12  ;;  %v13115_v32 = vmul.f32 1.442695, %v13114_v48  ;;  %v11645_v40 = vmul.f32 %v11643_v15, %v11634_v28 }
0x16c7   :  { %17719 = vmatmul.mubr.msk.f32.gmra.mrb[134].mxu1 %vm431_vm0, %v20135_v52  ;;  %v11652_v31 = vmul.f32 %v25984_v51, %v25968_v27  ;;  %v11631_v54 = vadd.f32 %v11629_v50, %v11623_v0  ;;  %v11655_v3 = vmul.f32 %v11617_v10, %v25968_v27  ;;  %v13125_v42 = vmul.f32 1.442695, %v13124_v43  ;;  %v20139_v57 = vld [vmem:[%s26749_s9 + $0x38] sm:$0xff]  ;;  %v20141_v43 = vld [vmem:[%s26749_s9 + $0x48] sm:$0xff] }
0x16c8   :  { %19352 = vpow2.f32 %v13096_v46  ;;  %17721 = vmatprep.mubr.msk.f32.mxu1 %vm431_vm0, %v20136_v62  ;;  %v13141_v20 = vmul.f32 2.0, %v14447_v4  ;;  %v11640_v1 = vrot.slane %v11637_v47, 1  ;;  %v13134_v15 = vmul.f32 2.0, %v14446_v6  ;;  %v20143_v62 = vld [vmem:[%s26749_s9 + $0x58] sm:$0xff] }
0x16c9   :  { %19354 = vpow2.f32 %v13105_v55  ;;  %v11653_v53 = vmul.f32 %v11652_v31, %v25971_v9  ;;  %v11638_v37 = vadd.f32 %v11637_v47, %v11631_v54  ;;  %v11647_v45 = vrot.slane %v11645_v40, 2  ;;  %v20144_v40 = vld [vmem:[%s26749_s9 + $0x60] sm:$0xff] }
0x16ca   :  { %19356 = vpow2.f32 %v13115_v32  ;;  %v11656_v41 = vmul.f32 %v11655_v3, %v25984_v51  ;;  %v13142_v44 = vmul.f32 1.442695, %v13141_v20  ;;  %v13135_v48 = vmul.f32 1.442695, %v13134_v15  ;;  %v20142_v32 = vld [vmem:[%s26749_s9 + $0x50] sm:$0xff]  ;;  %v20145_v20 = vld [vmem:[%s26749_s9 + $0x68] sm:$0xff] }
0x16cb   :  { %17722 = vmatmul.mubr.msk.f32.gmra.mrb[136].mxu1 %vm431_vm0, %v20137_v35  ;;  %v11642_v10 = vadd.f32 %v11640_v1, %v11638_v37  ;;  %19358 = vpow2.f32 %v13125_v42  ;;  %v20146_v35 = vld [vmem:[%s26749_s9 + $0x70] sm:$0xff] }
0x16cc   :  { %17724 = vmatprep.mubr.msk.f32.mxu1 %vm431_vm0, %v20138_v58  ;;  %v11658_v19 = vrot.slane %v11656_v41, 2  ;;  %19360 = vpow2.f32 %v13142_v44 }
0x16cd   :  { %v11649_v12 = vadd.f32 %v11647_v45, %v11642_v10  ;;  %19362 = vpow2.f32 %v13135_v48  ;;  %v20147_v10 = vld [vmem:[%s26749_s9 + $0x78] sm:$0xff]  ;;  %v20148_v45 = vld [vmem:[%s26749_s9 + $0x80] sm:$0xff] }
0x16ce   :  { %v20151_v48 = vld [vmem:[%s26749_s9 + $0x98] sm:$0xff] }
0x16cf   :  { %17725 = vmatmul.mubr.msk.f32.gmra.mrb[138].mxu1 %vm431_vm0, %v20139_v57  ;;  %v11654_v4 = vadd.f32 %v11653_v53, %v11649_v12  ;;  %v20149_v57 = vld [vmem:[%s26749_s9 + $0x88] sm:$0xff]  ;;  %v20150_v12 = vld [vmem:[%s26749_s9 + $0x90] sm:$0xff] }
0x16d0   :  { %17727 = vmatprep.mubr.msk.f32.mxu1 %vm431_vm0, %v20140_v14  ;;  %v20152_v14 = vld [vmem:[%s26749_s9 + $0xa0] sm:$0xff] }
0x16d1   :  { %v26055_v28 = vadd.f32 %v11658_v19, %v11654_v4  ;;  %v20153_v4 = vld [vmem:[%s26749_s9 + $0xa8] sm:$0xff]  ;;  %v20154_v19 = vld [vmem:[%s26749_s9 + $0xb0] sm:$0xff] }
0x16d2   :  { %v19353_v46 = vpop.eup %19352 }
0x16d3   :  { %v19355_v51 = vpop.eup %19354  ;;  %v13099_v55 = vrot.slane %v19353_v46, 3  ;;  %17728 = vmatmul.mubr.msk.f32.gmra.mrb[140].mxu1 %vm431_vm0, %v20141_v43  ;;  %v20158_v43 = vld [vmem:[%s26749_s9 + $0xd0] sm:$0xff] }
0x16d4   :  { %17730 = vmatprep.mubr.msk.f32.mxu1 %vm431_vm0, %v20142_v32  ;;  %v13108_v52 = vrot.slane %v19355_v51, 6  ;;  %v19357_v0 = vpop.eup %19356  ;;  %v20156_v51 = vld [vmem:[%s26749_s9 + $0xc0] sm:$0xff]  ;;  %v20159_v32 = vld [vmem:[%s26749_s9 + $0xd8] sm:$0xff] }
0x16d5   :  { %v13101_v6 = vadd.f32 %v19353_v46, %v13099_v55  ;;  %v19359_v47 = vpop.eup %19358  ;;  %v13119_v54 = vrot.slane %v19357_v0, 1  ;;  %v20155_v46 = vld [vmem:[%s26749_s9 + $0xb8] sm:$0xff]  ;;  %v20157_v55 = vld [vmem:[%s26749_s9 + $0xc8] sm:$0xff] }
0x16d6   :  { %v13128_v42 = vrot.slane %v19359_v47, 2  ;;  %v19361_v53 = vpop.eup %19360  ;;  %v20165_v47 = vld [vmem:[%s26749_s9 + $0x108] sm:$0xff] }
0x16d7   :  { %v13110_v50 = vadd.f32 %v13108_v52, %v13101_v6  ;;  %17731 = vmatmul.mubr.msk.f32.gmra.mrb[142].mxu1 %vm431_vm0, %v20143_v62  ;;  %v19363_v1 = vpop.eup %19362  ;;  %v13145_v58 = vrot.slane %v19361_v53, 2  ;;  %v20160_v6 = vld [vmem:[%s26749_s9 + $0xe0] sm:$0xff]  ;;  %v20161_v52 = vld [vmem:[%s26749_s9 + $0xe8] sm:$0xff] }
0x16d8   :  { %17733 = vmatprep.mubr.msk.f32.mxu1 %vm431_vm0, %v20144_v40  ;;  %v20164_v62 = vld [vmem:[%s26749_s9 + $0x100] sm:$0xff]  ;;  %v20166_v40 = vld [vmem:[%s26749_s9 + $0x110] sm:$0xff]  ;;  %v20173_v53 = vld [vmem:[%s26751_s8 + $0x28] sm:$0xff] }
0x16d9   :  { %v13117_v31 = vadd.f32 %v19357_v0, %v13110_v50  ;;  %v20162_v0 = vld [vmem:[%s26749_s9 + $0xf0] sm:$0xff]  ;;  %v20163_v50 = vld [vmem:[%s26749_s9 + $0xf8] sm:$0xff] }
0x16db   :  { %v13121_v3 = vadd.f32 %v13119_v54, %v13117_v31  ;;  %17734 = vmatmul.mubr.msk.f32.gmra.mrb[144].mxu1 %vm431_vm0, %v20145_v20  ;;  %v20167_v31 = vld [vmem:[%s26749_s9 + $0x118] sm:$0xff]  ;;  %v20168_v54 = vld [vmem:[%s26751_s8] sm:$0xff] }
0x16dc   :  { %17736 = vmatprep.mubr.msk.f32.mxu1 %vm431_vm0, %v20146_v35  ;;  %v20171_v20 = vld [vmem:[%s26751_s8 + $0x18] sm:$0xff]  ;;  %v20174_v35 = vld [vmem:[%s26751_s8 + $0x30] sm:$0xff] }
0x16dd   :  { %v13130_v37 = vadd.f32 %v13128_v42, %v13121_v3  ;;  %v20169_v3 = vld [vmem:[%s26751_s8 + $0x8] sm:$0xff]  ;;  %v20170_v42 = vld [vmem:[%s26751_s8 + $0x10] sm:$0xff] }
0x16df   :  { %v13137_v15 = vadd.f32 %v19363_v1, %v13130_v37  ;;  %17737 = vmatmul.mubr.msk.f32.gmra.mrb[146].mxu1 %vm431_vm0, %v20147_v10  ;;  %v20175_v37 = vld [vmem:[%s26751_s8 + $0x38] sm:$0xff]  ;;  %v20176_v1 = vld [vmem:[%s26751_s8 + $0x40] sm:$0xff] }
0x16e0   :  { %17739 = vmatprep.mubr.msk.f32.mxu1 %vm431_vm0, %v20148_v45  ;;  %v20179_v10 = vld [vmem:[%s26751_s8 + $0x58] sm:$0xff]  ;;  %v20180_v45 = vld [vmem:[%s26751_s8 + $0x60] sm:$0xff] }
0x16e1   :  { %v26085_v41 = vadd.f32 %v13145_v58, %v13137_v15  ;;  %v20177_v15 = vld [vmem:[%s26751_s8 + $0x48] sm:$0xff]  ;;  %v20178_v58 = vld [vmem:[%s26751_s8 + $0x50] sm:$0xff] }
0x16e3   :  { %v13148_v44 = vsub.f32 %v25934_v39, %v26085_v41  ;;  %17740 = vmatmul.mubr.msk.f32.gmra.mrb[148].mxu1 %vm431_vm0, %v20149_v57  ;;  %v20181_v57 = vld [vmem:[%s26751_s8 + $0x68] sm:$0xff] }
0x16e4   :  { %17742 = vmatprep.mubr.msk.f32.mxu1 %vm431_vm0, %v20150_v12  ;;  %v20182_v12 = vld [vmem:[%s26751_s8 + $0x70] sm:$0xff] }
0x16e7   :  { %17743 = vmatmul.mubr.msk.f32.gmra.mrb[150].mxu1 %vm431_vm0, %v20151_v48  ;;  %v20183_v48 = vld [vmem:[%s26751_s8 + $0x78] sm:$0xff] }
0x16e8   :  { %17745 = vmatprep.mubr.msk.f32.mxu1 %vm431_vm0, %v20152_v14  ;;  %v20184_v14 = vld [vmem:[%s26751_s8 + $0x80] sm:$0xff] }
0x16eb   :  { %17746 = vmatmul.mubr.msk.f32.gmra.mrb[152].mxu1 %vm431_vm0, %v20153_v4  ;;  %v20185_v4 = vld [vmem:[%s26751_s8 + $0x88] sm:$0xff] }
0x16ec   :  { %17748 = vmatprep.mubr.msk.f32.mxu1 %vm431_vm0, %v20154_v19  ;;  %v20186_v19 = vld [vmem:[%s26751_s8 + $0x90] sm:$0xff] }
0x16ef   :  { %17749 = vmatmul.mubr.msk.f32.gmra.mrb[154].mxu1 %vm431_vm0, %v20155_v46  ;;  %v20187_v46 = vld [vmem:[%s26751_s8 + $0x98] sm:$0xff] }
0x16f0   :  { %17751 = vmatprep.mubr.msk.f32.mxu1 %vm431_vm0, %v20156_v51  ;;  %v20188_v51 = vld [vmem:[%s26751_s8 + $0xa0] sm:$0xff] }
0x16f3   :  { %17752 = vmatmul.mubr.msk.f32.gmra.mrb[156].mxu1 %vm431_vm0, %v20157_v55  ;;  %v20189_v55 = vld [vmem:[%s26751_s8 + $0xa8] sm:$0xff] }
0x16f4   :  { %17754 = vmatprep.mubr.msk.f32.mxu1 %vm431_vm0, %v20158_v43  ;;  %v20190_v43 = vld [vmem:[%s26751_s8 + $0xb0] sm:$0xff] }
0x16f7   :  { %17755 = vmatmul.mubr.msk.f32.gmra.mrb[158].mxu1 %vm431_vm0, %v20159_v32  ;;  %v20191_v32 = vld [vmem:[%s26751_s8 + $0xb8] sm:$0xff] }
0x16f8   :  { %17757 = vmatprep.mubr.msk.f32.mxu1 %vm431_vm0, %v20160_v6  ;;  %v20192_v6 = vld [vmem:[%s26751_s8 + $0xc0] sm:$0xff] }
0x16fb   :  { %17758 = vmatmul.mubr.msk.f32.gmra.mrb[160].mxu1 %vm431_vm0, %v20161_v52  ;;  %v20193_v52 = vld [vmem:[%s26751_s8 + $0xc8] sm:$0xff] }
0x16fc   :  { %17760 = vmatprep.mubr.msk.f32.mxu1 %vm431_vm0, %v20162_v0  ;;  %v20194_v0 = vld [vmem:[%s26751_s8 + $0xd0] sm:$0xff] }
0x16ff   :  { %17761 = vmatmul.mubr.msk.f32.gmra.mrb[162].mxu1 %vm431_vm0, %v20163_v50  ;;  %v20195_v50 = vld [vmem:[%s26751_s8 + $0xd8] sm:$0xff] }
0x1700   :  { %17763 = vmatprep.mubr.msk.f32.mxu1 %vm431_vm0, %v20164_v62  ;;  %v20196_v62 = vld [vmem:[%s26751_s8 + $0xe0] sm:$0xff] }
0x1703   :  { %17764 = vmatmul.mubr.msk.f32.gmra.mrb[164].mxu1 %vm431_vm0, %v20165_v47  ;;  %v20197_v47 = vld [vmem:[%s26751_s8 + $0xe8] sm:$0xff] }
0x1704   :  { %17766 = vmatprep.mubr.msk.f32.mxu1 %vm431_vm0, %v20166_v40  ;;  %v20198_v40 = vld [vmem:[%s26751_s8 + $0xf0] sm:$0xff] }
0x1707   :  { %17767 = vmatmul.mubr.msk.f32.gmra.mrb[166].mxu1 %vm431_vm0, %v20167_v31  ;;  %v20199_v31 = vld [vmem:[%s26751_s8 + $0xf8] sm:$0xff] }
0x1708   :  { %17773 = vmatprep.mubr.msk.f32.mxu1 %vm431_vm0, %v20168_v54  ;;  %v20200_v54 = vld [vmem:[%s26751_s8 + $0x100] sm:$0xff] }
0x170b   :  { %17774 = vmatmul.mubr.msk.f32.vlgmr.msra.gmra.mrb[132].mxu1 %vm431_vm0, %v20169_v3  ;;  %v20201_v3 = vld [vmem:[%s26751_s8 + $0x108] sm:$0xff] }
0x170c   :  { %18393 = vmatpush3.bf16.msk.msra.mxu1 %vm20417_vm3, %v26005_v49  ;;  %17776 = vmatprep.mubr.msk.f32.mxu1 %vm431_vm0, %v20170_v42  ;;  %v20172_v49 = vld [vmem:[%s26751_s8 + $0x20] sm:$0xff]  ;;  %v20202_v42 = vld [vmem:[%s26751_s8 + $0x110] sm:$0xff] }
0x170d   :  { %18396 = vmatprep.subr.msk.bf16.mxu1 %vm20417_vm3, %v25973_v56 }
0x170f   :  { %17777 = vmatmul.mubr.msk.f32.gmra.mrb[134].mxu1 %vm431_vm0, %v20171_v20  ;;  %v20203_v20 = vld [vmem:[%s26751_s8 + $0x118] sm:$0xff] }
0x1710   :  { %17779 = vmatprep.mubr.msk.f32.mxu1 %vm431_vm0, %v20172_v49  ;;  %v20204_v49 = vld [vmem:[%s26752_s10] sm:$0xff] }
0x1713   :  { %17780 = vmatmul.mubr.msk.f32.gmra.mrb[136].mxu1 %vm431_vm0, %v20173_v53  ;;  %v20205_v53 = vld [vmem:[%s26752_s10 + $0x8] sm:$0xff] }
0x1714   :  { %17782 = vmatprep.mubr.msk.f32.mxu1 %vm431_vm0, %v20174_v35  ;;  %v20206_v35 = vld [vmem:[%s26752_s10 + $0x10] sm:$0xff] }
0x1717   :  { %17783 = vmatmul.mubr.msk.f32.gmra.mrb[138].mxu1 %vm431_vm0, %v20175_v37  ;;  %v20207_v37 = vld [vmem:[%s26752_s10 + $0x18] sm:$0xff] }
0x1718   :  { %17785 = vmatprep.mubr.msk.f32.mxu1 %vm431_vm0, %v20176_v1  ;;  %v20208_v1 = vld [vmem:[%s26752_s10 + $0x20] sm:$0xff] }
0x171b   :  { %17786 = vmatmul.mubr.msk.f32.gmra.mrb[140].mxu1 %vm431_vm0, %v20177_v15  ;;  %v20211_v15 = vld [vmem:[%s26752_s10 + $0x38] sm:$0xff] }
0x171c   :  { %17788 = vmatprep.mubr.msk.f32.mxu1 %vm431_vm0, %v20178_v58  ;;  %v20212_v58 = vld [vmem:[%s26752_s10 + $0x40] sm:$0xff] }
0x171f   :  { %17789 = vmatmul.mubr.msk.f32.gmra.mrb[142].mxu1 %vm431_vm0, %v20179_v10  ;;  %v20213_v10 = vld [vmem:[%s26752_s10 + $0x48] sm:$0xff] }
0x1720   :  { %17791 = vmatprep.mubr.msk.f32.mxu1 %vm431_vm0, %v20180_v45  ;;  %v20214_v45 = vld [vmem:[%s26752_s10 + $0x50] sm:$0xff] }
0x1723   :  { %17792 = vmatmul.mubr.msk.f32.gmra.mrb[144].mxu1 %vm431_vm0, %v20181_v57  ;;  %v20215_v57 = vld [vmem:[%s26752_s10 + $0x58] sm:$0xff] }
0x1724   :  { %17794 = vmatprep.mubr.msk.f32.mxu1 %vm431_vm0, %v20182_v12  ;;  %v20216_v12 = vld [vmem:[%s26752_s10 + $0x60] sm:$0xff] }
0x1727   :  { %17795 = vmatmul.mubr.msk.f32.gmra.mrb[146].mxu1 %vm431_vm0, %v20183_v48  ;;  %v20217_v48 = vld [vmem:[%s26752_s10 + $0x68] sm:$0xff] }
0x1728   :  { %17797 = vmatprep.mubr.msk.f32.mxu1 %vm431_vm0, %v20184_v14  ;;  %v20218_v14 = vld [vmem:[%s26752_s10 + $0x70] sm:$0xff] }
0x172b   :  { %17798 = vmatmul.mubr.msk.f32.gmra.mrb[148].mxu1 %vm431_vm0, %v20185_v4  ;;  %v20219_v4 = vld [vmem:[%s26752_s10 + $0x78] sm:$0xff] }
0x172c   :  { %17800 = vmatprep.mubr.msk.f32.mxu1 %vm431_vm0, %v20186_v19  ;;  %v20220_v19 = vld [vmem:[%s26752_s10 + $0x80] sm:$0xff] }
0x172f   :  { %17801 = vmatmul.mubr.msk.f32.gmra.mrb[150].mxu1 %vm431_vm0, %v20187_v46  ;;  %v20221_v46 = vld [vmem:[%s26752_s10 + $0x88] sm:$0xff] }
0x1730   :  { %17803 = vmatprep.mubr.msk.f32.mxu1 %vm431_vm0, %v20188_v51  ;;  %v20222_v51 = vld [vmem:[%s26752_s10 + $0x90] sm:$0xff] }
0x1733   :  { %17804 = vmatmul.mubr.msk.f32.gmra.mrb[152].mxu1 %vm431_vm0, %v20189_v55  ;;  %v20223_v55 = vld [vmem:[%s26752_s10 + $0x98] sm:$0xff] }
0x1734   :  { %17806 = vmatprep.mubr.msk.f32.mxu1 %vm431_vm0, %v20190_v43  ;;  %v20224_v43 = vld [vmem:[%s26752_s10 + $0xa0] sm:$0xff] }
0x1737   :  { %17807 = vmatmul.mubr.msk.f32.gmra.mrb[154].mxu1 %vm431_vm0, %v20191_v32  ;;  %v20225_v32 = vld [vmem:[%s26752_s10 + $0xa8] sm:$0xff] }
0x1738   :  { %17809 = vmatprep.mubr.msk.f32.mxu1 %vm431_vm0, %v20192_v6  ;;  %v20226_v6 = vld [vmem:[%s26752_s10 + $0xb0] sm:$0xff] }
0x173b   :  { %17810 = vmatmul.mubr.msk.f32.gmra.mrb[156].mxu1 %vm431_vm0, %v20193_v52  ;;  %v20227_v52 = vld [vmem:[%s26752_s10 + $0xb8] sm:$0xff] }
0x173c   :  { %17812 = vmatprep.mubr.msk.f32.mxu1 %vm431_vm0, %v20194_v0  ;;  %v20228_v0 = vld [vmem:[%s26752_s10 + $0xc0] sm:$0xff] }
0x173f   :  { %17813 = vmatmul.mubr.msk.f32.gmra.mrb[158].mxu1 %vm431_vm0, %v20195_v50  ;;  %v20229_v50 = vld [vmem:[%s26752_s10 + $0xc8] sm:$0xff] }
0x1740   :  { %17815 = vmatprep.mubr.msk.f32.mxu1 %vm431_vm0, %v20196_v62  ;;  %v20230_v62 = vld [vmem:[%s26752_s10 + $0xd0] sm:$0xff] }
0x1743   :  { %17816 = vmatmul.mubr.msk.f32.gmra.mrb[160].mxu1 %vm431_vm0, %v20197_v47  ;;  %v20231_v47 = vld [vmem:[%s26752_s10 + $0xd8] sm:$0xff] }
0x1744   :  { %17818 = vmatprep.mubr.msk.f32.mxu1 %vm431_vm0, %v20198_v40  ;;  %v20232_v40 = vld [vmem:[%s26752_s10 + $0xe0] sm:$0xff] }
0x1747   :  { %17819 = vmatmul.mubr.msk.f32.gmra.mrb[162].mxu1 %vm431_vm0, %v20199_v31  ;;  %v20233_v31 = vld [vmem:[%s26752_s10 + $0xe8] sm:$0xff] }
0x1748   :  { %17821 = vmatprep.mubr.msk.f32.mxu1 %vm431_vm0, %v20200_v54  ;;  %v20234_v54 = vld [vmem:[%s26752_s10 + $0xf0] sm:$0xff] }
0x174b   :  { %17822 = vmatmul.mubr.msk.f32.gmra.mrb[164].mxu1 %vm431_vm0, %v20201_v3  ;;  %v20235_v3 = vld [vmem:[%s26752_s10 + $0xf8] sm:$0xff] }
0x174c   :  { %17824 = vmatprep.mubr.msk.f32.mxu1 %vm431_vm0, %v20202_v42  ;;  %v20236_v42 = vld [vmem:[%s26752_s10 + $0x100] sm:$0xff] }
0x174f   :  { %17825 = vmatmul.mubr.msk.f32.gmra.mrb[166].mxu1 %vm431_vm0, %v20203_v20  ;;  %v20237_v20 = vld [vmem:[%s26752_s10 + $0x108] sm:$0xff] }
0x1750   :  { %17831 = vmatprep.mubr.msk.f32.mxu1 %vm431_vm0, %v20204_v49  ;;  %v20238_v49 = vld [vmem:[%s26752_s10 + $0x110] sm:$0xff] }
0x1753   :  { %17832 = vmatmul.mubr.msk.f32.vlgmr.msra.gmra.mrb[132].mxu1 %vm431_vm0, %v20205_v53  ;;  %v20239_v53 = vld [vmem:[%s26752_s10 + $0x118] sm:$0xff] }
0x1754   :  { %18399 = vmatpush3.bf16.msk.msra.mxu1 %vm20417_vm3, %v25973_v56  ;;  %17834 = vmatprep.mubr.msk.f32.mxu1 %vm431_vm0, %v20206_v35  ;;  %v20210_v56 = vld [vmem:[%s26752_s10 + $0x30] sm:$0xff]  ;;  %v20240_v35 = vld [vmem:[%s26753_s11] sm:$0xff] }
0x1757   :  { %17835 = vmatmul.mubr.msk.f32.gmra.mrb[134].mxu1 %vm431_vm0, %v20207_v37  ;;  %v20241_v37 = vld [vmem:[%s26753_s11 + $0x8] sm:$0xff] }
0x1758   :  { %17837 = vmatprep.mubr.msk.f32.mxu1 %vm431_vm0, %v20208_v1  ;;  %v20242_v1 = vld [vmem:[%s26753_s11 + $0x10] sm:$0xff] }
0x175b   :  { %17838 = vmatmul.mubr.msk.f32.gmra.mrb[136].mxu1 %vm431_vm0, %v20209_v13  ;;  %v20243_v13 = vld [vmem:[%s26753_s11 + $0x18] sm:$0xff] }
0x175c   :  { %17840 = vmatprep.mubr.msk.f32.mxu1 %vm431_vm0, %v20210_v56  ;;  %v20244_v56 = vld [vmem:[%s26753_s11 + $0x20] sm:$0xff] }
0x175f   :  { %17841 = vmatmul.mubr.msk.f32.gmra.mrb[138].mxu1 %vm431_vm0, %v20211_v15  ;;  %v20245_v15 = vld [vmem:[%s26753_s11 + $0x28] sm:$0xff] }
0x1760   :  { %17843 = vmatprep.mubr.msk.f32.mxu1 %vm431_vm0, %v20212_v58  ;;  %v20246_v58 = vld [vmem:[%s26753_s11 + $0x30] sm:$0xff] }
0x1763   :  { %17844 = vmatmul.mubr.msk.f32.gmra.mrb[140].mxu1 %vm431_vm0, %v20213_v10  ;;  %v20247_v10 = vld [vmem:[%s26753_s11 + $0x38] sm:$0xff] }
0x1764   :  { %17846 = vmatprep.mubr.msk.f32.mxu1 %vm431_vm0, %v20214_v45  ;;  %v20248_v45 = vld [vmem:[%s26753_s11 + $0x40] sm:$0xff] }
0x1767   :  { %17847 = vmatmul.mubr.msk.f32.gmra.mrb[142].mxu1 %vm431_vm0, %v20215_v57  ;;  %v20249_v57 = vld [vmem:[%s26753_s11 + $0x48] sm:$0xff] }
0x1768   :  { %17849 = vmatprep.mubr.msk.f32.mxu1 %vm431_vm0, %v20216_v12  ;;  %v20250_v12 = vld [vmem:[%s26753_s11 + $0x50] sm:$0xff] }
0x176b   :  { %17850 = vmatmul.mubr.msk.f32.gmra.mrb[144].mxu1 %vm431_vm0, %v20217_v48  ;;  %v20251_v48 = vld [vmem:[%s26753_s11 + $0x58] sm:$0xff] }
0x176c   :  { %17852 = vmatprep.mubr.msk.f32.mxu1 %vm431_vm0, %v20218_v14  ;;  %v20252_v14 = vld [vmem:[%s26753_s11 + $0x60] sm:$0xff] }
0x176f   :  { %17853 = vmatmul.mubr.msk.f32.gmra.mrb[146].mxu1 %vm431_vm0, %v20219_v4  ;;  %v20253_v4 = vld [vmem:[%s26753_s11 + $0x68] sm:$0xff] }
0x1770   :  { %17855 = vmatprep.mubr.msk.f32.mxu1 %vm431_vm0, %v20220_v19  ;;  %v20254_v19 = vld [vmem:[%s26753_s11 + $0x70] sm:$0xff] }
0x1773   :  { %17856 = vmatmul.mubr.msk.f32.gmra.mrb[148].mxu1 %vm431_vm0, %v20221_v46  ;;  %v20255_v46 = vld [vmem:[%s26753_s11 + $0x78] sm:$0xff] }
0x1774   :  { %17858 = vmatprep.mubr.msk.f32.mxu1 %vm431_vm0, %v20222_v51  ;;  %v20256_v51 = vld [vmem:[%s26753_s11 + $0x80] sm:$0xff] }
0x1777   :  { %17859 = vmatmul.mubr.msk.f32.gmra.mrb[150].mxu1 %vm431_vm0, %v20223_v55  ;;  %v20257_v55 = vld [vmem:[%s26753_s11 + $0x88] sm:$0xff] }
0x1778   :  { %17861 = vmatprep.mubr.msk.f32.mxu1 %vm431_vm0, %v20224_v43  ;;  %v20258_v43 = vld [vmem:[%s26753_s11 + $0x90] sm:$0xff] }
0x177b   :  { %17862 = vmatmul.mubr.msk.f32.gmra.mrb[152].mxu1 %vm431_vm0, %v20225_v32  ;;  %v20259_v32 = vld [vmem:[%s26753_s11 + $0x98] sm:$0xff] }
0x177c   :  { %17864 = vmatprep.mubr.msk.f32.mxu1 %vm431_vm0, %v20226_v6  ;;  %v20260_v6 = vld [vmem:[%s26753_s11 + $0xa0] sm:$0xff] }
0x177f   :  { %17865 = vmatmul.mubr.msk.f32.gmra.mrb[154].mxu1 %vm431_vm0, %v20227_v52  ;;  %v20261_v52 = vld [vmem:[%s26753_s11 + $0xa8] sm:$0xff] }
0x1780   :  { %17867 = vmatprep.mubr.msk.f32.mxu1 %vm431_vm0, %v20228_v0  ;;  %v20262_v0 = vld [vmem:[%s26753_s11 + $0xb0] sm:$0xff] }
0x1783   :  { %17868 = vmatmul.mubr.msk.f32.gmra.mrb[156].mxu1 %vm431_vm0, %v20229_v50  ;;  %v20263_v50 = vld [vmem:[%s26753_s11 + $0xb8] sm:$0xff] }
0x1784   :  { %17870 = vmatprep.mubr.msk.f32.mxu1 %vm431_vm0, %v20230_v62  ;;  %v20264_v62 = vld [vmem:[%s26753_s11 + $0xc0] sm:$0xff] }
0x1787   :  { %17871 = vmatmul.mubr.msk.f32.gmra.mrb[158].mxu1 %vm431_vm0, %v20231_v47  ;;  %v20265_v47 = vld [vmem:[%s26753_s11 + $0xc8] sm:$0xff] }
0x1788   :  { %17873 = vmatprep.mubr.msk.f32.mxu1 %vm431_vm0, %v20232_v40  ;;  %v20266_v40 = vld [vmem:[%s26753_s11 + $0xd0] sm:$0xff] }
0x178b   :  { %17874 = vmatmul.mubr.msk.f32.gmra.mrb[160].mxu1 %vm431_vm0, %v20233_v31  ;;  %v20267_v31 = vld [vmem:[%s26753_s11 + $0xd8] sm:$0xff] }
0x178c   :  { %17876 = vmatprep.mubr.msk.f32.mxu1 %vm431_vm0, %v20234_v54  ;;  %v20268_v54 = vld [vmem:[%s26753_s11 + $0xe0] sm:$0xff] }
0x178f   :  { %17877 = vmatmul.mubr.msk.f32.gmra.mrb[162].mxu1 %vm431_vm0, %v20235_v3  ;;  %v20269_v3 = vld [vmem:[%s26753_s11 + $0xe8] sm:$0xff] }
0x1790   :  { %17879 = vmatprep.mubr.msk.f32.mxu1 %vm431_vm0, %v20236_v42  ;;  %v20270_v42 = vld [vmem:[%s26753_s11 + $0xf0] sm:$0xff] }
0x1793   :  { %17880 = vmatmul.mubr.msk.f32.gmra.mrb[164].mxu1 %vm431_vm0, %v20237_v20  ;;  %v20271_v20 = vld [vmem:[%s26753_s11 + $0xf8] sm:$0xff] }
0x1794   :  { %17882 = vmatprep.mubr.msk.f32.mxu1 %vm431_vm0, %v20238_v49  ;;  %v20272_v49 = vld [vmem:[%s26753_s11 + $0x100] sm:$0xff] }
0x1797   :  { %17883 = vmatmul.mubr.msk.f32.gmra.mrb[166].mxu1 %vm431_vm0, %v20239_v53  ;;  %v20273_v53 = vld [vmem:[%s26753_s11 + $0x108] sm:$0xff] }
0x1798   :  { %17889 = vmatprep.mubr.msk.f32.mxu1 %vm431_vm0, %v20240_v35  ;;  %v20274_v35 = vld [vmem:[%s26753_s11 + $0x110] sm:$0xff] }
0x179b   :  { %17890 = vmatmul.mubr.msk.f32.vlgmr.msra.gmra.mrb[132].mxu1 %vm431_vm0, %v20241_v37  ;;  %v20275_v37 = vld [vmem:[%s26753_s11 + $0x118] sm:$0xff] }
0x179c   :  { %17892 = vmatprep.mubr.msk.f32.mxu1 %vm431_vm0, %v20242_v1 }
0x179f   :  { %17893 = vmatmul.mubr.msk.f32.gmra.mrb[134].mxu1 %vm431_vm0, %v20243_v13 }
0x17a0   :  { %17895 = vmatprep.mubr.msk.f32.mxu1 %vm431_vm0, %v20244_v56 }
0x17a3   :  { %17896 = vmatmul.mubr.msk.f32.gmra.mrb[136].mxu1 %vm431_vm0, %v20245_v15 }
0x17a4   :  { %17898 = vmatprep.mubr.msk.f32.mxu1 %vm431_vm0, %v20246_v58 }
0x17a7   :  { %17899 = vmatmul.mubr.msk.f32.gmra.mrb[138].mxu1 %vm431_vm0, %v20247_v10 }
0x17a8   :  { %17901 = vmatprep.mubr.msk.f32.mxu1 %vm431_vm0, %v20248_v45 }
0x17ab   :  { %17902 = vmatmul.mubr.msk.f32.gmra.mrb[140].mxu1 %vm431_vm0, %v20249_v57 }
0x17ac   :  { %17904 = vmatprep.mubr.msk.f32.mxu1 %vm431_vm0, %v20250_v12 }
0x17af   :  { %17905 = vmatmul.mubr.msk.f32.gmra.mrb[142].mxu1 %vm431_vm0, %v20251_v48 }
0x17b0   :  { %17907 = vmatprep.mubr.msk.f32.mxu1 %vm431_vm0, %v20252_v14  ;;  %v27082_v14 = vld [vmem:[#allocation39_spill] sm:$0xff] }
0x17b3   :  { %17908 = vmatmul.mubr.msk.f32.gmra.mrb[144].mxu1 %vm431_vm0, %v20253_v4 }
0x17b4   :  { %17910 = vmatprep.mubr.msk.f32.mxu1 %vm431_vm0, %v20254_v19 }
0x17b7   :  { %17911 = vmatmul.mubr.msk.f32.gmra.mrb[146].mxu1 %vm431_vm0, %v20255_v46 }
0x17b8   :  { %17913 = vmatprep.mubr.msk.f32.mxu1 %vm431_vm0, %v20256_v51 }
0x17bb   :  { %17914 = vmatmul.mubr.msk.f32.gmra.mrb[148].mxu1 %vm431_vm0, %v20257_v55  ;;  %v27083_v55 = vld [vmem:[#allocation40_spill] sm:$0xff] }
0x17bc   :  { %17916 = vmatprep.mubr.msk.f32.mxu1 %vm431_vm0, %v20258_v43 }
0x17bf   :  { %17917 = vmatmul.mubr.msk.f32.gmra.mrb[150].mxu1 %vm431_vm0, %v20259_v32 }
0x17c0   :  { %17919 = vmatprep.mubr.msk.f32.mxu1 %vm431_vm0, %v20260_v6  ;;  %v27084_v6 = vld [vmem:[#allocation41_spill] sm:$0xff] }
0x17c3   :  { %17920 = vmatmul.mubr.msk.f32.gmra.mrb[152].mxu1 %vm431_vm0, %v20261_v52 }
0x17c4   :  { %17922 = vmatprep.mubr.msk.f32.mxu1 %vm431_vm0, %v20262_v0 }
0x17c7   :  { %17923 = vmatmul.mubr.msk.f32.gmra.mrb[154].mxu1 %vm431_vm0, %v20263_v50 }
0x17c8   :  { %17925 = vmatprep.mubr.msk.f32.mxu1 %vm431_vm0, %v20264_v62  ;;  %v27085_v62 = vld [vmem:[#allocation42_spill] sm:$0xff] }
0x17cb   :  { %17926 = vmatmul.mubr.msk.f32.gmra.mrb[156].mxu1 %vm431_vm0, %v20265_v47 }
0x17cc   :  { %17928 = vmatprep.mubr.msk.f32.mxu1 %vm431_vm0, %v20266_v40 }
0x17cf   :  { %17929 = vmatmul.mubr.msk.f32.gmra.mrb[158].mxu1 %vm431_vm0, %v20267_v31  ;;  %v27086_v31 = vld [vmem:[#allocation43_spill] sm:$0xff] }
0x17d0   :  { %17931 = vmatprep.mubr.msk.f32.mxu1 %vm431_vm0, %v20268_v54 }
0x17d3   :  { %17932 = vmatmul.mubr.msk.f32.gmra.mrb[160].mxu1 %vm431_vm0, %v20269_v3 }
0x17d4   :  { %17934 = vmatprep.mubr.msk.f32.mxu1 %vm431_vm0, %v20270_v42 }
0x17d7   :  { %17935 = vmatmul.mubr.msk.f32.gmra.mrb[162].mxu1 %vm431_vm0, %v20271_v20 }
0x17d8   :  { %17937 = vmatprep.mubr.msk.f32.mxu1 %vm431_vm0, %v20272_v49  ;;  %v27087_v49 = vld [vmem:[#allocation44_spill] sm:$0xff] }
0x17db   :  { %17938 = vmatmul.mubr.msk.f32.gmra.mrb[164].mxu1 %vm431_vm0, %v20273_v53 }
0x17dc   :  { %17940 = vmatprep.mubr.msk.f32.mxu1 %vm431_vm0, %v20274_v35 }
0x17df   :  { %17941 = vmatmul.mubr.msk.f32.gmra.mrb[166].mxu1 %vm431_vm0, %v20275_v37 }
0x186e   :  { %v17891_v1 = vpop.f32.mrb[132].mxu1 }
0x186f   :  { %v12730_v13 = vadd.f32 %v17891_v1, %v26972_v22  ;;  %v12514_v56 = vpop.f32.mrb[133].mxu1  ;;  %v27088_v1 = vld [vmem:[#allocation45_spill] sm:$0xff] }
0x1870   :  { %v12729_v15 = vadd.f32 %v12514_v56, %v27028_v17 }
0x1871   :  { %v12766_v58 = vmax.f32 %v12730_v13, 0.0 }
0x1872   :  { %v12765_v10 = vmax.f32 %v12729_v15, 0.0  ;;  %v17894_v45 = vpop.f32.mrb[134].mxu1 }
0x1873   :  { %v12732_v57 = vadd.f32 %v17894_v45, %v27029_v60  ;;  %v12524_v12 = vpop.f32.mrb[135].mxu1 }
0x1874   :  { %v26609_v48 = vpack.c.bf16 %v12766_v58, %v12765_v10  ;;  %v12731_v4 = vadd.f32 %v12524_v12, %v27082_v14  ;;  %v27089_v10 = vld [vmem:[#allocation47_spill] sm:$0xff]  ;;  %v27090_v14 = vld [vmem:[#allocation48_spill] sm:$0xff] }
0x1875   :  { %v12768_v19 = vmax.f32 %v12732_v57, 0.0 }
0x1876   :  { %v12767_v46 = vmax.f32 %v12731_v4, 0.0  ;;  %v17897_v51 = vpop.f32.mrb[136].mxu1 }
0x1877   :  { %v12734_v43 = vadd.f32 %v17897_v51, %v27083_v55  ;;  %v12534_v32 = vpop.f32.mrb[137].mxu1  ;;  %v27091_v55 = vld [vmem:[#allocation51_spill] sm:$0xff] }
0x1878   :  { %v26613_v22 = vpack.c.bf16 %v12768_v19, %v12767_v46  ;;  %v12733_v17 = vadd.f32 %v12534_v32, %v27084_v6 }
0x1879   :  { %v12770_v52 = vmax.f32 %v12734_v43, 0.0 }
0x187a   :  { %v12769_v0 = vmax.f32 %v12733_v17, 0.0  ;;  %v17900_v50 = vpop.f32.mrb[138].mxu1 }
0x187b   :  { %v12736_v60 = vadd.f32 %v17900_v50, %v27085_v62  ;;  %v12544_v47 = vpop.f32.mrb[139].mxu1  ;;  %v27092_v62 = vld [vmem:[#allocation55_spill] sm:$0xff] }
0x187c   :  { %v26617_v40 = vpack.c.bf16 %v12770_v52, %v12769_v0  ;;  %v12735_v54 = vadd.f32 %v12544_v47, %v27086_v31 }
0x187d   :  { %v12772_v3 = vmax.f32 %v12736_v60, 0.0 }
0x187e   :  { %v12771_v42 = vmax.f32 %v12735_v54, 0.0  ;;  %v17903_v20 = vpop.f32.mrb[140].mxu1 }
0x187f   :  { %v12738_v53 = vadd.f32 %v17903_v20, %v27087_v49  ;;  %v12554_v35 = vpop.f32.mrb[141].mxu1  ;;  %v27093_v49 = vld [vmem:[#allocation35_spill] sm:$0xff] }
0x1880   :  { %v26621_v37 = vpack.c.bf16 %v12772_v3, %v12771_v42  ;;  %v12737_v13 = vadd.f32 %v12554_v35, %v27088_v1 }
0x1881   :  { %v12774_v56 = vmax.f32 %v12738_v53, 0.0 }
0x1882   :  { %v12773_v15 = vmax.f32 %v12737_v13, 0.0  ;;  %v17906_v58 = vpop.f32.mrb[142].mxu1 }
0x1883   :  { %v12740_v45 = vadd.f32 %v17906_v58, %v27089_v10  ;;  %v12564_v57 = vpop.f32.mrb[143].mxu1 }
0x1884   :  { %v26625_v12 = vpack.c.bf16 %v12774_v56, %v12773_v15  ;;  %v12739_v4 = vadd.f32 %v12564_v57, %v27090_v14 }
0x1885   :  { %v12776_v19 = vmax.f32 %v12740_v45, 0.0 }
0x1886   :  { %v12775_v46 = vmax.f32 %v12739_v4, 0.0  ;;  %v17909_v51 = vpop.f32.mrb[144].mxu1 }
0x1887   :  { %v12742_v43 = vadd.f32 %v17909_v51, %v27091_v55  ;;  %v12574_v32 = vpop.f32.mrb[145].mxu1 }
0x1888   :  { %v26629_v6 = vpack.c.bf16 %v12776_v19, %v12775_v46  ;;  %v12741_v17 = vadd.f32 %v12574_v32, %v26985_v36 }
0x1889   :  { %v12778_v52 = vmax.f32 %v12742_v43, 0.0 }
0x188a   :  { %v12777_v0 = vmax.f32 %v12741_v17, 0.0  ;;  %v17912_v50 = vpop.f32.mrb[146].mxu1 }
0x188b   :  { %v12744_v60 = vadd.f32 %v17912_v50, %v27092_v62  ;;  %v12584_v47 = vpop.f32.mrb[147].mxu1 }
0x188c   :  { %v26633_v31 = vpack.c.bf16 %v12778_v52, %v12777_v0  ;;  %v12743_v54 = vadd.f32 %v12584_v47, %v22079_v59 }
0x188d   :  { %v12780_v3 = vmax.f32 %v12744_v60, 0.0 }
0x188e   :  { %v12779_v42 = vmax.f32 %v12743_v54, 0.0  ;;  %v17915_v20 = vpop.f32.mrb[148].mxu1 }
0x188f   :  { %v12746_v53 = vadd.f32 %v17915_v20, %v27093_v49  ;;  %v12594_v35 = vpop.f32.mrb[149].mxu1 }
0x1890   :  { %v26637_v1 = vpack.c.bf16 %v12780_v3, %v12779_v42  ;;  %v12745_v36 = vadd.f32 %v12594_v35, %v21987_v21  ;;  %v27094_v42 = vld [vmem:[#allocation46_spill] sm:$0xff] }
0x1891   :  { %v12782_v13 = vmax.f32 %v12746_v53, 0.0 }
0x1892   :  { %v12781_v56 = vmax.f32 %v12745_v36, 0.0  ;;  %v17918_v15 = vpop.f32.mrb[150].mxu1 }
0x1893   :  { %v12748_v58 = vadd.f32 %v17918_v15, %v21999_v25  ;;  %v12604_v10 = vpop.f32.mrb[151].mxu1 }
0x1894   :  { %v18400_v45 = vpack.c.bf16 %v12782_v13, %v12781_v56  ;;  %v12747_v57 = vadd.f32 %v12604_v10, %v22001_v30  ;;  %v27096_v13 = vld [vmem:[#allocation50_spill] sm:$0xff] }
0x1895   :  { %v12784_v59 = vmax.f32 %v12748_v58, 0.0 }
0x1896   :  { %v12783_v14 = vmax.f32 %v12747_v57, 0.0  ;;  %v17921_v4 = vpop.f32.mrb[152].mxu1  ;;  %18401 = vmatprep.subr.bf16.mxu0 %v18400_v45 }
0x1897   :  { %v12750_v19 = vadd.f32 %v17921_v4, %v22007_v33  ;;  %v12614_v46 = vpop.f32.mrb[153].mxu1  ;;  %18403 = vmatpush3.bf16.msra.mxu0 %v26609_v48 }
0x1898   :  { %v18404_v51 = vpack.c.bf16 %v12784_v59, %v12783_v14  ;;  %v12749_v21 = vadd.f32 %v12614_v46, %v22009_v26  ;;  %v27098_v59 = vld [vmem:[#allocation54_spill] sm:$0xff] }
0x1899   :  { %v12786_v55 = vmax.f32 %v12750_v19, 0.0 }
0x189a   :  { %v12785_v43 = vmax.f32 %v12749_v21, 0.0  ;;  %v17924_v32 = vpop.f32.mrb[154].mxu1  ;;  %18405 = vmatprep.subr.bf16.mxu0 %v18404_v51 }
0x189b   :  { %v12752_v25 = vadd.f32 %v17924_v32, %v22015_v61  ;;  %v12624_v17 = vpop.f32.mrb[155].mxu1  ;;  %18407 = vmatpush3.bf16.msra.mxu0 %v26613_v22 }
0x189c   :  { %v18408_v30 = vpack.c.bf16 %v12786_v55, %v12785_v43  ;;  %v12751_v52 = vadd.f32 %v12624_v17, %v22017_v34  ;;  %v27100_v43 = vld [vmem:[#allocation57_spill] sm:$0xff] }
0x189d   :  { %v12788_v0 = vmax.f32 %v12752_v25, 0.0 }
0x189e   :  { %v12787_v33 = vmax.f32 %v12751_v52, 0.0  ;;  %v17927_v50 = vpop.f32.mrb[156].mxu1  ;;  %18409 = vmatprep.subr.bf16.mxu0 %v18408_v30 }
0x189f   :  { %v12754_v48 = vadd.f32 %v17927_v50, %v22023_v8  ;;  %v12634_v62 = vpop.f32.mrb[157].mxu1  ;;  %18411 = vmatpush3.bf16.msra.mxu0 %v26617_v40  ;;  %v27095_v40 = vld [vmem:[#allocation49_spill] sm:$0xff]  ;;  %v27102_v50 = vld [vmem:[#allocation59_spill] sm:$0xff] }
0x18a0   :  { %v18412_v26 = vpack.c.bf16 %v12788_v0, %v12787_v33  ;;  %v12753_v60 = vadd.f32 %v12634_v62, %v22025_v7 }
0x18a1   :  { %v12790_v47 = vmax.f32 %v12754_v48, 0.0 }
0x18a2   :  { %v12789_v61 = vmax.f32 %v12753_v60, 0.0  ;;  %v17930_v54 = vpop.f32.mrb[158].mxu1  ;;  %18413 = vmatprep.subr.bf16.mxu0 %v18412_v26  ;;  %v20277_v60 = vld [vmem:[%s26754_s13 + $0x20] sm:$0x1] }
0x18a3   :  { %v12756_v22 = vadd.f32 %v17930_v54, %v22031_v18  ;;  %v12644_v3 = vpop.f32.mrb[159].mxu1  ;;  %18415 = vmatpush3.bf16.msra.mxu0 %v26621_v37  ;;  %v27097_v37 = vld [vmem:[#allocation53_spill] sm:$0xff]  ;;  %v20280_v54 = vld [vmem:[%s26754_s13 + $0x28] sm:$0x1] }
0x18a4   :  { %v18416_v34 = vpack.c.bf16 %v12790_v47, %v12789_v61  ;;  %v12755_v20 = vadd.f32 %v12644_v3, %v27094_v42  ;;  %v20279_v61 = vld [vmem:[%s26754_s13 + $0x10] sm:$0xff] }
0x18a5   :  { %v12792_v49 = vmax.f32 %v12756_v22, 0.0 }
0x18a6   :  { %v12791_v8 = vmax.f32 %v12755_v20, 0.0  ;;  %v17933_v53 = vpop.f32.mrb[160].mxu1  ;;  %18417 = vmatprep.subr.bf16.mxu0 %v18416_v34 }
0x18a7   :  { %v12758_v35 = vadd.f32 %v17933_v53, %v27095_v40  ;;  %v12654_v36 = vpop.f32.mrb[161].mxu1  ;;  %18419 = vmatpush3.bf16.msra.mxu0 %v26625_v12  ;;  %v27099_v12 = vld [vmem:[#allocation56_spill] sm:$0xff]  ;;  %v26689_v53 = vadd.f32 %v25968_v27, %v25212_v23 }
0x18a8   :  { %v18420_v7 = vpack.c.bf16 %v12792_v49, %v12791_v8  ;;  %v12757_v56 = vadd.f32 %v12654_v36, %v27096_v13  ;;  %v26685_v8 = vadd.f32 %v25971_v9, %v25215_v5  ;;  %v27103_v40 = vld [vmem:[#allocation60_spill] sm:$0xff] }
0x18a9   :  { %v12794_v15 = vmax.f32 %v12758_v35, 0.0  ;;  %v12955_v27 = vsub.f32 1.0, %v26689_v53 }
0x18aa   :  { %v12793_v18 = vmax.f32 %v12757_v56, 0.0  ;;  %v17936_v58 = vpop.f32.mrb[162].mxu1  ;;  %18421 = vmatprep.subr.bf16.mxu0 %v18420_v7  ;;  %v27104_v7 = vld [vmem:[#allocation61_spill] sm:$0xff] }
0x18ab   :  { %v12760_v10 = vadd.f32 %v17936_v58, %v27097_v37  ;;  %v12664_v45 = vpop.f32.mrb[163].mxu1  ;;  %18423 = vmatpush3.bf16.msra.mxu0 %v26629_v6  ;;  %v27101_v6 = vld [vmem:[#allocation58_spill] sm:$0xff]  ;;  %v14289_v56 = vld [vmem:[%s26750_s0 + $0x78] sm:$0x1]  ;;  %v12956_v37 = vsub.f32 1.0, %v26685_v8 }
0x18ac   :  { %v18424_v57 = vpack.c.bf16 %v12794_v15, %v12793_v18  ;;  %v12759_v14 = vadd.f32 %v12664_v45, %v27098_v59  ;;  %v14288_v15 = vld [vmem:[%s26750_s0 + $0x70] sm:$0xff] }
0x18ad   :  { %v12796_v4 = vmax.f32 %v12760_v10, 0.0 }
0x18ae   :  { %v12795_v19 = vmax.f32 %v12759_v14, 0.0  ;;  %v17939_v46 = vpop.f32.mrb[164].mxu1  ;;  %18425 = vmatprep.subr.bf16.mxu0 %v18424_v57 }
0x18af   :  { %v12762_v51 = vadd.f32 %v17939_v46, %v27099_v12  ;;  %v12674_v21 = vpop.f32.mrb[165].mxu1  ;;  %18427 = vmatpush3.bf16.msra.mxu0 %v26633_v31  ;;  %v20276_v31 = vld [vmem:[%s26754_s13] sm:$0xff] }
0x18b0   :  { %v18428_v55 = vpack.c.bf16 %v12796_v4, %v12795_v19  ;;  %v12761_v32 = vadd.f32 %v12674_v21, %v27100_v43 }
0x18b1   :  { %v12798_v25 = vmax.f32 %v12762_v51, 0.0 }
0x18b2   :  { %v12797_v17 = vmax.f32 %v12761_v32, 0.0  ;;  %v17942_v30 = vpop.f32.mrb[166].mxu1  ;;  %18429 = vmatprep.subr.bf16.mxu0 %v18428_v55 }
0x18b3   :  { %v12764_v52 = vadd.f32 %v17942_v30, %v27101_v6  ;;  %v12684_v0 = vpop.f32.mrb[167].mxu1  ;;  %18431 = vmatpush3.bf16.msra.mxu0 %v26637_v1  ;;  %v20278_v1 = vld [vmem:[%s26754_s13 + $0x18] sm:$0x1] }
0x18b4   :  { %v18432_v33 = vpack.c.bf16 %v12798_v25, %v12797_v17  ;;  %v12763_v48 = vadd.f32 %v12684_v0, %v27102_v50 }
0x18b5   :  { %v12800_v62 = vmax.f32 %v12764_v52, 0.0 }
0x18b6   :  { %v12799_v26 = vmax.f32 %v12763_v48, 0.0  ;;  %12866 = vmatmul.mubr.f32.vlgmr.msra.gmra.mrb[162].mxu0 %v20276_v31  ;;  %18433 = vmatprep.subr.bf16.mxu0 %v18432_v33 }
0x18b7   :  { %18435 = vmatpush3.bf16.msra.mxu0 %v18432_v33  ;;  %12870 = vmatprep.mubr.f32.mxu0 %v20277_v60 }
0x18b8   :  { %v18436_v47 = vpack.c.bf16 %v12800_v62, %v12799_v26 }
0x18ba   :  { %12871 = vmatmul.mubr.f32.gmra.mrb[164].mxu0 %v20278_v1  ;;  %18437 = vmatprep.subr.bf16.mxu0 %v18436_v47 }
0x18bb   :  { %18439 = vmatpush3.bf16.msra.mxu0 %v18436_v47  ;;  %17951 = vmatprep.mubr.msk.f32.mxu0 %vm2185_vm4, %v20279_v61 }
0x18be   :  { %17952 = vmatmul.mubr.msk.f32.vlgmr.msra.gmra.mrb[166].mxu0 %vm2185_vm4, %v20280_v54 }
0x1989   :  { %v16006_v22 = vpop.f32.mrb[162].mxu0 }
0x198a   :  { %v16007_v3 = vpop.f32.mrb[163].mxu0 }
0x198b   :  { %v16008_v34 = vadd.f32 %v16007_v3, %v16006_v22 }
0x198d   :  { %v16009_v42 = vpop.f32.mrb[164].mxu0  ;;  %v12868_v13 = vadd.f32 %v16008_v34, %v27104_v7 }
0x198e   :  { %v16010_v20 = vpop.f32.mrb[165].mxu0 }
0x198f   :  { %v16011_v49 = vadd.f32 %v16010_v20, %v16009_v42 }
0x1991   :  { %v12873_v35 = vadd.f32 %v16011_v49, %v27103_v40  ;;  %v17953_v36 = vpop.f32.mrb[166].mxu0 }
0x1992   :  { %v12942_v18 = vpop.f32.mrb[167].mxu0 }
0x1993   :  { %v12948_v9 = vadd.f32 %v17953_v36, %v12873_v35  ;;  %v12943_v58 = vadd.f32 %v12942_v18, %v12868_v13 }
0x1995   :  { %v12954_v10 = vmul.f32 %v12948_v9, %v12948_v9  ;;  %v12968_v45 = vadd.f32 %v14289_v56, %v12948_v9  ;;  %v12953_v57 = vmul.f32 %v12943_v58, %v12943_v58  ;;  %v12967_v59 = vadd.f32 %v14288_v15, %v12943_v58 }
0x1997   :  { %v12958_v14 = vmul.f32 %v12956_v37, %v12954_v10  ;;  %v12969_v4 = vsel %vm540_vm1, %v12968_v45, -inf  ;;  %v12957_v19 = vmul.f32 %v12955_v27, %v12953_v57 }
0x1998   :  { %v12970_v46 = vmax.f32 %v12967_v59, %v12969_v4 }
0x1999   :  { %v12959_v12 = vsel %vm540_vm1, %v12958_v14, 0.0 }
0x199a   :  { %v12960_v51 = vadd.f32 %v12959_v12, %v12957_v19  ;;  %v12971_v21 = vrot.slane %v12970_v46, 4 }
0x199c   :  { %v12961_v55 = vrot.slane %v12960_v51, 4  ;;  %v12972_v43 = vmax.f32 %v12970_v46, %v12971_v21  ;;  %v11661_v46 = vmax.f32 %v25198_v29, %v26055_v28 }
0x199e   :  { %v12962_v32 = vadd.f32 %v12961_v55, %v12960_v51  ;;  %v12973_v25 = vrot.slane %v12972_v43, 2  ;;  %v13028_v55 = vadd.f32 %v11661_v46, %v25954_v38 }
0x19a0   :  { %v12963_v17 = vrot.slane %v12962_v32, 2  ;;  %v12974_v30 = vmax.f32 %v12972_v43, %v12973_v25 }
0x19a2   :  { %v12964_v6 = vadd.f32 %v12963_v17, %v12962_v32  ;;  %v12975_v52 = vrot.slane %v12974_v30, 1  ;;  %v13029_v32 = vsub.f32 1.0, %v13028_v55 }
0x19a4   :  { %v12965_v0 = vrot.slane %v12964_v6, 1  ;;  %v12976_v33 = vmax.f32 %v12974_v30, %v12975_v52 }
0x19a6   :  { %v12966_v50 = vadd.f32 %v12965_v0, %v12964_v6  ;;  %v12977_v48 = vsub.f32 %v12967_v59, %v12976_v33  ;;  %v12978_v62 = vsub.f32 %v12968_v45, %v12976_v33  ;;  %v13033_v0 = vrot.slane %v13029_v32, %v22185_v16 }
0x19a8   :  { %v12979_v26 = vmul.f32 1.442695, %v12977_v48  ;;  %v12981_v31 = vmul.f32 1.442695, %v12978_v62  ;;  %v13090_v60 = vmul.f32 0.0025, %v12966_v50 }
0x19aa   :  { %19364 = vpow2.f32 %v12979_v26  ;;  %v26708_v47 = vadd.f32 %v13090_v60, %v25178_v2 }
0x19ab   :  { %19366 = vpow2.f32 %v12981_v31 }
0x19b4   :  { %v19365_v1 = vpop.eup %19364 }
0x19b5   :  { %v19367_v61 = vpop.eup %19366 }
0x19b6   :  { %v12983_v54 = vsel %vm540_vm1, %v19367_v61, 0.0 }
0x19b7   :  { %v12984_v22 = vadd.f32 %v19365_v1, %v12983_v54 }
0x19b9   :  { %v12985_v3 = vrot.slane %v12984_v22, 4 }
0x19bb   :  { %v12986_v34 = vadd.f32 %v12985_v3, %v12984_v22 }
0x19bd   :  { %v12987_v42 = vrot.slane %v12986_v34, 2 }
0x19bf   :  { %v12988_v20 = vadd.f32 %v12987_v42, %v12986_v34 }
0x19c1   :  { %v12989_v49 = vrot.slane %v12988_v20, 1 }
0x19c3   :  { %v12990_v40 = vadd.f32 %v12989_v49, %v12988_v20 }
0x19c5   :  { %19368 = vrcp.f32 %v12990_v40 }
0x19cf   :  { %v19369_v35 = vpop.eup %19368 }
0x19d0   :  { %v12992_v36 = vmul.f32 %v19369_v35, %v19365_v1  ;;  %v12993_v7 = vmul.f32 %v19369_v35, %v19367_v61 }
0x19d2   :  { %v12994_v13 = vsel %vm540_vm1, %v12993_v7, -inf }
0x19d3   :  { %v12995_v2 = vmax.f32 %v12992_v36, %v12994_v13 }
0x19d5   :  { %v12996_v56 = vrot.slane %v12995_v2, 4 }
0x19d7   :  { %v12997_v15 = vmax.f32 %v12995_v2, %v12996_v56 }
0x19d9   :  { %v12998_v18 = vrot.slane %v12997_v15, 2 }
0x19db   :  { %v12999_v9 = vmax.f32 %v12997_v15, %v12998_v18 }
0x19dd   :  { %v13000_v58 = vrot.slane %v12999_v9, 1 }
0x19df   :  { %v13001_v10 = vmax.f32 %v12999_v9, %v13000_v58 }
0x19e1   :  { %vm13002_vm0 = vcmp.eq.f32.partialorder %v12992_v36, %v13001_v10  ;;  %vm13003_vm3 = vcmp.eq.f32.partialorder %v12993_v7, %v13001_v10 }
0x19e2   :  { %v13004_v45 = vsel %vm13002_vm0, %v21360_v63, 9  ;;  %v13005_v57 = vsel %vm13003_vm3, %v21363_v11, 9 }
0x19e3   :  { %v13006_v59 = vsel %vm540_vm1, %v13005_v57, 2147483647 }
0x19e4   :  { %vm13007_vm4 = vcmp.lt.s32.totalorder %v13004_v45, %v13006_v59 }
0x19e5   :  { %v13008_v14 = vsel %vm13007_vm4, %v13004_v45, %v13006_v59 }
0x19e6   :  { %v13009_v4 = vrot.slane %v13008_v14, 4 }
0x19e8   :  { %vm13010_vm13 = vcmp.lt.s32.totalorder %v13008_v14, %v13009_v4 }
0x19e9   :  { %v13011_v19 = vsel %vm13010_vm13, %v13008_v14, %v13009_v4 }
0x19ea   :  { %v13012_v12 = vrot.slane %v13011_v19, 2 }
0x19ec   :  { %vm13013_vm14 = vcmp.lt.s32.totalorder %v13011_v19, %v13012_v12 }
0x19ed   :  { %v13014_v51 = vsel %vm13013_vm14, %v13011_v19, %v13012_v12 }
0x19ee   :  { %v13015_v21 = vrot.slane %v13014_v51, 1 }
0x19f0   :  { %vm13016_vm15 = vcmp.lt.s32.totalorder %v13014_v51, %v13015_v21 }
0x19f1   :  { %v13017_v43 = vsel %vm13016_vm15, %v13014_v51, %v13015_v21 }
0x19f2   :  { %vm13018_vm2 = vcmp.eq.s32.totalorder %v21360_v63, %v13017_v43  ;;  %vm13019_vm1 = vcmp.eq.s32.totalorder %v21363_v11, %v13017_v43 }
0x19f3   :  { %v14440_v25 = vsel %vm13018_vm2, 1.0, %v26944_v24  ;;  %v14441_v17 = vsel %vm13019_vm1, 1.0, %v26944_v24 }
0x19f4   :  { %v13024_v30 = vsub.f32 %v14440_v25, %v12992_v36  ;;  %v13025_v6 = vsub.f32 %v14441_v17, %v12993_v7 }
0x19f6   :  { %v13026_v29 = vadd.f32 %v13024_v30, %v12992_v36  ;;  %v13027_v52 = vadd.f32 %v13025_v6, %v12993_v7 }
0x19f8   :  { %v13034_v33 = vmul.f32 %v13033_v0, %v13026_v29  ;;  %v13035_v50 = vmul.f32 %v13033_v0, %v13027_v52 }
0x19fa   :  { %v13036_v38 = vmul.f32 %v13034_v33, %v12955_v27  ;;  %v13037_v63 = vmul.f32 %v13035_v50, %v12956_v37 }
0x19fc   :  { %v13038_v11 = vadd.f32 %v13036_v38, %v25212_v23  ;;  %v13039_v48 = vadd.f32 %v13037_v63, %v25215_v5 }
0x19fe   :  { %v13041_v62 = vrot.slane %v13038_v11, 1  ;;  %v13044_v24 = vrot.slane %v13038_v11, 2  ;;  %v13059_v26 = vrot.slane %v13038_v11, 3  ;;  %v13052_v31 = vrot.slane %v13039_v48, 2 }
0x19ff   :  { %v13077_v60 = vrot.slane %v13038_v11, 4  ;;  %v13070_v16 = vrot.slane %v13039_v48, 6  ;;  %v13062_v22 = vrot.slane %v13038_v11, 6 }
0x1a00   :  { %v13043_v1 = vmul.f32 %v13041_v62, %v13038_v11  ;;  %v13061_v61 = vmul.f32 %v13059_v26, %v13038_v11  ;;  %v13151_v54 = vadd.f32 %v13041_v62, %v13038_v11  ;;  %v13170_v53 = vadd.f32 %v13059_v26, %v13038_v11 }
0x1a01   :  { %v13079_v3 = vmul.f32 %v13077_v60, %v13038_v11  ;;  %v13190_v27 = vadd.f32 %v13077_v60, %v13038_v11  ;;  %v13197_v42 = vadd.f32 %v13044_v24, %v13038_v11  ;;  %v13082_v57 = vmul.f32 %v13044_v24, %v13038_v11 }
0x1a02   :  { %v13046_v34 = vmul.f32 %v13044_v24, %v13043_v1  ;;  %v13054_v8 = vmul.f32 %v13052_v31, %v13043_v1  ;;  %v13072_v37 = vmul.f32 %v13070_v16, %v13061_v61  ;;  %v13152_v20 = vadd.f32 %v13151_v54, %v13044_v24 }
0x1a03   :  { %v13080_v23 = vmul.f32 %v13079_v3, %v13039_v48  ;;  %v13161_v5 = vadd.f32 %v13151_v54, %v13052_v31  ;;  %v13064_v40 = vmul.f32 %v13062_v22, %v13061_v61  ;;  %v13171_v13 = vadd.f32 %v13170_v53, %v13062_v22 }
0x1a04   :  { %v13048_v49 = vrot.slane %v13046_v34, 3  ;;  %v13056_v35 = vrot.slane %v13054_v8, 6  ;;  %v14448_v36 = vadd.f32 -3.0, %v13152_v20  ;;  %v13181_v56 = vadd.f32 %v13170_v53, %v13070_v16 }
0x1a05   :  { %v14449_v7 = vadd.f32 -3.0, %v13161_v5  ;;  %v13191_v15 = vadd.f32 %v13190_v27, %v13039_v48  ;;  %v13198_v18 = vadd.f32 %v13197_v42, %v13077_v60  ;;  %v14450_v10 = vadd.f32 -3.0, %v13171_v13 }
0x1a06   :  { %v13050_v2 = vadd.f32 %v13048_v49, %v13046_v34  ;;  %v13154_v9 = vmul.f32 2.0, %v14448_v36  ;;  %v14451_v59 = vadd.f32 -3.0, %v13181_v56  ;;  %v13067_v51 = vrot.slane %v13064_v40, 1 }
0x1a07   :  { %v13163_v58 = vmul.f32 2.0, %v14449_v7  ;;  %v13173_v19 = vmul.f32 2.0, %v14450_v10  ;;  %v14453_v46 = vadd.f32 -3.0, %v13198_v18  ;;  %v14452_v43 = vadd.f32 -3.0, %v13191_v15 }
0x1a08   :  { %v13058_v45 = vadd.f32 %v13056_v35, %v13050_v2  ;;  %v13155_v14 = vmul.f32 1.442695, %v13154_v9  ;;  %v13183_v21 = vmul.f32 2.0, %v14451_v59  ;;  %v13074_v25 = vrot.slane %v13072_v37, 2 }
0x1a09   :  { %v13164_v4 = vmul.f32 1.442695, %v13163_v58  ;;  %v13174_v55 = vmul.f32 1.442695, %v13173_v19  ;;  %v13083_v17 = vmul.f32 %v13082_v57, %v13077_v60  ;;  %v13200_v6 = vmul.f32 2.0, %v14453_v46 }
0x1a0a   :  { %v13065_v12 = vadd.f32 %v13064_v40, %v13058_v45  ;;  %19370 = vpow2.f32 %v13155_v14  ;;  %v13184_v30 = vmul.f32 1.442695, %v13183_v21  ;;  %v13193_v52 = vmul.f32 2.0, %v14452_v43 }
0x1a0b   :  { %19372 = vpow2.f32 %v13164_v4  ;;  %v13085_v33 = vrot.slane %v13083_v17, 2  ;;  %v13201_v50 = vmul.f32 1.442695, %v13200_v6  ;;  %v13208_v42 = vmul.f32 5.0, %v26055_v28 }
0x1a0c   :  { %v13069_v32 = vadd.f32 %v13067_v51, %v13065_v12  ;;  %19374 = vpow2.f32 %v13174_v55  ;;  %v13194_v63 = vmul.f32 1.442695, %v13193_v52 }
0x1a0d   :  { %19376 = vpow2.f32 %v13184_v30 }
0x1a0e   :  { %v13076_v29 = vadd.f32 %v13074_v25, %v13069_v32  ;;  %19378 = vpow2.f32 %v13201_v50 }
0x1a0f   :  { %19380 = vpow2.f32 %v13194_v63 }
0x1a10   :  { %v13081_v0 = vadd.f32 %v13080_v23, %v13076_v29 }
0x1a12   :  { %v13087_v38 = vadd.f32 %v13085_v33, %v13081_v0 }
0x1a14   :  { %v13149_v11 = vmul.f32 5.0, %v13087_v38  ;;  %v19371_v48 = vpop.eup %19370 }
0x1a15   :  { %v19373_v62 = vpop.eup %19372  ;;  %v13158_v26 = vrot.slane %v19371_v48, 3 }
0x1a16   :  { %v13150_v24 = vadd.f32 %v13149_v11, %v13148_v44  ;;  %v13167_v60 = vrot.slane %v19373_v62, 6  ;;  %v19375_v1 = vpop.eup %19374 }
0x1a17   :  { %v13160_v31 = vadd.f32 %v19371_v48, %v13158_v26  ;;  %v19377_v16 = vpop.eup %19376  ;;  %v13178_v22 = vrot.slane %v19375_v1, 1 }
0x1a18   :  { %13210 = vst [vmem:[%s26755_s15] sm:$0x1] %v13150_v24  ;;  %v13187_v53 = vrot.slane %v19377_v16, 2  ;;  %v19379_v27 = vpop.eup %19378 }
0x1a19   :  { %v13169_v61 = vadd.f32 %v13167_v60, %v13160_v31  ;;  %v19381_v8 = vpop.eup %19380  ;;  %v13204_v41 = vrot.slane %v19379_v27, 2 }
0x1a1b   :  { %v13176_v54 = vadd.f32 %v19375_v1, %v13169_v61 }
0x1a1d   :  { %v13180_v3 = vadd.f32 %v13178_v22, %v13176_v54 }
0x1a1f   :  { %v13189_v34 = vadd.f32 %v13187_v53, %v13180_v3 }
0x1a21   :  { %v13196_v39 = vadd.f32 %v19381_v8, %v13189_v34 }
0x1a23   :  { %v13206_v44 = vadd.f32 %v13204_v41, %v13196_v39 }
0x1a25   :  { %v13207_v37 = vsub.f32 %v26708_v47, %v13206_v44 }
0x1a27   :  { %v13209_v23 = vadd.f32 %v13208_v42, %v13207_v37 }
0x1a29   :  { %13211 = vst [vmem:[%s26755_s15 + $0x1] sm:$0x1] %v13209_v23 }

</bundles_post_ra>
